<compile_context>
chip_gen: v7x
topology: tpu7x:2x2x1
jax: 0.10.0
libtpu: 0.0.40
codegen_flags: <defaults>
</compile_context>

<pallas_src>
import functools

import jax
import jax.numpy as jnp
from jax.experimental import pallas as pl
from jax.experimental.pallas import tpu as pltpu


# ---------------------------------------------------------------------------
# Fused decoder-layer kernel (one (batch-tile) grid step per invocation)
# ---------------------------------------------------------------------------
def _layer_norm(x, g, b, eps):
    mean = jnp.mean(x, axis=-1, keepdims=True)
    xc = x - mean
    var = jnp.mean(xc * xc, axis=-1, keepdims=True)
    return xc * jax.lax.rsqrt(var + eps) * g + b


def _decoder_kernel(q_ref, k_ref,
                    pw_ref, pb_ref, n1g_ref, n1b_ref,
                    wq_ref, bq_ref, wkv_ref, bkv_ref, wo_ref, bo_ref,
                    n2g_ref, n2b_ref,
                    l1w_ref, l1b_ref, l2w_ref, l2b_ref,
                    n3g_ref, n3b_ref,
                    o_ref, *, block_b, lq, lk, nhead, eps):
    d_model = o_ref.shape[-1]
    head_dim = d_model // nhead

    # ---- input projection (zero-pad contraction 300 -> 384 in VMEM) -------
    x_in = q_ref[...]                                        # (Bt*Lq, Pin) bf16
    pad_cols = pw_ref.shape[0] - x_in.shape[-1]
    if pad_cols:
        x_in = jnp.concatenate(
            [x_in, jnp.zeros((x_in.shape[0], pad_cols), x_in.dtype)], axis=-1)
    x = jnp.dot(x_in, pw_ref[...],
                preferred_element_type=jnp.float32) + pb_ref[...]
    q_n = _layer_norm(x, n1g_ref[...], n1b_ref[...], eps)    # (Bt*Lq, D) f32
    q_bf = q_n.astype(jnp.bfloat16)

    # ---- Q projection and fused K/V projection (value source == key) ------
    k_in = k_ref[...]                                        # (Bt*Lk, D) bf16
    Q = (jnp.dot(q_bf, wq_ref[...], preferred_element_type=jnp.float32)
         + bq_ref[...]).astype(jnp.bfloat16)                 # (Bt*Lq, D)
    KV = (jnp.dot(k_in, wkv_ref[...], preferred_element_type=jnp.float32)
          + bkv_ref[...])                                    # (Bt*Lk, 2D)
    K = KV[:, :d_model].astype(jnp.bfloat16)
    V = KV[:, d_model:].astype(jnp.bfloat16)

    # ---- attention: per-batch row slices, per-head lane-aligned columns ---
    # Tiny matmuls; free filler under the MXU-bound dense matmuls above.
    scale = 1.0 / float(head_dim) ** 0.5
    batch_outs = []
    for b in range(block_b):
        qrows = slice(b * lq, (b + 1) * lq)
        krows = slice(b * lk, (b + 1) * lk)
        head_outs = []
        for h in range(nhead):
            cols = slice(h * head_dim, (h + 1) * head_dim)
            qh = Q[qrows, cols]
            kh = K[krows, cols]
            vh = V[krows, cols]
            s = jax.lax.dot_general(qh, kh, (((1,), (1,)), ((), ())),
                                    preferred_element_type=jnp.float32) * scale
            m = jnp.max(s, axis=-1, keepdims=True)
            p = jnp.exp(s - m)
            p = p * pl.reciprocal(jnp.sum(p, axis=-1, keepdims=True),
                                  approx=True)
            head_outs.append(jnp.dot(p.astype(jnp.bfloat16), vh,
                                     preferred_element_type=jnp.float32))
        batch_outs.append(jnp.concatenate(head_outs, axis=-1))   # (Lq, D) f32
    attn_bf = jnp.concatenate(batch_outs, axis=0).astype(jnp.bfloat16)

    # ---- output projection + residual + norm2 ------------------------------
    attn = (jnp.dot(attn_bf, wo_ref[...],
                    preferred_element_type=jnp.float32) + bo_ref[...])
    y = _layer_norm(q_n + attn, n2g_ref[...], n2b_ref[...], eps)

    # ---- FFN (relu) + residual + norm3 -------------------------------------
    h1 = (jnp.dot(y.astype(jnp.bfloat16), l1w_ref[...],
                  preferred_element_type=jnp.float32) + l1b_ref[...])
    h1 = jnp.maximum(h1, 0.0)
    ff = (jnp.dot(h1.astype(jnp.bfloat16), l2w_ref[...],
                  preferred_element_type=jnp.float32) + l2b_ref[...])
    out = _layer_norm(y + ff, n3g_ref[...], n3b_ref[...], eps)
    o_ref[...] = out.astype(o_ref.dtype)


# ---------------------------------------------------------------------------
# Wrapper
# ---------------------------------------------------------------------------
_WEIGHT_ORDER = ("proj_w", "proj_b", "norm1_g", "norm1_b",
                 "wq", "bq", "wkv", "bkv", "wo", "bo",
                 "norm2_g", "norm2_b",
                 "lin1_w", "lin1_b", "lin2_w", "lin2_b",
                 "norm3_g", "norm3_b")


def _pick_block_b(B, Lq, Lk):
    """Batch-tile size: target ~256 matmul rows, keep >= 2 grid steps."""
    cap = max(1, min(32, 256 // max(Lq, 1)))
    divisors = [d for d in range(1, B + 1) if B % d == 0]
    legal = [d for d in divisors
             if d == B or ((d * Lq) % 8 == 0 and (d * Lk) % 8 == 0)]
    cand = [d for d in legal if d <= cap]
    bt = max(cand) if cand else min(legal)
    if B // bt < 2:                      # v7x: 2 TCs shard parallel grid axes
        two_step = [d for d in legal if B // d >= 2]
        if two_step:
            bt = max(two_step)
    return bt


def _w_spec(w):
    # Constant block index -> DMA'd once, kept VMEM-resident; single-buffered
    # to avoid allocating a useless second pipeline buffer for the weights.
    try:
        return pl.BlockSpec(w.shape, lambda b: (0, 0),
                            pipeline_mode=pl.Buffered(1))
    except TypeError:                    # older API without pipeline_mode
        return pl.BlockSpec(w.shape, lambda b: (0, 0))


def cape_decoder_forward(query, key, params, *, nhead=6, eps=1e-5,
                         block_b=None):
    """query: (B, Lq, 300), key: (B, Lk, d_model) -> (B, Lq, d_model)."""
    B, Lq, pin = query.shape
    _, Lk, d_model = key.shape

    Bt = _pick_block_b(B, Lq, Lk) if block_b is None else block_b
    assert B % Bt == 0
    grid = (B // Bt,)

    # bf16 inputs halve the per-block DMA bytes; matmul math is bf16 anyway.
    # Flatten (B, L, D) -> (B*L, D): layout-free, lets dense matmuls use a
    # large M dimension (Bt*Lq / Bt*Lk rows per grid step).
    q2d = query.astype(jnp.bfloat16).reshape(B * Lq, pin)
    k2d = key.astype(jnp.bfloat16).reshape(B * Lk, d_model)

    weights = [params[name] for name in _WEIGHT_ORDER]

    kernel = functools.partial(_decoder_kernel, block_b=Bt, lq=Lq, lk=Lk,
                               nhead=nhead, eps=eps)
    out2d = pl.pallas_call(
        kernel,
        out_shape=jax.ShapeDtypeStruct((B * Lq, d_model), jnp.float32),
        grid=grid,
        in_specs=[pl.BlockSpec((Bt * Lq, pin), lambda b: (b, 0)),
                  pl.BlockSpec((Bt * Lk, d_model), lambda b: (b, 0))]
                 + [_w_spec(w) for w in weights],
        out_specs=pl.BlockSpec((Bt * Lq, d_model), lambda b: (b, 0)),
        compiler_params=pltpu.CompilerParams(
            dimension_semantics=("parallel",),
            vmem_limit_bytes=48 * 1024 * 1024),
    )(q2d, k2d, *weights)
    return out2d.reshape(B, Lq, d_model)


# ---------------------------------------------------------------------------
# Parameters (bf16 matmul weights, f32 biases / LN params, fused KV, padded K)
# ---------------------------------------------------------------------------
def init_params(rng, *, d_model, nhead, dim_feedforward, proj_in):
    proj_in_pad = ((proj_in + 127) // 128) * 128
    ks = jax.random.split(rng, 8)

    def lin(k, fan_in, fan_out):
        w = (jax.random.normal(k, (fan_in, fan_out), jnp.float32)
             * (1.0 / float(fan_in) ** 0.5))
        b = jnp.zeros((1, fan_out), jnp.float32)
        return w, b

    proj_w, proj_b = lin(ks[0], proj_in, d_model)
    proj_w = jnp.pad(proj_w, ((0, proj_in_pad - proj_in), (0, 0)))
    wq, bq = lin(ks[1], d_model, d_model)
    wk, bk = lin(ks[2], d_model, d_model)
    wv, bv = lin(ks[3], d_model, d_model)
    wo, bo = lin(ks[4], d_model, d_model)
    l1w, l1b = lin(ks[5], d_model, dim_feedforward)
    l2w, l2b = lin(ks[6], dim_feedforward, d_model)

    bf = lambda w: w.astype(jnp.bfloat16)
    p = {
        "proj_w": bf(proj_w), "proj_b": proj_b,
        "wq": bf(wq), "bq": bq,
        "wkv": bf(jnp.concatenate([wk, wv], axis=1)),
        "bkv": jnp.concatenate([bk, bv], axis=1),
        "wo": bf(wo), "bo": bo,
        "lin1_w": bf(l1w), "lin1_b": l1b,
        "lin2_w": bf(l2w), "lin2_b": l2b,
    }
    for name in ("norm1", "norm2", "norm3"):
        p[name + "_g"] = jnp.ones((1, d_model), jnp.float32)
        p[name + "_b"] = jnp.zeros((1, d_model), jnp.float32)
    return p


# ---------------------------------------------------------------------------
# Pure-JAX reference (f32 math, same weights) for a sanity check
# ---------------------------------------------------------------------------
def _reference(query, key, p, *, nhead, eps):
    f32 = lambda a: a.astype(jnp.float32)
    B, Lq, pin = query.shape
    d_model = key.shape[-1]
    q = jnp.pad(query, ((0, 0), (0, 0), (0, p["proj_w"].shape[0] - pin)))

    def ln(x, g, b):
        mu = x.mean(-1, keepdims=True)
        var = ((x - mu) ** 2).mean(-1, keepdims=True)
        return (x - mu) * jax.lax.rsqrt(var + eps) * g + b

    x = ln(q @ f32(p["proj_w"]) + p["proj_b"], p["norm1_g"], p["norm1_b"])
    Q = x @ f32(p["wq"]) + p["bq"]
    KV = key @ f32(p["wkv"]) + p["bkv"]
    K, V = KV[..., :d_model], KV[..., d_model:]
    hd = d_model // nhead

    def split(t):
        return t.reshape(t.shape[0], t.shape[1], nhead, hd).transpose(0, 2, 1, 3)

    s = jnp.einsum("bhqd,bhkd->bhqk", split(Q), split(K)) / (hd ** 0.5)
    o = jnp.einsum("bhqk,bhkd->bhqd", jax.nn.softmax(s, axis=-1), split(V))
    o = o.transpose(0, 2, 1, 3).reshape(B, Lq, d_model)
    y = ln(x + (o @ f32(p["wo"]) + p["bo"]), p["norm2_g"], p["norm2_b"])
    h = jnp.maximum(y @ f32(p["lin1_w"]) + p["lin1_b"], 0.0)
    return ln(y + (h @ f32(p["lin2_w"]) + p["lin2_b"]),
              p["norm3_g"], p["norm3_b"])


if __name__ == "__main__":
    B, Lq, Lk = 4, 8, 16
    d_model, nhead, dim_feedforward, proj_in = 768, 6, 512, 300  # head_dim=128

    root = jax.random.PRNGKey(0)
    kq, kk, kp = jax.random.split(root, 3)
    query = jax.random.normal(kq, (B, Lq, proj_in), jnp.float32)
    key_t = jax.random.normal(kk, (B, Lk, d_model), jnp.float32)
    params = init_params(kp, d_model=d_model, nhead=nhead,
                         dim_feedforward=dim_feedforward, proj_in=proj_in)

    fwd = jax.jit(functools.partial(cape_decoder_forward, nhead=nhead, eps=1e-5))
    out = jax.block_until_ready(fwd(query, key_t, params))

    assert out.shape == (B, Lq, d_model), out.shape
    assert bool(jnp.all(jnp.isfinite(out)))
    ref = _reference(query, key_t, params, nhead=nhead, eps=1e-5)
    abs_err = float(jnp.max(jnp.abs(out - ref)))
    rel_err = float(jnp.sqrt(jnp.mean((out - ref) ** 2) / jnp.mean(ref ** 2)))
    assert abs_err < 0.25, f"max abs err vs f32 reference too large: {abs_err}"
    assert rel_err < 0.03, f"rms relative err vs f32 reference too large: {rel_err}"
    print("KERNEL_OK")
</pallas_src>

<mosaic_0001>
module attributes {stable_mosaic.version = 11 : i64} {
  func.func @_decoder_kernel(%arg0: i32, %arg1: memref<16x300xbf16, #tpu.memory_space<vmem>>, %arg2: memref<32x768xbf16, #tpu.memory_space<vmem>>, %arg3: memref<384x768xbf16, #tpu.memory_space<vmem>>, %arg4: memref<1x768xf32, #tpu.memory_space<vmem>>, %arg5: memref<1x768xf32, #tpu.memory_space<vmem>>, %arg6: memref<1x768xf32, #tpu.memory_space<vmem>>, %arg7: memref<768x768xbf16, #tpu.memory_space<vmem>>, %arg8: memref<1x768xf32, #tpu.memory_space<vmem>>, %arg9: memref<768x1536xbf16, #tpu.memory_space<vmem>>, %arg10: memref<1x1536xf32, #tpu.memory_space<vmem>>, %arg11: memref<768x768xbf16, #tpu.memory_space<vmem>>, %arg12: memref<1x768xf32, #tpu.memory_space<vmem>>, %arg13: memref<1x768xf32, #tpu.memory_space<vmem>>, %arg14: memref<1x768xf32, #tpu.memory_space<vmem>>, %arg15: memref<768x512xbf16, #tpu.memory_space<vmem>>, %arg16: memref<1x512xf32, #tpu.memory_space<vmem>>, %arg17: memref<512x768xbf16, #tpu.memory_space<vmem>>, %arg18: memref<1x768xf32, #tpu.memory_space<vmem>>, %arg19: memref<1x768xf32, #tpu.memory_space<vmem>>, %arg20: memref<1x768xf32, #tpu.memory_space<vmem>>, %arg21: memref<16x768xf32, #tpu.memory_space<vmem>>) attributes {dimension_semantics = [#tpu.dimension_semantics<parallel>], iteration_bounds = array<i64: 2>, scalar_prefetch = 0 : i64, scratch_operands = 0 : i64, tpu.core_type = #tpu.core_type<tc>, window_params = [{transform_indices = @transform_0, window_bounds = array<i64: 16, 300>}, {transform_indices = @transform_1, window_bounds = array<i64: 32, 768>}, {pipeline_mode = #tpu.pipeline_mode<synchronous>, transform_indices = @transform_2, window_bounds = array<i64: 384, 768>}, {pipeline_mode = #tpu.pipeline_mode<synchronous>, transform_indices = @transform_3, window_bounds = array<i64: 1, 768>}, {pipeline_mode = #tpu.pipeline_mode<synchronous>, transform_indices = @transform_4, window_bounds = array<i64: 1, 768>}, {pipeline_mode = #tpu.pipeline_mode<synchronous>, transform_indices = @transform_5, window_bounds = array<i64: 1, 768>}, {pipeline_mode = #tpu.pipeline_mode<synchronous>, transform_indices = @transform_6, window_bounds = array<i64: 768, 768>}, {pipeline_mode = #tpu.pipeline_mode<synchronous>, transform_indices = @transform_7, window_bounds = array<i64: 1, 768>}, {pipeline_mode = #tpu.pipeline_mode<synchronous>, transform_indices = @transform_8, window_bounds = array<i64: 768, 1536>}, {pipeline_mode = #tpu.pipeline_mode<synchronous>, transform_indices = @transform_9, window_bounds = array<i64: 1, 1536>}, {pipeline_mode = #tpu.pipeline_mode<synchronous>, transform_indices = @transform_10, window_bounds = array<i64: 768, 768>}, {pipeline_mode = #tpu.pipeline_mode<synchronous>, transform_indices = @transform_11, window_bounds = array<i64: 1, 768>}, {pipeline_mode = #tpu.pipeline_mode<synchronous>, transform_indices = @transform_12, window_bounds = array<i64: 1, 768>}, {pipeline_mode = #tpu.pipeline_mode<synchronous>, transform_indices = @transform_13, window_bounds = array<i64: 1, 768>}, {pipeline_mode = #tpu.pipeline_mode<synchronous>, transform_indices = @transform_14, window_bounds = array<i64: 768, 512>}, {pipeline_mode = #tpu.pipeline_mode<synchronous>, transform_indices = @transform_15, window_bounds = array<i64: 1, 512>}, {pipeline_mode = #tpu.pipeline_mode<synchronous>, transform_indices = @transform_16, window_bounds = array<i64: 512, 768>}, {pipeline_mode = #tpu.pipeline_mode<synchronous>, transform_indices = @transform_17, window_bounds = array<i64: 1, 768>}, {pipeline_mode = #tpu.pipeline_mode<synchronous>, transform_indices = @transform_18, window_bounds = array<i64: 1, 768>}, {pipeline_mode = #tpu.pipeline_mode<synchronous>, transform_indices = @transform_19, window_bounds = array<i64: 1, 768>}, {transform_indices = @transform_20, window_bounds = array<i64: 16, 768>}]} {
    %c0 = arith.constant 0 : index
    %c0_0 = arith.constant 0 : index
    %0 = vector.load %arg1[%c0, %c0_0] : memref<16x300xbf16, #tpu.memory_space<vmem>>, vector<16x300xbf16>
    %cst = arith.constant 0.000000e+00 : bf16
    %1 = vector.broadcast %cst : bf16 to vector<16x84xbf16>
    %2 = tpu.concatenate %0, %1 in 1 : vector<16x300xbf16>, vector<16x84xbf16> -> vector<16x384xbf16>
    %c0_1 = arith.constant 0 : index
    %c0_2 = arith.constant 0 : index
    %3 = vector.load %arg3[%c0_1, %c0_2] : memref<384x768xbf16, #tpu.memory_space<vmem>>, vector<384x768xbf16>
    %cst_3 = arith.constant dense<0.000000e+00> : vector<16x768xf32>
    %4 = tpu.matmul %2, %3, %cst_3 {dimension_numbers = #tpu.dot_dimension_numbers<[1], [0], [0], [1], [0, 0, 1, 1], [], []>} : vector<16x384xbf16>, vector<384x768xbf16>, vector<16x768xf32> -> vector<16x768xf32>
    %c0_4 = arith.constant 0 : index
    %c0_5 = arith.constant 0 : index
    %5 = vector.load %arg4[%c0_4, %c0_5] : memref<1x768xf32, #tpu.memory_space<vmem>>, vector<1x768xf32>
    %6 = vector.broadcast %5 : vector<1x768xf32> to vector<16x768xf32>
    %7 = arith.addf %4, %6 : vector<16x768xf32>
    %c0_6 = arith.constant 0 : index
    %c0_7 = arith.constant 0 : index
    %8 = vector.load %arg5[%c0_6, %c0_7] : memref<1x768xf32, #tpu.memory_space<vmem>>, vector<1x768xf32>
    %c0_8 = arith.constant 0 : index
    %c0_9 = arith.constant 0 : index
    %9 = vector.load %arg6[%c0_8, %c0_9] : memref<1x768xf32, #tpu.memory_space<vmem>>, vector<1x768xf32>
    %cst_10 = arith.constant dense<0.000000e+00> : vector<16xf32>
    %10 = vector.multi_reduction <add>, %7, %cst_10 [1] : vector<16x768xf32> to vector<16xf32>
    %11 = vector.shape_cast %10 : vector<16xf32> to vector<16x1xf32>
    %cst_11 = arith.constant 7.680000e+02 : f32
    %12 = vector.broadcast %cst_11 : f32 to vector<16x1xf32>
    %13 = arith.divf %11, %12 : vector<16x1xf32>
    %14 = vector.broadcast %13 : vector<16x1xf32> to vector<16x768xf32>
    %15 = arith.subf %7, %14 : vector<16x768xf32>
    %16 = arith.mulf %15, %15 : vector<16x768xf32>
    %cst_12 = arith.constant dense<0.000000e+00> : vector<16xf32>
    %17 = vector.multi_reduction <add>, %16, %cst_12 [1] : vector<16x768xf32> to vector<16xf32>
    %18 = vector.shape_cast %17 : vector<16xf32> to vector<16x1xf32>
    %cst_13 = arith.constant 7.680000e+02 : f32
    %19 = vector.broadcast %cst_13 : f32 to vector<16x1xf32>
    %20 = arith.divf %18, %19 : vector<16x1xf32>
    %cst_14 = arith.constant 9.99999974E-6 : f32
    %21 = vector.broadcast %cst_14 : f32 to vector<16x1xf32>
    %22 = arith.addf %20, %21 : vector<16x1xf32>
    %23 = math.rsqrt %22 : vector<16x1xf32>
    %24 = vector.broadcast %23 : vector<16x1xf32> to vector<16x768xf32>
    %25 = arith.mulf %15, %24 : vector<16x768xf32>
    %26 = vector.broadcast %8 : vector<1x768xf32> to vector<16x768xf32>
    %27 = arith.mulf %25, %26 : vector<16x768xf32>
    %28 = vector.broadcast %9 : vector<1x768xf32> to vector<16x768xf32>
    %29 = arith.addf %27, %28 : vector<16x768xf32>
    %30 = arith.truncf %29 : vector<16x768xf32> to vector<16x768xbf16>
    %c0_15 = arith.constant 0 : index
    %c0_16 = arith.constant 0 : index
    %31 = vector.load %arg2[%c0_15, %c0_16] : memref<32x768xbf16, #tpu.memory_space<vmem>>, vector<32x768xbf16>
    %c0_17 = arith.constant 0 : index
    %c0_18 = arith.constant 0 : index
    %32 = vector.load %arg7[%c0_17, %c0_18] : memref<768x768xbf16, #tpu.memory_space<vmem>>, vector<768x768xbf16>
    %cst_19 = arith.constant dense<0.000000e+00> : vector<16x768xf32>
    %33 = tpu.matmul %30, %32, %cst_19 {dimension_numbers = #tpu.dot_dimension_numbers<[1], [0], [0], [1], [0, 0, 1, 1], [], []>} : vector<16x768xbf16>, vector<768x768xbf16>, vector<16x768xf32> -> vector<16x768xf32>
    %c0_20 = arith.constant 0 : index
    %c0_21 = arith.constant 0 : index
    %34 = vector.load %arg8[%c0_20, %c0_21] : memref<1x768xf32, #tpu.memory_space<vmem>>, vector<1x768xf32>
    %35 = vector.broadcast %34 : vector<1x768xf32> to vector<16x768xf32>
    %36 = arith.addf %33, %35 : vector<16x768xf32>
    %37 = arith.truncf %36 : vector<16x768xf32> to vector<16x768xbf16>
    %c0_22 = arith.constant 0 : index
    %c0_23 = arith.constant 0 : index
    %38 = vector.load %arg9[%c0_22, %c0_23] : memref<768x1536xbf16, #tpu.memory_space<vmem>>, vector<768x1536xbf16>
    %cst_24 = arith.constant dense<0.000000e+00> : vector<32x1536xf32>
    %39 = tpu.matmul %31, %38, %cst_24 {dimension_numbers = #tpu.dot_dimension_numbers<[1], [0], [0], [1], [0, 0, 1, 1], [], []>} : vector<32x768xbf16>, vector<768x1536xbf16>, vector<32x1536xf32> -> vector<32x1536xf32>
    %c0_25 = arith.constant 0 : index
    %c0_26 = arith.constant 0 : index
    %40 = vector.load %arg10[%c0_25, %c0_26] : memref<1x1536xf32, #tpu.memory_space<vmem>>, vector<1x1536xf32>
    %41 = vector.broadcast %40 : vector<1x1536xf32> to vector<32x1536xf32>
    %42 = arith.addf %39, %41 : vector<32x1536xf32>
    %43 = vector.extract_strided_slice %42 {offsets = [0, 0], sizes = [32, 768], strides = [1, 1]} : vector<32x1536xf32> to vector<32x768xf32>
    %44 = arith.truncf %43 : vector<32x768xf32> to vector<32x768xbf16>
    %45 = vector.extract_strided_slice %42 {offsets = [0, 768], sizes = [32, 768], strides = [1, 1]} : vector<32x1536xf32> to vector<32x768xf32>
    %46 = arith.truncf %45 : vector<32x768xf32> to vector<32x768xbf16>
    %47 = vector.extract_strided_slice %37 {offsets = [0, 0], sizes = [8, 128], strides = [1, 1]} : vector<16x768xbf16> to vector<8x128xbf16>
    %48 = vector.extract_strided_slice %44 {offsets = [0, 0], sizes = [16, 128], strides = [1, 1]} : vector<32x768xbf16> to vector<16x128xbf16>
    %49 = vector.extract_strided_slice %46 {offsets = [0, 0], sizes = [16, 128], strides = [1, 1]} : vector<32x768xbf16> to vector<16x128xbf16>
    %cst_27 = arith.constant dense<0.000000e+00> : vector<8x16xf32>
    %50 = tpu.matmul %47, %48, %cst_27 {dimension_numbers = #tpu.dot_dimension_numbers<[1], [1], [0], [0], [0, 0, 1, 0], [], []>} : vector<8x128xbf16>, vector<16x128xbf16>, vector<8x16xf32> -> vector<8x16xf32>
    %cst_28 = arith.constant 0.0883883461 : f32
    %51 = vector.broadcast %cst_28 : f32 to vector<8x16xf32>
    %52 = arith.mulf %50, %51 : vector<8x16xf32>
    %cst_29 = arith.constant dense<0xFF800000> : vector<8xf32>
    %53 = vector.multi_reduction <maximumf>, %52, %cst_29 [1] : vector<8x16xf32> to vector<8xf32>
    %54 = vector.shape_cast %53 : vector<8xf32> to vector<8x1xf32>
    %55 = vector.broadcast %54 : vector<8x1xf32> to vector<8x16xf32>
    %56 = arith.subf %52, %55 : vector<8x16xf32>
    %57 = math.exp %56 : vector<8x16xf32>
    %cst_30 = arith.constant dense<0.000000e+00> : vector<8xf32>
    %58 = vector.multi_reduction <add>, %57, %cst_30 [1] : vector<8x16xf32> to vector<8xf32>
    %59 = vector.shape_cast %58 : vector<8xf32> to vector<8x1xf32>
    %60 = tpu.reciprocal %59 {approx = true} : vector<8x1xf32> -> vector<8x1xf32>
    %61 = vector.broadcast %60 : vector<8x1xf32> to vector<8x16xf32>
    %62 = arith.mulf %57, %61 : vector<8x16xf32>
    %63 = arith.truncf %62 : vector<8x16xf32> to vector<8x16xbf16>
    %cst_31 = arith.constant dense<0.000000e+00> : vector<8x128xf32>
    %64 = tpu.matmul %63, %49, %cst_31 {dimension_numbers = #tpu.dot_dimension_numbers<[1], [0], [0], [1], [0, 0, 1, 1], [], []>} : vector<8x16xbf16>, vector<16x128xbf16>, vector<8x128xf32> -> vector<8x128xf32>
    %65 = vector.extract_strided_slice %37 {offsets = [0, 128], sizes = [8, 128], strides = [1, 1]} : vector<16x768xbf16> to vector<8x128xbf16>
    %66 = vector.extract_strided_slice %44 {offsets = [0, 128], sizes = [16, 128], strides = [1, 1]} : vector<32x768xbf16> to vector<16x128xbf16>
    %67 = vector.extract_strided_slice %46 {offsets = [0, 128], sizes = [16, 128], strides = [1, 1]} : vector<32x768xbf16> to vector<16x128xbf16>
    %cst_32 = arith.constant dense<0.000000e+00> : vector<8x16xf32>
    %68 = tpu.matmul %65, %66, %cst_32 {dimension_numbers = #tpu.dot_dimension_numbers<[1], [1], [0], [0], [0, 0, 1, 0], [], []>} : vector<8x128xbf16>, vector<16x128xbf16>, vector<8x16xf32> -> vector<8x16xf32>
    %cst_33 = arith.constant 0.0883883461 : f32
    %69 = vector.broadcast %cst_33 : f32 to vector<8x16xf32>
    %70 = arith.mulf %68, %69 : vector<8x16xf32>
    %cst_34 = arith.constant dense<0xFF800000> : vector<8xf32>
    %71 = vector.multi_reduction <maximumf>, %70, %cst_34 [1] : vector<8x16xf32> to vector<8xf32>
    %72 = vector.shape_cast %71 : vector<8xf32> to vector<8x1xf32>
    %73 = vector.broadcast %72 : vector<8x1xf32> to vector<8x16xf32>
    %74 = arith.subf %70, %73 : vector<8x16xf32>
    %75 = math.exp %74 : vector<8x16xf32>
    %cst_35 = arith.constant dense<0.000000e+00> : vector<8xf32>
    %76 = vector.multi_reduction <add>, %75, %cst_35 [1] : vector<8x16xf32> to vector<8xf32>
    %77 = vector.shape_cast %76 : vector<8xf32> to vector<8x1xf32>
    %78 = tpu.reciprocal %77 {approx = true} : vector<8x1xf32> -> vector<8x1xf32>
    %79 = vector.broadcast %78 : vector<8x1xf32> to vector<8x16xf32>
    %80 = arith.mulf %75, %79 : vector<8x16xf32>
    %81 = arith.truncf %80 : vector<8x16xf32> to vector<8x16xbf16>
    %cst_36 = arith.constant dense<0.000000e+00> : vector<8x128xf32>
    %82 = tpu.matmul %81, %67, %cst_36 {dimension_numbers = #tpu.dot_dimension_numbers<[1], [0], [0], [1], [0, 0, 1, 1], [], []>} : vector<8x16xbf16>, vector<16x128xbf16>, vector<8x128xf32> -> vector<8x128xf32>
    %83 = vector.extract_strided_slice %37 {offsets = [0, 256], sizes = [8, 128], strides = [1, 1]} : vector<16x768xbf16> to vector<8x128xbf16>
    %84 = vector.extract_strided_slice %44 {offsets = [0, 256], sizes = [16, 128], strides = [1, 1]} : vector<32x768xbf16> to vector<16x128xbf16>
    %85 = vector.extract_strided_slice %46 {offsets = [0, 256], sizes = [16, 128], strides = [1, 1]} : vector<32x768xbf16> to vector<16x128xbf16>
    %cst_37 = arith.constant dense<0.000000e+00> : vector<8x16xf32>
    %86 = tpu.matmul %83, %84, %cst_37 {dimension_numbers = #tpu.dot_dimension_numbers<[1], [1], [0], [0], [0, 0, 1, 0], [], []>} : vector<8x128xbf16>, vector<16x128xbf16>, vector<8x16xf32> -> vector<8x16xf32>
    %cst_38 = arith.constant 0.0883883461 : f32
    %87 = vector.broadcast %cst_38 : f32 to vector<8x16xf32>
    %88 = arith.mulf %86, %87 : vector<8x16xf32>
    %cst_39 = arith.constant dense<0xFF800000> : vector<8xf32>
    %89 = vector.multi_reduction <maximumf>, %88, %cst_39 [1] : vector<8x16xf32> to vector<8xf32>
    %90 = vector.shape_cast %89 : vector<8xf32> to vector<8x1xf32>
    %91 = vector.broadcast %90 : vector<8x1xf32> to vector<8x16xf32>
    %92 = arith.subf %88, %91 : vector<8x16xf32>
    %93 = math.exp %92 : vector<8x16xf32>
    %cst_40 = arith.constant dense<0.000000e+00> : vector<8xf32>
    %94 = vector.multi_reduction <add>, %93, %cst_40 [1] : vector<8x16xf32> to vector<8xf32>
    %95 = vector.shape_cast %94 : vector<8xf32> to vector<8x1xf32>
    %96 = tpu.reciprocal %95 {approx = true} : vector<8x1xf32> -> vector<8x1xf32>
    %97 = vector.broadcast %96 : vector<8x1xf32> to vector<8x16xf32>
    %98 = arith.mulf %93, %97 : vector<8x16xf32>
    %99 = arith.truncf %98 : vector<8x16xf32> to vector<8x16xbf16>
    %cst_41 = arith.constant dense<0.000000e+00> : vector<8x128xf32>
    %100 = tpu.matmul %99, %85, %cst_41 {dimension_numbers = #tpu.dot_dimension_numbers<[1], [0], [0], [1], [0, 0, 1, 1], [], []>} : vector<8x16xbf16>, vector<16x128xbf16>, vector<8x128xf32> -> vector<8x128xf32>
    %101 = vector.extract_strided_slice %37 {offsets = [0, 384], sizes = [8, 128], strides = [1, 1]} : vector<16x768xbf16> to vector<8x128xbf16>
    %102 = vector.extract_strided_slice %44 {offsets = [0, 384], sizes = [16, 128], strides = [1, 1]} : vector<32x768xbf16> to vector<16x128xbf16>
    %103 = vector.extract_strided_slice %46 {offsets = [0, 384], sizes = [16, 128], strides = [1, 1]} : vector<32x768xbf16> to vector<16x128xbf16>
    %cst_42 = arith.constant dense<0.000000e+00> : vector<8x16xf32>
    %104 = tpu.matmul %101, %102, %cst_42 {dimension_numbers = #tpu.dot_dimension_numbers<[1], [1], [0], [0], [0, 0, 1, 0], [], []>} : vector<8x128xbf16>, vector<16x128xbf16>, vector<8x16xf32> -> vector<8x16xf32>
    %cst_43 = arith.constant 0.0883883461 : f32
    %105 = vector.broadcast %cst_43 : f32 to vector<8x16xf32>
    %106 = arith.mulf %104, %105 : vector<8x16xf32>
    %cst_44 = arith.constant dense<0xFF800000> : vector<8xf32>
    %107 = vector.multi_reduction <maximumf>, %106, %cst_44 [1] : vector<8x16xf32> to vector<8xf32>
    %108 = vector.shape_cast %107 : vector<8xf32> to vector<8x1xf32>
    %109 = vector.broadcast %108 : vector<8x1xf32> to vector<8x16xf32>
    %110 = arith.subf %106, %109 : vector<8x16xf32>
    %111 = math.exp %110 : vector<8x16xf32>
    %cst_45 = arith.constant dense<0.000000e+00> : vector<8xf32>
    %112 = vector.multi_reduction <add>, %111, %cst_45 [1] : vector<8x16xf32> to vector<8xf32>
    %113 = vector.shape_cast %112 : vector<8xf32> to vector<8x1xf32>
    %114 = tpu.reciprocal %113 {approx = true} : vector<8x1xf32> -> vector<8x1xf32>
    %115 = vector.broadcast %114 : vector<8x1xf32> to vector<8x16xf32>
    %116 = arith.mulf %111, %115 : vector<8x16xf32>
    %117 = arith.truncf %116 : vector<8x16xf32> to vector<8x16xbf16>
    %cst_46 = arith.constant dense<0.000000e+00> : vector<8x128xf32>
    %118 = tpu.matmul %117, %103, %cst_46 {dimension_numbers = #tpu.dot_dimension_numbers<[1], [0], [0], [1], [0, 0, 1, 1], [], []>} : vector<8x16xbf16>, vector<16x128xbf16>, vector<8x128xf32> -> vector<8x128xf32>
    %119 = vector.extract_strided_slice %37 {offsets = [0, 512], sizes = [8, 128], strides = [1, 1]} : vector<16x768xbf16> to vector<8x128xbf16>
    %120 = vector.extract_strided_slice %44 {offsets = [0, 512], sizes = [16, 128], strides = [1, 1]} : vector<32x768xbf16> to vector<16x128xbf16>
    %121 = vector.extract_strided_slice %46 {offsets = [0, 512], sizes = [16, 128], strides = [1, 1]} : vector<32x768xbf16> to vector<16x128xbf16>
    %cst_47 = arith.constant dense<0.000000e+00> : vector<8x16xf32>
    %122 = tpu.matmul %119, %120, %cst_47 {dimension_numbers = #tpu.dot_dimension_numbers<[1], [1], [0], [0], [0, 0, 1, 0], [], []>} : vector<8x128xbf16>, vector<16x128xbf16>, vector<8x16xf32> -> vector<8x16xf32>
    %cst_48 = arith.constant 0.0883883461 : f32
    %123 = vector.broadcast %cst_48 : f32 to vector<8x16xf32>
    %124 = arith.mulf %122, %123 : vector<8x16xf32>
    %cst_49 = arith.constant dense<0xFF800000> : vector<8xf32>
    %125 = vector.multi_reduction <maximumf>, %124, %cst_49 [1] : vector<8x16xf32> to vector<8xf32>
    %126 = vector.shape_cast %125 : vector<8xf32> to vector<8x1xf32>
    %127 = vector.broadcast %126 : vector<8x1xf32> to vector<8x16xf32>
    %128 = arith.subf %124, %127 : vector<8x16xf32>
    %129 = math.exp %128 : vector<8x16xf32>
    %cst_50 = arith.constant dense<0.000000e+00> : vector<8xf32>
    %130 = vector.multi_reduction <add>, %129, %cst_50 [1] : vector<8x16xf32> to vector<8xf32>
    %131 = vector.shape_cast %130 : vector<8xf32> to vector<8x1xf32>
    %132 = tpu.reciprocal %131 {approx = true} : vector<8x1xf32> -> vector<8x1xf32>
    %133 = vector.broadcast %132 : vector<8x1xf32> to vector<8x16xf32>
    %134 = arith.mulf %129, %133 : vector<8x16xf32>
    %135 = arith.truncf %134 : vector<8x16xf32> to vector<8x16xbf16>
    %cst_51 = arith.constant dense<0.000000e+00> : vector<8x128xf32>
    %136 = tpu.matmul %135, %121, %cst_51 {dimension_numbers = #tpu.dot_dimension_numbers<[1], [0], [0], [1], [0, 0, 1, 1], [], []>} : vector<8x16xbf16>, vector<16x128xbf16>, vector<8x128xf32> -> vector<8x128xf32>
    %137 = vector.extract_strided_slice %37 {offsets = [0, 640], sizes = [8, 128], strides = [1, 1]} : vector<16x768xbf16> to vector<8x128xbf16>
    %138 = vector.extract_strided_slice %44 {offsets = [0, 640], sizes = [16, 128], strides = [1, 1]} : vector<32x768xbf16> to vector<16x128xbf16>
    %139 = vector.extract_strided_slice %46 {offsets = [0, 640], sizes = [16, 128], strides = [1, 1]} : vector<32x768xbf16> to vector<16x128xbf16>
    %cst_52 = arith.constant dense<0.000000e+00> : vector<8x16xf32>
    %140 = tpu.matmul %137, %138, %cst_52 {dimension_numbers = #tpu.dot_dimension_numbers<[1], [1], [0], [0], [0, 0, 1, 0], [], []>} : vector<8x128xbf16>, vector<16x128xbf16>, vector<8x16xf32> -> vector<8x16xf32>
    %cst_53 = arith.constant 0.0883883461 : f32
    %141 = vector.broadcast %cst_53 : f32 to vector<8x16xf32>
    %142 = arith.mulf %140, %141 : vector<8x16xf32>
    %cst_54 = arith.constant dense<0xFF800000> : vector<8xf32>
    %143 = vector.multi_reduction <maximumf>, %142, %cst_54 [1] : vector<8x16xf32> to vector<8xf32>
    %144 = vector.shape_cast %143 : vector<8xf32> to vector<8x1xf32>
    %145 = vector.broadcast %144 : vector<8x1xf32> to vector<8x16xf32>
    %146 = arith.subf %142, %145 : vector<8x16xf32>
    %147 = math.exp %146 : vector<8x16xf32>
    %cst_55 = arith.constant dense<0.000000e+00> : vector<8xf32>
    %148 = vector.multi_reduction <add>, %147, %cst_55 [1] : vector<8x16xf32> to vector<8xf32>
    %149 = vector.shape_cast %148 : vector<8xf32> to vector<8x1xf32>
    %150 = tpu.reciprocal %149 {approx = true} : vector<8x1xf32> -> vector<8x1xf32>
    %151 = vector.broadcast %150 : vector<8x1xf32> to vector<8x16xf32>
    %152 = arith.mulf %147, %151 : vector<8x16xf32>
    %153 = arith.truncf %152 : vector<8x16xf32> to vector<8x16xbf16>
    %cst_56 = arith.constant dense<0.000000e+00> : vector<8x128xf32>
    %154 = tpu.matmul %153, %139, %cst_56 {dimension_numbers = #tpu.dot_dimension_numbers<[1], [0], [0], [1], [0, 0, 1, 1], [], []>} : vector<8x16xbf16>, vector<16x128xbf16>, vector<8x128xf32> -> vector<8x128xf32>
    %155 = tpu.concatenate %64, %82, %100, %118, %136, %154 in 1 : vector<8x128xf32>, vector<8x128xf32>, vector<8x128xf32>, vector<8x128xf32>, vector<8x128xf32>, vector<8x128xf32> -> vector<8x768xf32>
    %156 = vector.extract_strided_slice %37 {offsets = [8, 0], sizes = [8, 128], strides = [1, 1]} : vector<16x768xbf16> to vector<8x128xbf16>
    %157 = vector.extract_strided_slice %44 {offsets = [16, 0], sizes = [16, 128], strides = [1, 1]} : vector<32x768xbf16> to vector<16x128xbf16>
    %158 = vector.extract_strided_slice %46 {offsets = [16, 0], sizes = [16, 128], strides = [1, 1]} : vector<32x768xbf16> to vector<16x128xbf16>
    %cst_57 = arith.constant dense<0.000000e+00> : vector<8x16xf32>
    %159 = tpu.matmul %156, %157, %cst_57 {dimension_numbers = #tpu.dot_dimension_numbers<[1], [1], [0], [0], [0, 0, 1, 0], [], []>} : vector<8x128xbf16>, vector<16x128xbf16>, vector<8x16xf32> -> vector<8x16xf32>
    %cst_58 = arith.constant 0.0883883461 : f32
    %160 = vector.broadcast %cst_58 : f32 to vector<8x16xf32>
    %161 = arith.mulf %159, %160 : vector<8x16xf32>
    %cst_59 = arith.constant dense<0xFF800000> : vector<8xf32>
    %162 = vector.multi_reduction <maximumf>, %161, %cst_59 [1] : vector<8x16xf32> to vector<8xf32>
    %163 = vector.shape_cast %162 : vector<8xf32> to vector<8x1xf32>
    %164 = vector.broadcast %163 : vector<8x1xf32> to vector<8x16xf32>
    %165 = arith.subf %161, %164 : vector<8x16xf32>
    %166 = math.exp %165 : vector<8x16xf32>
    %cst_60 = arith.constant dense<0.000000e+00> : vector<8xf32>
    %167 = vector.multi_reduction <add>, %166, %cst_60 [1] : vector<8x16xf32> to vector<8xf32>
    %168 = vector.shape_cast %167 : vector<8xf32> to vector<8x1xf32>
    %169 = tpu.reciprocal %168 {approx = true} : vector<8x1xf32> -> vector<8x1xf32>
    %170 = vector.broadcast %169 : vector<8x1xf32> to vector<8x16xf32>
    %171 = arith.mulf %166, %170 : vector<8x16xf32>
    %172 = arith.truncf %171 : vector<8x16xf32> to vector<8x16xbf16>
    %cst_61 = arith.constant dense<0.000000e+00> : vector<8x128xf32>
    %173 = tpu.matmul %172, %158, %cst_61 {dimension_numbers = #tpu.dot_dimension_numbers<[1], [0], [0], [1], [0, 0, 1, 1], [], []>} : vector<8x16xbf16>, vector<16x128xbf16>, vector<8x128xf32> -> vector<8x128xf32>
    %174 = vector.extract_strided_slice %37 {offsets = [8, 128], sizes = [8, 128], strides = [1, 1]} : vector<16x768xbf16> to vector<8x128xbf16>
    %175 = vector.extract_strided_slice %44 {offsets = [16, 128], sizes = [16, 128], strides = [1, 1]} : vector<32x768xbf16> to vector<16x128xbf16>
    %176 = vector.extract_strided_slice %46 {offsets = [16, 128], sizes = [16, 128], strides = [1, 1]} : vector<32x768xbf16> to vector<16x128xbf16>
    %cst_62 = arith.constant dense<0.000000e+00> : vector<8x16xf32>
    %177 = tpu.matmul %174, %175, %cst_62 {dimension_numbers = #tpu.dot_dimension_numbers<[1], [1], [0], [0], [0, 0, 1, 0], [], []>} : vector<8x128xbf16>, vector<16x128xbf16>, vector<8x16xf32> -> vector<8x16xf32>
    %cst_63 = arith.constant 0.0883883461 : f32
    %178 = vector.broadcast %cst_63 : f32 to vector<8x16xf32>
    %179 = arith.mulf %177, %178 : vector<8x16xf32>
    %cst_64 = arith.constant dense<0xFF800000> : vector<8xf32>
    %180 = vector.multi_reduction <maximumf>, %179, %cst_64 [1] : vector<8x16xf32> to vector<8xf32>
    %181 = vector.shape_cast %180 : vector<8xf32> to vector<8x1xf32>
    %182 = vector.broadcast %181 : vector<8x1xf32> to vector<8x16xf32>
    %183 = arith.subf %179, %182 : vector<8x16xf32>
    %184 = math.exp %183 : vector<8x16xf32>
    %cst_65 = arith.constant dense<0.000000e+00> : vector<8xf32>
    %185 = vector.multi_reduction <add>, %184, %cst_65 [1] : vector<8x16xf32> to vector<8xf32>
    %186 = vector.shape_cast %185 : vector<8xf32> to vector<8x1xf32>
    %187 = tpu.reciprocal %186 {approx = true} : vector<8x1xf32> -> vector<8x1xf32>
    %188 = vector.broadcast %187 : vector<8x1xf32> to vector<8x16xf32>
    %189 = arith.mulf %184, %188 : vector<8x16xf32>
    %190 = arith.truncf %189 : vector<8x16xf32> to vector<8x16xbf16>
    %cst_66 = arith.constant dense<0.000000e+00> : vector<8x128xf32>
    %191 = tpu.matmul %190, %176, %cst_66 {dimension_numbers = #tpu.dot_dimension_numbers<[1], [0], [0], [1], [0, 0, 1, 1], [], []>} : vector<8x16xbf16>, vector<16x128xbf16>, vector<8x128xf32> -> vector<8x128xf32>
    %192 = vector.extract_strided_slice %37 {offsets = [8, 256], sizes = [8, 128], strides = [1, 1]} : vector<16x768xbf16> to vector<8x128xbf16>
    %193 = vector.extract_strided_slice %44 {offsets = [16, 256], sizes = [16, 128], strides = [1, 1]} : vector<32x768xbf16> to vector<16x128xbf16>
    %194 = vector.extract_strided_slice %46 {offsets = [16, 256], sizes = [16, 128], strides = [1, 1]} : vector<32x768xbf16> to vector<16x128xbf16>
    %cst_67 = arith.constant dense<0.000000e+00> : vector<8x16xf32>
    %195 = tpu.matmul %192, %193, %cst_67 {dimension_numbers = #tpu.dot_dimension_numbers<[1], [1], [0], [0], [0, 0, 1, 0], [], []>} : vector<8x128xbf16>, vector<16x128xbf16>, vector<8x16xf32> -> vector<8x16xf32>
    %cst_68 = arith.constant 0.0883883461 : f32
    %196 = vector.broadcast %cst_68 : f32 to vector<8x16xf32>
    %197 = arith.mulf %195, %196 : vector<8x16xf32>
    %cst_69 = arith.constant dense<0xFF800000> : vector<8xf32>
    %198 = vector.multi_reduction <maximumf>, %197, %cst_69 [1] : vector<8x16xf32> to vector<8xf32>
    %199 = vector.shape_cast %198 : vector<8xf32> to vector<8x1xf32>
    %200 = vector.broadcast %199 : vector<8x1xf32> to vector<8x16xf32>
    %201 = arith.subf %197, %200 : vector<8x16xf32>
    %202 = math.exp %201 : vector<8x16xf32>
    %cst_70 = arith.constant dense<0.000000e+00> : vector<8xf32>
    %203 = vector.multi_reduction <add>, %202, %cst_70 [1] : vector<8x16xf32> to vector<8xf32>
    %204 = vector.shape_cast %203 : vector<8xf32> to vector<8x1xf32>
    %205 = tpu.reciprocal %204 {approx = true} : vector<8x1xf32> -> vector<8x1xf32>
    %206 = vector.broadcast %205 : vector<8x1xf32> to vector<8x16xf32>
    %207 = arith.mulf %202, %206 : vector<8x16xf32>
    %208 = arith.truncf %207 : vector<8x16xf32> to vector<8x16xbf16>
    %cst_71 = arith.constant dense<0.000000e+00> : vector<8x128xf32>
    %209 = tpu.matmul %208, %194, %cst_71 {dimension_numbers = #tpu.dot_dimension_numbers<[1], [0], [0], [1], [0, 0, 1, 1], [], []>} : vector<8x16xbf16>, vector<16x128xbf16>, vector<8x128xf32> -> vector<8x128xf32>
    %210 = vector.extract_strided_slice %37 {offsets = [8, 384], sizes = [8, 128], strides = [1, 1]} : vector<16x768xbf16> to vector<8x128xbf16>
    %211 = vector.extract_strided_slice %44 {offsets = [16, 384], sizes = [16, 128], strides = [1, 1]} : vector<32x768xbf16> to vector<16x128xbf16>
    %212 = vector.extract_strided_slice %46 {offsets = [16, 384], sizes = [16, 128], strides = [1, 1]} : vector<32x768xbf16> to vector<16x128xbf16>
    %cst_72 = arith.constant dense<0.000000e+00> : vector<8x16xf32>
    %213 = tpu.matmul %210, %211, %cst_72 {dimension_numbers = #tpu.dot_dimension_numbers<[1], [1], [0], [0], [0, 0, 1, 0], [], []>} : vector<8x128xbf16>, vector<16x128xbf16>, vector<8x16xf32> -> vector<8x16xf32>
    %cst_73 = arith.constant 0.0883883461 : f32
    %214 = vector.broadcast %cst_73 : f32 to vector<8x16xf32>
    %215 = arith.mulf %213, %214 : vector<8x16xf32>
    %cst_74 = arith.constant dense<0xFF800000> : vector<8xf32>
    %216 = vector.multi_reduction <maximumf>, %215, %cst_74 [1] : vector<8x16xf32> to vector<8xf32>
    %217 = vector.shape_cast %216 : vector<8xf32> to vector<8x1xf32>
    %218 = vector.broadcast %217 : vector<8x1xf32> to vector<8x16xf32>
    %219 = arith.subf %215, %218 : vector<8x16xf32>
    %220 = math.exp %219 : vector<8x16xf32>
    %cst_75 = arith.constant dense<0.000000e+00> : vector<8xf32>
    %221 = vector.multi_reduction <add>, %220, %cst_75 [1] : vector<8x16xf32> to vector<8xf32>
    %222 = vector.shape_cast %221 : vector<8xf32> to vector<8x1xf32>
    %223 = tpu.reciprocal %222 {approx = true} : vector<8x1xf32> -> vector<8x1xf32>
    %224 = vector.broadcast %223 : vector<8x1xf32> to vector<8x16xf32>
    %225 = arith.mulf %220, %224 : vector<8x16xf32>
    %226 = arith.truncf %225 : vector<8x16xf32> to vector<8x16xbf16>
    %cst_76 = arith.constant dense<0.000000e+00> : vector<8x128xf32>
    %227 = tpu.matmul %226, %212, %cst_76 {dimension_numbers = #tpu.dot_dimension_numbers<[1], [0], [0], [1], [0, 0, 1, 1], [], []>} : vector<8x16xbf16>, vector<16x128xbf16>, vector<8x128xf32> -> vector<8x128xf32>
    %228 = vector.extract_strided_slice %37 {offsets = [8, 512], sizes = [8, 128], strides = [1, 1]} : vector<16x768xbf16> to vector<8x128xbf16>
    %229 = vector.extract_strided_slice %44 {offsets = [16, 512], sizes = [16, 128], strides = [1, 1]} : vector<32x768xbf16> to vector<16x128xbf16>
    %230 = vector.extract_strided_slice %46 {offsets = [16, 512], sizes = [16, 128], strides = [1, 1]} : vector<32x768xbf16> to vector<16x128xbf16>
    %cst_77 = arith.constant dense<0.000000e+00> : vector<8x16xf32>
    %231 = tpu.matmul %228, %229, %cst_77 {dimension_numbers = #tpu.dot_dimension_numbers<[1], [1], [0], [0], [0, 0, 1, 0], [], []>} : vector<8x128xbf16>, vector<16x128xbf16>, vector<8x16xf32> -> vector<8x16xf32>
    %cst_78 = arith.constant 0.0883883461 : f32
    %232 = vector.broadcast %cst_78 : f32 to vector<8x16xf32>
    %233 = arith.mulf %231, %232 : vector<8x16xf32>
    %cst_79 = arith.constant dense<0xFF800000> : vector<8xf32>
    %234 = vector.multi_reduction <maximumf>, %233, %cst_79 [1] : vector<8x16xf32> to vector<8xf32>
    %235 = vector.shape_cast %234 : vector<8xf32> to vector<8x1xf32>
    %236 = vector.broadcast %235 : vector<8x1xf32> to vector<8x16xf32>
    %237 = arith.subf %233, %236 : vector<8x16xf32>
    %238 = math.exp %237 : vector<8x16xf32>
    %cst_80 = arith.constant dense<0.000000e+00> : vector<8xf32>
    %239 = vector.multi_reduction <add>, %238, %cst_80 [1] : vector<8x16xf32> to vector<8xf32>
    %240 = vector.shape_cast %239 : vector<8xf32> to vector<8x1xf32>
    %241 = tpu.reciprocal %240 {approx = true} : vector<8x1xf32> -> vector<8x1xf32>
    %242 = vector.broadcast %241 : vector<8x1xf32> to vector<8x16xf32>
    %243 = arith.mulf %238, %242 : vector<8x16xf32>
    %244 = arith.truncf %243 : vector<8x16xf32> to vector<8x16xbf16>
    %cst_81 = arith.constant dense<0.000000e+00> : vector<8x128xf32>
    %245 = tpu.matmul %244, %230, %cst_81 {dimension_numbers = #tpu.dot_dimension_numbers<[1], [0], [0], [1], [0, 0, 1, 1], [], []>} : vector<8x16xbf16>, vector<16x128xbf16>, vector<8x128xf32> -> vector<8x128xf32>
    %246 = vector.extract_strided_slice %37 {offsets = [8, 640], sizes = [8, 128], strides = [1, 1]} : vector<16x768xbf16> to vector<8x128xbf16>
    %247 = vector.extract_strided_slice %44 {offsets = [16, 640], sizes = [16, 128], strides = [1, 1]} : vector<32x768xbf16> to vector<16x128xbf16>
    %248 = vector.extract_strided_slice %46 {offsets = [16, 640], sizes = [16, 128], strides = [1, 1]} : vector<32x768xbf16> to vector<16x128xbf16>
    %cst_82 = arith.constant dense<0.000000e+00> : vector<8x16xf32>
    %249 = tpu.matmul %246, %247, %cst_82 {dimension_numbers = #tpu.dot_dimension_numbers<[1], [1], [0], [0], [0, 0, 1, 0], [], []>} : vector<8x128xbf16>, vector<16x128xbf16>, vector<8x16xf32> -> vector<8x16xf32>
    %cst_83 = arith.constant 0.0883883461 : f32
    %250 = vector.broadcast %cst_83 : f32 to vector<8x16xf32>
    %251 = arith.mulf %249, %250 : vector<8x16xf32>
    %cst_84 = arith.constant dense<0xFF800000> : vector<8xf32>
    %252 = vector.multi_reduction <maximumf>, %251, %cst_84 [1] : vector<8x16xf32> to vector<8xf32>
    %253 = vector.shape_cast %252 : vector<8xf32> to vector<8x1xf32>
    %254 = vector.broadcast %253 : vector<8x1xf32> to vector<8x16xf32>
    %255 = arith.subf %251, %254 : vector<8x16xf32>
    %256 = math.exp %255 : vector<8x16xf32>
    %cst_85 = arith.constant dense<0.000000e+00> : vector<8xf32>
    %257 = vector.multi_reduction <add>, %256, %cst_85 [1] : vector<8x16xf32> to vector<8xf32>
    %258 = vector.shape_cast %257 : vector<8xf32> to vector<8x1xf32>
    %259 = tpu.reciprocal %258 {approx = true} : vector<8x1xf32> -> vector<8x1xf32>
    %260 = vector.broadcast %259 : vector<8x1xf32> to vector<8x16xf32>
    %261 = arith.mulf %256, %260 : vector<8x16xf32>
    %262 = arith.truncf %261 : vector<8x16xf32> to vector<8x16xbf16>
    %cst_86 = arith.constant dense<0.000000e+00> : vector<8x128xf32>
    %263 = tpu.matmul %262, %248, %cst_86 {dimension_numbers = #tpu.dot_dimension_numbers<[1], [0], [0], [1], [0, 0, 1, 1], [], []>} : vector<8x16xbf16>, vector<16x128xbf16>, vector<8x128xf32> -> vector<8x128xf32>
    %264 = tpu.concatenate %173, %191, %209, %227, %245, %263 in 1 : vector<8x128xf32>, vector<8x128xf32>, vector<8x128xf32>, vector<8x128xf32>, vector<8x128xf32>, vector<8x128xf32> -> vector<8x768xf32>
    %265 = tpu.concatenate %155, %264 in 0 : vector<8x768xf32>, vector<8x768xf32> -> vector<16x768xf32>
    %266 = arith.truncf %265 : vector<16x768xf32> to vector<16x768xbf16>
    %c0_87 = arith.constant 0 : index
    %c0_88 = arith.constant 0 : index
    %267 = vector.load %arg11[%c0_87, %c0_88] : memref<768x768xbf16, #tpu.memory_space<vmem>>, vector<768x768xbf16>
    %cst_89 = arith.constant dense<0.000000e+00> : vector<16x768xf32>
    %268 = tpu.matmul %266, %267, %cst_89 {dimension_numbers = #tpu.dot_dimension_numbers<[1], [0], [0], [1], [0, 0, 1, 1], [], []>} : vector<16x768xbf16>, vector<768x768xbf16>, vector<16x768xf32> -> vector<16x768xf32>
    %c0_90 = arith.constant 0 : index
    %c0_91 = arith.constant 0 : index
    %269 = vector.load %arg12[%c0_90, %c0_91] : memref<1x768xf32, #tpu.memory_space<vmem>>, vector<1x768xf32>
    %270 = vector.broadcast %269 : vector<1x768xf32> to vector<16x768xf32>
    %271 = arith.addf %268, %270 : vector<16x768xf32>
    %272 = arith.addf %29, %271 : vector<16x768xf32>
    %c0_92 = arith.constant 0 : index
    %c0_93 = arith.constant 0 : index
    %273 = vector.load %arg13[%c0_92, %c0_93] : memref<1x768xf32, #tpu.memory_space<vmem>>, vector<1x768xf32>
    %c0_94 = arith.constant 0 : index
    %c0_95 = arith.constant 0 : index
    %274 = vector.load %arg14[%c0_94, %c0_95] : memref<1x768xf32, #tpu.memory_space<vmem>>, vector<1x768xf32>
    %cst_96 = arith.constant dense<0.000000e+00> : vector<16xf32>
    %275 = vector.multi_reduction <add>, %272, %cst_96 [1] : vector<16x768xf32> to vector<16xf32>
    %276 = vector.shape_cast %275 : vector<16xf32> to vector<16x1xf32>
    %cst_97 = arith.constant 7.680000e+02 : f32
    %277 = vector.broadcast %cst_97 : f32 to vector<16x1xf32>
    %278 = arith.divf %276, %277 : vector<16x1xf32>
    %279 = vector.broadcast %278 : vector<16x1xf32> to vector<16x768xf32>
    %280 = arith.subf %272, %279 : vector<16x768xf32>
    %281 = arith.mulf %280, %280 : vector<16x768xf32>
    %cst_98 = arith.constant dense<0.000000e+00> : vector<16xf32>
    %282 = vector.multi_reduction <add>, %281, %cst_98 [1] : vector<16x768xf32> to vector<16xf32>
    %283 = vector.shape_cast %282 : vector<16xf32> to vector<16x1xf32>
    %cst_99 = arith.constant 7.680000e+02 : f32
    %284 = vector.broadcast %cst_99 : f32 to vector<16x1xf32>
    %285 = arith.divf %283, %284 : vector<16x1xf32>
    %cst_100 = arith.constant 9.99999974E-6 : f32
    %286 = vector.broadcast %cst_100 : f32 to vector<16x1xf32>
    %287 = arith.addf %285, %286 : vector<16x1xf32>
    %288 = math.rsqrt %287 : vector<16x1xf32>
    %289 = vector.broadcast %288 : vector<16x1xf32> to vector<16x768xf32>
    %290 = arith.mulf %280, %289 : vector<16x768xf32>
    %291 = vector.broadcast %273 : vector<1x768xf32> to vector<16x768xf32>
    %292 = arith.mulf %290, %291 : vector<16x768xf32>
    %293 = vector.broadcast %274 : vector<1x768xf32> to vector<16x768xf32>
    %294 = arith.addf %292, %293 : vector<16x768xf32>
    %295 = arith.truncf %294 : vector<16x768xf32> to vector<16x768xbf16>
    %c0_101 = arith.constant 0 : index
    %c0_102 = arith.constant 0 : index
    %296 = vector.load %arg15[%c0_101, %c0_102] : memref<768x512xbf16, #tpu.memory_space<vmem>>, vector<768x512xbf16>
    %cst_103 = arith.constant dense<0.000000e+00> : vector<16x512xf32>
    %297 = tpu.matmul %295, %296, %cst_103 {dimension_numbers = #tpu.dot_dimension_numbers<[1], [0], [0], [1], [0, 0, 1, 1], [], []>} : vector<16x768xbf16>, vector<768x512xbf16>, vector<16x512xf32> -> vector<16x512xf32>
    %c0_104 = arith.constant 0 : index
    %c0_105 = arith.constant 0 : index
    %298 = vector.load %arg16[%c0_104, %c0_105] : memref<1x512xf32, #tpu.memory_space<vmem>>, vector<1x512xf32>
    %299 = vector.broadcast %298 : vector<1x512xf32> to vector<16x512xf32>
    %300 = arith.addf %297, %299 : vector<16x512xf32>
    %cst_106 = arith.constant 0.000000e+00 : f32
    %301 = vector.broadcast %cst_106 : f32 to vector<16x512xf32>
    %302 = arith.maximumf %300, %301 : vector<16x512xf32>
    %303 = arith.truncf %302 : vector<16x512xf32> to vector<16x512xbf16>
    %c0_107 = arith.constant 0 : index
    %c0_108 = arith.constant 0 : index
    %304 = vector.load %arg17[%c0_107, %c0_108] : memref<512x768xbf16, #tpu.memory_space<vmem>>, vector<512x768xbf16>
    %cst_109 = arith.constant dense<0.000000e+00> : vector<16x768xf32>
    %305 = tpu.matmul %303, %304, %cst_109 {dimension_numbers = #tpu.dot_dimension_numbers<[1], [0], [0], [1], [0, 0, 1, 1], [], []>} : vector<16x512xbf16>, vector<512x768xbf16>, vector<16x768xf32> -> vector<16x768xf32>
    %c0_110 = arith.constant 0 : index
    %c0_111 = arith.constant 0 : index
    %306 = vector.load %arg18[%c0_110, %c0_111] : memref<1x768xf32, #tpu.memory_space<vmem>>, vector<1x768xf32>
    %307 = vector.broadcast %306 : vector<1x768xf32> to vector<16x768xf32>
    %308 = arith.addf %305, %307 : vector<16x768xf32>
    %309 = arith.addf %294, %308 : vector<16x768xf32>
    %c0_112 = arith.constant 0 : index
    %c0_113 = arith.constant 0 : index
    %310 = vector.load %arg19[%c0_112, %c0_113] : memref<1x768xf32, #tpu.memory_space<vmem>>, vector<1x768xf32>
    %c0_114 = arith.constant 0 : index
    %c0_115 = arith.constant 0 : index
    %311 = vector.load %arg20[%c0_114, %c0_115] : memref<1x768xf32, #tpu.memory_space<vmem>>, vector<1x768xf32>
    %cst_116 = arith.constant dense<0.000000e+00> : vector<16xf32>
    %312 = vector.multi_reduction <add>, %309, %cst_116 [1] : vector<16x768xf32> to vector<16xf32>
    %313 = vector.shape_cast %312 : vector<16xf32> to vector<16x1xf32>
    %cst_117 = arith.constant 7.680000e+02 : f32
    %314 = vector.broadcast %cst_117 : f32 to vector<16x1xf32>
    %315 = arith.divf %313, %314 : vector<16x1xf32>
    %316 = vector.broadcast %315 : vector<16x1xf32> to vector<16x768xf32>
    %317 = arith.subf %309, %316 : vector<16x768xf32>
    %318 = arith.mulf %317, %317 : vector<16x768xf32>
    %cst_118 = arith.constant dense<0.000000e+00> : vector<16xf32>
    %319 = vector.multi_reduction <add>, %318, %cst_118 [1] : vector<16x768xf32> to vector<16xf32>
    %320 = vector.shape_cast %319 : vector<16xf32> to vector<16x1xf32>
    %cst_119 = arith.constant 7.680000e+02 : f32
    %321 = vector.broadcast %cst_119 : f32 to vector<16x1xf32>
    %322 = arith.divf %320, %321 : vector<16x1xf32>
    %cst_120 = arith.constant 9.99999974E-6 : f32
    %323 = vector.broadcast %cst_120 : f32 to vector<16x1xf32>
    %324 = arith.addf %322, %323 : vector<16x1xf32>
    %325 = math.rsqrt %324 : vector<16x1xf32>
    %326 = vector.broadcast %325 : vector<16x1xf32> to vector<16x768xf32>
    %327 = arith.mulf %317, %326 : vector<16x768xf32>
    %328 = vector.broadcast %310 : vector<1x768xf32> to vector<16x768xf32>
    %329 = arith.mulf %327, %328 : vector<16x768xf32>
    %330 = vector.broadcast %311 : vector<1x768xf32> to vector<16x768xf32>
    %331 = arith.addf %329, %330 : vector<16x768xf32>
    %c0_121 = arith.constant 0 : index
    %c0_122 = arith.constant 0 : index
    %332 = vector.load %arg21[%c0_121, %c0_122] : memref<16x768xf32, #tpu.memory_space<vmem>>, vector<16x768xf32>
    tpu.vector_store %arg21[%c0_121, %c0_122], %331 {strides = array<i32>} : memref<16x768xf32, #tpu.memory_space<vmem>>, vector<16x768xf32>,
    return
  }
  func.func @transform_0(%arg0: i32) -> (i32, i32) {
    %c0_i32 = arith.constant 0 : i32
    %c0_i32_0 = arith.constant 0 : i32
    return %arg0, %c0_i32 : i32, i32
  }
  func.func @transform_1(%arg0: i32) -> (i32, i32) {
    %c0_i32 = arith.constant 0 : i32
    %c0_i32_0 = arith.constant 0 : i32
    return %arg0, %c0_i32 : i32, i32
  }
  func.func @transform_2(%arg0: i32) -> (i32, i32) {
    %c0_i32 = arith.constant 0 : i32
    %c0_i32_0 = arith.constant 0 : i32
    %c0_i32_1 = arith.constant 0 : i32
    return %c0_i32, %c0_i32_0 : i32, i32
  }
  func.func @transform_3(%arg0: i32) -> (i32, i32) {
    %c0_i32 = arith.constant 0 : i32
    %c0_i32_0 = arith.constant 0 : i32
    %c0_i32_1 = arith.constant 0 : i32
    return %c0_i32, %c0_i32_0 : i32, i32
  }
  func.func @transform_4(%arg0: i32) -> (i32, i32) {
    %c0_i32 = arith.constant 0 : i32
    %c0_i32_0 = arith.constant 0 : i32
    %c0_i32_1 = arith.constant 0 : i32
    return %c0_i32, %c0_i32_0 : i32, i32
  }
  func.func @transform_5(%arg0: i32) -> (i32, i32) {
    %c0_i32 = arith.constant 0 : i32
    %c0_i32_0 = arith.constant 0 : i32
    %c0_i32_1 = arith.constant 0 : i32
    return %c0_i32, %c0_i32_0 : i32, i32
  }
  func.func @transform_6(%arg0: i32) -> (i32, i32) {
    %c0_i32 = arith.constant 0 : i32
    %c0_i32_0 = arith.constant 0 : i32
    %c0_i32_1 = arith.constant 0 : i32
    return %c0_i32, %c0_i32_0 : i32, i32
  }
  func.func @transform_7(%arg0: i32) -> (i32, i32) {
    %c0_i32 = arith.constant 0 : i32
    %c0_i32_0 = arith.constant 0 : i32
    %c0_i32_1 = arith.constant 0 : i32
    return %c0_i32, %c0_i32_0 : i32, i32
  }
  func.func @transform_8(%arg0: i32) -> (i32, i32) {
    %c0_i32 = arith.constant 0 : i32
    %c0_i32_0 = arith.constant 0 : i32
    %c0_i32_1 = arith.constant 0 : i32
    return %c0_i32, %c0_i32_0 : i32, i32
  }
  func.func @transform_9(%arg0: i32) -> (i32, i32) {
    %c0_i32 = arith.constant 0 : i32
    %c0_i32_0 = arith.constant 0 : i32
    %c0_i32_1 = arith.constant 0 : i32
    return %c0_i32, %c0_i32_0 : i32, i32
  }
  func.func @transform_10(%arg0: i32) -> (i32, i32) {
    %c0_i32 = arith.constant 0 : i32
    %c0_i32_0 = arith.constant 0 : i32
    %c0_i32_1 = arith.constant 0 : i32
    return %c0_i32, %c0_i32_0 : i32, i32
  }
  func.func @transform_11(%arg0: i32) -> (i32, i32) {
    %c0_i32 = arith.constant 0 : i32
    %c0_i32_0 = arith.constant 0 : i32
    %c0_i32_1 = arith.constant 0 : i32
    return %c0_i32, %c0_i32_0 : i32, i32
  }
  func.func @transform_12(%arg0: i32) -> (i32, i32) {
    %c0_i32 = arith.constant 0 : i32
    %c0_i32_0 = arith.constant 0 : i32
    %c0_i32_1 = arith.constant 0 : i32
    return %c0_i32, %c0_i32_0 : i32, i32
  }
  func.func @transform_13(%arg0: i32) -> (i32, i32) {
    %c0_i32 = arith.constant 0 : i32
    %c0_i32_0 = arith.constant 0 : i32
    %c0_i32_1 = arith.constant 0 : i32
    return %c0_i32, %c0_i32_0 : i32, i32
  }
  func.func @transform_14(%arg0: i32) -> (i32, i32) {
    %c0_i32 = arith.constant 0 : i32
    %c0_i32_0 = arith.constant 0 : i32
    %c0_i32_1 = arith.constant 0 : i32
    return %c0_i32, %c0_i32_0 : i32, i32
  }
  func.func @transform_15(%arg0: i32) -> (i32, i32) {
    %c0_i32 = arith.constant 0 : i32
    %c0_i32_0 = arith.constant 0 : i32
    %c0_i32_1 = arith.constant 0 : i32
    return %c0_i32, %c0_i32_0 : i32, i32
  }
  func.func @transform_16(%arg0: i32) -> (i32, i32) {
    %c0_i32 = arith.constant 0 : i32
    %c0_i32_0 = arith.constant 0 : i32
    %c0_i32_1 = arith.constant 0 : i32
    return %c0_i32, %c0_i32_0 : i32, i32
  }
  func.func @transform_17(%arg0: i32) -> (i32, i32) {
    %c0_i32 = arith.constant 0 : i32
    %c0_i32_0 = arith.constant 0 : i32
    %c0_i32_1 = arith.constant 0 : i32
    return %c0_i32, %c0_i32_0 : i32, i32
  }
  func.func @transform_18(%arg0: i32) -> (i32, i32) {
    %c0_i32 = arith.constant 0 : i32
    %c0_i32_0 = arith.constant 0 : i32
    %c0_i32_1 = arith.constant 0 : i32
    return %c0_i32, %c0_i32_0 : i32, i32
  }
  func.func @transform_19(%arg0: i32) -> (i32, i32) {
    %c0_i32 = arith.constant 0 : i32
    %c0_i32_0 = arith.constant 0 : i32
    %c0_i32_1 = arith.constant 0 : i32
    return %c0_i32, %c0_i32_0 : i32, i32
  }
  func.func @transform_20(%arg0: i32) -> (i32, i32) {
    %c0_i32 = arith.constant 0 : i32
    %c0_i32_0 = arith.constant 0 : i32
    return %arg0, %c0_i32 : i32, i32
  }
}

</mosaic_0001>

<bundles_post_ra>
// kernel: cape_decoder_forward.1
= control target key start
LH: loop header
LB: loop body
LE: loop exit
PB: predicated region body
PF: predicated region fallthrough
CT: control target
= control target key end

     0   :  { %s23212_s0 = inlined_call_operand.vmem [shape: bf16[32,300], index: 0, kind: input, shape index: {}]   ;;  %s23213_s1 = inlined_call_operand.vmem [shape: bf16[64,768], index: 1, kind: input, shape index: {}]   ;;  %s23214_s2 = inlined_call_operand.hbm [shape: bf16[384,768], index: 2, kind: input, shape index: {}]   ;;  %s23215_s3 = inlined_call_operand.hbm [shape: f32[1,768], index: 3, kind: input, shape index: {}]   ;;  %s23216_s4 = inlined_call_operand.hbm [shape: f32[1,768], index: 4, kind: input, shape index: {}]   ;;  %s23217_s5 = inlined_call_operand.hbm [shape: f32[1,768], index: 5, kind: input, shape index: {}]   ;;  %s23218_s6 = inlined_call_operand.hbm [shape: bf16[768,768], index: 6, kind: input, shape index: {}]   ;;  %s23219_s7 = inlined_call_operand.hbm [shape: f32[1,768], index: 7, kind: input, shape index: {}]   ;;  %s23220_s8 = inlined_call_operand.hbm [shape: bf16[768,1536], index: 8, kind: input, shape index: {}]   ;;  %s23221_s9 = inlined_call_operand.hbm [shape: f32[1,1536], index: 9, kind: input, shape index: {}]   ;;  %s23222_s10 = inlined_call_operand.hbm [shape: bf16[768,768], index: 10, kind: input, shape index: {}]   ;;  %s23223_s11 = inlined_call_operand.hbm [shape: f32[1,768], index: 11, kind: input, shape index: {}]   ;;  %s23224_s12 = inlined_call_operand.hbm [shape: f32[1,768], index: 12, kind: input, shape index: {}]   ;;  %s23225_s13 = inlined_call_operand.hbm [shape: f32[1,768], index: 13, kind: input, shape index: {}]   ;;  %s23226_s14 = inlined_call_operand.hbm [shape: bf16[768,512], index: 14, kind: input, shape index: {}]   ;;  %s23227_s15 = inlined_call_operand.hbm [shape: f32[1,512], index: 15, kind: input, shape index: {}]   ;;  %s23228_s16 = inlined_call_operand.hbm [shape: bf16[512,768], index: 16, kind: input, shape index: {}]   ;;  %s23229_s17 = inlined_call_operand.hbm [shape: f32[1,768], index: 17, kind: input, shape index: {}]   ;;  %s23230_s18 = inlined_call_operand.hbm [shape: f32[1,768], index: 18, kind: input, shape index: {}]   ;;  %s23231_s19 = inlined_call_operand.hbm [shape: f32[1,768], index: 19, kind: input, shape index: {}]   ;;  %s23232_s20 = inlined_call_operand.hbm [shape: f32[32,768], index: 20, kind: output, shape index: {}]  }
   0x1   :  { %23272 = sst [smem:[#allocation65_spill]] %s23212_s0 }
   0x2   :  { %23273 = sst [smem:[#allocation66_spill]] %s23213_s1 }
   0x3   :  { %23274 = sst [smem:[#allocation67_spill]] %s23214_s2 }
   0x4   :  { %23275 = sst [smem:[#allocation68_spill]] %s23215_s3 }
   0x5   :  { %23276 = sst [smem:[#allocation69_spill]] %s23216_s4 }
   0x6   :  { %23277 = sst [smem:[#allocation70_spill]] %s23217_s5 }
   0x7   :  { %23278 = sst [smem:[#allocation71_spill]] %s23219_s7 }
   0x8   :  { %23279 = sst [smem:[#allocation72_spill]] %s23221_s9 }
   0x9   :  { %23280 = sst [smem:[#allocation73_spill]] %s23223_s11 }
   0xa   :  { %23281 = sst [smem:[#allocation74_spill]] %s23225_s13 }
   0xb   :  { %23282 = sst [smem:[#allocation75_spill]] %s23232_s20 }
   0xc   :  { %25 = vsyncpa [#allocation3], 0 }
   0xd   :  { %26 = vsyncpa [#allocation6], 0 }
   0xe   :  { %27 = vsyncpa [#allocation9], 0 }
   0xf   :  { %28 = vsyncpa [#allocation12], 0 }
  0x10   :  { %29 = vsyncpa [#allocation15], 0 }
  0x11   :  { %30 = vsyncpa [#allocation18], 0 }
  0x12   :  { %31 = vsyncpa [#allocation21], 0 }
  0x13   :  { %32 = vsyncpa [#allocation24], 0 }
  0x14   :  { %33 = vsyncpa [#allocation27], 0 }
  0x15   :  { %34 = vsyncpa [#allocation30], 0 }
  0x16   :  { %35 = vsyncpa [#allocation4], 0 }
  0x17   :  { %37 = vsyncpa [#allocation4 + $0x1], 0  ;;  %s21642_s1 = smov 0   ;;  %s21644_s22 = smov 0  }
  0x18   :  { %s21646_s23 = smov 0   ;;  %s21648_s24 = smov 0  }
  0x19 LB: > { %23283 = sst [smem:[#allocation43_spill]] %s21493_s1  ;;  %s21663_s2 = sadd.s32 4294967295, %s21505_s24   ;;  %s21505_s24 = sphi %s21648_s24, %s23381_s24   ;;  %s21501_s23 = sphi %s21646_s23, %s23384_s23   ;;  %s21497_s22 = sphi %s21644_s22, %s23383_s22   ;;  %s21493_s1 = sphi %s21642_s1, %s23382_s1  }
  0x1a   : > { %23284 = sst [smem:[#allocation44_spill]] %s21497_s22  ;;  %s15801_s25 = sadd.s32 4294967294, %s21505_s24  }
  0x1b   : > { %23285 = sst [smem:[#allocation45_spill]] %s21501_s23  ;;  %s21667_s3 = sadd.s32 1, %s21505_s24  }
  0x1c   : > { %23286 = sst [smem:[#allocation46_spill]] %s21505_s24  ;;  %s480_s26 = sadd.s32 1, %s21501_s23 }
  0x1d   : > { %23287 = sst [smem:[#allocation47_spill]] %s21663_s2  ;;  %s477_s27 = ssub.s32 %s21505_s24, %s21667_s3 }
  0x1e   : > { %23288 = sst [smem:[#allocation48_spill]] %s21667_s3  ;;  %p490_p0 = scmp.ne.s32.totalorder %s21501_s23, %s21497_s22 }
  0x1f   : > { %p478_p1 = scmp.eq.s32.totalorder %s477_s27, 0  ;;  %p491_p2 = scmp.eq.s32.totalorder %s21663_s2, 1 }
  0x20   : > { %p496_p3 = scmp.ne.s32.totalorder %s21497_s22, %s21493_s1  ;;  %p497_p4 = scmp.eq.s32.totalorder %s15801_s25, 1 }
  0x21   : > { %s21678_s28 = scalar_select %p478_p1, %s21501_s23, %s480_s26  }
  0x22   : > { %p21680_p5 = por %p491_p2, %p490_p0  ;;  %p21684_p6 = por %p497_p4, %p496_p3 }
  0x23   : > { %23289 = sst [smem:[#allocation49_spill]] %s21678_s28  ;;  %p15802_p7 = scmp.ge.s32.totalorder %s21505_s24, 1 }
  0x24   : > { %s23290_s4 = scalar_select %p21680_p5, 1, 0 }
  0x25   : > { %s23292_s29 = scalar_select %p21684_p6, 1, 0 }
  0x26   : > { %23291 = sst [smem:[#allocation50_spill]] %s23290_s4  ;;  %p504_p8 = scmp.lt.s32.totalorder %s21505_s24, 3 }
  0x27   : > { %23293 = sst [smem:[#allocation51_spill]] %s23292_s29  ;;  %p23245_p9 = scmp.eq.s32.totalorder %s21663_s2, 0 }
  0x28   : > { %p21691_p10 = pnand %p15802_p7, %p504_p8  ;;  %s21507_s0 = smov [#allocation5]  }
  0x29   : > { %s530_s21 = sshll.u32 %s21507_s0, 4  ;;  %s21508_s25 = smov [#allocation8]   ;;  %s531_s21 = int_to_ptr.vmem [resolvable:$true] %s530_s21 }
  0x2a   : > { %s23294_s30 = scalar_select %p21691_p10, 1, 0 }
  0x2b   : > { %p18118_p11 = pneg %p21691_p10  ;;  %s552_s26 = sshll.u32 %s21508_s25, 4  ;;  %s21703_s26 = int_to_ptr.vmem [resolvable:$true] %s552_s26 }
  0x2c   : > { %s21509_s28 = smov [#allocation11]   ;;  %s23296_s0 = sld [smem:[#allocation68_spill]] }
  0x2d   : > { %p21699_p12 = pnand %p23245_p9, %p18118_p11  ;;  %s576_s23 = sshll.u32 %s21509_s28, 4  ;;  %s21705_s23 = int_to_ptr.vmem [resolvable:$true] %s576_s23 }
  0x2f   : > { %p21715_p0 = pneg %p21699_p12 }
  0x32   : > { %s20899_s1 = scalar_lea.hbm %s23296_s0, 96 }
  0x33   : > { %p20900_p13 = scmp.ne.s32.totalorder %s23296_s0, %s20899_s1  ;;  %p20906_p3 = scmp.lt.u32.totalorder %s20899_s1, %s23296_s0 }
  0x35   : > { %p20902_p1 = pnand %p21715_p0, %p20900_p13 }
  0x37   : > { %p20903_p2 = pneg %p20902_p1 }
  0x39   : > { %p20908_p4 = pnand %p20906_p3, %p20903_p2 }
  0x3b   : > { %20911 = shalt.err (!%p20908_p4)
}
  0x3c   : > { %s20912_s3 = scalar_lea.vmem %s531_s21, 96  ;;  %p20920_p9 = scmp.lt.s32.totalorder %s531_s21, %s531_s21 }
  0x3d   : > { %p20913_p7 = scmp.ne.s32.totalorder %s531_s21, %s20912_s3  ;;  %p20921_p6 = scmp.lt.s32.totalorder %s20912_s3, %s20912_s3 }
  0x3f   : > { %p20915_p8 = pnand %p20913_p7, %p21715_p0  ;;  %p20922_p5 = por %p20921_p6, %p20920_p9 }
  0x41   : > { %p20916_p11 = pneg %p20915_p8 }
  0x43   : > { %p20923_p10 = pnand %p20922_p5, %p20916_p11 }
  0x45   : > { %20926 = shalt.err (!%p20923_p10)
}
  0x46   : > { %18124 = dma.hbm_to_vmem [thread:$0]  (!%p21699_p12), %s23296_s0, 96, %s531_s21, [#allocation6]  }
  0x47   : > { %s23298_s5 = sld [smem:[#allocation70_spill]] }
  0x4d   : > { %s20927_s29 = scalar_lea.hbm %s23298_s5, 96 }
  0x4e   : > { %p20928_p13 = scmp.ne.s32.totalorder %s23298_s5, %s20927_s29  ;;  %p20934_p5 = scmp.lt.u32.totalorder %s20927_s29, %s23298_s5 }
  0x50   : > { %p20930_p1 = pnand %p20928_p13, %p21715_p0 }
  0x52   : > { %p20931_p6 = pneg %p20930_p1 }
  0x54   : > { %p20936_p9 = pnand %p20934_p5, %p20931_p6 }
  0x56   : > { %20939 = shalt.err (!%p20936_p9)
}
  0x57   : > { %s20940_s21 = scalar_lea.vmem %s21703_s26, 96  ;;  %p20948_p4 = scmp.lt.s32.totalorder %s21703_s26, %s21703_s26 }
  0x58   : > { %p20941_p10 = scmp.ne.s32.totalorder %s21703_s26, %s20940_s21  ;;  %p20949_p7 = scmp.lt.s32.totalorder %s20940_s21, %s20940_s21 }
  0x5a   : > { %p20943_p2 = pnand %p20941_p10, %p21715_p0  ;;  %p20950_p8 = por %p20949_p7, %p20948_p4 }
  0x5c   : > { %p20944_p3 = pneg %p20943_p2 }
  0x5e   : > { %p20951_p11 = pnand %p20950_p8, %p20944_p3 }
  0x60   : > { %20954 = shalt.err (!%p20951_p11)
}
  0x61   : > { %18130 = dma.hbm_to_vmem [thread:$0]  (!%p21699_p12), %s23298_s5, 96, %s21703_s26, [#allocation9]  }
  0x62   : > { %s23299_s7 = sld [smem:[#allocation71_spill]] }
  0x68   : > { %s20955_s20 = scalar_lea.hbm %s23299_s7, 96 }
  0x69   : > { %p20956_p13 = scmp.ne.s32.totalorder %s23299_s7, %s20955_s20  ;;  %p20962_p5 = scmp.lt.u32.totalorder %s20955_s20, %s23299_s7 }
  0x6b   : > { %p20958_p1 = pnand %p20956_p13, %p21715_p0 }
  0x6d   : > { %p20959_p6 = pneg %p20958_p1 }
  0x6f   : > { %p20964_p9 = pnand %p20962_p5, %p20959_p6 }
  0x71   : > { %20967 = shalt.err (!%p20964_p9)
}
  0x72   : > { %s20968_s26 = scalar_lea.vmem %s21705_s23, 96  ;;  %p20976_p4 = scmp.lt.s32.totalorder %s21705_s23, %s21705_s23 }
  0x73   : > { %p20969_p10 = scmp.ne.s32.totalorder %s21705_s23, %s20968_s26  ;;  %p20977_p7 = scmp.lt.s32.totalorder %s20968_s26, %s20968_s26 }
  0x75   : > { %p20971_p2 = pnand %p20969_p10, %p21715_p0  ;;  %p20978_p8 = por %p20977_p7, %p20976_p4 }
  0x77   : > { %p20972_p3 = pneg %p20971_p2 }
  0x79   : > { %p20979_p11 = pnand %p20978_p8, %p20972_p3 }
  0x7b   : > { %20982 = shalt.err (!%p20979_p11)
}
  0x7c   : > { %18136 = dma.hbm_to_vmem [thread:$0]  (!%p21699_p12), %s23299_s7, 96, %s21705_s23, [#allocation12]  }
  0x7d   : > { %s21510_s2 = smov [#allocation14]   ;;  %s21511_s4 = smov [#allocation17]  }
  0x7e   : > { %s600_s24 = sshll.u32 %s21510_s2, 4  ;;  %s624_s20 = sshll.u32 %s21511_s4, 4  ;;  %s601_s24 = int_to_ptr.vmem [resolvable:$true] %s600_s24  ;;  %s625_s20 = int_to_ptr.vmem [resolvable:$true] %s624_s20 }
  0x7f   : > { %s23300_s9 = sld [smem:[#allocation72_spill]] }
  0x85   : > { %s20983_s28 = scalar_lea.hbm %s23300_s9, 192 }
  0x86   : > { %p20984_p13 = scmp.ne.s32.totalorder %s23300_s9, %s20983_s28  ;;  %p20990_p5 = scmp.lt.u32.totalorder %s20983_s28, %s23300_s9 }
  0x88   : > { %p20986_p1 = pnand %p20984_p13, %p21715_p0 }
  0x8a   : > { %p20987_p6 = pneg %p20986_p1 }
  0x8c   : > { %p20992_p9 = pnand %p20990_p5, %p20987_p6 }
  0x8e   : > { %20995 = shalt.err (!%p20992_p9)
}
  0x8f   : > { %s20996_s23 = scalar_lea.vmem %s601_s24, 192  ;;  %p21004_p4 = scmp.lt.s32.totalorder %s601_s24, %s601_s24 }
  0x90   : > { %p20997_p10 = scmp.ne.s32.totalorder %s601_s24, %s20996_s23  ;;  %p21005_p7 = scmp.lt.s32.totalorder %s20996_s23, %s20996_s23 }
  0x92   : > { %p20999_p2 = pnand %p20997_p10, %p21715_p0  ;;  %p21006_p8 = por %p21005_p7, %p21004_p4 }
  0x94   : > { %p21000_p3 = pneg %p20999_p2 }
  0x96   : > { %p21007_p11 = pnand %p21006_p8, %p21000_p3 }
  0x98   : > { %21010 = shalt.err (!%p21007_p11)
}
  0x99   : > { %18142 = dma.hbm_to_vmem [thread:$0]  (!%p21699_p12), %s23300_s9, 192, %s601_s24, [#allocation15]  }
  0x9a   : > { %s23301_s11 = sld [smem:[#allocation73_spill]] }
  0xa0   : > { %s21011_s1 = scalar_lea.hbm %s23301_s11, 96 }
  0xa1   : > { %p21012_p13 = scmp.ne.s32.totalorder %s23301_s11, %s21011_s1  ;;  %p21018_p5 = scmp.lt.u32.totalorder %s21011_s1, %s23301_s11 }
  0xa3   : > { %p21014_p1 = pnand %p21012_p13, %p21715_p0 }
  0xa5   : > { %p21015_p6 = pneg %p21014_p1 }
  0xa7   : > { %p21020_p9 = pnand %p21018_p5, %p21015_p6 }
  0xa9   : > { %21023 = shalt.err (!%p21020_p9)
}
  0xaa   : > { %s21024_s21 = scalar_lea.vmem %s625_s20, 96  ;;  %p21032_p4 = scmp.lt.s32.totalorder %s625_s20, %s625_s20 }
  0xab   : > { %p21025_p10 = scmp.ne.s32.totalorder %s625_s20, %s21024_s21  ;;  %p21033_p7 = scmp.lt.s32.totalorder %s21024_s21, %s21024_s21 }
  0xad   : > { %p21027_p2 = pnand %p21025_p10, %p21715_p0  ;;  %p21034_p8 = por %p21033_p7, %p21032_p4 }
  0xaf   : > { %p21028_p3 = pneg %p21027_p2 }
  0xb1   : > { %p21035_p11 = pnand %p21034_p8, %p21028_p3 }
  0xb3   : > { %21038 = shalt.err (!%p21035_p11)
}
  0xb4   : > { %18148 = dma.hbm_to_vmem [thread:$0]  (!%p21699_p12), %s23301_s11, 96, %s625_s20, [#allocation18]  }
  0xb5   : > { %s21512_s22 = smov [#allocation20]   ;;  %s21513_s0 = smov [#allocation23]  }
  0xb6   : > { %s646_s2 = sshll.u32 %s21512_s22, 4  ;;  %s670_s4 = sshll.u32 %s21513_s0, 4  ;;  %s647_s2 = int_to_ptr.vmem [resolvable:$true] %s646_s2  ;;  %s671_s4 = int_to_ptr.vmem [resolvable:$true] %s670_s4 }
  0xb7   : > { %s23302_s13 = sld [smem:[#allocation74_spill]] }
  0xbd   : > { %s21039_s28 = scalar_lea.hbm %s23302_s13, 96 }
  0xbe   : > { %p21040_p13 = scmp.ne.s32.totalorder %s23302_s13, %s21039_s28  ;;  %p21046_p5 = scmp.lt.u32.totalorder %s21039_s28, %s23302_s13 }
  0xc0   : > { %p21042_p1 = pnand %p21040_p13, %p21715_p0 }
  0xc2   : > { %p21043_p6 = pneg %p21042_p1 }
  0xc4   : > { %p21048_p9 = pnand %p21046_p5, %p21043_p6 }
  0xc6   : > { %21051 = shalt.err (!%p21048_p9)
}
  0xc7   : > { %s21052_s20 = scalar_lea.vmem %s647_s2, 96  ;;  %p21060_p4 = scmp.lt.s32.totalorder %s647_s2, %s647_s2 }
  0xc8   : > { %p21053_p10 = scmp.ne.s32.totalorder %s647_s2, %s21052_s20  ;;  %p21061_p7 = scmp.lt.s32.totalorder %s21052_s20, %s21052_s20 }
  0xca   : > { %p21055_p2 = pnand %p21053_p10, %p21715_p0  ;;  %p21062_p8 = por %p21061_p7, %p21060_p4 }
  0xcc   : > { %p21056_p3 = pneg %p21055_p2 }
  0xce   : > { %p21063_p11 = pnand %p21062_p8, %p21056_p3 }
  0xd0   : > { %21066 = shalt.err (!%p21063_p11)
}
  0xd1   : > { %18154 = dma.hbm_to_vmem [thread:$0]  (!%p21699_p12), %s23302_s13, 96, %s647_s2, [#allocation21]  }
  0xd2   : > { %s21067_s29 = scalar_lea.hbm %s23227_s15, 64 }
  0xd3   : > { %p21068_p13 = scmp.ne.s32.totalorder %s23227_s15, %s21067_s29  ;;  %p21074_p5 = scmp.lt.u32.totalorder %s21067_s29, %s23227_s15 }
  0xd5   : > { %p21070_p1 = pnand %p21068_p13, %p21715_p0 }
  0xd7   : > { %p21071_p6 = pneg %p21070_p1 }
  0xd9   : > { %p21076_p9 = pnand %p21074_p5, %p21071_p6 }
  0xdb   : > { %21079 = shalt.err (!%p21076_p9)
}
  0xdc   : > { %s21080_s24 = scalar_lea.vmem %s671_s4, 64  ;;  %p21088_p4 = scmp.lt.s32.totalorder %s671_s4, %s671_s4 }
  0xdd   : > { %p21081_p10 = scmp.ne.s32.totalorder %s671_s4, %s21080_s24  ;;  %p21089_p7 = scmp.lt.s32.totalorder %s21080_s24, %s21080_s24 }
  0xdf   : > { %p21083_p2 = pnand %p21081_p10, %p21715_p0  ;;  %p21090_p8 = por %p21089_p7, %p21088_p4 }
  0xe1   : > { %p21084_p3 = pneg %p21083_p2 }
  0xe3   : > { %p21091_p11 = pnand %p21090_p8, %p21084_p3 }
  0xe5   : > { %21094 = shalt.err (!%p21091_p11)
}
  0xe6   : > { %18160 = dma.hbm_to_vmem [thread:$0]  (!%p21699_p12), %s23227_s15, 64, %s671_s4, [#allocation24]  }
  0xe7   : > { %s21514_s23 = smov [#allocation26]   ;;  %s21515_s0 = smov [#allocation2]  }
  0xe8   : > { %s694_s22 = sshll.u32 %s21514_s23, 4  ;;  %s516_s1 = sshll.u32 %s21515_s0, 4  ;;  %s695_s22 = int_to_ptr.vmem [resolvable:$true] %s694_s22  ;;  %s517_s1 = int_to_ptr.vmem [resolvable:$true] %s516_s1 }
  0xe9   : > { %s21095_s3 = scalar_lea.hbm %s23229_s17, 96 }
  0xea   : > { %p21096_p13 = scmp.ne.s32.totalorder %s23229_s17, %s21095_s3  ;;  %p21102_p5 = scmp.lt.u32.totalorder %s21095_s3, %s23229_s17 }
  0xec   : > { %p21098_p1 = pnand %p21096_p13, %p21715_p0 }
  0xee   : > { %p21099_p6 = pneg %p21098_p1 }
  0xf0   : > { %p21104_p9 = pnand %p21102_p5, %p21099_p6 }
  0xf2   : > { %21107 = shalt.err (!%p21104_p9)
}
  0xf3   : > { %s21108_s4 = scalar_lea.vmem %s695_s22, 96  ;;  %p21116_p4 = scmp.lt.s32.totalorder %s695_s22, %s695_s22 }
  0xf4   : > { %p21109_p10 = scmp.ne.s32.totalorder %s695_s22, %s21108_s4  ;;  %p21117_p7 = scmp.lt.s32.totalorder %s21108_s4, %s21108_s4 }
  0xf6   : > { %p21111_p2 = pnand %p21109_p10, %p21715_p0  ;;  %p21118_p8 = por %p21117_p7, %p21116_p4 }
  0xf8   : > { %p21112_p3 = pneg %p21111_p2 }
  0xfa   : > { %p21119_p11 = pnand %p21118_p8, %p21112_p3 }
  0xfc   : > { %21122 = shalt.err (!%p21119_p11)
}
  0xfd   : > { %18166 = dma.hbm_to_vmem [thread:$0]  (!%p21699_p12), %s23229_s17, 96, %s695_s22, [#allocation27]  }
  0xfe   : > { %s23303_s28 = sld [smem:[#allocation67_spill]] }
 0x104   : > { %s21123_s3 = scalar_lea.hbm %s23303_s28, 18432 }
 0x105   : > { %p21124_p13 = scmp.ne.s32.totalorder %s23303_s28, %s21123_s3  ;;  %p21130_p5 = scmp.lt.u32.totalorder %s21123_s3, %s23303_s28 }
 0x107   : > { %p21126_p1 = pnand %p21124_p13, %p21715_p0 }
 0x109   : > { %p21127_p6 = pneg %p21126_p1 }
 0x10b   : > { %p21132_p9 = pnand %p21130_p5, %p21127_p6 }
 0x10d   : > { %21135 = shalt.err (!%p21132_p9)
}
 0x10e   : > { %s21136_s4 = scalar_lea.vmem %s517_s1, 18432  ;;  %p21144_p4 = scmp.lt.s32.totalorder %s517_s1, %s517_s1 }
 0x10f   : > { %p21137_p10 = scmp.ne.s32.totalorder %s517_s1, %s21136_s4  ;;  %p21145_p7 = scmp.lt.s32.totalorder %s21136_s4, %s21136_s4 }
 0x111   : > { %p21139_p2 = pnand %p21137_p10, %p21715_p0  ;;  %p21146_p8 = por %p21145_p7, %p21144_p4 }
 0x113   : > { %p21140_p3 = pneg %p21139_p2 }
 0x115   : > { %p21147_p11 = pnand %p21146_p8, %p21140_p3 }
 0x117   : > { %21150 = shalt.err (!%p21147_p11)
}
 0x118   : > { %s23253_s22 = smov 384   ;;  %s23254_s20 = smov 24  }
 0x119   : > { %18121 = dma.hbm_to_vmem [thread:$0]  (!%p21699_p12), %s23303_s28, 18432, %s517_s1, [#allocation3], %s23253_s22, %s23253_s22, %s23254_s20  }
 0x11a   : > { %s21518_s29 = smov [#allocation7]   ;;  %s21519_s26 = smov [#allocation10]  }
 0x11b   : > { %s541_s3 = sshll.u32 %s21518_s29, 4  ;;  %s562_s21 = sshll.u32 %s21519_s26, 4  ;;  %s542_s3 = int_to_ptr.vmem [resolvable:$true] %s541_s3  ;;  %s563_s21 = int_to_ptr.vmem [resolvable:$true] %s562_s21 }
 0x11c   : > { %s23304_s4 = sld [smem:[#allocation69_spill]] }
 0x122   : > { %s21151_s5 = scalar_lea.hbm %s23304_s4, 96 }
 0x123   : > { %p21152_p13 = scmp.ne.s32.totalorder %s23304_s4, %s21151_s5  ;;  %p21158_p5 = scmp.lt.u32.totalorder %s21151_s5, %s23304_s4 }
 0x125   : > { %p21154_p1 = pnand %p21152_p13, %p21715_p0 }
 0x127   : > { %p21155_p6 = pneg %p21154_p1 }
 0x129   : > { %p21160_p9 = pnand %p21158_p5, %p21155_p6 }
 0x12b   : > { %21163 = shalt.err (!%p21160_p9)
}
 0x12c   : > { %s21164_s1 = scalar_lea.vmem %s542_s3, 96  ;;  %p21172_p4 = scmp.lt.s32.totalorder %s542_s3, %s542_s3 }
 0x12d   : > { %p21165_p10 = scmp.ne.s32.totalorder %s542_s3, %s21164_s1  ;;  %p21173_p7 = scmp.lt.s32.totalorder %s21164_s1, %s21164_s1 }
 0x12f   : > { %p21167_p2 = pnand %p21165_p10, %p21715_p0  ;;  %p21174_p8 = por %p21173_p7, %p21172_p4 }
 0x131   : > { %p21168_p3 = pneg %p21167_p2 }
 0x133   : > { %p21175_p11 = pnand %p21174_p8, %p21168_p3 }
 0x135   : > { %21178 = shalt.err (!%p21175_p11)
}
 0x136   : > { %18127 = dma.hbm_to_vmem [thread:$0]  (!%p21699_p12), %s23304_s4, 96, %s542_s3, [#allocation6]  }
 0x137   : > { %s21179_s13 = scalar_lea.hbm %s23218_s6, 36864 }
 0x138   : > { %p21180_p13 = scmp.ne.s32.totalorder %s23218_s6, %s21179_s13  ;;  %p21186_p5 = scmp.lt.u32.totalorder %s21179_s13, %s23218_s6 }
 0x13a   : > { %p21182_p1 = pnand %p21180_p13, %p21715_p0 }
 0x13c   : > { %p21183_p6 = pneg %p21182_p1 }
 0x13e   : > { %p21188_p9 = pnand %p21186_p5, %p21183_p6 }
 0x140   : > { %21191 = shalt.err (!%p21188_p9)
}
 0x141   : > { %s21192_s24 = scalar_lea.vmem %s563_s21, 36864  ;;  %p21200_p4 = scmp.lt.s32.totalorder %s563_s21, %s563_s21 }
 0x142   : > { %p21193_p10 = scmp.ne.s32.totalorder %s563_s21, %s21192_s24  ;;  %p21201_p7 = scmp.lt.s32.totalorder %s21192_s24, %s21192_s24 }
 0x144   : > { %p21195_p2 = pnand %p21193_p10, %p21715_p0  ;;  %p21202_p8 = por %p21201_p7, %p21200_p4 }
 0x146   : > { %p21196_p3 = pneg %p21195_p2 }
 0x148   : > { %p21203_p11 = pnand %p21202_p8, %p21196_p3 }
 0x14a   : > { %21206 = shalt.err (!%p21203_p11)
}
 0x14b   : > { %18133 = dma.hbm_to_vmem [thread:$0]  (!%p21699_p12), %s23218_s6, 36864, %s563_s21, [#allocation9], %s23253_s22, %s23253_s22, %s23254_s20  }
 0x14c   : > { %s21520_s1 = smov [#allocation13]   ;;  %s21207_s11 = scalar_lea.hbm %s23220_s8, 73728 }
 0x14d   : > { %s586_s7 = sshll.u32 %s21520_s1, 4  ;;  %p21208_p13 = scmp.ne.s32.totalorder %s23220_s8, %s21207_s11  ;;  %s587_s7 = int_to_ptr.vmem [resolvable:$true] %s586_s7 }
 0x14e   : > { %p21214_p5 = scmp.lt.u32.totalorder %s21207_s11, %s23220_s8 }
 0x14f   : > { %p21210_p1 = pnand %p21208_p13, %p21715_p0 }
 0x151   : > { %p21211_p6 = pneg %p21210_p1 }
 0x153   : > { %p21216_p9 = pnand %p21214_p5, %p21211_p6 }
 0x155   : > { %21219 = shalt.err (!%p21216_p9)
}
 0x156   : > { %s21220_s21 = scalar_lea.vmem %s587_s7, 73728  ;;  %p21228_p4 = scmp.lt.s32.totalorder %s587_s7, %s587_s7 }
 0x157   : > { %p21221_p10 = scmp.ne.s32.totalorder %s587_s7, %s21220_s21  ;;  %p21229_p7 = scmp.lt.s32.totalorder %s21220_s21, %s21220_s21 }
 0x159   : > { %p21223_p2 = pnand %p21221_p10, %p21715_p0  ;;  %p21230_p8 = por %p21229_p7, %p21228_p4 }
 0x15b   : > { %p21224_p3 = pneg %p21223_p2 }
 0x15d   : > { %p21231_p11 = pnand %p21230_p8, %p21224_p3 }
 0x15f   : > { %21234 = shalt.err (!%p21231_p11)
}
 0x160   : > { %s21521_s26 = smov 768   ;;  %s21522_s24 = smov 48  }
 0x161   : > { %18139 = dma.hbm_to_vmem [thread:$0]  (!%p21699_p12), %s23220_s8, 73728, %s587_s7, [#allocation12], %s21521_s26, %s21521_s26, %s21522_s24  }
 0x162   : > { %s21523_s1 = smov [#allocation16]   ;;  %s21524_s5 = smov [#allocation19]  }
 0x163   : > { %s610_s9 = sshll.u32 %s21523_s1, 4  ;;  %s635_s11 = sshll.u32 %s21524_s5, 4  ;;  %s611_s9 = int_to_ptr.vmem [resolvable:$true] %s610_s9  ;;  %s21945_s11 = int_to_ptr.vmem [resolvable:$true] %s635_s11 }
 0x164   : > { %s21235_s0 = scalar_lea.hbm %s23222_s10, 36864 }
 0x165   : > { %p21236_p13 = scmp.ne.s32.totalorder %s23222_s10, %s21235_s0  ;;  %p21242_p5 = scmp.lt.u32.totalorder %s21235_s0, %s23222_s10 }
 0x167   : > { %p21238_p1 = pnand %p21236_p13, %p21715_p0 }
 0x169   : > { %p21239_p6 = pneg %p21238_p1 }
 0x16b   : > { %p21244_p9 = pnand %p21242_p5, %p21239_p6 }
 0x16d   : > { %21247 = shalt.err (!%p21244_p9)
}
 0x16e   : > { %s21248_s26 = scalar_lea.vmem %s611_s9, 36864  ;;  %p21256_p4 = scmp.lt.s32.totalorder %s611_s9, %s611_s9 }
 0x16f   : > { %p21249_p10 = scmp.ne.s32.totalorder %s611_s9, %s21248_s26  ;;  %p21257_p7 = scmp.lt.s32.totalorder %s21248_s26, %s21248_s26 }
 0x171   : > { %p21251_p2 = pnand %p21249_p10, %p21715_p0  ;;  %p21258_p8 = por %p21257_p7, %p21256_p4 }
 0x173   : > { %p21252_p3 = pneg %p21251_p2 }
 0x175   : > { %p21259_p11 = pnand %p21258_p8, %p21252_p3 }
 0x177   : > { %21262 = shalt.err (!%p21259_p11)
}
 0x178   : > { %18145 = dma.hbm_to_vmem [thread:$0]  (!%p21699_p12), %s23222_s10, 36864, %s611_s9, [#allocation15], %s23253_s22, %s23253_s22, %s23254_s20  }
 0x179   : > { %s21263_s13 = scalar_lea.hbm %s23224_s12, 96 }
 0x17a   : > { %p21264_p13 = scmp.ne.s32.totalorder %s23224_s12, %s21263_s13  ;;  %p21270_p5 = scmp.lt.u32.totalorder %s21263_s13, %s23224_s12 }
 0x17c   : > { %p21266_p1 = pnand %p21264_p13, %p21715_p0 }
 0x17e   : > { %p21267_p6 = pneg %p21266_p1 }
 0x180   : > { %p21272_p9 = pnand %p21270_p5, %p21267_p6 }
 0x182   : > { %21275 = shalt.err (!%p21272_p9)
}
 0x183   : > { %s21276_s9 = scalar_lea.vmem %s21945_s11, 96  ;;  %p21284_p4 = scmp.lt.s32.totalorder %s21945_s11, %s21945_s11 }
 0x184   : > { %p21277_p10 = scmp.ne.s32.totalorder %s21945_s11, %s21276_s9  ;;  %p21285_p7 = scmp.lt.s32.totalorder %s21276_s9, %s21276_s9 }
 0x186   : > { %p21279_p2 = pnand %p21277_p10, %p21715_p0  ;;  %p21286_p8 = por %p21285_p7, %p21284_p4 }
 0x188   : > { %p21280_p3 = pneg %p21279_p2 }
 0x18a   : > { %p21287_p11 = pnand %p21286_p8, %p21280_p3 }
 0x18c   : > { %21290 = shalt.err (!%p21287_p11)
}
 0x18d   : > { %18151 = dma.hbm_to_vmem [thread:$0]  (!%p21699_p12), %s23224_s12, 96, %s21945_s11, [#allocation18]  }
 0x18e   : > { %s21525_s26 = smov [#allocation22]   ;;  %s21291_s5 = scalar_lea.hbm %s23226_s14, 24576 }
 0x18f   : > { %s656_s24 = sshll.u32 %s21525_s26, 4  ;;  %p21292_p13 = scmp.ne.s32.totalorder %s23226_s14, %s21291_s5  ;;  %s657_s24 = int_to_ptr.vmem [resolvable:$true] %s656_s24 }
 0x190   : > { %p21298_p5 = scmp.lt.u32.totalorder %s21291_s5, %s23226_s14 }
 0x191   : > { %p21294_p1 = pnand %p21292_p13, %p21715_p0 }
 0x193   : > { %p21295_p6 = pneg %p21294_p1 }
 0x195   : > { %p21300_p9 = pnand %p21298_p5, %p21295_p6 }
 0x197   : > { %21303 = shalt.err (!%p21300_p9)
}
 0x198   : > { %s21304_s11 = scalar_lea.vmem %s657_s24, 24576  ;;  %p21312_p4 = scmp.lt.s32.totalorder %s657_s24, %s657_s24 }
 0x199   : > { %p21305_p10 = scmp.ne.s32.totalorder %s657_s24, %s21304_s11  ;;  %p21313_p7 = scmp.lt.s32.totalorder %s21304_s11, %s21304_s11 }
 0x19b   : > { %p21307_p2 = pnand %p21305_p10, %p21715_p0  ;;  %p21314_p8 = por %p21313_p7, %p21312_p4 }
 0x19d   : > { %p21308_p3 = pneg %p21307_p2 }
 0x19f   : > { %p21315_p11 = pnand %p21314_p8, %p21308_p3 }
 0x1a1   : > { %21318 = shalt.err (!%p21315_p11)
}
 0x1a2   : > { %s21526_s21 = smov 256   ;;  %s21527_s9 = smov 16  }
 0x1a3   : > { %18157 = dma.hbm_to_vmem [thread:$0]  (!%p21699_p12), %s23226_s14, 24576, %s657_s24, [#allocation21], %s21526_s21, %s21526_s21, %s21527_s9  }
 0x1a4   : > { %s21528_s26 = smov [#allocation25]   ;;  %s21529_s1 = smov [#allocation28]  }
 0x1a5   : > { %s680_s2 = sshll.u32 %s21528_s26, 4  ;;  %s705_s5 = sshll.u32 %s21529_s1, 4  ;;  %s681_s2 = int_to_ptr.vmem [resolvable:$true] %s680_s2  ;;  %s706_s5 = int_to_ptr.vmem [resolvable:$true] %s705_s5 }
 0x1a6   : > { %s21319_s0 = scalar_lea.hbm %s23228_s16, 24576 }
 0x1a7   : > { %p21320_p13 = scmp.ne.s32.totalorder %s23228_s16, %s21319_s0  ;;  %p21326_p5 = scmp.lt.u32.totalorder %s21319_s0, %s23228_s16 }
 0x1a9   : > { %p21322_p1 = pnand %p21320_p13, %p21715_p0 }
 0x1ab   : > { %p21323_p6 = pneg %p21322_p1 }
 0x1ad   : > { %p21328_p9 = pnand %p21326_p5, %p21323_p6 }
 0x1af   : > { %21331 = shalt.err (!%p21328_p9)
}
 0x1b0   : > { %s21332_s24 = scalar_lea.vmem %s681_s2, 24576  ;;  %p21340_p4 = scmp.lt.s32.totalorder %s681_s2, %s681_s2 }
 0x1b1   : > { %p21333_p10 = scmp.ne.s32.totalorder %s681_s2, %s21332_s24  ;;  %p21341_p7 = scmp.lt.s32.totalorder %s21332_s24, %s21332_s24 }
 0x1b3   : > { %p21335_p2 = pnand %p21333_p10, %p21715_p0  ;;  %p21342_p8 = por %p21341_p7, %p21340_p4 }
 0x1b5   : > { %p21336_p3 = pneg %p21335_p2 }
 0x1b7   : > { %p21343_p11 = pnand %p21342_p8, %p21336_p3 }
 0x1b9   : > { %21346 = shalt.err (!%p21343_p11)
}
 0x1ba   : > { %s23305_s21 = smov 24   ;;  %s23306_s9 = smov 384  }
 0x1bb   : > { %18163 = dma.hbm_to_vmem [thread:$0]  (!%p21699_p12), %s23228_s16, 24576, %s681_s2, [#allocation24], %s23306_s9, %s23306_s9, %s23305_s21  }
 0x1bc   : > { %s21347_s26 = scalar_lea.hbm %s23230_s18, 96 }
 0x1bd   : > { %p21348_p13 = scmp.ne.s32.totalorder %s23230_s18, %s21347_s26  ;;  %p21354_p5 = scmp.lt.u32.totalorder %s21347_s26, %s23230_s18 }
 0x1bf   : > { %p21350_p1 = pnand %p21348_p13, %p21715_p0 }
 0x1c1   : > { %p21351_p6 = pneg %p21350_p1 }
 0x1c3   : > { %p21356_p9 = pnand %p21354_p5, %p21351_p6 }
 0x1c5   : > { %21359 = shalt.err (!%p21356_p9)
}
 0x1c6   : > { %s21360_s29 = scalar_lea.vmem %s706_s5, 96  ;;  %p21368_p4 = scmp.lt.s32.totalorder %s706_s5, %s706_s5 }
 0x1c7   : > { %p21361_p10 = scmp.ne.s32.totalorder %s706_s5, %s21360_s29  ;;  %p21369_p7 = scmp.lt.s32.totalorder %s21360_s29, %s21360_s29 }
 0x1c9   : > { %p21363_p2 = pnand %p21361_p10, %p21715_p0  ;;  %p21370_p8 = por %p21369_p7, %p21368_p4 }
 0x1cb   : > { %p21364_p3 = pneg %p21363_p2 }
 0x1cd   : > { %p21371_p11 = pnand %p21370_p8, %p21364_p3 }
 0x1cf   : > { %21374 = shalt.err (!%p21371_p11)
}
 0x1d0   : > { %18169 = dma.hbm_to_vmem [thread:$0]  (!%p21699_p12), %s23230_s18, 96, %s706_s5, [#allocation27]  }
 0x1d1   : > { %s21530_s24 = smov [#allocation29]   ;;  %s21375_s20 = scalar_lea.hbm %s23231_s19, 96 }
 0x1d2   : > { %s716_s21 = sshll.u32 %s21530_s24, 4  ;;  %p21376_p13 = scmp.ne.s32.totalorder %s23231_s19, %s21375_s20  ;;  %s717_s21 = int_to_ptr.vmem [resolvable:$true] %s716_s21 }
 0x1d3   : > { %p21382_p5 = scmp.lt.u32.totalorder %s21375_s20, %s23231_s19 }
 0x1d4   : > { %p21378_p1 = pnand %p21376_p13, %p21715_p0 }
 0x1d6   : > { %p21379_p6 = pneg %p21378_p1 }
 0x1d8   : > { %p21384_p9 = pnand %p21382_p5, %p21379_p6 }
 0x1da   : > { %21387 = shalt.err (!%p21384_p9)
}
 0x1db   : > { %s21388_s5 = scalar_lea.vmem %s717_s21, 96  ;;  %p21396_p4 = scmp.lt.s32.totalorder %s717_s21, %s717_s21 }
 0x1dc   : > { %p21389_p10 = scmp.ne.s32.totalorder %s717_s21, %s21388_s5  ;;  %p21397_p7 = scmp.lt.s32.totalorder %s21388_s5, %s21388_s5 }
 0x1de   : > { %p21391_p2 = pnand %p21389_p10, %p21715_p0  ;;  %p21398_p8 = por %p21397_p7, %p21396_p4 }
 0x1e0   : > { %p21392_p3 = pneg %p21391_p2 }
 0x1e2   : > { %p21399_p11 = pnand %p21398_p8, %p21392_p3 }
 0x1e4   : > { %21402 = shalt.err (!%p21399_p11)
}
 0x1e5   : > { %18172 = dma.hbm_to_vmem [thread:$0]  (!%p21699_p12), %s23231_s19, 96, %s717_s21, [#allocation30]  }
 0x1e6   : > { %p23307_p13 = scmp.ne.s32.totalorder %s23294_s30, 0 }
 0x1e8   : > { %749 = sbr.rel (%p23307_p13) target bundleno = 7952 (0x1f10), region = 100 }
 0x1ef   : > { %s23308_s0 = sld [smem:[#allocation47_spill]] }
 0x1f5   : > { %p23309_p1 = scmp.eq.s32.totalorder %s23308_s0, 0 }
 0x1f7   : > { %21448 = dma.done.wait (%p23309_p1), [#allocation3], 18432   ;;  %p23310_p0 = pmov %p23309_p1 }
 0x1f9   : > { %21450 = vsyncadd (%p23310_p0), [#allocation3], 4294948864  ;;  %p23311_p6 = pmov %p23310_p0 }
 0x1fa   : > { %p23312_p5 = pmov %p23310_p0 }
 0x1fb   : > { %21452 = dma.done.wait (%p23311_p6), [#allocation6], 192  }
 0x1fc   : > { %21454 = vsyncadd (%p23312_p5), [#allocation6], 4294967104  ;;  %p23313_p9 = pmov %p23310_p0 }
 0x1fd   : > { %p23314_p12 = pmov %p23310_p0 }
 0x1fe   : > { %21456 = dma.done.wait (%p23313_p9), [#allocation9], 36960  }
 0x1ff   : > { %21458 = vsyncadd (%p23314_p12), [#allocation9], 4294930336  ;;  %p23315_p10 = pmov %p23310_p0 }
 0x200   : > { %p23316_p2 = pmov %p23310_p0 }
 0x201   : > { %21460 = dma.done.wait (%p23315_p10), [#allocation12], 73824  }
 0x202   : > { %21462 = vsyncadd (%p23316_p2), [#allocation12], 4294893472  ;;  %p23317_p3 = pmov %p23310_p0 }
 0x203   : > { %p23318_p4 = pmov %p23310_p0 }
 0x204   : > { %21464 = dma.done.wait (%p23317_p3), [#allocation15], 37056  }
 0x205   : > { %21466 = vsyncadd (%p23318_p4), [#allocation15], 4294930240  ;;  %p23319_p7 = pmov %p23310_p0 }
 0x206   : > { %p23320_p8 = pmov %p23310_p0 }
 0x207   : > { %21468 = dma.done.wait (%p23319_p7), [#allocation18], 192  }
 0x208   : > { %21470 = vsyncadd (%p23320_p8), [#allocation18], 4294967104  ;;  %p23321_p11 = pmov %p23310_p0 }
 0x209   : > { %p23322_p13 = pmov %p23310_p0 }
 0x20a   : > { %21472 = dma.done.wait (%p23321_p11), [#allocation21], 24672  }
 0x20b   : > { %21474 = vsyncadd (%p23322_p13), [#allocation21], 4294942624  ;;  %p23323_p1 = pmov %p23310_p0 }
 0x20d   : > { %21476 = dma.done.wait (%p23323_p1), [#allocation24], 24640  }
 0x20e   : > { %21478 = vsyncadd (%p23310_p0), [#allocation24], 4294942656  ;;  %p23324_p6 = pmov %p23310_p0 }
 0x20f   : > { %p23325_p5 = pmov %p23310_p0 }
 0x210   : > { %21480 = dma.done.wait (%p23324_p6), [#allocation27], 192  }
 0x211   : > { %21482 = vsyncadd (%p23325_p5), [#allocation27], 4294967104  ;;  %p23326_p9 = pmov %p23310_p0 }
 0x212   : > { %p23327_p12 = pmov %p23310_p0 }
 0x213   : > { %21484 = dma.done.wait (%p23326_p9), [#allocation30], 96  }
 0x214   : > { %21486 = vsyncadd (%p23327_p12), [#allocation30], 4294967200  ;;  %v21531_v0 = vmov 0   ;;  %v18275_v1 = vld [vmem:[#allocation2 + $0x4] ss:$24 sps:$4 sm:$0xff]   ;;  %s15841_s30 = sshll.u32 %s23308_s0, 1 }
 0x215   : > { %1893 = vmatprep.mubr.bf16.mxu1 %v21531_v0  ;;  %v18277_v2 = vld [vmem:[#allocation2 + $0x304] ss:$24 sps:$4 sm:$0xff]   ;;  %1818 = vmatprep.subr.bf16.mxu0 %v18275_v1  ;;  %v18279_v3 = vld [vmem:[#allocation2] ss:$24 sps:$4 sm:$0xff]   ;;  %v18281_v5 = vld [vmem:[#allocation2 + $0x34] ss:$24 sps:$4 sm:$0xff]  }
 0x216   : > { %v18280_v4 = vld [vmem:[#allocation2 + $0x300] ss:$24 sps:$4 sm:$0xff]   ;;  %1861 = vmatprep.subr.bf16.mxu1 %v18277_v2  ;;  %1819 = vmatpush1.bf16.msra.mxu0 %v18279_v3  ;;  %v18283_v6 = vld [vmem:[#allocation2 + $0x334] ss:$24 sps:$4 sm:$0xff]   ;;  %v18285_v7 = vld [vmem:[#allocation2 + $0x30] ss:$24 sps:$4 sm:$0xff]  }
 0x217   : > { %1862 = vmatpush1.bf16.msra.mxu1 %v18280_v4  ;;  %1820 = vmatprep.subr.bf16.mxu0 %v18281_v5  ;;  %v18286_v8 = vld [vmem:[#allocation2 + $0x330] ss:$24 sps:$4 sm:$0xff]   ;;  %v18287_v9 = vld [vmem:[#allocation2 + $0x64] ss:$24 sps:$4 sm:$0xff]   ;;  %v18291_v11 = vld [vmem:[#allocation2 + $0x60] ss:$24 sps:$4 sm:$0xff]  }
 0x218   : > { %1863 = vmatprep.subr.bf16.mxu1 %v18283_v6  ;;  %v18289_v10 = vld [vmem:[#allocation2 + $0x364] ss:$24 sps:$4 sm:$0xff]   ;;  %v18292_v12 = vld [vmem:[#allocation2 + $0x360] ss:$24 sps:$4 sm:$0xff]   ;;  %v18293_v13 = vld [vmem:[#allocation2 + $0x94] ss:$24 sps:$4 sm:$0xff]  }
 0x219   : > { %v18295_v14 = vld [vmem:[#allocation2 + $0x394] ss:$24 sps:$4 sm:$0xff]   ;;  %v18297_v15 = vld [vmem:[#allocation2 + $0x90] ss:$24 sps:$4 sm:$0xff]   ;;  %p883_p10 = scmp.lt.s32.totalorder %s15841_s30, 3  ;;  %s23328_s2 = sld [smem:[#allocation65_spill]] }
 0x21a   : > { %1821 = vmatpush1.bf16.msra.mxu0 %v18285_v7  ;;  %v18298_v16 = vld [vmem:[#allocation2 + $0x390] ss:$24 sps:$4 sm:$0xff]   ;;  %v18299_v17 = vld [vmem:[#allocation2 + $0xc4] ss:$24 sps:$4 sm:$0xff]   ;;  %v18303_v19 = vld [vmem:[#allocation2 + $0xc0] ss:$24 sps:$4 sm:$0xff]  }
 0x21b   : > { %1864 = vmatpush1.bf16.msra.mxu1 %v18286_v8  ;;  %1822 = vmatprep.subr.bf16.mxu0 %v18287_v9  ;;  %v18301_v18 = vld [vmem:[#allocation2 + $0x3c4] ss:$24 sps:$4 sm:$0xff]   ;;  %v18304_v20 = vld [vmem:[#allocation2 + $0x3c0] ss:$24 sps:$4 sm:$0xff]   ;;  %s23386_s30 = smov (!%p883_p10, %s15841_s30), 3  ;;  %vm917_vm0 = vcmask 359424  }
 0x21c   : > { %1865 = vmatprep.subr.bf16.mxu1 %v18289_v10  ;;  %v18305_v21 = vld [vmem:[#allocation2 + $0xf4] ss:$24 sps:$4 sm:$0xff]   ;;  %v18309_v23 = vld [vmem:[#allocation2 + $0xf0] ss:$24 sps:$4 sm:$0xff]   ;;  %s18041_s27 = smul.u32 12, %s23386_s30  ;;  %s15843_s24 = sshll.u32 %s23308_s0, 2 }
 0x21d   : > { %v18307_v22 = vld [vmem:[#allocation2 + $0x3f4] ss:$24 sps:$4 sm:$0xff]   ;;  %v18310_v24 = vld [vmem:[#allocation2 + $0x3f0] ss:$24 sps:$4 sm:$0xff]   ;;  %v18311_v25 = vld [vmem:[#allocation2 + $0x124] ss:$24 sps:$4 sm:$0xff]  }
 0x21e   : > { %1823 = vmatpush1.bf16.msra.mxu0 %v18291_v11  ;;  %v18313_v26 = vld [vmem:[#allocation2 + $0x424] ss:$24 sps:$4 sm:$0xff]   ;;  %v18315_v27 = vld [vmem:[#allocation2 + $0x120] ss:$24 sps:$4 sm:$0xff]   ;;  %v18317_v29 = vld [vmem:[#allocation2 + $0x154] ss:$24 sps:$4 sm:$0xff]  }
 0x21f   : > { %1866 = vmatpush1.bf16.msra.mxu1 %v18292_v12  ;;  %1824 = vmatprep.subr.bf16.mxu0 %v18293_v13  ;;  %v18316_v28 = vld [vmem:[#allocation2 + $0x420] ss:$24 sps:$4 sm:$0xff]   ;;  %s22113_s11 = scalar_lea.vmem %s23328_s2, %s18041_s27  ;;  %v18319_v30 = vld [vmem:[#allocation2 + $0x454] ss:$24 sps:$4 sm:$0xff]   ;;  %v18321_v31 = vld [vmem:[#allocation2 + $0x150] ss:$24 sps:$4 sm:$0xff]  }
 0x220   : > { %1867 = vmatprep.subr.bf16.mxu1 %v18295_v14  ;;  %v18322_v32 = vld [vmem:[#allocation2 + $0x450] ss:$24 sps:$4 sm:$0xff]   ;;  %v18323_v33 = vld [vmem:[#allocation2 + $0x184] ss:$24 sps:$4 sm:$0xff]   ;;  %v18328_v37 = vld [vmem:[#allocation2 + $0x180] ss:$24 sps:$4 sm:$0xff]  }
 0x221   : > { %v18327_v34 = vld [vmem:[#allocation2 + $0xc] ss:$24 sps:$4 sm:$0xff]   ;;  %v18325_v36 = vld [vmem:[#allocation2 + $0x8] ss:$24 sps:$4 sm:$0xff]   ;;  %v18334_v39 = vld [vmem:[#allocation2 + $0x3c] ss:$24 sps:$4 sm:$0xff]  }
 0x222   : > { %1825 = vmatpush1.bf16.msra.mxu0 %v18297_v15  ;;  %v22116_v35 = vld [vmem:[%s22113_s11 + $0x8] ss:$12 sps:$4 sm:$0xff]   ;;  %v18330_v38 = vld [vmem:[#allocation2 + $0x1b4] ss:$24 sps:$4 sm:$0xff]   ;;  %v18335_v41 = vld [vmem:[#allocation2 + $0x1b0] ss:$24 sps:$4 sm:$0xff]  }
 0x223   : > { %1868 = vmatpush1.bf16.msra.mxu1 %v18298_v16  ;;  %1826 = vmatprep.subr.bf16.mxu0 %v18299_v17  ;;  %v18332_v40 = vld [vmem:[#allocation2 + $0x38] ss:$24 sps:$4 sm:$0xff]   ;;  %v18336_v42 = vld [vmem:[#allocation2 + $0x1e4] ss:$24 sps:$4 sm:$0xff]   ;;  %v18338_v44 = vld [vmem:[#allocation2 + $0x68] ss:$24 sps:$4 sm:$0xff]  }
 0x224   : > { %1869 = vmatprep.subr.bf16.mxu1 %v18301_v18  ;;  %v18340_v43 = vld [vmem:[#allocation2 + $0x6c] ss:$24 sps:$4 sm:$0xff]   ;;  %v18341_v45 = vld [vmem:[#allocation2 + $0x1e0] ss:$24 sps:$4 sm:$0xff]   ;;  %v18346_v47 = vld [vmem:[#allocation2 + $0x9c] ss:$24 sps:$4 sm:$0xff]  }
 0x225   : > { %v18342_v46 = vld [vmem:[#allocation2 + $0x214] ss:$24 sps:$4 sm:$0xff]   ;;  %v18344_v48 = vld [vmem:[#allocation2 + $0x98] ss:$24 sps:$4 sm:$0xff]   ;;  %v18348_v50 = vld [vmem:[#allocation2 + $0x244] ss:$24 sps:$4 sm:$0xff]  }
 0x226   : > { %1827 = vmatpush1.bf16.msra.mxu0 %v18303_v19  ;;  %v18347_v49 = vld [vmem:[#allocation2 + $0x210] ss:$24 sps:$4 sm:$0xff]   ;;  %v18372_v51 = vld [vmem:[%s22113_s11 + $0x4] ss:$12 sps:$4 sm:$0xff]   ;;  %v18352_v52 = vld [vmem:[#allocation2 + $0xcc] ss:$24 sps:$4 sm:$0xff]  }
 0x227   : > { %1870 = vmatpush1.bf16.msra.mxu1 %v18304_v20  ;;  %1828 = vmatprep.subr.bf16.mxu0 %v18305_v21  ;;  %v18350_v53 = vld [vmem:[#allocation2 + $0xc8] ss:$24 sps:$4 sm:$0xff]   ;;  %v18354_v55 = vld [vmem:[#allocation2 + $0x274] ss:$24 sps:$4 sm:$0xff]   ;;  %v18356_v57 = vld [vmem:[#allocation2 + $0xf8] ss:$24 sps:$4 sm:$0xff]  }
 0x228   : > { %1871 = vmatprep.subr.bf16.mxu1 %v18307_v22  ;;  %1850 = vmatprep.mubr.bf16.mxu0 %v18372_v51  ;;  %v18353_v54 = vld [vmem:[#allocation2 + $0x240] ss:$24 sps:$4 sm:$0xff]   ;;  %v18358_v56 = vld [vmem:[#allocation2 + $0xfc] ss:$24 sps:$4 sm:$0xff]   ;;  %v18359_v58 = vld [vmem:[#allocation2 + $0x270] ss:$24 sps:$4 sm:$0xff]  }
 0x229   : > { %v18360_v59 = vld [vmem:[#allocation2 + $0x2a4] ss:$24 sps:$4 sm:$0xff]   ;;  %v18362_v61 = vld [vmem:[#allocation2 + $0x128] ss:$24 sps:$4 sm:$0xff]   ;;  %v18366_v63 = vld [vmem:[#allocation2 + $0x2d4] ss:$24 sps:$4 sm:$0xff]  }
 0x22a   : > { %1829 = vmatpush1.bf16.msra.mxu0 %v18309_v23  ;;  %v18364_v60 = vld [vmem:[#allocation2 + $0x12c] ss:$24 sps:$4 sm:$0xff]   ;;  %v18365_v62 = vld [vmem:[#allocation2 + $0x2a0] ss:$24 sps:$4 sm:$0xff]   ;;  %v18370_v1 = vld [vmem:[#allocation2 + $0x15c] ss:$24 sps:$4 sm:$0xff]  }
 0x22b   : > { %1872 = vmatpush1.bf16.msra.mxu1 %v18310_v24  ;;  %1830 = vmatprep.subr.bf16.mxu0 %v18311_v25  ;;  %v18368_v2 = vld [vmem:[#allocation2 + $0x158] ss:$24 sps:$4 sm:$0xff]   ;;  %v18377_v4 = vld [vmem:[#allocation2 + $0x18c] ss:$24 sps:$4 sm:$0xff]   ;;  %v18375_v7 = vld [vmem:[#allocation2 + $0x188] ss:$24 sps:$4 sm:$0xff]  }
 0x22c   : > { %1873 = vmatprep.subr.bf16.mxu1 %v18313_v26  ;;  %v18371_v3 = vld [vmem:[#allocation2 + $0x2d0] ss:$24 sps:$4 sm:$0xff]   ;;  %v18380_v5 = vld [vmem:[#allocation2 + $0x14] ss:$24 sps:$4 sm:$0xff]   ;;  %v18386_v10 = vld [vmem:[#allocation2 + $0x44] ss:$24 sps:$4 sm:$0xff]  }
 0x22d   : > { %v22122_v6 = vld [vmem:[%s22113_s11] ss:$12 sps:$4 sm:$0xff]   ;;  %v18384_v12 = vld [vmem:[#allocation2 + $0x40] ss:$24 sps:$4 sm:$0xff]   ;;  %v18389_v13 = vld [vmem:[#allocation2 + $0x1ec] ss:$24 sps:$4 sm:$0xff]  }
 0x22e   : > { %1831 = vmatpush1.bf16.msra.mxu0 %v18315_v27  ;;  %v18378_v8 = vld [vmem:[#allocation2 + $0x10] ss:$24 sps:$4 sm:$0xff]   ;;  %v18383_v9 = vld [vmem:[#allocation2 + $0x1bc] ss:$24 sps:$4 sm:$0xff]   ;;  %v18396_v20 = vld [vmem:[#allocation2 + $0xa0] ss:$24 sps:$4 sm:$0xff]  }
 0x22f   : > { %1874 = vmatpush1.bf16.msra.mxu1 %v18316_v28  ;;  %1832 = vmatprep.subr.bf16.mxu0 %v18317_v29  ;;  %v18381_v11 = vld [vmem:[#allocation2 + $0x1b8] ss:$24 sps:$4 sm:$0xff]   ;;  %v18392_v14 = vld [vmem:[#allocation2 + $0x74] ss:$24 sps:$4 sm:$0xff]   ;;  %v18387_v15 = vld [vmem:[#allocation2 + $0x1e8] ss:$24 sps:$4 sm:$0xff]  }
 0x230   : > { %1875 = vmatprep.subr.bf16.mxu1 %v18319_v30  ;;  %v18390_v16 = vld [vmem:[#allocation2 + $0x70] ss:$24 sps:$4 sm:$0xff]   ;;  %v18395_v17 = vld [vmem:[#allocation2 + $0x21c] ss:$24 sps:$4 sm:$0xff]   ;;  %v18401_v21 = vld [vmem:[#allocation2 + $0x24c] ss:$24 sps:$4 sm:$0xff]  }
 0x231   : > { %v18398_v18 = vld [vmem:[#allocation2 + $0xa4] ss:$24 sps:$4 sm:$0xff]   ;;  %v18393_v19 = vld [vmem:[#allocation2 + $0x218] ss:$24 sps:$4 sm:$0xff]   ;;  %v18404_v22 = vld [vmem:[#allocation2 + $0xd4] ss:$24 sps:$4 sm:$0xff]  }
 0x232   : > { %1833 = vmatpush1.bf16.msra.mxu0 %v18321_v31  ;;  %v18399_v23 = vld [vmem:[#allocation2 + $0x248] ss:$24 sps:$4 sm:$0xff]   ;;  %v18407_v25 = vld [vmem:[#allocation2 + $0x27c] ss:$24 sps:$4 sm:$0xff]   ;;  %v18405_v27 = vld [vmem:[#allocation2 + $0x278] ss:$24 sps:$4 sm:$0xff]  }
 0x233   : > { %1876 = vmatpush1.bf16.msra.mxu1 %v18322_v32  ;;  %1834 = vmatprep.subr.bf16.mxu0 %v18323_v33  ;;  %v18402_v24 = vld [vmem:[#allocation2 + $0xd0] ss:$24 sps:$4 sm:$0xff]   ;;  %v18410_v26 = vld [vmem:[#allocation2 + $0x104] ss:$24 sps:$4 sm:$0xff]   ;;  %v18408_v28 = vld [vmem:[#allocation2 + $0x100] ss:$24 sps:$4 sm:$0xff]  }
 0x234   : > { %1904 = vmatprep.subr.bf16.mxu1 %v18327_v34  ;;  %v18413_v29 = vld [vmem:[#allocation2 + $0x2ac] ss:$24 sps:$4 sm:$0xff]   ;;  %v18411_v31 = vld [vmem:[#allocation2 + $0x2a8] ss:$24 sps:$4 sm:$0xff]   ;;  %v18419_v33 = vld [vmem:[#allocation2 + $0x2dc] ss:$24 sps:$4 sm:$0xff]  }
 0x235   : > { %v18416_v30 = vld [vmem:[#allocation2 + $0x134] ss:$24 sps:$4 sm:$0xff]   ;;  %v18414_v32 = vld [vmem:[#allocation2 + $0x130] ss:$24 sps:$4 sm:$0xff]   ;;  %v18422_v34 = vld [vmem:[#allocation2 + $0x164] ss:$24 sps:$4 sm:$0xff]  }
 0x236   : > { %15992 = vmatmul.mubr.msk.bf16.vlgmr.msra.gmra.mrb[0].mxu1 %vm917_vm0, %v22116_v35  ;;  %1835 = vmatpush1.bf16.msra.mxu0 %v18328_v37  ;;  %v18420_v37 = vld [vmem:[#allocation2 + $0x160] ss:$24 sps:$4 sm:$0xff]   ;;  %p890_p2 = scmp.lt.s32.totalorder %s15843_s24, 7  ;;  %s23342_s20 = sld [smem:[#allocation66_spill]]  ;;  %vm21533_vm1 = vmmov 0   ;;  %vm9007_vm2 = vcmask 130048  }
 0x237   : > { %1905 = vmatpush1.bf16.msra.mxu1 %v18325_v36  ;;  %1836 = vmatprep.subr.bf16.mxu0 %v18330_v38  ;;  %v18417_v36 = vld [vmem:[#allocation2 + $0x2d8] ss:$24 sps:$4 sm:$0xff]   ;;  %v18425_v38 = vld [vmem:[#allocation2 + $0x30c] ss:$24 sps:$4 sm:$0xff]   ;;  %s23373_s7 = sld [smem:[#allocation44_spill]]  ;;  %s18043_s5 = smul.u32 1536, %s23308_s0 }
 0x238   : > { %1906 = vmatprep.subr.bf16.mxu1 %v18334_v39  ;;  %1936 = vmatprep.mubr.bf16.mxu1 %v18372_v51  ;;  %v18428_v39 = vld [vmem:[#allocation2 + $0x194] ss:$24 sps:$4 sm:$0xff]   ;;  %s23388_s24 = smov (!%p890_p2, %s15843_s24), 7  ;;  %s23374_s27 = sld [smem:[#allocation75_spill]] }
 0x239   : > { %s18042_s21 = smul.u32 24, %s23388_s24  ;;  %s23375_s29 = sld [smem:[#allocation50_spill]] }
 0x23a   : > { %1837 = vmatpush1.bf16.msra.mxu0 %v18335_v41  ;;  %v18426_v41 = vld [vmem:[#allocation2 + $0x190] ss:$24 sps:$4 sm:$0xff]   ;;  %s21534_s24 = smov [#allocation31]  }
 0x23b   : > { %1907 = vmatpush1.bf16.msra.mxu1 %v18332_v40  ;;  %1838 = vmatprep.subr.bf16.mxu0 %v18336_v42  ;;  %v18423_v40 = vld [vmem:[#allocation2 + $0x308] ss:$24 sps:$4 sm:$0xff]   ;;  %v18431_v42 = vld [vmem:[#allocation2 + $0x33c] ss:$24 sps:$4 sm:$0xff]  }
 0x23c   : > { %1908 = vmatprep.subr.bf16.mxu1 %v18340_v43  ;;  %v18434_v43 = vld [vmem:[#allocation2 + $0x1c4] ss:$24 sps:$4 sm:$0xff]   ;;  %s22333_s3 = scalar_lea.vmem %s23342_s20, %s18042_s21  ;;  %s21407_s21 = sshll.u32 %s21534_s24, 4  ;;  %s21408_s21 = int_to_ptr.vmem [resolvable:$false] %s21407_s21 }
 0x23d   : > { %s879_s26 = sand.u32 1, %s23373_s7   ;;  %s21409_s9 = scalar_lea.vmem %s21408_s21, 3072 }
 0x23e   : > { %1839 = vmatpush1.bf16.msra.mxu0 %v18341_v45  ;;  %v18432_v45 = vld [vmem:[#allocation2 + $0x1c0] ss:$24 sps:$4 sm:$0xff]   ;;  %s23144_s1 = smul.u32 96, %s879_s26  ;;  %s23165_s25 = scalar_lea.hbm %s23374_s27, %s18043_s5 }
 0x23f   : > { %1909 = vmatpush1.bf16.msra.mxu1 %v18338_v44  ;;  %1840 = vmatprep.subr.bf16.mxu0 %v18342_v46  ;;  %v18429_v44 = vld [vmem:[#allocation2 + $0x338] ss:$24 sps:$4 sm:$0xff]   ;;  %v18437_v46 = vld [vmem:[#allocation2 + $0x36c] ss:$24 sps:$4 sm:$0xff]   ;;  %s23171_s2 = scalar_lea.sflag [#allocation4], %s879_s26  ;;  %p23376_p4 = scmp.ne.s32.totalorder %s23375_s29, 0 }
 0x240   : > { %1910 = vmatprep.subr.bf16.mxu1 %v18346_v47  ;;  %v18440_v47 = vld [vmem:[#allocation2 + $0x1f4] ss:$24 sps:$4 sm:$0xff]   ;;  %s881_s13 = scalar_lea.vmem [#allocation31], %s23144_s1 }
 0x241   : > { %s15553_s23 = sshll.u32 %s881_s13, 4  ;;  %s23167_s23 = int_to_ptr.vmem [resolvable:$true] %s15553_s23 }
 0x242   : > { %1841 = vmatpush1.bf16.msra.mxu0 %v18347_v49  ;;  %v18438_v49 = vld [vmem:[#allocation2 + $0x1f0] ss:$24 sps:$4 sm:$0xff]   ;;  %p21410_p11 = scmp.lt.s32.totalorder %s23167_s23, %s21408_s21 }
 0x243   : > { %1911 = vmatpush1.bf16.msra.mxu1 %v18344_v48  ;;  %1842 = vmatprep.subr.bf16.mxu0 %v18348_v50  ;;  %v18435_v48 = vld [vmem:[#allocation2 + $0x368] ss:$24 sps:$4 sm:$0xff]   ;;  %v18443_v50 = vld [vmem:[#allocation2 + $0x39c] ss:$24 sps:$4 sm:$0xff]  }
 0x244   : > { %1912 = vmatprep.subr.bf16.mxu1 %v18352_v52  ;;  %v18441_v52 = vld [vmem:[#allocation2 + $0x398] ss:$24 sps:$4 sm:$0xff]  }
 0x246   : > { %1843 = vmatpush1.bf16.msra.mxu0 %v18353_v54  ;;  %v18449_v54 = vld [vmem:[#allocation2 + $0x3cc] ss:$24 sps:$4 sm:$0xff]  }
 0x247   : > { %1913 = vmatpush1.bf16.msra.mxu1 %v18350_v53  ;;  %1844 = vmatprep.subr.bf16.mxu0 %v18354_v55  ;;  %v18444_v53 = vld [vmem:[#allocation2 + $0x220] ss:$24 sps:$4 sm:$0xff]   ;;  %v18452_v55 = vld [vmem:[#allocation2 + $0x254] ss:$24 sps:$4 sm:$0xff]  }
 0x248   : > { %1914 = vmatprep.subr.bf16.mxu1 %v18358_v56  ;;  %v18447_v56 = vld [vmem:[#allocation2 + $0x3c8] ss:$24 sps:$4 sm:$0xff]  }
 0x24a   : > { %1845 = vmatpush1.bf16.msra.mxu0 %v18359_v58  ;;  %v18455_v58 = vld [vmem:[#allocation2 + $0x3fc] ss:$24 sps:$4 sm:$0xff]  }
 0x24b   : > { %1915 = vmatpush1.bf16.msra.mxu1 %v18356_v57  ;;  %1846 = vmatprep.subr.bf16.mxu0 %v18360_v59  ;;  %v18450_v57 = vld [vmem:[#allocation2 + $0x250] ss:$24 sps:$4 sm:$0xff]   ;;  %v18458_v59 = vld [vmem:[#allocation2 + $0x284] ss:$24 sps:$4 sm:$0xff]  }
 0x24c   : > { %1916 = vmatprep.subr.bf16.mxu1 %v18364_v60  ;;  %v18453_v60 = vld [vmem:[#allocation2 + $0x3f8] ss:$24 sps:$4 sm:$0xff]  }
 0x24e   : > { %1847 = vmatpush1.bf16.msra.mxu0 %v18365_v62  ;;  %v18461_v62 = vld [vmem:[#allocation2 + $0x42c] ss:$24 sps:$4 sm:$0xff]  }
 0x24f   : > { %1917 = vmatpush1.bf16.msra.mxu1 %v18362_v61  ;;  %1848 = vmatprep.subr.bf16.mxu0 %v18366_v63  ;;  %v18456_v61 = vld [vmem:[#allocation2 + $0x280] ss:$24 sps:$4 sm:$0xff]   ;;  %v18464_v63 = vld [vmem:[#allocation2 + $0x2b4] ss:$24 sps:$4 sm:$0xff]  }
 0x250   : > { %1918 = vmatprep.subr.bf16.mxu1 %v18370_v1  ;;  %v18459_v1 = vld [vmem:[#allocation2 + $0x428] ss:$24 sps:$4 sm:$0xff]  }
 0x252   : > { %1849 = vmatpush1.bf16.msra.mxu0 %v18371_v3  ;;  %v18467_v3 = vld [vmem:[#allocation2 + $0x45c] ss:$24 sps:$4 sm:$0xff]  }
 0x253   : > { %1919 = vmatpush1.bf16.msra.mxu1 %v18368_v2  ;;  %1990 = vmatprep.subr.bf16.mxu0 %v18380_v5  ;;  %v18462_v2 = vld [vmem:[#allocation2 + $0x2b0] ss:$24 sps:$4 sm:$0xff]  }
 0x254   : > { %1920 = vmatprep.subr.bf16.mxu1 %v18377_v4  ;;  %v18470_v4 = vld [vmem:[#allocation2 + $0x2e4] ss:$24 sps:$4 sm:$0xff]   ;;  %v18465_v5 = vld [vmem:[#allocation2 + $0x458] ss:$24 sps:$4 sm:$0xff]  }
 0x255   : > { %1851 = vmatmul.mubr.bf16.vlgmr.msra.gmra.mrb[0].mxu0 %v22122_v6 }
 0x256   : > { %1991 = vmatpush1.bf16.msra.mxu0 %v18378_v8  ;;  %2022 = vmatprep.mubr.bf16.mxu0 %v18372_v51  ;;  %v18446_v51 = vld [vmem:[#allocation2 + $0x224] ss:$24 sps:$4 sm:$0xff]   ;;  %v18473_v8 = vld [vmem:[#allocation2 + $0x314] ss:$24 sps:$4 sm:$0xff]  }
 0x257   : > { %1921 = vmatpush1.bf16.msra.mxu1 %v18375_v7  ;;  %1992 = vmatprep.subr.bf16.mxu0 %v18386_v10  ;;  %v18468_v7 = vld [vmem:[#allocation2 + $0x2e0] ss:$24 sps:$4 sm:$0xff]   ;;  %v18476_v10 = vld [vmem:[#allocation2 + $0x344] ss:$24 sps:$4 sm:$0xff]  }
 0x258   : > { %1922 = vmatprep.subr.bf16.mxu1 %v18383_v9  ;;  %v18471_v9 = vld [vmem:[#allocation2 + $0x310] ss:$24 sps:$4 sm:$0xff]  }
 0x25a   : > { %1993 = vmatpush1.bf16.msra.mxu0 %v18384_v12  ;;  %v18479_v12 = vld [vmem:[#allocation2 + $0x374] ss:$24 sps:$4 sm:$0xff]  }
 0x25b   : > { %1923 = vmatpush1.bf16.msra.mxu1 %v18381_v11  ;;  %1994 = vmatprep.subr.bf16.mxu0 %v18392_v14  ;;  %v18474_v11 = vld [vmem:[#allocation2 + $0x340] ss:$24 sps:$4 sm:$0xff]   ;;  %v18482_v14 = vld [vmem:[#allocation2 + $0x3a4] ss:$24 sps:$4 sm:$0xff]  }
 0x25c   : > { %1924 = vmatprep.subr.bf16.mxu1 %v18389_v13  ;;  %v18477_v13 = vld [vmem:[#allocation2 + $0x370] ss:$24 sps:$4 sm:$0xff]  }
 0x25e   : > { %1995 = vmatpush1.bf16.msra.mxu0 %v18390_v16  ;;  %v18485_v16 = vld [vmem:[#allocation2 + $0x3d4] ss:$24 sps:$4 sm:$0xff]  }
 0x25f   : > { %1925 = vmatpush1.bf16.msra.mxu1 %v18387_v15  ;;  %1996 = vmatprep.subr.bf16.mxu0 %v18398_v18  ;;  %v18480_v15 = vld [vmem:[#allocation2 + $0x3a0] ss:$24 sps:$4 sm:$0xff]   ;;  %v18488_v18 = vld [vmem:[#allocation2 + $0x404] ss:$24 sps:$4 sm:$0xff]  }
 0x260   : > { %1926 = vmatprep.subr.bf16.mxu1 %v18395_v17  ;;  %v18483_v17 = vld [vmem:[#allocation2 + $0x3d0] ss:$24 sps:$4 sm:$0xff]  }
 0x262   : > { %1997 = vmatpush1.bf16.msra.mxu0 %v18396_v20  ;;  %v18492_v20 = vld [vmem:[#allocation2 + $0x460] ss:$24 sps:$4 sm:$0xff]  }
 0x263   : > { %1927 = vmatpush1.bf16.msra.mxu1 %v18393_v19  ;;  %1998 = vmatprep.subr.bf16.mxu0 %v18404_v22  ;;  %v18489_v19 = vld [vmem:[#allocation2 + $0x430] ss:$24 sps:$4 sm:$0xff]  }
 0x264   : > { %1928 = vmatprep.subr.bf16.mxu1 %v18401_v21  ;;  %v20877_v21 = vld [vmem:[%s22113_s11 + $0x8] ss:$12 sps:$4 sm:$0xff]   ;;  %s21403_s11 = scalar_lea.vmem %s23167_s23, 1536 }
 0x265   : > { %p21404_p3 = scmp.ne.s32.totalorder %s23167_s23, %s21403_s11  ;;  %p21411_p13 = scmp.lt.s32.totalorder %s21409_s9, %s21403_s11 }
 0x266   : > { %1999 = vmatpush1.bf16.msra.mxu0 %v18402_v24 }
 0x267   : > { %1929 = vmatpush1.bf16.msra.mxu1 %v18399_v23  ;;  %2000 = vmatprep.subr.bf16.mxu0 %v18410_v26  ;;  %v1068_v26 = vlaneseq  ;;  %p21405_p7 = pnand %p21404_p3, %p23376_p4  ;;  %p21412_p1 = por %p21411_p13, %p21410_p11 }
 0x268   : > { %1930 = vmatprep.subr.bf16.mxu1 %v18407_v25 }
 0x269   : > { %p21406_p8 = pneg %p21405_p7 }
 0x26a   : > { %2001 = vmatpush1.bf16.msra.mxu0 %v18408_v28  ;;  %v1066_v28 = vld [vmem:[#allocation5] sm:$0x3f] }
 0x26b   : > { %1931 = vmatpush1.bf16.msra.mxu1 %v18405_v27  ;;  %2002 = vmatprep.subr.bf16.mxu0 %v18416_v30  ;;  %v22133_v27 = vshrl.u32 %v1068_v26, 7  ;;  %v18510_v26 = vld [vmem:[#allocation10 + $0x68] ss:$24 sps:$4 sm:$0xff]   ;;  %p21413_p0 = pnand %p21412_p1, %p21406_p8 }
 0x26c   : > { %1932 = vmatprep.subr.bf16.mxu1 %v18413_v29 }
 0x26d   : > { %v22136_v29 = vsub.s32 0, %v22133_v27  ;;  %v22139_v30 = vsub.s32 1, %v22133_v27 }
 0x26e   : > { %2003 = vmatpush1.bf16.msra.mxu0 %v18414_v32 }
 0x26f   : > { %1933 = vmatpush1.bf16.msra.mxu1 %v18411_v31  ;;  %2004 = vmatprep.subr.bf16.mxu0 %v18422_v34  ;;  %v1071_v31 = vrot.slane %v1066_v28, %v22136_v29  ;;  %v1075_v32 = vrot.slane %v1066_v28, %v22139_v30 }
 0x270   : > { %1934 = vmatprep.subr.bf16.mxu1 %v18419_v33 }
 0x272   : > { %2005 = vmatpush1.bf16.msra.mxu0 %v18420_v37 }
 0x273   : > { %1935 = vmatpush1.bf16.msra.mxu1 %v18417_v36  ;;  %2006 = vmatprep.subr.bf16.mxu0 %v18428_v39 }
 0x274   : > { %1947 = vmatprep.subr.bf16.mxu1 %v18425_v38 }
 0x276   : > { %1937 = vmatmul.mubr.bf16.vlgmr.msra.gmra.mrb[4].mxu1 %v22122_v6  ;;  %2007 = vmatpush1.bf16.msra.mxu0 %v18426_v41 }
 0x277   : > { %1948 = vmatpush1.bf16.msra.mxu1 %v18423_v40  ;;  %2008 = vmatprep.subr.bf16.mxu0 %v18434_v43 }
 0x278   : > { %1949 = vmatprep.subr.bf16.mxu1 %v18431_v42  ;;  %1979 = vmatprep.mubr.bf16.mxu1 %v21531_v0 }
 0x27a   : > { %2009 = vmatpush1.bf16.msra.mxu0 %v18432_v45 }
 0x27b   : > { %1950 = vmatpush1.bf16.msra.mxu1 %v18429_v44  ;;  %2010 = vmatprep.subr.bf16.mxu0 %v18440_v47 }
 0x27c   : > { %1951 = vmatprep.subr.bf16.mxu1 %v18437_v46 }
 0x27e   : > { %2011 = vmatpush1.bf16.msra.mxu0 %v18438_v49 }
 0x27f   : > { %1952 = vmatpush1.bf16.msra.mxu1 %v18435_v48  ;;  %2012 = vmatprep.subr.bf16.mxu0 %v18446_v51 }
 0x280   : > { %1953 = vmatprep.subr.bf16.mxu1 %v18443_v50  ;;  %v22152_v50 = vsub.s32 2, %v22133_v27 }
 0x282   : > { %2013 = vmatpush1.bf16.msra.mxu0 %v18444_v53  ;;  %v1079_v51 = vrot.slane %v1066_v28, %v22152_v50 }
 0x283   : > { %1954 = vmatpush1.bf16.msra.mxu1 %v18441_v52  ;;  %2014 = vmatprep.subr.bf16.mxu0 %v18452_v55  ;;  %v22156_v52 = vsub.s32 3, %v22133_v27  ;;  %v22162_v55 = vsub.s32 4, %v22133_v27 }
 0x284   : > { %1955 = vmatprep.subr.bf16.mxu1 %v18449_v54 }
 0x285   : > { %v1083_v54 = vrot.slane %v1066_v28, %v22156_v52  ;;  %23329 = vst [vmem:[#allocation52_spill] sm:$0xff] %v22162_v55 }
 0x286   : > { %2015 = vmatpush1.bf16.msra.mxu0 %v18450_v57 }
 0x287   : > { %1956 = vmatpush1.bf16.msra.mxu1 %v18447_v56  ;;  %2016 = vmatprep.subr.bf16.mxu0 %v18458_v59  ;;  %v22165_v56 = vsub.s32 5, %v22133_v27 }
 0x288   : > { %1957 = vmatprep.subr.bf16.mxu1 %v18455_v58 }
 0x289   : > { %23330 = vst [vmem:[#allocation53_spill] sm:$0xff] %v22165_v56 }
 0x28a   : > { %2017 = vmatpush1.bf16.msra.mxu0 %v18456_v61 }
 0x28b   : > { %1958 = vmatpush1.bf16.msra.mxu1 %v18453_v60  ;;  %2018 = vmatprep.subr.bf16.mxu0 %v18464_v63  ;;  %v1091_v63 = vrot.slane %v1066_v28, %v22165_v56 }
 0x28c   : > { %1959 = vmatprep.subr.bf16.mxu1 %v18461_v62  ;;  %v1087_v62 = vrot.slane %v1066_v28, %v22162_v55  ;;  %v18515_v28 = vld [vmem:[#allocation10 + $0x94] ss:$24 sps:$4 sm:$0xff]  }
 0x28e   : > { %2019 = vmatpush1.bf16.msra.mxu0 %v18462_v2 }
 0x28f   : > { %1960 = vmatpush1.bf16.msra.mxu1 %v18459_v1  ;;  %2020 = vmatprep.subr.bf16.mxu0 %v18470_v4 }
 0x290   : > { %1961 = vmatprep.subr.bf16.mxu1 %v18467_v3 }
 0x292   : > { %2021 = vmatpush1.bf16.msra.mxu0 %v18468_v7 }
 0x293   : > { %1962 = vmatpush1.bf16.msra.mxu1 %v18465_v5  ;;  %2033 = vmatprep.subr.bf16.mxu0 %v18473_v8 }
 0x295   : > { %2023 = vmatmul.mubr.bf16.vlgmr.msra.gmra.mrb[4].mxu0 %v22122_v6  ;;  %v18491_v6 = vld [vmem:[#allocation2 + $0x434] ss:$24 sps:$4 sm:$0xff]  }
 0x296   : > { %15993 = vmatmul.mubr.msk.bf16.vlgmr.msra.gmra.mrb[4].mxu1 %vm917_vm0, %v22116_v35  ;;  %2034 = vmatpush1.bf16.msra.mxu0 %v18471_v9  ;;  %v18486_v35 = vld [vmem:[#allocation2 + $0x400] ss:$24 sps:$4 sm:$0xff]  }
 0x297   : > { %2065 = vmatprep.mubr.bf16.mxu0 %v21531_v0  ;;  %2035 = vmatprep.subr.bf16.mxu0 %v18476_v10  ;;  %v18494_v0 = vld [vmem:[#allocation2 + $0x464] ss:$24 sps:$4 sm:$0xff]  }
 0x29a   : > { %2036 = vmatpush1.bf16.msra.mxu0 %v18474_v11 }
 0x29b   : > { %2037 = vmatprep.subr.bf16.mxu0 %v18479_v12 }
 0x29e   : > { %2038 = vmatpush1.bf16.msra.mxu0 %v18477_v13 }
 0x29f   : > { %2039 = vmatprep.subr.bf16.mxu0 %v18482_v14 }
 0x2a2   : > { %2040 = vmatpush1.bf16.msra.mxu0 %v18480_v15 }
 0x2a3   : > { %2041 = vmatprep.subr.bf16.mxu0 %v18485_v16 }
 0x2a6   : > { %2042 = vmatpush1.bf16.msra.mxu0 %v18483_v17 }
 0x2a7   : > { %2043 = vmatprep.subr.bf16.mxu0 %v18488_v18  ;;  %v18495_v18 = vld [vmem:[#allocation10] ss:$24 sps:$4 sm:$0xff]  }
 0x2aa   : > { %2044 = vmatpush1.bf16.msra.mxu0 %v18486_v35  ;;  %v18497_v35 = vld [vmem:[#allocation10 + $0x4] ss:$24 sps:$4 sm:$0xff]  }
 0x2ab   : > { %2045 = vmatprep.subr.bf16.mxu0 %v18491_v6  ;;  %v18498_v6 = vld [vmem:[#allocation10 + $0x8] ss:$24 sps:$4 sm:$0xff]   ;;  %4015 = vmatprep.subr.bf16.mxu1 %v18497_v35 }
 0x2ac   : > { %4016 = vmatpush1.bf16.msra.mxu1 %v18495_v18 }
 0x2ae   : > { %2046 = vmatpush1.bf16.msra.mxu0 %v18489_v19  ;;  %v18500_v19 = vld [vmem:[#allocation10 + $0xc] ss:$24 sps:$4 sm:$0xff]  }
 0x2af   : > { %2047 = vmatprep.subr.bf16.mxu0 %v18494_v0  ;;  %v18503_v0 = vld [vmem:[#allocation10 + $0x34] ss:$24 sps:$4 sm:$0xff]  }
 0x2b0   : > { %4017 = vmatprep.subr.bf16.mxu1 %v18503_v0 }
 0x2b2   : > { %2048 = vmatpush1.bf16.msra.mxu0 %v18492_v20  ;;  %v18506_v20 = vld [vmem:[#allocation10 + $0x3c] ss:$24 sps:$4 sm:$0xff]  }
 0x2b3   : > { %4144 = vmatprep.subr.bf16.mxu0 %v18500_v19 }
 0x2b5   : > { %15994 = vmatmul.mubr.msk.bf16.vlgmr.msra.gmra.mrb[4].mxu0 %vm917_vm0, %v20877_v21  ;;  %v18501_v21 = vld [vmem:[#allocation10 + $0x30] ss:$24 sps:$4 sm:$0xff]  }
 0x2b6   : > { %4145 = vmatpush1.bf16.msra.mxu0 %v18498_v6  ;;  %4018 = vmatpush1.bf16.msra.mxu1 %v18501_v21 }
 0x2b7   : > { %4146 = vmatprep.subr.bf16.mxu0 %v18506_v20 }
 0x309   : > { %v1895_v22 = vpop.f32.mrb[0].mxu1 }
 0x30a   : > { %v1897_v23 = vpop.f32.mrb[1].mxu1 }
 0x30b   : > { %v1899_v24 = vpop.f32.mrb[2].mxu1 }
 0x30c   : > { %v1901_v25 = vpop.f32.mrb[3].mxu1 }
 0x328   : > { %v1852_v33 = vpop.f32.mrb[0].mxu0 }
 0x329   : > { %v1853_v34 = vadd.f32 %v1852_v33, %v1071_v31  ;;  %v1854_v36 = vpop.f32.mrb[1].mxu0  ;;  %v18516_v33 = vld [vmem:[#allocation10 + $0x98] ss:$24 sps:$4 sm:$0xff]  }
 0x32a   : > { %v1855_v37 = vadd.f32 %v1854_v36, %v1075_v32  ;;  %v1856_v38 = vpop.f32.mrb[2].mxu0  ;;  %v18519_v36 = vld [vmem:[#allocation10 + $0xc0] ss:$24 sps:$4 sm:$0xff]  }
 0x32b   : > { %v22143_v39 = vadd.f32 %v1895_v22, %v1853_v34  ;;  %v1857_v40 = vadd.f32 %v1856_v38, %v1071_v31  ;;  %v1858_v41 = vpop.f32.mrb[3].mxu0  ;;  %v18504_v22 = vld [vmem:[#allocation10 + $0x38] ss:$24 sps:$4 sm:$0xff]   ;;  %v18518_v31 = vld [vmem:[#allocation10 + $0x9c] ss:$24 sps:$4 sm:$0xff]  }
 0x32c   : > { %v22145_v42 = vadd.f32 %v1897_v23, %v1855_v37  ;;  %v1859_v43 = vadd.f32 %v1858_v41, %v1075_v32  ;;  %v18509_v23 = vld [vmem:[#allocation10 + $0x64] ss:$24 sps:$4 sm:$0xff]   ;;  %4147 = vmatpush1.bf16.msra.mxu0 %v18504_v22  ;;  %v18513_v32 = vld [vmem:[#allocation10 + $0x90] ss:$24 sps:$4 sm:$0xff]  }
 0x32d   : > { %v22147_v44 = vadd.f32 %v1899_v24, %v1857_v40  ;;  %v18512_v24 = vld [vmem:[#allocation10 + $0x6c] ss:$24 sps:$4 sm:$0xff]   ;;  %4019 = vmatprep.subr.bf16.mxu1 %v18509_v23  ;;  %v18522_v38 = vld [vmem:[#allocation10 + $0xc8] ss:$24 sps:$4 sm:$0xff]   ;;  %v18530_v41 = vld [vmem:[#allocation10 + $0xfc] ss:$24 sps:$4 sm:$0xff]  }
 0x32e   : > { %v22149_v45 = vadd.f32 %v1901_v25, %v1859_v43  ;;  %v2078_v57 = vadd.f32 %v22145_v42, %v22143_v39  ;;  %v18507_v25 = vld [vmem:[#allocation10 + $0x60] ss:$24 sps:$4 sm:$0xff]   ;;  %4148 = vmatprep.subr.bf16.mxu0 %v18512_v24  ;;  %v18521_v34 = vld [vmem:[#allocation10 + $0xc4] ss:$24 sps:$4 sm:$0xff]   ;;  %v18527_v40 = vld [vmem:[#allocation10 + $0xf4] ss:$24 sps:$4 sm:$0xff]  }
 0x32f   : > { %4020 = vmatpush1.bf16.msra.mxu1 %v18507_v25  ;;  %v18524_v37 = vld [vmem:[#allocation10 + $0xcc] ss:$24 sps:$4 sm:$0xff]   ;;  %v18525_v43 = vld [vmem:[#allocation10 + $0xf0] ss:$24 sps:$4 sm:$0xff]  }
 0x330   : > { %v2085_v61 = vadd.f32 %v22149_v45, %v22147_v44  ;;  %4149 = vmatpush1.bf16.msra.mxu0 %v18510_v26  ;;  %4021 = vmatprep.subr.bf16.mxu1 %v18515_v28 }
 0x331   : > { %4150 = vmatprep.subr.bf16.mxu0 %v18518_v31 }
 0x333   : > { %4022 = vmatpush1.bf16.msra.mxu1 %v18513_v32 }
 0x334   : > { %4151 = vmatpush1.bf16.msra.mxu0 %v18516_v33  ;;  %4023 = vmatprep.subr.bf16.mxu1 %v18521_v34 }
 0x335   : > { %4152 = vmatprep.subr.bf16.mxu0 %v18524_v37 }
 0x337   : > { %4024 = vmatpush1.bf16.msra.mxu1 %v18519_v36 }
 0x338   : > { %4153 = vmatpush1.bf16.msra.mxu0 %v18522_v38  ;;  %4025 = vmatprep.subr.bf16.mxu1 %v18527_v40 }
 0x339   : > { %4154 = vmatprep.subr.bf16.mxu0 %v18530_v41 }
 0x33b   : > { %4026 = vmatpush1.bf16.msra.mxu1 %v18525_v43  ;;  %v18557_v43 = vld [vmem:[#allocation10 + $0x1e4] ss:$24 sps:$4 sm:$0xff]  }
 0x369   : > { %v1981_v46 = vpop.f32.mrb[4].mxu1 }
 0x36a   : > { %v1983_v47 = vpop.f32.mrb[5].mxu1  ;;  %v22158_v53 = vadd.f32 %v1981_v46, %v1079_v51  ;;  %v18528_v46 = vld [vmem:[#allocation10 + $0xf8] ss:$24 sps:$4 sm:$0xff]  }
 0x36b   : > { %v1985_v48 = vpop.f32.mrb[6].mxu1  ;;  %v22172_v60 = vadd.f32 %v1983_v47, %v1083_v54  ;;  %v18533_v47 = vld [vmem:[#allocation10 + $0x124] ss:$24 sps:$4 sm:$0xff]   ;;  %4155 = vmatpush1.bf16.msra.mxu0 %v18528_v46 }
 0x36c   : > { %v1987_v49 = vpop.f32.mrb[7].mxu1  ;;  %v22169_v58 = vadd.f32 %v1985_v48, %v1079_v51  ;;  %v2079_v59 = vadd.f32 %v22158_v53, %v2078_v57  ;;  %v18536_v48 = vld [vmem:[#allocation10 + $0x12c] ss:$24 sps:$4 sm:$0xff]   ;;  %v18534_v51 = vld [vmem:[#allocation10 + $0x128] ss:$24 sps:$4 sm:$0xff]   ;;  %4027 = vmatprep.subr.bf16.mxu1 %v18533_v47 }
 0x36d   : > { %v22179_v2 = vadd.f32 %v1987_v49, %v1083_v54  ;;  %v18531_v49 = vld [vmem:[#allocation10 + $0x120] ss:$24 sps:$4 sm:$0xff]   ;;  %v18539_v54 = vld [vmem:[#allocation10 + $0x154] ss:$24 sps:$4 sm:$0xff]   ;;  %4156 = vmatprep.subr.bf16.mxu0 %v18536_v48 }
 0x36e   : > { %v2086_v1 = vadd.f32 %v22169_v58, %v2085_v61  ;;  %v2080_v4 = vadd.f32 %v22172_v60, %v2079_v59  ;;  %v18542_v57 = vld [vmem:[#allocation10 + $0x15c] ss:$24 sps:$4 sm:$0xff]   ;;  %v18537_v59 = vld [vmem:[#allocation10 + $0x150] ss:$24 sps:$4 sm:$0xff]   ;;  %4028 = vmatpush1.bf16.msra.mxu1 %v18531_v49  ;;  %v18560_v46 = vld [vmem:[#allocation10 + $0x1ec] ss:$24 sps:$4 sm:$0xff]  }
 0x36f   : > { %v18540_v61 = vld [vmem:[#allocation10 + $0x158] ss:$24 sps:$4 sm:$0xff]   ;;  %4157 = vmatpush1.bf16.msra.mxu0 %v18534_v51  ;;  %4029 = vmatprep.subr.bf16.mxu1 %v18539_v54  ;;  %v18558_v47 = vld [vmem:[#allocation10 + $0x1e8] ss:$24 sps:$4 sm:$0xff]   ;;  %v18563_v48 = vld [vmem:[#allocation10 + $0x214] ss:$24 sps:$4 sm:$0xff]  }
 0x370   : > { %v2087_v10 = vadd.f32 %v22179_v2, %v2086_v1  ;;  %4158 = vmatprep.subr.bf16.mxu0 %v18542_v57  ;;  %v18543_v1 = vld [vmem:[#allocation10 + $0x180] ss:$24 sps:$4 sm:$0xff]   ;;  %v18566_v49 = vld [vmem:[#allocation10 + $0x21c] ss:$24 sps:$4 sm:$0xff]   ;;  %v18561_v51 = vld [vmem:[#allocation10 + $0x210] ss:$24 sps:$4 sm:$0xff]  }
 0x371   : > { %v18564_v54 = vld [vmem:[#allocation10 + $0x218] ss:$24 sps:$4 sm:$0xff]   ;;  %v18569_v57 = vld [vmem:[#allocation10 + $0x244] ss:$24 sps:$4 sm:$0xff]  }
 0x372   : > { %4030 = vmatpush1.bf16.msra.mxu1 %v18537_v59  ;;  %v18567_v59 = vld [vmem:[#allocation10 + $0x240] ss:$24 sps:$4 sm:$0xff]  }
 0x373   : > { %4159 = vmatpush1.bf16.msra.mxu0 %v18540_v61  ;;  %v18570_v61 = vld [vmem:[#allocation10 + $0x248] ss:$24 sps:$4 sm:$0xff]  }
 0x388   : > { %v2067_v3 = vpop.f32.mrb[4].mxu0 }
 0x389   : > { %v22182_v5 = vadd.f32 %v2067_v3, %v1087_v62  ;;  %v2069_v7 = vpop.f32.mrb[5].mxu0  ;;  %v18546_v3 = vld [vmem:[#allocation10 + $0x188] ss:$24 sps:$4 sm:$0xff]  }
 0x38a   : > { %v22184_v8 = vadd.f32 %v2069_v7, %v1091_v63  ;;  %v2071_v9 = vpop.f32.mrb[6].mxu0  ;;  %v18554_v7 = vld [vmem:[#allocation10 + $0x1bc] ss:$24 sps:$4 sm:$0xff]  }
 0x38b   : > { %v22187_v11 = vadd.f32 %v2071_v9, %v1087_v62  ;;  %v2073_v12 = vpop.f32.mrb[7].mxu0  ;;  %v2081_v13 = vadd.f32 %v22182_v5, %v2080_v4  ;;  %v18545_v62 = vld [vmem:[#allocation10 + $0x184] ss:$24 sps:$4 sm:$0xff]   ;;  %v18551_v4 = vld [vmem:[#allocation10 + $0x1b4] ss:$24 sps:$4 sm:$0xff]  }
 0x38c   : > { %v22191_v15 = vadd.f32 %v2073_v12, %v1091_v63  ;;  %v18548_v63 = vld [vmem:[#allocation10 + $0x18c] ss:$24 sps:$4 sm:$0xff]   ;;  %4031 = vmatprep.subr.bf16.mxu1 %v18545_v62  ;;  %v18549_v9 = vld [vmem:[#allocation10 + $0x1b0] ss:$24 sps:$4 sm:$0xff]  }
 0x38d   : > { %v2088_v14 = vadd.f32 %v22187_v11, %v2087_v10  ;;  %v2082_v16 = vadd.f32 %v22184_v8, %v2081_v13  ;;  %4160 = vmatprep.subr.bf16.mxu0 %v18548_v63  ;;  %v18552_v10 = vld [vmem:[#allocation10 + $0x1b8] ss:$24 sps:$4 sm:$0xff]   ;;  %4032 = vmatpush1.bf16.msra.mxu1 %v18543_v1  ;;  %v18572_v62 = vld [vmem:[#allocation10 + $0x24c] ss:$24 sps:$4 sm:$0xff]   ;;  %v18578_v1 = vld [vmem:[#allocation10 + $0x27c] ss:$24 sps:$4 sm:$0xff]  }
 0x38e   : > { %4161 = vmatpush1.bf16.msra.mxu0 %v18546_v3  ;;  %4033 = vmatprep.subr.bf16.mxu1 %v18551_v4  ;;  %v18575_v63 = vld [vmem:[#allocation10 + $0x274] ss:$24 sps:$4 sm:$0xff]   ;;  %v18573_v3 = vld [vmem:[#allocation10 + $0x270] ss:$24 sps:$4 sm:$0xff]  }
 0x38f   : > { %2083 = vadd.xlane.f32.xlu0 %v2082_v16  ;;  %v2089_v17 = vadd.f32 %v22191_v15, %v2088_v14  ;;  %4162 = vmatprep.subr.bf16.mxu0 %v18554_v7  ;;  %v18576_v4 = vld [vmem:[#allocation10 + $0x278] ss:$24 sps:$4 sm:$0xff]   ;;  %v18581_v7 = vld [vmem:[#allocation10 + $0x2a4] ss:$24 sps:$4 sm:$0xff]  }
 0x391   : > { %4034 = vmatpush1.bf16.msra.mxu1 %v18549_v9  ;;  %v18584_v9 = vld [vmem:[#allocation10 + $0x2ac] ss:$24 sps:$4 sm:$0xff]  }
 0x392   : > { %4163 = vmatpush1.bf16.msra.mxu0 %v18552_v10  ;;  %4035 = vmatprep.subr.bf16.mxu1 %v18557_v43  ;;  %v18579_v10 = vld [vmem:[#allocation10 + $0x2a0] ss:$24 sps:$4 sm:$0xff]  }
 0x393   : > { %2090 = vadd.xlane.f32.xlu0 %v2089_v17  ;;  %4164 = vmatprep.subr.bf16.mxu0 %v18560_v46 }
 0x396   : > { %4165 = vmatpush1.bf16.msra.mxu0 %v18558_v47 }
 0x397   : > { %4166 = vmatprep.subr.bf16.mxu0 %v18566_v49 }
 0x39a   : > { %4167 = vmatpush1.bf16.msra.mxu0 %v18564_v54 }
 0x39b   : > { %4168 = vmatprep.subr.bf16.mxu0 %v18572_v62 }
 0x39e   : > { %4169 = vmatpush1.bf16.msra.mxu0 %v18570_v61 }
 0x39f   : > { %4170 = vmatprep.subr.bf16.mxu0 %v18578_v1 }
 0x3a2   : > { %4171 = vmatpush1.bf16.msra.mxu0 %v18576_v4 }
 0x3a3   : > { %4172 = vmatprep.subr.bf16.mxu0 %v18584_v9 }
 0x41c   : > { %v2084_v12 = vpop.xlane.xlu0 %2083 }
 0x41d   : > { %v2093_v13 = vmul.f32 0.0013020834, %v2084_v12  ;;  %v18582_v12 = vld [vmem:[#allocation10 + $0x2a8] ss:$24 sps:$4 sm:$0xff]  }
 0x41e   : > { %4173 = vmatpush1.bf16.msra.mxu0 %v18582_v12 }
 0x41f   : > { %v22196_v14 = vsub.f32 %v22143_v39, %v2093_v13  ;;  %v22199_v16 = vsub.f32 %v22145_v42, %v2093_v13  ;;  %v22202_v17 = vsub.f32 %v22158_v53, %v2093_v13  ;;  %v22205_v35 = vsub.f32 %v22172_v60, %v2093_v13 }
 0x420   : > { %v2091_v18 = vpop.xlane.xlu0 %2090  ;;  %v22212_v39 = vsub.f32 %v22182_v5, %v2093_v13  ;;  %v22226_v22 = vsub.f32 %v22184_v8, %v2093_v13  ;;  %v18587_v13 = vld [vmem:[#allocation10 + $0x2d4] ss:$24 sps:$4 sm:$0xff]  }
 0x421   : > { %v2094_v6 = vmul.f32 0.0013020834, %v2091_v18  ;;  %v2107_v19 = vmul.f32 %v22196_v14, %v22196_v14  ;;  %v2108_v0 = vmul.f32 %v22199_v16, %v22199_v16  ;;  %v2109_v42 = vmul.f32 %v22202_v17, %v22202_v17  ;;  %v18590_v18 = vld [vmem:[#allocation10 + $0x2dc] ss:$24 sps:$4 sm:$0xff]  }
 0x422   : > { %v2110_v5 = vmul.f32 %v22205_v35, %v22205_v35  ;;  %4174 = vmatprep.subr.bf16.mxu0 %v18590_v18 }
 0x423   : > { %v2119_v20 = vadd.f32 %v2108_v0, %v2107_v19  ;;  %v22217_v53 = vsub.f32 %v22147_v44, %v2094_v6  ;;  %v22220_v60 = vsub.f32 %v22149_v45, %v2094_v6  ;;  %v22223_v21 = vsub.f32 %v22169_v58, %v2094_v6  ;;  %v18588_v19 = vld [vmem:[#allocation10 + $0x2d8] ss:$24 sps:$4 sm:$0xff]   ;;  %v18593_v0 = vld [vmem:[#allocation10 + $0x304] ss:$24 sps:$4 sm:$0xff]  }
 0x424   : > { %v22231_v24 = vsub.f32 %v22179_v2, %v2094_v6  ;;  %v2111_v58 = vmul.f32 %v22212_v39, %v22212_v39  ;;  %v22240_v8 = vsub.f32 %v22187_v11, %v2094_v6  ;;  %v2112_v2 = vmul.f32 %v22226_v22, %v22226_v22  ;;  %4175 = vmatpush1.bf16.msra.mxu0 %v18588_v19 }
 0x425   : > { %v2120_v23 = vadd.f32 %v2119_v20, %v2109_v42  ;;  %v2113_v44 = vmul.f32 %v22217_v53, %v22217_v53  ;;  %v2114_v45 = vmul.f32 %v22220_v60, %v22220_v60  ;;  %v2115_v26 = vmul.f32 %v22223_v21, %v22223_v21  ;;  %v18596_v42 = vld [vmem:[#allocation10 + $0x30c] ss:$24 sps:$4 sm:$0xff]  }
 0x426   : > { %v22247_v32 = vsub.f32 %v22191_v15, %v2094_v6  ;;  %v2116_v33 = vmul.f32 %v22231_v24, %v22231_v24  ;;  %v2117_v11 = vmul.f32 %v22240_v8, %v22240_v8  ;;  %v18555_v15 = vld [vmem:[#allocation10 + $0x1e0] ss:$24 sps:$4 sm:$0xff]   ;;  %v18585_v6 = vld [vmem:[#allocation10 + $0x2d0] ss:$24 sps:$4 sm:$0xff]   ;;  %4187 = vmatprep.subr.bf16.mxu0 %v18596_v42 }
 0x427   : > { %v2121_v25 = vadd.f32 %v2120_v23, %v2110_v5  ;;  %v2126_v28 = vadd.f32 %v2114_v45, %v2113_v44  ;;  %4036 = vmatpush1.bf16.msra.mxu1 %v18555_v15 }
 0x428   : > { %v2118_v38 = vmul.f32 %v22247_v32, %v22247_v32  ;;  %4037 = vmatprep.subr.bf16.mxu1 %v18563_v48 }
 0x429   : > { %v2122_v31 = vadd.f32 %v2121_v25, %v2111_v58  ;;  %v2127_v34 = vadd.f32 %v2126_v28, %v2115_v26  ;;  %v2076_v25 = vld [vmem:[#allocation7] sm:$0x3f]  ;;  %v2077_v26 = vld [vmem:[#allocation8] sm:$0x3f] }
 0x42a   : > { %v2159_v28 = vrot.slane %v2076_v25, %v22139_v30  ;;  %v2202_v43 = vrot.slane %v2077_v26, %v22139_v30  ;;  %v2206_v46 = vrot.slane %v2077_v26, %v22152_v50  ;;  %v2198_v49 = vrot.slane %v2077_v26, %v22136_v29 }
 0x42b   : > { %v2123_v36 = vadd.f32 %v2122_v31, %v2112_v2  ;;  %v2128_v37 = vadd.f32 %v2127_v34, %v2116_v33  ;;  %4038 = vmatpush1.bf16.msra.mxu1 %v18561_v51  ;;  %v2163_v2 = vrot.slane %v2076_v25, %v22152_v50  ;;  %v2155_v33 = vrot.slane %v2076_v25, %v22136_v29 }
 0x42c   : > { %4039 = vmatprep.subr.bf16.mxu1 %v18569_v57  ;;  %v2167_v34 = vrot.slane %v2076_v25, %v22156_v52 }
 0x42d   : > { %2124 = vadd.xlane.f32.xlu1 %v2123_v36  ;;  %v2129_v40 = vadd.f32 %v2128_v37, %v2117_v11  ;;  %v2175_v36 = vrot.slane %v2076_v25, %v22165_v56  ;;  %v2171_v11 = vrot.slane %v2076_v25, %v22162_v55  ;;  %v18602_v25 = vld [vmem:[#allocation10 + $0x33c] ss:$24 sps:$4 sm:$0xff]  }
 0x42f   : > { %v2130_v41 = vadd.f32 %v2129_v40, %v2118_v38  ;;  %4040 = vmatpush1.bf16.msra.mxu1 %v18567_v59 }
 0x430   : > { %4041 = vmatprep.subr.bf16.mxu1 %v18575_v63 }
 0x431   : > { %2131 = vadd.xlane.f32.xlu1 %v2130_v41 }
 0x433   : > { %4042 = vmatpush1.bf16.msra.mxu1 %v18573_v3 }
 0x434   : > { %4043 = vmatprep.subr.bf16.mxu1 %v18581_v7 }
 0x437   : > { %4044 = vmatpush1.bf16.msra.mxu1 %v18579_v10 }
 0x438   : > { %4045 = vmatprep.subr.bf16.mxu1 %v18587_v13 }
 0x43b   : > { %4046 = vmatpush1.bf16.msra.mxu1 %v18585_v6 }
 0x43c   : > { %4058 = vmatprep.subr.bf16.mxu1 %v18593_v0 }
 0x4ba   : > { %v2125_v20 = vpop.xlane.xlu1 %2124 }
 0x4bb   : > { %v2133_v5 = vmul.f32 0.0013020834, %v2125_v20  ;;  %v18591_v20 = vld [vmem:[#allocation10 + $0x300] ss:$24 sps:$4 sm:$0xff]  }
 0x4bd   : > { %v2135_v23 = vadd.f32 1e-05, %v2133_v5 }
 0x4be   : > { %v2132_v44 = vpop.xlane.xlu1 %2131 }
 0x4bf   : > { %20817 = vrsqrt.f32 %v2135_v23  ;;  %v2134_v45 = vmul.f32 0.0013020834, %v2132_v44 }
 0x4c1   : > { %v2136_v58 = vadd.f32 1e-05, %v2134_v45 }
 0x4c3   : > { %20819 = vrsqrt.f32 %v2136_v58  ;;  %v18599_v58 = vld [vmem:[#allocation10 + $0x334] ss:$24 sps:$4 sm:$0xff]  }
 0x4c9   : > { %v20818_v31 = vpop.eup %20817 }
 0x4ca   : > { %v2140_v37 = vmul.f32 %v20818_v31, %v22199_v16  ;;  %v2139_v38 = vmul.f32 %v20818_v31, %v22196_v14  ;;  %v2142_v40 = vmul.f32 %v20818_v31, %v22205_v35  ;;  %v2141_v41 = vmul.f32 %v20818_v31, %v22202_v17 }
 0x4cb   : > { %v2144_v15 = vmul.f32 %v20818_v31, %v22226_v22  ;;  %v2143_v47 = vmul.f32 %v20818_v31, %v22212_v39  ;;  %v2218_v16 = vrot.slane %v2077_v26, %v22165_v56  ;;  %v2210_v14 = vrot.slane %v2077_v26, %v22156_v52  ;;  %v18605_v31 = vld [vmem:[#allocation10 + $0x364] ss:$24 sps:$4 sm:$0xff]  }
 0x4cc   : > { %v2183_v48 = vmul.f32 %v2159_v28, %v2140_v37  ;;  %v2184_v51 = vmul.f32 %v2163_v2, %v2141_v41  ;;  %v2214_v17 = vrot.slane %v2077_v26, %v22162_v55  ;;  %v2182_v22 = vmul.f32 %v2155_v33, %v2139_v38  ;;  %v18614_v37 = vld [vmem:[#allocation10 + $0x39c] ss:$24 sps:$4 sm:$0xff]   ;;  %v18609_v38 = vld [vmem:[#allocation10 + $0x390] ss:$24 sps:$4 sm:$0xff]  }
 0x4cd   : > { %v20820_v54 = vpop.eup %20819  ;;  %v2187_v35 = vmul.f32 %v2175_v36, %v2144_v15  ;;  %v2186_v57 = vmul.f32 %v2171_v11, %v2143_v47  ;;  %v2185_v62 = vmul.f32 %v2167_v34, %v2142_v40  ;;  %v18612_v40 = vld [vmem:[#allocation10 + $0x398] ss:$24 sps:$4 sm:$0xff]   ;;  %v18617_v41 = vld [vmem:[#allocation10 + $0x3c4] ss:$24 sps:$4 sm:$0xff]   ;;  %v18618_v15 = vld [vmem:[#allocation10 + $0x3c8] ss:$24 sps:$4 sm:$0xff]  }
 0x4ce   : > { %v2146_v59 = vmul.f32 %v20820_v54, %v22220_v60  ;;  %v2145_v61 = vmul.f32 %v20820_v54, %v22217_v53  ;;  %v22275_v39 = vadd.f32 %v2202_v43, %v2183_v48  ;;  %v2148_v63 = vmul.f32 %v20820_v54, %v22231_v24  ;;  %v18623_v47 = vld [vmem:[#allocation10 + $0x3f4] ss:$24 sps:$4 sm:$0xff]  }
 0x4cf   : > { %v2147_v1 = vmul.f32 %v20820_v54, %v22223_v21  ;;  %v22279_v3 = vadd.f32 %v2206_v46, %v2184_v51  ;;  %v2150_v9 = vmul.f32 %v20820_v54, %v22247_v32  ;;  %v22282_v10 = vadd.f32 %v2218_v16, %v2187_v35  ;;  %v18626_v48 = vld [vmem:[#allocation10 + $0x3fc] ss:$24 sps:$4 sm:$0xff]   ;;  %v18624_v51 = vld [vmem:[#allocation10 + $0x3f8] ss:$24 sps:$4 sm:$0xff]   ;;  %v18630_v35 = vld [vmem:[#allocation10 + $0x428] ss:$24 sps:$4 sm:$0xff]  }
 0x4d0   : > { %23331 = vst [vmem:[#allocation54_spill] sm:$0xff] %v22275_v39  ;;  %v2189_v4 = vmul.f32 %v2159_v28, %v2146_v59  ;;  %v2188_v7 = vmul.f32 %v2155_v33, %v2145_v61  ;;  %v2191_v12 = vmul.f32 %v2167_v34, %v2148_v63  ;;  %v2149_v53 = vmul.f32 %v20820_v54, %v22240_v8  ;;  %v18594_v8 = vld [vmem:[#allocation10 + $0x308] ss:$24 sps:$4 sm:$0xff]   ;;  %v18608_v33 = vld [vmem:[#allocation10 + $0x36c] ss:$24 sps:$4 sm:$0xff]  }
 0x4d1   : > { %23332 = vst [vmem:[#allocation55_spill] sm:$0xff] %v22279_v3  ;;  %23333 = vst [vmem:[#allocation56_spill] sm:$0xff] %v22282_v10  ;;  %v2190_v60 = vmul.f32 %v2163_v2, %v2147_v1  ;;  %v22285_v13 = vadd.f32 %v2214_v17, %v2186_v57  ;;  %v22289_v6 = vadd.f32 %v2198_v49, %v2182_v22  ;;  %v18597_v28 = vld [vmem:[#allocation10 + $0x330] ss:$24 sps:$4 sm:$0xff]   ;;  %v18603_v34 = vld [vmem:[#allocation10 + $0x360] ss:$24 sps:$4 sm:$0xff]  }
 0x4d2   : > { %v22287_v18 = vadd.f32 %v2202_v43, %v2189_v4  ;;  %v22291_v24 = vadd.f32 %v2198_v49, %v2188_v7  ;;  %v2193_v21 = vmul.f32 %v2175_v36, %v2150_v9  ;;  %v22293_v19 = vadd.f32 %v2210_v14, %v2191_v12  ;;  %v18600_v2 = vld [vmem:[#allocation10 + $0x338] ss:$24 sps:$4 sm:$0xff]   ;;  %v18606_v36 = vld [vmem:[#allocation10 + $0x368] ss:$24 sps:$4 sm:$0xff]   ;;  %v18620_v43 = vld [vmem:[#allocation10 + $0x3cc] ss:$24 sps:$4 sm:$0xff]  }
 0x4d3   : > { %23334 = vst [vmem:[#allocation57_spill] sm:$0xff] %v22285_v13  ;;  %v22295_v0 = vadd.f32 %v2206_v46, %v2190_v60  ;;  %v2192_v32 = vmul.f32 %v2171_v11, %v2149_v53  ;;  %v22307_v44 = vadd.f32 %v2210_v14, %v2185_v62  ;;  %v18611_v11 = vld [vmem:[#allocation10 + $0x394] ss:$24 sps:$4 sm:$0xff]   ;;  %v18615_v46 = vld [vmem:[#allocation10 + $0x3c0] ss:$24 sps:$4 sm:$0xff]  }
 0x4d4   : > { %23335 = vst [vmem:[#allocation58_spill] sm:$0xff] %v22287_v18  ;;  %23336 = vst [vmem:[#allocation59_spill] sm:$0xff] %v22291_v24  ;;  %v22299_v42 = vpack.c.bf16 %v22287_v18, %v22275_v39  ;;  %v22303_v5 = vpack.c.bf16 %v22291_v24, %v22289_v6  ;;  %v22305_v23 = vadd.f32 %v2218_v16, %v2193_v21  ;;  %v18621_v49 = vld [vmem:[#allocation10 + $0x3f0] ss:$24 sps:$4 sm:$0xff]   ;;  %v18629_v16 = vld [vmem:[#allocation10 + $0x424] ss:$24 sps:$4 sm:$0xff]  }
 0x4d5   : > { %23337 = vst [vmem:[#allocation60_spill] sm:$0xff] %v22293_v19  ;;  %23338 = vst [vmem:[#allocation61_spill] sm:$0xff] %v22295_v0  ;;  %v22309_v45 = vadd.f32 %v2214_v17, %v2192_v32  ;;  %v22317_v26 = vpack.c.bf16 %v22293_v19, %v22307_v44  ;;  %v18632_v54 = vld [vmem:[#allocation10 + $0x42c] ss:$24 sps:$4 sm:$0xff]   ;;  %v18627_v14 = vld [vmem:[#allocation10 + $0x420] ss:$24 sps:$4 sm:$0xff]  }
 0x4d6   : > { %23339 = vst [vmem:[#allocation62_spill] sm:$0xff] %v22305_v23  ;;  %23340 = vst [vmem:[#allocation63_spill] sm:$0xff] %v22307_v44  ;;  %4047 = vmatprep.mubr.bf16.mxu1 %v22299_v42  ;;  %4176 = vmatprep.mubr.bf16.mxu0 %v22299_v42  ;;  %v18635_v57 = vld [vmem:[#allocation10 + $0x454] ss:$24 sps:$4 sm:$0xff]   ;;  %v18633_v59 = vld [vmem:[#allocation10 + $0x450] ss:$24 sps:$4 sm:$0xff]  }
 0x4d7   : > { %23341 = vst [vmem:[#allocation64_spill] sm:$0xff] %v22309_v45  ;;  %4048 = vmatmul.mubr.bf16.vlgmr.msra.gmra.mrb[8].mxu1 %v22303_v5  ;;  %4177 = vmatmul.mubr.bf16.vlgmr.msra.gmra.mrb[8].mxu0 %v22303_v5  ;;  %v18638_v17 = vld [vmem:[#allocation10 + $0x45c] ss:$24 sps:$4 sm:$0xff]   ;;  %v18636_v61 = vld [vmem:[#allocation10 + $0x458] ss:$24 sps:$4 sm:$0xff]  }
 0x4d8   : > { %4059 = vmatpush1.bf16.msra.mxu1 %v18591_v20  ;;  %4188 = vmatpush1.bf16.msra.mxu0 %v18594_v8  ;;  %v18641_v22 = vld [vmem:[#allocation10 + $0x484] ss:$24 sps:$4 sm:$0xff]   ;;  %v18639_v63 = vld [vmem:[#allocation10 + $0x480] ss:$24 sps:$4 sm:$0xff]   ;;  %v18647_v4 = vld [vmem:[#allocation10 + $0x4b4] ss:$24 sps:$4 sm:$0xff]  }
 0x4d9   : > { %4090 = vmatprep.mubr.bf16.mxu1 %v22317_v26  ;;  %4219 = vmatprep.mubr.bf16.mxu0 %v22317_v26  ;;  %v18644_v62 = vld [vmem:[#allocation10 + $0x48c] ss:$24 sps:$4 sm:$0xff]   ;;  %v18642_v1 = vld [vmem:[#allocation10 + $0x488] ss:$24 sps:$4 sm:$0xff]   ;;  %v18650_v7 = vld [vmem:[#allocation10 + $0x4bc] ss:$24 sps:$4 sm:$0xff]  }
 0x4da   : > { %4060 = vmatprep.subr.bf16.mxu1 %v18599_v58  ;;  %4189 = vmatprep.subr.bf16.mxu0 %v18602_v25  ;;  %v18645_v9 = vld [vmem:[#allocation10 + $0x4b0] ss:$24 sps:$4 sm:$0xff]   ;;  %v18653_v60 = vld [vmem:[#allocation10 + $0x4e4] ss:$24 sps:$4 sm:$0xff]   ;;  %v18651_v21 = vld [vmem:[#allocation10 + $0x4e0] ss:$24 sps:$4 sm:$0xff]  }
 0x4db   : > { %v18648_v12 = vld [vmem:[#allocation10 + $0x4b8] ss:$24 sps:$4 sm:$0xff]   ;;  %v18656_v53 = vld [vmem:[#allocation10 + $0x4ec] ss:$24 sps:$4 sm:$0xff]   ;;  %v18654_v32 = vld [vmem:[#allocation10 + $0x4e8] ss:$24 sps:$4 sm:$0xff]  }
 0x4dc   : > { %4061 = vmatpush1.bf16.msra.mxu1 %v18597_v28  ;;  %4190 = vmatpush1.bf16.msra.mxu0 %v18600_v2  ;;  %v18659_v20 = vld [vmem:[#allocation10 + $0x514] ss:$24 sps:$4 sm:$0xff]   ;;  %v18657_v58 = vld [vmem:[#allocation10 + $0x510] ss:$24 sps:$4 sm:$0xff]   ;;  %v18665_v28 = vld [vmem:[#allocation10 + $0x544] ss:$24 sps:$4 sm:$0xff]  }
 0x4dd   : > { %4062 = vmatprep.subr.bf16.mxu1 %v18605_v31  ;;  %4191 = vmatprep.subr.bf16.mxu0 %v18608_v33  ;;  %v18662_v8 = vld [vmem:[#allocation10 + $0x51c] ss:$24 sps:$4 sm:$0xff]   ;;  %v18660_v25 = vld [vmem:[#allocation10 + $0x518] ss:$24 sps:$4 sm:$0xff]   ;;  %v18668_v2 = vld [vmem:[#allocation10 + $0x54c] ss:$24 sps:$4 sm:$0xff]  }
 0x4de   : > { %v18663_v31 = vld [vmem:[#allocation10 + $0x540] ss:$24 sps:$4 sm:$0xff]  }
 0x4df   : > { %v18666_v33 = vld [vmem:[#allocation10 + $0x548] ss:$24 sps:$4 sm:$0xff]  }
 0x4e0   : > { %4063 = vmatpush1.bf16.msra.mxu1 %v18603_v34  ;;  %4192 = vmatpush1.bf16.msra.mxu0 %v18606_v36  ;;  %v18671_v34 = vld [vmem:[#allocation10 + $0x574] ss:$24 sps:$4 sm:$0xff]  }
 0x4e1   : > { %4064 = vmatprep.subr.bf16.mxu1 %v18611_v11  ;;  %4193 = vmatprep.subr.bf16.mxu0 %v18614_v37  ;;  %v18674_v36 = vld [vmem:[#allocation10 + $0x57c] ss:$24 sps:$4 sm:$0xff]   ;;  %v18669_v11 = vld [vmem:[#allocation10 + $0x570] ss:$24 sps:$4 sm:$0xff]  }
 0x4e2   : > { %v18672_v37 = vld [vmem:[#allocation10 + $0x578] ss:$24 sps:$4 sm:$0xff]  }
 0x4e3   : > { %v19743_v44 = vld [vmem:[#allocation13 + $0x9e8] ss:$48 sps:$4 sm:$0xff]   ;;  %v19784_v39 = vld [vmem:[#allocation13 + $0xecc] ss:$48 sps:$4 sm:$0xff]  }
 0x4e4   : > { %4065 = vmatpush1.bf16.msra.mxu1 %v18609_v38  ;;  %4194 = vmatpush1.bf16.msra.mxu0 %v18612_v40  ;;  %v18677_v38 = vld [vmem:[#allocation10 + $0x5a4] ss:$24 sps:$4 sm:$0xff]  }
 0x4e5   : > { %4066 = vmatprep.subr.bf16.mxu1 %v18617_v41  ;;  %4195 = vmatprep.subr.bf16.mxu0 %v18620_v43  ;;  %v18680_v40 = vld [vmem:[#allocation10 + $0x5ac] ss:$24 sps:$4 sm:$0xff]   ;;  %v18675_v41 = vld [vmem:[#allocation10 + $0x5a0] ss:$24 sps:$4 sm:$0xff]  }
 0x4e6   : > { %v18678_v43 = vld [vmem:[#allocation10 + $0x5a8] ss:$24 sps:$4 sm:$0xff]  }
 0x4e8   : > { %4067 = vmatpush1.bf16.msra.mxu1 %v18615_v46  ;;  %4196 = vmatpush1.bf16.msra.mxu0 %v18618_v15  ;;  %v18683_v46 = vld [vmem:[#allocation10 + $0x5d4] ss:$24 sps:$4 sm:$0xff]  }
 0x4e9   : > { %4068 = vmatprep.subr.bf16.mxu1 %v18623_v47  ;;  %4197 = vmatprep.subr.bf16.mxu0 %v18626_v48  ;;  %v18686_v15 = vld [vmem:[#allocation10 + $0x5dc] ss:$24 sps:$4 sm:$0xff]   ;;  %v18681_v47 = vld [vmem:[#allocation10 + $0x5d0] ss:$24 sps:$4 sm:$0xff]  }
 0x4ea   : > { %v18684_v48 = vld [vmem:[#allocation10 + $0x5d8] ss:$24 sps:$4 sm:$0xff]  }
 0x4ec   : > { %4069 = vmatpush1.bf16.msra.mxu1 %v18621_v49  ;;  %4198 = vmatpush1.bf16.msra.mxu0 %v18624_v51  ;;  %v18689_v49 = vld [vmem:[#allocation10 + $0x604] ss:$24 sps:$4 sm:$0xff]  }
 0x4ed   : > { %4070 = vmatprep.subr.bf16.mxu1 %v18629_v16  ;;  %4199 = vmatprep.subr.bf16.mxu0 %v18632_v54  ;;  %v18692_v51 = vld [vmem:[#allocation10 + $0x60c] ss:$24 sps:$4 sm:$0xff]   ;;  %v18687_v16 = vld [vmem:[#allocation10 + $0x600] ss:$24 sps:$4 sm:$0xff]   ;;  %v22324_v54 = vpack.c.bf16 %v22295_v0, %v22279_v3 }
 0x4ee   : > { %v19752_v0 = vld [vmem:[#allocation13 + $0xb08] ss:$48 sps:$4 sm:$0xff]  }
 0x4f0   : > { %4071 = vmatpush1.bf16.msra.mxu1 %v18627_v14  ;;  %4200 = vmatpush1.bf16.msra.mxu0 %v18630_v35  ;;  %v18690_v14 = vld [vmem:[#allocation10 + $0x608] ss:$24 sps:$4 sm:$0xff]   ;;  %v22328_v35 = vpack.c.bf16 %v22305_v23, %v22282_v10 }
 0x4f1   : > { %4072 = vmatprep.subr.bf16.mxu1 %v18635_v57  ;;  %4201 = vmatprep.subr.bf16.mxu0 %v18638_v17  ;;  %v18695_v57 = vld [vmem:[#allocation10 + $0x634] ss:$24 sps:$4 sm:$0xff]  }
 0x4f2   : > { %v18698_v17 = vld [vmem:[#allocation10 + $0x63c] ss:$24 sps:$4 sm:$0xff]  }
 0x4f4   : > { %4073 = vmatpush1.bf16.msra.mxu1 %v18633_v59  ;;  %4202 = vmatpush1.bf16.msra.mxu0 %v18636_v61  ;;  %v18693_v59 = vld [vmem:[#allocation10 + $0x630] ss:$24 sps:$4 sm:$0xff]  }
 0x4f5   : > { %4074 = vmatprep.subr.bf16.mxu1 %v18641_v22  ;;  %4203 = vmatprep.subr.bf16.mxu0 %v18644_v62  ;;  %v18696_v61 = vld [vmem:[#allocation10 + $0x638] ss:$24 sps:$4 sm:$0xff]   ;;  %v18701_v22 = vld [vmem:[#allocation10 + $0x664] ss:$24 sps:$4 sm:$0xff]  }
 0x4f6   : > { %v18699_v62 = vld [vmem:[#allocation10 + $0x660] ss:$24 sps:$4 sm:$0xff]  }
 0x4f8   : > { %4075 = vmatpush1.bf16.msra.mxu1 %v18639_v63  ;;  %4204 = vmatpush1.bf16.msra.mxu0 %v18642_v1  ;;  %v18704_v63 = vld [vmem:[#allocation10 + $0x66c] ss:$24 sps:$4 sm:$0xff]   ;;  %v18702_v1 = vld [vmem:[#allocation10 + $0x668] ss:$24 sps:$4 sm:$0xff]  }
 0x4f9   : > { %4076 = vmatprep.subr.bf16.mxu1 %v18647_v4  ;;  %4205 = vmatprep.subr.bf16.mxu0 %v18650_v7  ;;  %v18707_v4 = vld [vmem:[#allocation10 + $0x694] ss:$24 sps:$4 sm:$0xff]  }
 0x4fa   : > { %v18710_v7 = vld [vmem:[#allocation10 + $0x69c] ss:$24 sps:$4 sm:$0xff]  }
 0x4fc   : > { %4077 = vmatpush1.bf16.msra.mxu1 %v18645_v9  ;;  %4206 = vmatpush1.bf16.msra.mxu0 %v18648_v12  ;;  %v18705_v9 = vld [vmem:[#allocation10 + $0x690] ss:$24 sps:$4 sm:$0xff]  }
 0x4fd   : > { %4078 = vmatprep.subr.bf16.mxu1 %v18653_v60  ;;  %4207 = vmatprep.subr.bf16.mxu0 %v18656_v53  ;;  %v18708_v12 = vld [vmem:[#allocation10 + $0x698] ss:$24 sps:$4 sm:$0xff]   ;;  %v18713_v60 = vld [vmem:[#allocation10 + $0x6c4] ss:$24 sps:$4 sm:$0xff]  }
 0x4fe   : > { %v18716_v53 = vld [vmem:[#allocation10 + $0x6cc] ss:$24 sps:$4 sm:$0xff]  }
 0x500   : > { %4079 = vmatpush1.bf16.msra.mxu1 %v18651_v21  ;;  %4208 = vmatpush1.bf16.msra.mxu0 %v18654_v32  ;;  %v18711_v21 = vld [vmem:[#allocation10 + $0x6c0] ss:$24 sps:$4 sm:$0xff]  }
 0x501   : > { %4080 = vmatprep.subr.bf16.mxu1 %v18659_v20  ;;  %4209 = vmatprep.subr.bf16.mxu0 %v18662_v8  ;;  %v18714_v32 = vld [vmem:[#allocation10 + $0x6c8] ss:$24 sps:$4 sm:$0xff]   ;;  %v18719_v20 = vld [vmem:[#allocation10 + $0x6f4] ss:$24 sps:$4 sm:$0xff]  }
 0x502   : > { %v18722_v8 = vld [vmem:[#allocation10 + $0x6fc] ss:$24 sps:$4 sm:$0xff]  }
 0x504   : > { %4081 = vmatpush1.bf16.msra.mxu1 %v18657_v58  ;;  %4210 = vmatpush1.bf16.msra.mxu0 %v18660_v25  ;;  %v18717_v58 = vld [vmem:[#allocation10 + $0x6f0] ss:$24 sps:$4 sm:$0xff]  }
 0x505   : > { %4082 = vmatprep.subr.bf16.mxu1 %v18665_v28  ;;  %4211 = vmatprep.subr.bf16.mxu0 %v18668_v2  ;;  %v18720_v25 = vld [vmem:[#allocation10 + $0x6f8] ss:$24 sps:$4 sm:$0xff]   ;;  %v18725_v28 = vld [vmem:[#allocation10 + $0x724] ss:$24 sps:$4 sm:$0xff]  }
 0x506   : > { %v18728_v2 = vld [vmem:[#allocation10 + $0x72c] ss:$24 sps:$4 sm:$0xff]  }
 0x508   : > { %4083 = vmatpush1.bf16.msra.mxu1 %v18663_v31  ;;  %4212 = vmatpush1.bf16.msra.mxu0 %v18666_v33  ;;  %v18723_v31 = vld [vmem:[#allocation10 + $0x720] ss:$24 sps:$4 sm:$0xff]  }
 0x509   : > { %4084 = vmatprep.subr.bf16.mxu1 %v18671_v34  ;;  %4213 = vmatprep.subr.bf16.mxu0 %v18674_v36  ;;  %v18726_v33 = vld [vmem:[#allocation10 + $0x728] ss:$24 sps:$4 sm:$0xff]   ;;  %v18731_v34 = vld [vmem:[#allocation10 + $0x754] ss:$24 sps:$4 sm:$0xff]  }
 0x50a   : > { %v18734_v36 = vld [vmem:[#allocation10 + $0x75c] ss:$24 sps:$4 sm:$0xff]  }
 0x50c   : > { %4085 = vmatpush1.bf16.msra.mxu1 %v18669_v11  ;;  %4214 = vmatpush1.bf16.msra.mxu0 %v18672_v37  ;;  %v18729_v11 = vld [vmem:[#allocation10 + $0x750] ss:$24 sps:$4 sm:$0xff]  }
 0x50d   : > { %4086 = vmatprep.subr.bf16.mxu1 %v18677_v38  ;;  %4215 = vmatprep.subr.bf16.mxu0 %v18680_v40  ;;  %v18732_v37 = vld [vmem:[#allocation10 + $0x758] ss:$24 sps:$4 sm:$0xff]   ;;  %v18737_v38 = vld [vmem:[#allocation10 + $0x784] ss:$24 sps:$4 sm:$0xff]  }
 0x50e   : > { %v18740_v40 = vld [vmem:[#allocation10 + $0x78c] ss:$24 sps:$4 sm:$0xff]  }
 0x510   : > { %4087 = vmatpush1.bf16.msra.mxu1 %v18675_v41  ;;  %4216 = vmatpush1.bf16.msra.mxu0 %v18678_v43  ;;  %v18735_v41 = vld [vmem:[#allocation10 + $0x780] ss:$24 sps:$4 sm:$0xff]  }
 0x511   : > { %4088 = vmatprep.subr.bf16.mxu1 %v18683_v46  ;;  %4217 = vmatprep.subr.bf16.mxu0 %v18686_v15  ;;  %v18738_v43 = vld [vmem:[#allocation10 + $0x788] ss:$24 sps:$4 sm:$0xff]   ;;  %v18743_v46 = vld [vmem:[#allocation10 + $0x7b4] ss:$24 sps:$4 sm:$0xff]  }
 0x512   : > { %v18746_v15 = vld [vmem:[#allocation10 + $0x7bc] ss:$24 sps:$4 sm:$0xff]  }
 0x514   : > { %4089 = vmatpush1.bf16.msra.mxu1 %v18681_v47  ;;  %4218 = vmatpush1.bf16.msra.mxu0 %v18684_v48  ;;  %v18741_v47 = vld [vmem:[#allocation10 + $0x7b0] ss:$24 sps:$4 sm:$0xff]  }
 0x515   : > { %4101 = vmatprep.subr.bf16.mxu1 %v18689_v49  ;;  %4230 = vmatprep.subr.bf16.mxu0 %v18692_v51  ;;  %v18744_v48 = vld [vmem:[#allocation10 + $0x7b8] ss:$24 sps:$4 sm:$0xff]   ;;  %v18749_v49 = vld [vmem:[#allocation10 + $0x7e4] ss:$24 sps:$4 sm:$0xff]  }
 0x516   : > { %v18752_v51 = vld [vmem:[#allocation10 + $0x7ec] ss:$24 sps:$4 sm:$0xff]  }
 0x517   : > { %4091 = vmatmul.mubr.bf16.vlgmr.msra.gmra.mrb[8].mxu1 %v22324_v54  ;;  %4220 = vmatmul.mubr.bf16.vlgmr.msra.gmra.mrb[8].mxu0 %v22324_v54 }
 0x518   : > { %4102 = vmatpush1.bf16.msra.mxu1 %v18687_v16  ;;  %4133 = vmatprep.mubr.bf16.mxu1 %v22328_v35  ;;  %v18747_v16 = vld [vmem:[#allocation10 + $0x7e0] ss:$24 sps:$4 sm:$0xff]  }
 0x519   : > { %4231 = vmatpush1.bf16.msra.mxu0 %v18690_v14  ;;  %4262 = vmatprep.mubr.bf16.mxu0 %v22328_v35  ;;  %v18750_v14 = vld [vmem:[#allocation10 + $0x7e8] ss:$24 sps:$4 sm:$0xff]  }
 0x51a   : > { %4103 = vmatprep.subr.bf16.mxu1 %v18695_v57  ;;  %4232 = vmatprep.subr.bf16.mxu0 %v18698_v17  ;;  %v18755_v57 = vld [vmem:[#allocation10 + $0x814] ss:$24 sps:$4 sm:$0xff]  }
 0x51b   : > { %v18758_v17 = vld [vmem:[#allocation10 + $0x81c] ss:$24 sps:$4 sm:$0xff]  }
 0x51c   : > { %4104 = vmatpush1.bf16.msra.mxu1 %v18693_v59  ;;  %v18753_v59 = vld [vmem:[#allocation10 + $0x810] ss:$24 sps:$4 sm:$0xff]  }
 0x51d   : > { %4233 = vmatpush1.bf16.msra.mxu0 %v18696_v61  ;;  %4105 = vmatprep.subr.bf16.mxu1 %v18701_v22  ;;  %v18756_v61 = vld [vmem:[#allocation10 + $0x818] ss:$24 sps:$4 sm:$0xff]   ;;  %v18761_v22 = vld [vmem:[#allocation10 + $0x844] ss:$24 sps:$4 sm:$0xff]  }
 0x51e   : > { %4234 = vmatprep.subr.bf16.mxu0 %v18704_v63  ;;  %v18759_v63 = vld [vmem:[#allocation10 + $0x840] ss:$24 sps:$4 sm:$0xff]  }
 0x520   : > { %4106 = vmatpush1.bf16.msra.mxu1 %v18699_v62  ;;  %v18764_v62 = vld [vmem:[#allocation10 + $0x84c] ss:$24 sps:$4 sm:$0xff]  }
 0x521   : > { %4235 = vmatpush1.bf16.msra.mxu0 %v18702_v1  ;;  %4107 = vmatprep.subr.bf16.mxu1 %v18707_v4  ;;  %v18762_v1 = vld [vmem:[#allocation10 + $0x848] ss:$24 sps:$4 sm:$0xff]   ;;  %v18767_v4 = vld [vmem:[#allocation10 + $0x874] ss:$24 sps:$4 sm:$0xff]  }
 0x522   : > { %4236 = vmatprep.subr.bf16.mxu0 %v18710_v7  ;;  %v18770_v7 = vld [vmem:[#allocation10 + $0x87c] ss:$24 sps:$4 sm:$0xff]  }
 0x524   : > { %4108 = vmatpush1.bf16.msra.mxu1 %v18705_v9  ;;  %v18765_v9 = vld [vmem:[#allocation10 + $0x870] ss:$24 sps:$4 sm:$0xff]  }
 0x525   : > { %4237 = vmatpush1.bf16.msra.mxu0 %v18708_v12  ;;  %4109 = vmatprep.subr.bf16.mxu1 %v18713_v60  ;;  %v18768_v12 = vld [vmem:[#allocation10 + $0x878] ss:$24 sps:$4 sm:$0xff]   ;;  %v18773_v60 = vld [vmem:[#allocation10 + $0x8a4] ss:$24 sps:$4 sm:$0xff]  }
 0x526   : > { %4238 = vmatprep.subr.bf16.mxu0 %v18716_v53  ;;  %v18776_v53 = vld [vmem:[#allocation10 + $0x8ac] ss:$24 sps:$4 sm:$0xff]  }
 0x528   : > { %4110 = vmatpush1.bf16.msra.mxu1 %v18711_v21  ;;  %v18771_v21 = vld [vmem:[#allocation10 + $0x8a0] ss:$24 sps:$4 sm:$0xff]  }
 0x529   : > { %4239 = vmatpush1.bf16.msra.mxu0 %v18714_v32  ;;  %4111 = vmatprep.subr.bf16.mxu1 %v18719_v20  ;;  %v18774_v32 = vld [vmem:[#allocation10 + $0x8a8] ss:$24 sps:$4 sm:$0xff]   ;;  %v18779_v20 = vld [vmem:[#allocation10 + $0x8d4] ss:$24 sps:$4 sm:$0xff]  }
 0x52a   : > { %4240 = vmatprep.subr.bf16.mxu0 %v18722_v8  ;;  %v18782_v8 = vld [vmem:[#allocation10 + $0x8dc] ss:$24 sps:$4 sm:$0xff]  }
 0x52c   : > { %4112 = vmatpush1.bf16.msra.mxu1 %v18717_v58  ;;  %v18777_v58 = vld [vmem:[#allocation10 + $0x8d0] ss:$24 sps:$4 sm:$0xff]  }
 0x52d   : > { %4241 = vmatpush1.bf16.msra.mxu0 %v18720_v25  ;;  %4113 = vmatprep.subr.bf16.mxu1 %v18725_v28  ;;  %v18780_v25 = vld [vmem:[#allocation10 + $0x8d8] ss:$24 sps:$4 sm:$0xff]   ;;  %v18785_v28 = vld [vmem:[#allocation10 + $0x14] ss:$24 sps:$4 sm:$0xff]  }
 0x52e   : > { %4242 = vmatprep.subr.bf16.mxu0 %v18728_v2  ;;  %v18788_v2 = vld [vmem:[#allocation13 + $0x4] ss:$48 sps:$4 sm:$0xff]  }
 0x530   : > { %4114 = vmatpush1.bf16.msra.mxu1 %v18723_v31  ;;  %v18783_v31 = vld [vmem:[#allocation10 + $0x10] ss:$24 sps:$4 sm:$0xff]  }
 0x531   : > { %4243 = vmatpush1.bf16.msra.mxu0 %v18726_v33  ;;  %4115 = vmatprep.subr.bf16.mxu1 %v18731_v34  ;;  %v22341_v33 = vpack.c.bf16 %v22309_v45, %v22285_v13  ;;  %v18786_v34 = vld [vmem:[#allocation13] ss:$48 sps:$4 sm:$0xff]  }
 0x532   : > { %4244 = vmatprep.subr.bf16.mxu0 %v18734_v36  ;;  %v18791_v36 = vld [vmem:[#allocation10 + $0x44] ss:$24 sps:$4 sm:$0xff]  }
 0x534   : > { %4116 = vmatpush1.bf16.msra.mxu1 %v18729_v11  ;;  %v18794_v11 = vld [vmem:[#allocation13 + $0x64] ss:$48 sps:$4 sm:$0xff]  }
 0x535   : > { %4245 = vmatpush1.bf16.msra.mxu0 %v18732_v37  ;;  %4117 = vmatprep.subr.bf16.mxu1 %v18737_v38  ;;  %v22345_v37 = vld [vmem:[%s22333_s3 + $0x4] ss:$24 sps:$4 sm:$0xff]  }
 0x536   : > { %4246 = vmatprep.subr.bf16.mxu0 %v18740_v40  ;;  %v18789_v38 = vld [vmem:[#allocation10 + $0x40] ss:$24 sps:$4 sm:$0xff]  }
 0x537   : > { %v18792_v40 = vld [vmem:[#allocation13 + $0x60] ss:$48 sps:$4 sm:$0xff]  }
 0x538   : > { %4118 = vmatpush1.bf16.msra.mxu1 %v18735_v41  ;;  %v18797_v41 = vld [vmem:[#allocation10 + $0x74] ss:$24 sps:$4 sm:$0xff]  }
 0x539   : > { %4247 = vmatpush1.bf16.msra.mxu0 %v18738_v43  ;;  %4119 = vmatprep.subr.bf16.mxu1 %v18743_v46  ;;  %v18800_v43 = vld [vmem:[#allocation13 + $0xc4] ss:$48 sps:$4 sm:$0xff]  }
 0x53a   : > { %4248 = vmatprep.subr.bf16.mxu0 %v18746_v15  ;;  %v18795_v46 = vld [vmem:[#allocation10 + $0x70] ss:$24 sps:$4 sm:$0xff]  }
 0x53b   : > { %v18798_v15 = vld [vmem:[#allocation13 + $0xc0] ss:$48 sps:$4 sm:$0xff]  }
 0x53c   : > { %4120 = vmatpush1.bf16.msra.mxu1 %v18741_v47  ;;  %v18803_v47 = vld [vmem:[#allocation10 + $0xa4] ss:$24 sps:$4 sm:$0xff]  }
 0x53d   : > { %4249 = vmatpush1.bf16.msra.mxu0 %v18744_v48  ;;  %4121 = vmatprep.subr.bf16.mxu1 %v18749_v49  ;;  %v18806_v48 = vld [vmem:[#allocation13 + $0x124] ss:$48 sps:$4 sm:$0xff]  }
 0x53e   : > { %4250 = vmatprep.subr.bf16.mxu0 %v18752_v51  ;;  %v18801_v49 = vld [vmem:[#allocation10 + $0xa0] ss:$24 sps:$4 sm:$0xff]   ;;  %v18809_v51 = vld [vmem:[#allocation10 + $0xd4] ss:$24 sps:$4 sm:$0xff]  }
 0x540   : > { %4122 = vmatpush1.bf16.msra.mxu1 %v18747_v16  ;;  %v18812_v16 = vld [vmem:[#allocation13 + $0x184] ss:$48 sps:$4 sm:$0xff]  }
 0x541   : > { %4251 = vmatpush1.bf16.msra.mxu0 %v18750_v14  ;;  %4123 = vmatprep.subr.bf16.mxu1 %v18755_v57  ;;  %v18807_v14 = vld [vmem:[#allocation10 + $0xd0] ss:$24 sps:$4 sm:$0xff]  }
 0x542   : > { %4252 = vmatprep.subr.bf16.mxu0 %v18758_v17  ;;  %v18810_v57 = vld [vmem:[#allocation13 + $0x180] ss:$48 sps:$4 sm:$0xff]  }
 0x543   : > { %v18815_v17 = vld [vmem:[#allocation10 + $0x104] ss:$24 sps:$4 sm:$0xff]  }
 0x544   : > { %4124 = vmatpush1.bf16.msra.mxu1 %v18753_v59  ;;  %v18818_v59 = vld [vmem:[#allocation13 + $0x1e4] ss:$48 sps:$4 sm:$0xff]  }
 0x545   : > { %4253 = vmatpush1.bf16.msra.mxu0 %v18756_v61  ;;  %4125 = vmatprep.subr.bf16.mxu1 %v18761_v22  ;;  %v18813_v61 = vld [vmem:[#allocation10 + $0x100] ss:$24 sps:$4 sm:$0xff]  }
 0x546   : > { %4254 = vmatprep.subr.bf16.mxu0 %v18764_v62  ;;  %v18816_v22 = vld [vmem:[#allocation13 + $0x1e0] ss:$48 sps:$4 sm:$0xff]  }
 0x547   : > { %v18821_v62 = vld [vmem:[#allocation10 + $0x134] ss:$24 sps:$4 sm:$0xff]  }
 0x548   : > { %4126 = vmatpush1.bf16.msra.mxu1 %v18759_v63  ;;  %v18824_v63 = vld [vmem:[#allocation13 + $0x244] ss:$48 sps:$4 sm:$0xff]  }
 0x549   : > { %4255 = vmatpush1.bf16.msra.mxu0 %v18762_v1  ;;  %4127 = vmatprep.subr.bf16.mxu1 %v18767_v4  ;;  %v18819_v1 = vld [vmem:[#allocation10 + $0x130] ss:$24 sps:$4 sm:$0xff]  }
 0x54a   : > { %4256 = vmatprep.subr.bf16.mxu0 %v18770_v7  ;;  %v18822_v4 = vld [vmem:[#allocation13 + $0x240] ss:$48 sps:$4 sm:$0xff]  }
 0x54b   : > { %v18827_v7 = vld [vmem:[#allocation10 + $0x164] ss:$24 sps:$4 sm:$0xff]  }
 0x54c   : > { %4128 = vmatpush1.bf16.msra.mxu1 %v18765_v9  ;;  %v18830_v9 = vld [vmem:[#allocation13 + $0x2a4] ss:$48 sps:$4 sm:$0xff]  }
 0x54d   : > { %4257 = vmatpush1.bf16.msra.mxu0 %v18768_v12  ;;  %4129 = vmatprep.subr.bf16.mxu1 %v18773_v60  ;;  %v18825_v12 = vld [vmem:[#allocation10 + $0x160] ss:$24 sps:$4 sm:$0xff]  }
 0x54e   : > { %4258 = vmatprep.subr.bf16.mxu0 %v18776_v53  ;;  %v18828_v60 = vld [vmem:[#allocation13 + $0x2a0] ss:$48 sps:$4 sm:$0xff]  }
 0x54f   : > { %v18833_v53 = vld [vmem:[#allocation10 + $0x194] ss:$24 sps:$4 sm:$0xff]  }
 0x550   : > { %4130 = vmatpush1.bf16.msra.mxu1 %v18771_v21  ;;  %v18836_v21 = vld [vmem:[#allocation13 + $0x304] ss:$48 sps:$4 sm:$0xff]  }
 0x551   : > { %4259 = vmatpush1.bf16.msra.mxu0 %v18774_v32  ;;  %4131 = vmatprep.subr.bf16.mxu1 %v18779_v20  ;;  %v18831_v32 = vld [vmem:[#allocation10 + $0x190] ss:$24 sps:$4 sm:$0xff]  }
 0x552   : > { %4260 = vmatprep.subr.bf16.mxu0 %v18782_v8  ;;  %v18834_v20 = vld [vmem:[#allocation13 + $0x300] ss:$48 sps:$4 sm:$0xff]  }
 0x553   : > { %v18839_v8 = vld [vmem:[#allocation10 + $0x1c4] ss:$24 sps:$4 sm:$0xff]  }
 0x554   : > { %4132 = vmatpush1.bf16.msra.mxu1 %v18777_v58  ;;  %v18842_v58 = vld [vmem:[#allocation13 + $0x364] ss:$48 sps:$4 sm:$0xff]  }
 0x555   : > { %4261 = vmatpush1.bf16.msra.mxu0 %v18780_v25  ;;  %4273 = vmatprep.subr.bf16.mxu1 %v18785_v28  ;;  %v18837_v25 = vld [vmem:[#allocation10 + $0x1c0] ss:$24 sps:$4 sm:$0xff]  }
 0x556   : > { %7988 = vmatprep.subr.bf16.mxu0 %v18788_v2  ;;  %v18840_v28 = vld [vmem:[#allocation13 + $0x360] ss:$48 sps:$4 sm:$0xff]  }
 0x557   : > { %4134 = vmatmul.mubr.bf16.vlgmr.msra.gmra.mrb[8].mxu1 %v22341_v33  ;;  %v18845_v2 = vld [vmem:[#allocation10 + $0x1f4] ss:$24 sps:$4 sm:$0xff]  }
 0x558   : > { %4263 = vmatmul.mubr.bf16.vlgmr.msra.gmra.mrb[8].mxu0 %v22341_v33  ;;  %4274 = vmatpush1.bf16.msra.mxu1 %v18783_v31  ;;  %v18848_v31 = vld [vmem:[#allocation13 + $0x3c4] ss:$48 sps:$4 sm:$0xff]  }
 0x559   : > { %4305 = vmatprep.mubr.bf16.mxu1 %v22299_v42  ;;  %7989 = vmatpush1.bf16.msra.mxu0 %v18786_v34  ;;  %v18804_v42 = vld [vmem:[#allocation13 + $0x120] ss:$48 sps:$4 sm:$0xff]  }
 0x55a   : > { %4275 = vmatprep.subr.bf16.mxu1 %v18791_v36  ;;  %7990 = vmatprep.subr.bf16.mxu0 %v18794_v11  ;;  %v18843_v34 = vld [vmem:[#allocation10 + $0x1f0] ss:$24 sps:$4 sm:$0xff]   ;;  %v18851_v11 = vld [vmem:[#allocation10 + $0x224] ss:$24 sps:$4 sm:$0xff]  }
 0x55b   : > { %8020 = vmatprep.mubr.bf16.mxu0 %v22345_v37  ;;  %v18846_v36 = vld [vmem:[#allocation13 + $0x3c0] ss:$48 sps:$4 sm:$0xff]  }
 0x55c   : > { %4276 = vmatpush1.bf16.msra.mxu1 %v18789_v38  ;;  %v18854_v38 = vld [vmem:[#allocation13 + $0x424] ss:$48 sps:$4 sm:$0xff]  }
 0x55d   : > { %7991 = vmatpush1.bf16.msra.mxu0 %v18792_v40  ;;  %4277 = vmatprep.subr.bf16.mxu1 %v18797_v41  ;;  %v18849_v40 = vld [vmem:[#allocation10 + $0x220] ss:$24 sps:$4 sm:$0xff]  }
 0x55e   : > { %7992 = vmatprep.subr.bf16.mxu0 %v18800_v43  ;;  %v18852_v41 = vld [vmem:[#allocation13 + $0x420] ss:$48 sps:$4 sm:$0xff]  }
 0x55f   : > { %v18857_v43 = vld [vmem:[#allocation10 + $0x254] ss:$24 sps:$4 sm:$0xff]  }
 0x560   : > { %4278 = vmatpush1.bf16.msra.mxu1 %v18795_v46  ;;  %v18860_v46 = vld [vmem:[#allocation13 + $0x484] ss:$48 sps:$4 sm:$0xff]  }
 0x561   : > { %7993 = vmatpush1.bf16.msra.mxu0 %v18798_v15  ;;  %4279 = vmatprep.subr.bf16.mxu1 %v18803_v47  ;;  %v18855_v15 = vld [vmem:[#allocation10 + $0x250] ss:$24 sps:$4 sm:$0xff]  }
 0x562   : > { %7994 = vmatprep.subr.bf16.mxu0 %v18806_v48  ;;  %v18858_v47 = vld [vmem:[#allocation13 + $0x480] ss:$48 sps:$4 sm:$0xff]  }
 0x563   : > { %v18863_v48 = vld [vmem:[#allocation10 + $0x284] ss:$24 sps:$4 sm:$0xff]  }
 0x564   : > { %4280 = vmatpush1.bf16.msra.mxu1 %v18801_v49  ;;  %v18866_v49 = vld [vmem:[#allocation13 + $0x4e4] ss:$48 sps:$4 sm:$0xff]  }
 0x565   : > { %7995 = vmatpush1.bf16.msra.mxu0 %v18804_v42  ;;  %4281 = vmatprep.subr.bf16.mxu1 %v18809_v51  ;;  %v18861_v42 = vld [vmem:[#allocation10 + $0x280] ss:$24 sps:$4 sm:$0xff]  }
 0x566   : > { %7996 = vmatprep.subr.bf16.mxu0 %v18812_v16  ;;  %v18864_v51 = vld [vmem:[#allocation13 + $0x4e0] ss:$48 sps:$4 sm:$0xff]  }
 0x567   : > { %v18869_v16 = vld [vmem:[#allocation10 + $0x2b4] ss:$24 sps:$4 sm:$0xff]  }
 0x568   : > { %4282 = vmatpush1.bf16.msra.mxu1 %v18807_v14  ;;  %v18872_v14 = vld [vmem:[#allocation13 + $0x544] ss:$48 sps:$4 sm:$0xff]  }
 0x569   : > { %7997 = vmatpush1.bf16.msra.mxu0 %v18810_v57  ;;  %4283 = vmatprep.subr.bf16.mxu1 %v18815_v17  ;;  %v18867_v57 = vld [vmem:[#allocation10 + $0x2b0] ss:$24 sps:$4 sm:$0xff]  }
 0x56a   : > { %7998 = vmatprep.subr.bf16.mxu0 %v18818_v59  ;;  %v18870_v17 = vld [vmem:[#allocation13 + $0x540] ss:$48 sps:$4 sm:$0xff]  }
 0x56b   : > { %v18875_v59 = vld [vmem:[#allocation10 + $0x2e4] ss:$24 sps:$4 sm:$0xff]  }
 0x56c   : > { %4284 = vmatpush1.bf16.msra.mxu1 %v18813_v61  ;;  %v18878_v61 = vld [vmem:[#allocation13 + $0x5a4] ss:$48 sps:$4 sm:$0xff]  }
 0x56d   : > { %7999 = vmatpush1.bf16.msra.mxu0 %v18816_v22  ;;  %4285 = vmatprep.subr.bf16.mxu1 %v18821_v62  ;;  %v18873_v22 = vld [vmem:[#allocation10 + $0x2e0] ss:$24 sps:$4 sm:$0xff]  }
 0x56e   : > { %8000 = vmatprep.subr.bf16.mxu0 %v18824_v63  ;;  %v18876_v62 = vld [vmem:[#allocation13 + $0x5a0] ss:$48 sps:$4 sm:$0xff]  }
 0x56f   : > { %v18881_v63 = vld [vmem:[#allocation10 + $0x314] ss:$24 sps:$4 sm:$0xff]  }
 0x570   : > { %4286 = vmatpush1.bf16.msra.mxu1 %v18819_v1  ;;  %v18886_v1 = vld [vmem:[#allocation13 + $0x604] ss:$48 sps:$4 sm:$0xff]  }
 0x571   : > { %8001 = vmatpush1.bf16.msra.mxu0 %v18822_v4  ;;  %4287 = vmatprep.subr.bf16.mxu1 %v18827_v7  ;;  %v18879_v4 = vld [vmem:[#allocation10 + $0x310] ss:$24 sps:$4 sm:$0xff]   ;;  %v22351_v7 = vld [vmem:[%s22333_s3] ss:$24 sps:$4 sm:$0xff]  }
 0x572   : > { %8002 = vmatprep.subr.bf16.mxu0 %v18830_v9  ;;  %v18890_v9 = vld [vmem:[#allocation10 + $0x344] ss:$24 sps:$4 sm:$0xff]  }
 0x574   : > { %4288 = vmatpush1.bf16.msra.mxu1 %v18825_v12  ;;  %v18884_v12 = vld [vmem:[#allocation13 + $0x600] ss:$48 sps:$4 sm:$0xff]  }
 0x575   : > { %8003 = vmatpush1.bf16.msra.mxu0 %v18828_v60  ;;  %4289 = vmatprep.subr.bf16.mxu1 %v18833_v53  ;;  %v22354_v60 = vld [vmem:[%s22333_s3 + $0x34] ss:$24 sps:$4 sm:$0xff]  }
 0x576   : > { %8004 = vmatprep.subr.bf16.mxu0 %v18836_v21  ;;  %v18893_v53 = vld [vmem:[#allocation13 + $0x664] ss:$48 sps:$4 sm:$0xff]  }
 0x577   : > { %v18888_v21 = vld [vmem:[#allocation10 + $0x340] ss:$24 sps:$4 sm:$0xff]  }
 0x578   : > { %4290 = vmatpush1.bf16.msra.mxu1 %v18831_v32  ;;  %v18896_v32 = vld [vmem:[#allocation10 + $0x374] ss:$24 sps:$4 sm:$0xff]  }
 0x579   : > { %8005 = vmatpush1.bf16.msra.mxu0 %v18834_v20  ;;  %4291 = vmatprep.subr.bf16.mxu1 %v18839_v8  ;;  %v18891_v20 = vld [vmem:[#allocation13 + $0x660] ss:$48 sps:$4 sm:$0xff]   ;;  %v18899_v8 = vld [vmem:[#allocation13 + $0x6c4] ss:$48 sps:$4 sm:$0xff]  }
 0x57a   : > { %8006 = vmatprep.subr.bf16.mxu0 %v18842_v58  ;;  %v18894_v58 = vld [vmem:[#allocation10 + $0x370] ss:$24 sps:$4 sm:$0xff]  }
 0x57c   : > { %4292 = vmatpush1.bf16.msra.mxu1 %v18837_v25  ;;  %v22361_v25 = vld [vmem:[%s22333_s3 + $0x30] ss:$24 sps:$4 sm:$0xff]  }
 0x57d   : > { %8007 = vmatpush1.bf16.msra.mxu0 %v18840_v28  ;;  %4293 = vmatprep.subr.bf16.mxu1 %v18845_v2  ;;  %v22364_v28 = vld [vmem:[%s22333_s3 + $0xc] ss:$24 sps:$4 sm:$0xff]  }
 0x57e   : > { %8008 = vmatprep.subr.bf16.mxu0 %v18848_v31  ;;  %v18905_v2 = vld [vmem:[#allocation13 + $0x724] ss:$48 sps:$4 sm:$0xff]  }
 0x57f   : > { %v18900_v31 = vld [vmem:[#allocation10 + $0x3a0] ss:$24 sps:$4 sm:$0xff]  }
 0x580   : > { %4294 = vmatpush1.bf16.msra.mxu1 %v18843_v34  ;;  %v18908_v34 = vld [vmem:[#allocation10 + $0x3d4] ss:$24 sps:$4 sm:$0xff]  }
 0x581   : > { %8009 = vmatpush1.bf16.msra.mxu0 %v18846_v36  ;;  %4295 = vmatprep.subr.bf16.mxu1 %v18851_v11  ;;  %v18903_v36 = vld [vmem:[#allocation13 + $0x720] ss:$48 sps:$4 sm:$0xff]   ;;  %v18911_v11 = vld [vmem:[#allocation13 + $0x784] ss:$48 sps:$4 sm:$0xff]  }
 0x582   : > { %8010 = vmatprep.subr.bf16.mxu0 %v18854_v38  ;;  %v18906_v38 = vld [vmem:[#allocation10 + $0x3d0] ss:$24 sps:$4 sm:$0xff]  }
 0x584   : > { %4296 = vmatpush1.bf16.msra.mxu1 %v18849_v40  ;;  %v18914_v40 = vld [vmem:[#allocation10 + $0x404] ss:$24 sps:$4 sm:$0xff]  }
 0x585   : > { %8011 = vmatpush1.bf16.msra.mxu0 %v18852_v41  ;;  %4297 = vmatprep.subr.bf16.mxu1 %v18857_v43  ;;  %v18909_v41 = vld [vmem:[#allocation13 + $0x780] ss:$48 sps:$4 sm:$0xff]   ;;  %v18917_v43 = vld [vmem:[#allocation13 + $0x7e4] ss:$48 sps:$4 sm:$0xff]  }
 0x586   : > { %8012 = vmatprep.subr.bf16.mxu0 %v18860_v46  ;;  %v18912_v46 = vld [vmem:[#allocation10 + $0x400] ss:$24 sps:$4 sm:$0xff]  }
 0x588   : > { %4298 = vmatpush1.bf16.msra.mxu1 %v18855_v15  ;;  %v18920_v15 = vld [vmem:[#allocation10 + $0x434] ss:$24 sps:$4 sm:$0xff]  }
 0x589   : > { %8013 = vmatpush1.bf16.msra.mxu0 %v18858_v47  ;;  %4299 = vmatprep.subr.bf16.mxu1 %v18863_v48  ;;  %v18915_v47 = vld [vmem:[#allocation13 + $0x7e0] ss:$48 sps:$4 sm:$0xff]   ;;  %v18923_v48 = vld [vmem:[#allocation13 + $0x844] ss:$48 sps:$4 sm:$0xff]  }
 0x58a   : > { %8014 = vmatprep.subr.bf16.mxu0 %v18866_v49  ;;  %v18918_v49 = vld [vmem:[#allocation10 + $0x430] ss:$24 sps:$4 sm:$0xff]  }
 0x58c   : > { %4300 = vmatpush1.bf16.msra.mxu1 %v18861_v42  ;;  %v18926_v42 = vld [vmem:[#allocation10 + $0x464] ss:$24 sps:$4 sm:$0xff]  }
 0x58d   : > { %8015 = vmatpush1.bf16.msra.mxu0 %v18864_v51  ;;  %4301 = vmatprep.subr.bf16.mxu1 %v18869_v16  ;;  %v18921_v51 = vld [vmem:[#allocation13 + $0x840] ss:$48 sps:$4 sm:$0xff]   ;;  %v18929_v16 = vld [vmem:[#allocation13 + $0x8a4] ss:$48 sps:$4 sm:$0xff]  }
 0x58e   : > { %8016 = vmatprep.subr.bf16.mxu0 %v18872_v14  ;;  %v18924_v14 = vld [vmem:[#allocation10 + $0x460] ss:$24 sps:$4 sm:$0xff]  }
 0x590   : > { %4302 = vmatpush1.bf16.msra.mxu1 %v18867_v57  ;;  %v18932_v57 = vld [vmem:[#allocation10 + $0x494] ss:$24 sps:$4 sm:$0xff]  }
 0x591   : > { %8017 = vmatpush1.bf16.msra.mxu0 %v18870_v17  ;;  %4303 = vmatprep.subr.bf16.mxu1 %v18875_v59  ;;  %v18927_v17 = vld [vmem:[#allocation13 + $0x8a0] ss:$48 sps:$4 sm:$0xff]   ;;  %v18935_v59 = vld [vmem:[#allocation13 + $0x904] ss:$48 sps:$4 sm:$0xff]  }
 0x592   : > { %8018 = vmatprep.subr.bf16.mxu0 %v18878_v61  ;;  %v18930_v61 = vld [vmem:[#allocation10 + $0x490] ss:$24 sps:$4 sm:$0xff]  }
 0x594   : > { %4304 = vmatpush1.bf16.msra.mxu1 %v18873_v22  ;;  %v18938_v22 = vld [vmem:[#allocation10 + $0x4c4] ss:$24 sps:$4 sm:$0xff]  }
 0x595   : > { %8019 = vmatpush1.bf16.msra.mxu0 %v18876_v62  ;;  %4316 = vmatprep.subr.bf16.mxu1 %v18881_v63  ;;  %v18933_v62 = vld [vmem:[#allocation13 + $0x900] ss:$48 sps:$4 sm:$0xff]   ;;  %v18941_v63 = vld [vmem:[#allocation13 + $0x964] ss:$48 sps:$4 sm:$0xff]  }
 0x596   : > { %8041 = vmatprep.subr.bf16.mxu0 %v18886_v1  ;;  %v18936_v1 = vld [vmem:[#allocation10 + $0x4c0] ss:$24 sps:$4 sm:$0xff]  }
 0x597   : > { %4306 = vmatmul.mubr.bf16.vlgmr.msra.gmra.mrb[12].mxu1 %v22303_v5  ;;  %v18902_v5 = vld [vmem:[#allocation10 + $0x3a4] ss:$24 sps:$4 sm:$0xff]  }
 0x598   : > { %4317 = vmatpush1.bf16.msra.mxu1 %v18879_v4  ;;  %4348 = vmatprep.mubr.bf16.mxu1 %v22317_v26  ;;  %v18897_v26 = vld [vmem:[#allocation13 + $0x6c0] ss:$48 sps:$4 sm:$0xff]  }
 0x599   : > { %8021 = vmatmul.mubr.bf16.vlgmr.msra.gmra.mrb[12].mxu0 %v22351_v7  ;;  %4318 = vmatprep.subr.bf16.mxu1 %v18890_v9  ;;  %v18944_v4 = vld [vmem:[#allocation10 + $0x4f4] ss:$24 sps:$4 sm:$0xff]  }
 0x59a   : > { %8042 = vmatpush1.bf16.msra.mxu0 %v18884_v12  ;;  %8030 = vmatprep.mubr.bf16.mxu0 %v22354_v60  ;;  %v18939_v9 = vld [vmem:[#allocation13 + $0x960] ss:$48 sps:$4 sm:$0xff]   ;;  %v18947_v12 = vld [vmem:[#allocation13 + $0x9c4] ss:$48 sps:$4 sm:$0xff]  }
 0x59b   : > { %8043 = vmatprep.subr.bf16.mxu0 %v18893_v53  ;;  %v18942_v53 = vld [vmem:[#allocation10 + $0x4f0] ss:$24 sps:$4 sm:$0xff]  }
 0x59c   : > { %4319 = vmatpush1.bf16.msra.mxu1 %v18888_v21  ;;  %v18950_v21 = vld [vmem:[#allocation10 + $0x524] ss:$24 sps:$4 sm:$0xff]  }
 0x59d   : > { %4320 = vmatprep.subr.bf16.mxu1 %v18896_v32  ;;  %v18945_v32 = vld [vmem:[#allocation13 + $0x9c0] ss:$48 sps:$4 sm:$0xff]  }
 0x59e   : > { %8044 = vmatpush1.bf16.msra.mxu0 %v18891_v20  ;;  %v18953_v20 = vld [vmem:[#allocation13 + $0xa24] ss:$48 sps:$4 sm:$0xff]  }
 0x59f   : > { %8045 = vmatprep.subr.bf16.mxu0 %v18899_v8  ;;  %v18948_v8 = vld [vmem:[#allocation10 + $0x520] ss:$24 sps:$4 sm:$0xff]  }
 0x5a0   : > { %4321 = vmatpush1.bf16.msra.mxu1 %v18894_v58  ;;  %v18956_v58 = vld [vmem:[#allocation10 + $0x554] ss:$24 sps:$4 sm:$0xff]  }
 0x5a1   : > { %4322 = vmatprep.subr.bf16.mxu1 %v18902_v5  ;;  %8031 = vmatmul.mubr.bf16.gmra.mrb[16].mxu0 %v22361_v25  ;;  %v18951_v5 = vld [vmem:[#allocation13 + $0xa20] ss:$48 sps:$4 sm:$0xff]  }
 0x5a2   : > { %8046 = vmatpush1.bf16.msra.mxu0 %v18897_v26  ;;  %8073 = vmatprep.mubr.bf16.mxu0 %v22364_v28  ;;  %v18959_v26 = vld [vmem:[#allocation13 + $0xa84] ss:$48 sps:$4 sm:$0xff]  }
 0x5a3   : > { %8047 = vmatprep.subr.bf16.mxu0 %v18905_v2  ;;  %v18954_v2 = vld [vmem:[#allocation10 + $0x550] ss:$24 sps:$4 sm:$0xff]  }
 0x5a4   : > { %4323 = vmatpush1.bf16.msra.mxu1 %v18900_v31  ;;  %v18962_v31 = vld [vmem:[#allocation10 + $0x584] ss:$24 sps:$4 sm:$0xff]  }
 0x5a5   : > { %4324 = vmatprep.subr.bf16.mxu1 %v18908_v34  ;;  %v18957_v34 = vld [vmem:[#allocation13 + $0xa80] ss:$48 sps:$4 sm:$0xff]  }
 0x5a6   : > { %8048 = vmatpush1.bf16.msra.mxu0 %v18903_v36  ;;  %v18965_v36 = vld [vmem:[#allocation13 + $0xae4] ss:$48 sps:$4 sm:$0xff]  }
 0x5a7   : > { %8049 = vmatprep.subr.bf16.mxu0 %v18911_v11  ;;  %v18960_v11 = vld [vmem:[#allocation10 + $0x580] ss:$24 sps:$4 sm:$0xff]  }
 0x5a8   : > { %4325 = vmatpush1.bf16.msra.mxu1 %v18906_v38  ;;  %v18968_v38 = vld [vmem:[#allocation10 + $0x5b4] ss:$24 sps:$4 sm:$0xff]  }
 0x5a9   : > { %4326 = vmatprep.subr.bf16.mxu1 %v18914_v40  ;;  %v18963_v40 = vld [vmem:[#allocation13 + $0xae0] ss:$48 sps:$4 sm:$0xff]  }
 0x5aa   : > { %8050 = vmatpush1.bf16.msra.mxu0 %v18909_v41  ;;  %v18973_v41 = vld [vmem:[#allocation13 + $0xb44] ss:$48 sps:$4 sm:$0xff]  }
 0x5ab   : > { %8051 = vmatprep.subr.bf16.mxu0 %v18917_v43  ;;  %v18966_v43 = vld [vmem:[#allocation10 + $0x5b0] ss:$24 sps:$4 sm:$0xff]  }
 0x5ac   : > { %4327 = vmatpush1.bf16.msra.mxu1 %v18912_v46  ;;  %v18977_v46 = vld [vmem:[#allocation10 + $0x5e4] ss:$24 sps:$4 sm:$0xff]  }
 0x5ad   : > { %4328 = vmatprep.subr.bf16.mxu1 %v18920_v15  ;;  %v18971_v15 = vld [vmem:[#allocation13 + $0xb40] ss:$48 sps:$4 sm:$0xff]  }
 0x5ae   : > { %8052 = vmatpush1.bf16.msra.mxu0 %v18915_v47  ;;  %v18980_v47 = vld [vmem:[#allocation13 + $0xba4] ss:$48 sps:$4 sm:$0xff]  }
 0x5af   : > { %8053 = vmatprep.subr.bf16.mxu0 %v18923_v48  ;;  %v18975_v48 = vld [vmem:[#allocation10 + $0x5e0] ss:$24 sps:$4 sm:$0xff]  }
 0x5b0   : > { %4329 = vmatpush1.bf16.msra.mxu1 %v18918_v49  ;;  %v18983_v49 = vld [vmem:[#allocation10 + $0x614] ss:$24 sps:$4 sm:$0xff]  }
 0x5b1   : > { %4330 = vmatprep.subr.bf16.mxu1 %v18926_v42  ;;  %v18978_v42 = vld [vmem:[#allocation13 + $0xba0] ss:$48 sps:$4 sm:$0xff]  }
 0x5b2   : > { %8054 = vmatpush1.bf16.msra.mxu0 %v18921_v51  ;;  %v18988_v51 = vld [vmem:[#allocation13 + $0xc04] ss:$48 sps:$4 sm:$0xff]  }
 0x5b3   : > { %8055 = vmatprep.subr.bf16.mxu0 %v18929_v16  ;;  %v18981_v16 = vld [vmem:[#allocation10 + $0x610] ss:$24 sps:$4 sm:$0xff]  }
 0x5b4   : > { %4331 = vmatpush1.bf16.msra.mxu1 %v18924_v14  ;;  %v22369_v14 = vld [vmem:[%s22333_s3 + $0x8] ss:$24 sps:$4 sm:$0xff]  }
 0x5b5   : > { %4332 = vmatprep.subr.bf16.mxu1 %v18932_v57  ;;  %v18992_v57 = vld [vmem:[#allocation10 + $0x644] ss:$24 sps:$4 sm:$0xff]  }
 0x5b6   : > { %8056 = vmatpush1.bf16.msra.mxu0 %v18927_v17  ;;  %v18986_v17 = vld [vmem:[#allocation13 + $0xc00] ss:$48 sps:$4 sm:$0xff]  }
 0x5b7   : > { %8057 = vmatprep.subr.bf16.mxu0 %v18935_v59  ;;  %v22372_v59 = vld [vmem:[%s22333_s3 + $0x3c] ss:$24 sps:$4 sm:$0xff]  }
 0x5b8   : > { %4333 = vmatpush1.bf16.msra.mxu1 %v18930_v61  ;;  %v18995_v61 = vld [vmem:[#allocation13 + $0xc64] ss:$48 sps:$4 sm:$0xff]  }
 0x5b9   : > { %4334 = vmatprep.subr.bf16.mxu1 %v18938_v22  ;;  %v18990_v22 = vld [vmem:[#allocation10 + $0x640] ss:$24 sps:$4 sm:$0xff]  }
 0x5ba   : > { %8058 = vmatpush1.bf16.msra.mxu0 %v18933_v62  ;;  %v18998_v62 = vld [vmem:[#allocation10 + $0x674] ss:$24 sps:$4 sm:$0xff]  }
 0x5bb   : > { %8059 = vmatprep.subr.bf16.mxu0 %v18941_v63  ;;  %v18993_v63 = vld [vmem:[#allocation13 + $0xc60] ss:$48 sps:$4 sm:$0xff]  }
 0x5bc   : > { %4335 = vmatpush1.bf16.msra.mxu1 %v18936_v1  ;;  %v19001_v1 = vld [vmem:[#allocation13 + $0xcc4] ss:$48 sps:$4 sm:$0xff]  }
 0x5bd   : > { %4336 = vmatprep.subr.bf16.mxu1 %v18944_v4  ;;  %v19004_v4 = vld [vmem:[#allocation10 + $0x6a4] ss:$24 sps:$4 sm:$0xff]  }
 0x5be   : > { %8060 = vmatpush1.bf16.msra.mxu0 %v18939_v9  ;;  %v22379_v9 = vld [vmem:[%s22333_s3 + $0x38] ss:$24 sps:$4 sm:$0xff]  }
 0x5bf   : > { %8061 = vmatprep.subr.bf16.mxu0 %v18947_v12  ;;  %v22382_v12 = vld [vmem:[%s22333_s3 + $0x14] ss:$24 sps:$4 sm:$0xff]  }
 0x5c0   : > { %4337 = vmatpush1.bf16.msra.mxu1 %v18942_v53  ;;  %v19007_v53 = vld [vmem:[#allocation13 + $0xd24] ss:$48 sps:$4 sm:$0xff]  }
 0x5c1   : > { %4338 = vmatprep.subr.bf16.mxu1 %v18950_v21  ;;  %v19002_v21 = vld [vmem:[#allocation10 + $0x6a0] ss:$24 sps:$4 sm:$0xff]  }
 0x5c2   : > { %8062 = vmatpush1.bf16.msra.mxu0 %v18945_v32  ;;  %v19010_v32 = vld [vmem:[#allocation10 + $0x6d4] ss:$24 sps:$4 sm:$0xff]  }
 0x5c3   : > { %8063 = vmatprep.subr.bf16.mxu0 %v18953_v20  ;;  %v19005_v20 = vld [vmem:[#allocation13 + $0xd20] ss:$48 sps:$4 sm:$0xff]  }
 0x5c4   : > { %4339 = vmatpush1.bf16.msra.mxu1 %v18948_v8  ;;  %v19013_v8 = vld [vmem:[#allocation13 + $0xd84] ss:$48 sps:$4 sm:$0xff]  }
 0x5c5   : > { %4340 = vmatprep.subr.bf16.mxu1 %v18956_v58  ;;  %v19008_v58 = vld [vmem:[#allocation10 + $0x6d0] ss:$24 sps:$4 sm:$0xff]  }
 0x5c6   : > { %8064 = vmatpush1.bf16.msra.mxu0 %v18951_v5  ;;  %v19016_v5 = vld [vmem:[#allocation10 + $0x704] ss:$24 sps:$4 sm:$0xff]  }
 0x5c7   : > { %8065 = vmatprep.subr.bf16.mxu0 %v18959_v26  ;;  %v19011_v26 = vld [vmem:[#allocation13 + $0xd80] ss:$48 sps:$4 sm:$0xff]  }
 0x5c8   : > { %4341 = vmatpush1.bf16.msra.mxu1 %v18954_v2  ;;  %v19019_v2 = vld [vmem:[#allocation13 + $0xde4] ss:$48 sps:$4 sm:$0xff]  }
 0x5c9   : > { %4342 = vmatprep.subr.bf16.mxu1 %v18962_v31  ;;  %v19014_v31 = vld [vmem:[#allocation10 + $0x700] ss:$24 sps:$4 sm:$0xff]  }
 0x5ca   : > { %8066 = vmatpush1.bf16.msra.mxu0 %v18957_v34  ;;  %v19022_v34 = vld [vmem:[#allocation10 + $0x734] ss:$24 sps:$4 sm:$0xff]  }
 0x5cb   : > { %8067 = vmatprep.subr.bf16.mxu0 %v18965_v36  ;;  %v19017_v36 = vld [vmem:[#allocation13 + $0xde0] ss:$48 sps:$4 sm:$0xff]  }
 0x5cc   : > { %4343 = vmatpush1.bf16.msra.mxu1 %v18960_v11  ;;  %v19025_v11 = vld [vmem:[#allocation13 + $0xe44] ss:$48 sps:$4 sm:$0xff]  }
 0x5cd   : > { %4344 = vmatprep.subr.bf16.mxu1 %v18968_v38  ;;  %v19020_v38 = vld [vmem:[#allocation10 + $0x730] ss:$24 sps:$4 sm:$0xff]  }
 0x5ce   : > { %8068 = vmatpush1.bf16.msra.mxu0 %v18963_v40  ;;  %v19028_v40 = vld [vmem:[#allocation10 + $0x764] ss:$24 sps:$4 sm:$0xff]  }
 0x5cf   : > { %8069 = vmatprep.subr.bf16.mxu0 %v18973_v41  ;;  %v19023_v41 = vld [vmem:[#allocation13 + $0xe40] ss:$48 sps:$4 sm:$0xff]  }
 0x5d0   : > { %4345 = vmatpush1.bf16.msra.mxu1 %v18966_v43  ;;  %v19031_v43 = vld [vmem:[#allocation13 + $0xea4] ss:$48 sps:$4 sm:$0xff]  }
 0x5d1   : > { %4346 = vmatprep.subr.bf16.mxu1 %v18977_v46  ;;  %v19026_v46 = vld [vmem:[#allocation10 + $0x760] ss:$24 sps:$4 sm:$0xff]  }
 0x5d2   : > { %8070 = vmatpush1.bf16.msra.mxu0 %v18971_v15  ;;  %v19034_v15 = vld [vmem:[#allocation10 + $0x794] ss:$24 sps:$4 sm:$0xff]  }
 0x5d3   : > { %8071 = vmatprep.subr.bf16.mxu0 %v18980_v47  ;;  %v19029_v47 = vld [vmem:[#allocation13 + $0xea0] ss:$48 sps:$4 sm:$0xff]  }
 0x5d4   : > { %4347 = vmatpush1.bf16.msra.mxu1 %v18975_v48  ;;  %v19037_v48 = vld [vmem:[#allocation13 + $0xf04] ss:$48 sps:$4 sm:$0xff]  }
 0x5d5   : > { %4359 = vmatprep.subr.bf16.mxu1 %v18983_v49  ;;  %v19032_v49 = vld [vmem:[#allocation10 + $0x790] ss:$24 sps:$4 sm:$0xff]  }
 0x5d6   : > { %8072 = vmatpush1.bf16.msra.mxu0 %v18978_v42  ;;  %v19040_v42 = vld [vmem:[#allocation10 + $0x7c4] ss:$24 sps:$4 sm:$0xff]  }
 0x5d7   : > { %4349 = vmatmul.mubr.bf16.vlgmr.msra.gmra.mrb[12].mxu1 %v22324_v54  ;;  %8094 = vmatprep.subr.bf16.mxu0 %v18988_v51  ;;  %v18996_v54 = vld [vmem:[#allocation10 + $0x670] ss:$24 sps:$4 sm:$0xff]  }
 0x5d8   : > { %4360 = vmatpush1.bf16.msra.mxu1 %v18981_v16  ;;  %4391 = vmatprep.mubr.bf16.mxu1 %v22328_v35  ;;  %v18999_v35 = vld [vmem:[#allocation13 + $0xcc0] ss:$48 sps:$4 sm:$0xff]   ;;  %v19043_v16 = vld [vmem:[#allocation13 + $0xf64] ss:$48 sps:$4 sm:$0xff]  }
 0x5d9   : > { %8074 = vmatmul.mubr.bf16.vlgmr.msra.gmra.mrb[12].mxu0 %v22369_v14  ;;  %4361 = vmatprep.subr.bf16.mxu1 %v18992_v57  ;;  %v19035_v51 = vld [vmem:[#allocation13 + $0xf00] ss:$48 sps:$4 sm:$0xff]  }
 0x5da   : > { %8095 = vmatpush1.bf16.msra.mxu0 %v18986_v17  ;;  %8083 = vmatprep.mubr.bf16.mxu0 %v22372_v59  ;;  %v19038_v57 = vld [vmem:[#allocation10 + $0x7c0] ss:$24 sps:$4 sm:$0xff]   ;;  %v19046_v17 = vld [vmem:[#allocation10 + $0x7f4] ss:$24 sps:$4 sm:$0xff]  }
 0x5db   : > { %8096 = vmatprep.subr.bf16.mxu0 %v18995_v61  ;;  %v19041_v61 = vld [vmem:[#allocation13 + $0xf60] ss:$48 sps:$4 sm:$0xff]  }
 0x5dc   : > { %4362 = vmatpush1.bf16.msra.mxu1 %v18990_v22  ;;  %v19049_v22 = vld [vmem:[#allocation13 + $0xfc4] ss:$48 sps:$4 sm:$0xff]  }
 0x5dd   : > { %4363 = vmatprep.subr.bf16.mxu1 %v18998_v62  ;;  %v19044_v62 = vld [vmem:[#allocation10 + $0x7f0] ss:$24 sps:$4 sm:$0xff]  }
 0x5de   : > { %8097 = vmatpush1.bf16.msra.mxu0 %v18993_v63  ;;  %v19052_v63 = vld [vmem:[#allocation10 + $0x824] ss:$24 sps:$4 sm:$0xff]  }
 0x5df   : > { %8098 = vmatprep.subr.bf16.mxu0 %v19001_v1  ;;  %v19047_v1 = vld [vmem:[#allocation13 + $0xfc0] ss:$48 sps:$4 sm:$0xff]  }
 0x5e0   : > { %4364 = vmatpush1.bf16.msra.mxu1 %v18996_v54  ;;  %v19055_v54 = vld [vmem:[#allocation13 + $0x1024] ss:$48 sps:$4 sm:$0xff]  }
 0x5e1   : > { %4365 = vmatprep.subr.bf16.mxu1 %v19004_v4  ;;  %8084 = vmatmul.mubr.bf16.gmra.mrb[16].mxu0 %v22379_v9  ;;  %v19050_v4 = vld [vmem:[#allocation10 + $0x820] ss:$24 sps:$4 sm:$0xff]  }
 0x5e2   : > { %8099 = vmatpush1.bf16.msra.mxu0 %v18999_v35  ;;  %8126 = vmatprep.mubr.bf16.mxu0 %v22382_v12  ;;  %v19058_v35 = vld [vmem:[#allocation10 + $0x854] ss:$24 sps:$4 sm:$0xff]  }
 0x5e3   : > { %8100 = vmatprep.subr.bf16.mxu0 %v19007_v53  ;;  %v19053_v53 = vld [vmem:[#allocation13 + $0x1020] ss:$48 sps:$4 sm:$0xff]  }
 0x5e4   : > { %4366 = vmatpush1.bf16.msra.mxu1 %v19002_v21  ;;  %v19061_v21 = vld [vmem:[#allocation13 + $0x1084] ss:$48 sps:$4 sm:$0xff]  }
 0x5e5   : > { %4367 = vmatprep.subr.bf16.mxu1 %v19010_v32  ;;  %v19056_v32 = vld [vmem:[#allocation10 + $0x850] ss:$24 sps:$4 sm:$0xff]  }
 0x5e6   : > { %8101 = vmatpush1.bf16.msra.mxu0 %v19005_v20  ;;  %v19064_v20 = vld [vmem:[#allocation10 + $0x884] ss:$24 sps:$4 sm:$0xff]  }
 0x5e7   : > { %8102 = vmatprep.subr.bf16.mxu0 %v19013_v8  ;;  %v19059_v8 = vld [vmem:[#allocation13 + $0x1080] ss:$48 sps:$4 sm:$0xff]  }
 0x5e8   : > { %4368 = vmatpush1.bf16.msra.mxu1 %v19008_v58  ;;  %v19067_v58 = vld [vmem:[#allocation13 + $0x10e4] ss:$48 sps:$4 sm:$0xff]  }
 0x5e9   : > { %4369 = vmatprep.subr.bf16.mxu1 %v19016_v5  ;;  %v19062_v5 = vld [vmem:[#allocation10 + $0x880] ss:$24 sps:$4 sm:$0xff]  }
 0x5ea   : > { %8103 = vmatpush1.bf16.msra.mxu0 %v19011_v26  ;;  %v19072_v26 = vld [vmem:[#allocation10 + $0x8b4] ss:$24 sps:$4 sm:$0xff]  }
 0x5eb   : > { %8104 = vmatprep.subr.bf16.mxu0 %v19019_v2  ;;  %v19065_v2 = vld [vmem:[#allocation13 + $0x10e0] ss:$48 sps:$4 sm:$0xff]  }
 0x5ec   : > { %4370 = vmatpush1.bf16.msra.mxu1 %v19014_v31  ;;  %v19076_v31 = vld [vmem:[#allocation13 + $0x1144] ss:$48 sps:$4 sm:$0xff]  }
 0x5ed   : > { %4371 = vmatprep.subr.bf16.mxu1 %v19022_v34  ;;  %v19070_v34 = vld [vmem:[#allocation10 + $0x8b0] ss:$24 sps:$4 sm:$0xff]  }
 0x5ee   : > { %8105 = vmatpush1.bf16.msra.mxu0 %v19017_v36  ;;  %v19079_v36 = vld [vmem:[#allocation10 + $0x8e4] ss:$24 sps:$4 sm:$0xff]  }
 0x5ef   : > { %8106 = vmatprep.subr.bf16.mxu0 %v19025_v11  ;;  %v19074_v11 = vld [vmem:[#allocation13 + $0x1140] ss:$48 sps:$4 sm:$0xff]  }
 0x5f0   : > { %4372 = vmatpush1.bf16.msra.mxu1 %v19020_v38  ;;  %v19082_v38 = vld [vmem:[#allocation13 + $0x11a4] ss:$48 sps:$4 sm:$0xff]  }
 0x5f1   : > { %4373 = vmatprep.subr.bf16.mxu1 %v19028_v40  ;;  %v19077_v40 = vld [vmem:[#allocation10 + $0x8e0] ss:$24 sps:$4 sm:$0xff]  }
 0x5f2   : > { %8107 = vmatpush1.bf16.msra.mxu0 %v19023_v41  ;;  %v19080_v41 = vld [vmem:[#allocation13 + $0x11a0] ss:$48 sps:$4 sm:$0xff]  }
 0x5f3   : > { %8108 = vmatprep.subr.bf16.mxu0 %v19031_v43  ;;  %v19088_v43 = vld [vmem:[#allocation13 + $0x14] ss:$48 sps:$4 sm:$0xff]  }
 0x5f4   : > { %4374 = vmatpush1.bf16.msra.mxu1 %v19026_v46  ;;  %v22387_v46 = vld [vmem:[%s22333_s3 + $0x10] ss:$24 sps:$4 sm:$0xff]  }
 0x5f5   : > { %4375 = vmatprep.subr.bf16.mxu1 %v19034_v15  ;;  %v19086_v15 = vld [vmem:[#allocation13 + $0x10] ss:$48 sps:$4 sm:$0xff]  }
 0x5f6   : > { %8109 = vmatpush1.bf16.msra.mxu0 %v19029_v47  ;;  %v22390_v47 = vld [vmem:[%s22333_s3 + $0x44] ss:$24 sps:$4 sm:$0xff]  }
 0x5f7   : > { %8110 = vmatprep.subr.bf16.mxu0 %v19037_v48  ;;  %v19091_v48 = vld [vmem:[#allocation13 + $0x74] ss:$48 sps:$4 sm:$0xff]  }
 0x5f8   : > { %4376 = vmatpush1.bf16.msra.mxu1 %v19032_v49  ;;  %v19089_v49 = vld [vmem:[#allocation13 + $0x70] ss:$48 sps:$4 sm:$0xff]  }
 0x5f9   : > { %4377 = vmatprep.subr.bf16.mxu1 %v19040_v42  ;;  %v19097_v42 = vld [vmem:[#allocation13 + $0xd4] ss:$48 sps:$4 sm:$0xff]  }
 0x5fa   : > { %8111 = vmatpush1.bf16.msra.mxu0 %v19035_v51  ;;  %v22397_v51 = vld [vmem:[%s22333_s3 + $0x40] ss:$24 sps:$4 sm:$0xff]  }
 0x5fb   : > { %8112 = vmatprep.subr.bf16.mxu0 %v19043_v16  ;;  %v19095_v16 = vld [vmem:[#allocation13 + $0xd0] ss:$48 sps:$4 sm:$0xff]  }
 0x5fc   : > { %4378 = vmatpush1.bf16.msra.mxu1 %v19038_v57  ;;  %v19100_v57 = vld [vmem:[#allocation13 + $0x134] ss:$48 sps:$4 sm:$0xff]  }
 0x5fd   : > { %4379 = vmatprep.subr.bf16.mxu1 %v19046_v17  ;;  %v19103_v17 = vld [vmem:[#allocation13 + $0x194] ss:$48 sps:$4 sm:$0xff]  }
 0x5fe   : > { %8113 = vmatpush1.bf16.msra.mxu0 %v19041_v61  ;;  %v19101_v61 = vld [vmem:[#allocation13 + $0x190] ss:$48 sps:$4 sm:$0xff]  }
 0x5ff   : > { %8114 = vmatprep.subr.bf16.mxu0 %v19049_v22  ;;  %v22401_v22 = vld [vmem:[#allocation11] sm:$0x3f] }
 0x600   : > { %4380 = vmatpush1.bf16.msra.mxu1 %v19044_v62  ;;  %v19106_v62 = vld [vmem:[#allocation13 + $0x1f4] ss:$48 sps:$4 sm:$0xff]  }
 0x601   : > { %4381 = vmatprep.subr.bf16.mxu1 %v19052_v63  ;;  %v2548_v63 = vrot.slane %v22401_v22, %v22136_v29 }
 0x602   : > { %8115 = vmatpush1.bf16.msra.mxu0 %v19047_v1 }
 0x603   : > { %8116 = vmatprep.subr.bf16.mxu0 %v19055_v54  ;;  %v2556_v54 = vrot.slane %v22401_v22, %v22152_v50 }
 0x604   : > { %4382 = vmatpush1.bf16.msra.mxu1 %v19050_v4  ;;  %v2552_v4 = vrot.slane %v22401_v22, %v22139_v30 }
 0x605   : > { %4383 = vmatprep.subr.bf16.mxu1 %v19058_v35 }
 0x606   : > { %8117 = vmatpush1.bf16.msra.mxu0 %v19053_v53 }
 0x607   : > { %8118 = vmatprep.subr.bf16.mxu0 %v19061_v21  ;;  %v2560_v21 = vrot.slane %v22401_v22, %v22156_v52 }
 0x608   : > { %4384 = vmatpush1.bf16.msra.mxu1 %v19056_v32  ;;  %v19109_v32 = vld [vmem:[#allocation13 + $0x254] ss:$48 sps:$4 sm:$0xff]  }
 0x609   : > { %4385 = vmatprep.subr.bf16.mxu1 %v19064_v20 }
 0x60a   : > { %8119 = vmatpush1.bf16.msra.mxu0 %v19059_v8 }
 0x60b   : > { %8120 = vmatprep.subr.bf16.mxu0 %v19067_v58 }
 0x60c   : > { %4386 = vmatpush1.bf16.msra.mxu1 %v19062_v5 }
 0x60d   : > { %4387 = vmatprep.subr.bf16.mxu1 %v19072_v26 }
 0x60e   : > { %8121 = vmatpush1.bf16.msra.mxu0 %v19065_v2 }
 0x60f   : > { %8122 = vmatprep.subr.bf16.mxu0 %v19076_v31 }
 0x610   : > { %4388 = vmatpush1.bf16.msra.mxu1 %v19070_v34 }
 0x611   : > { %4389 = vmatprep.subr.bf16.mxu1 %v19079_v36 }
 0x612   : > { %8123 = vmatpush1.bf16.msra.mxu0 %v19074_v11 }
 0x613   : > { %8124 = vmatprep.subr.bf16.mxu0 %v19082_v38 }
 0x614   : > { %4390 = vmatpush1.bf16.msra.mxu1 %v19077_v40  ;;  %v19107_v40 = vld [vmem:[#allocation13 + $0x250] ss:$48 sps:$4 sm:$0xff]  }
 0x616   : > { %8125 = vmatpush1.bf16.msra.mxu0 %v19080_v41 }
 0x617   : > { %4392 = vmatmul.mubr.bf16.vlgmr.msra.gmra.mrb[12].mxu1 %v22341_v33  ;;  %8306 = vmatprep.subr.bf16.mxu0 %v19088_v43  ;;  %v19098_v33 = vld [vmem:[#allocation13 + $0x130] ss:$48 sps:$4 sm:$0xff]  }
 0x618   : > { %8179 = vmatprep.mubr.bf16.mxu1 %v22345_v37 }
 0x619   : > { %8127 = vmatmul.mubr.bf16.vlgmr.msra.gmra.mrb[12].mxu0 %v22387_v46 }
 0x61a   : > { %8307 = vmatpush1.bf16.msra.mxu0 %v19086_v15  ;;  %8136 = vmatprep.mubr.bf16.mxu0 %v22390_v47 }
 0x61b   : > { %8308 = vmatprep.subr.bf16.mxu0 %v19091_v48  ;;  %v19112_v48 = vld [vmem:[#allocation13 + $0x2b4] ss:$48 sps:$4 sm:$0xff]  }
 0x61e   : > { %8309 = vmatpush1.bf16.msra.mxu0 %v19089_v49 }
 0x61f   : > { %8310 = vmatprep.subr.bf16.mxu0 %v19097_v42 }
 0x621   : > { %8137 = vmatmul.mubr.bf16.gmra.mrb[16].mxu0 %v22397_v51 }
 0x622   : > { %8311 = vmatpush1.bf16.msra.mxu0 %v19095_v16  ;;  %8338 = vmatprep.mubr.bf16.mxu0 %v22345_v37  ;;  %v19104_v37 = vld [vmem:[#allocation13 + $0x1f0] ss:$48 sps:$4 sm:$0xff]  }
 0x623   : > { %8312 = vmatprep.subr.bf16.mxu0 %v19100_v57  ;;  %v19110_v57 = vld [vmem:[#allocation13 + $0x2b0] ss:$48 sps:$4 sm:$0xff]  }
 0x626   : > { %8313 = vmatpush1.bf16.msra.mxu0 %v19098_v33  ;;  %v19115_v33 = vld [vmem:[#allocation13 + $0x314] ss:$48 sps:$4 sm:$0xff]  }
 0x627   : > { %8314 = vmatprep.subr.bf16.mxu0 %v19103_v17  ;;  %v19113_v17 = vld [vmem:[#allocation13 + $0x310] ss:$48 sps:$4 sm:$0xff]  }
 0x62a   : > { %8315 = vmatpush1.bf16.msra.mxu0 %v19101_v61  ;;  %v4135_v1 = vpop.f32.mrb[8].mxu1  ;;  %v19118_v61 = vld [vmem:[#allocation13 + $0x374] ss:$48 sps:$4 sm:$0xff]  }
 0x62b   : > { %v4264_v35 = vpop.f32.mrb[8].mxu0  ;;  %v4137_v53 = vpop.f32.mrb[9].mxu1  ;;  %8316 = vmatprep.subr.bf16.mxu0 %v19106_v62  ;;  %v17768_v58 = vadd.f32 %v4135_v1, %v2548_v63  ;;  %v19116_v62 = vld [vmem:[#allocation13 + $0x370] ss:$48 sps:$4 sm:$0xff]  }
 0x62c   : > { %v4266_v20 = vpop.f32.mrb[9].mxu0  ;;  %v4139_v8 = vpop.f32.mrb[10].mxu1  ;;  %v17772_v31 = vadd.f32 %v4264_v35, %v2556_v54  ;;  %v17769_v34 = vadd.f32 %v4137_v53, %v2552_v4  ;;  %v19119_v1 = vld [vmem:[#allocation13 + $0x3d0] ss:$48 sps:$4 sm:$0xff]   ;;  %v19130_v53 = vld [vmem:[#allocation13 + $0x4f4] ss:$48 sps:$4 sm:$0xff]  }
 0x62d   : > { %v17770_v5 = vadd.f32 %v4139_v8, %v2548_v63  ;;  %v4268_v26 = vpop.f32.mrb[10].mxu0  ;;  %v4141_v2 = vpop.f32.mrb[11].mxu1  ;;  %v17773_v41 = vadd.f32 %v4266_v20, %v2560_v21  ;;  %v19121_v63 = vld [vmem:[#allocation13 + $0x3d4] ss:$48 sps:$4 sm:$0xff]   ;;  %v19125_v35 = vld [vmem:[#allocation13 + $0x490] ss:$48 sps:$4 sm:$0xff]  }
 0x62e   : > { %v17774_v36 = vadd.f32 %v4268_v26, %v2556_v54  ;;  %8317 = vmatpush1.bf16.msra.mxu0 %v19104_v37  ;;  %v17771_v11 = vadd.f32 %v4141_v2, %v2552_v4  ;;  %v4270_v38 = vpop.f32.mrb[11].mxu0  ;;  %v19124_v54 = vld [vmem:[#allocation13 + $0x434] ss:$48 sps:$4 sm:$0xff]   ;;  %v19122_v4 = vld [vmem:[#allocation13 + $0x430] ss:$48 sps:$4 sm:$0xff]  }
 0x62f   : > { %v22411_v43 = vpack.c.bf16 %v17770_v5, %v17768_v58  ;;  %v17775_v15 = vadd.f32 %v4270_v38, %v2560_v21  ;;  %8318 = vmatprep.subr.bf16.mxu0 %v19109_v32  ;;  %v19127_v37 = vld [vmem:[#allocation13 + $0x494] ss:$48 sps:$4 sm:$0xff]   ;;  %v19128_v21 = vld [vmem:[#allocation13 + $0x4f0] ss:$48 sps:$4 sm:$0xff]   ;;  %v19238_v26 = vld [vmem:[#allocation13 + $0xc] ss:$48 sps:$4 sm:$0xff]  }
 0x630   : > { %v22413_v49 = vpack.c.bf16 %v17774_v36, %v17772_v31  ;;  %v22415_v42 = vpack.c.bf16 %v17771_v11, %v17769_v34  ;;  %v19133_v32 = vld [vmem:[#allocation13 + $0x554] ss:$48 sps:$4 sm:$0xff]   ;;  %v19131_v20 = vld [vmem:[#allocation13 + $0x550] ss:$48 sps:$4 sm:$0xff]   ;;  %v19236_v31 = vld [vmem:[#allocation13 + $0x8] ss:$48 sps:$4 sm:$0xff]   ;;  %8147 = vmatprep.subr.bf16.mxu1 %v19238_v26 }
 0x631   : > { %v22417_v16 = vpack.c.bf16 %v17775_v15, %v17773_v41  ;;  %v19136_v8 = vld [vmem:[#allocation13 + $0x5b4] ss:$48 sps:$4 sm:$0xff]   ;;  %v19134_v58 = vld [vmem:[#allocation13 + $0x5b0] ss:$48 sps:$4 sm:$0xff]   ;;  %8148 = vmatpush1.bf16.msra.mxu1 %v19236_v31  ;;  %v19244_v36 = vld [vmem:[#allocation13 + $0x6c] ss:$48 sps:$4 sm:$0xff]  }
 0x632   : > { %8319 = vmatpush1.bf16.msra.mxu0 %v19107_v40  ;;  %v19139_v5 = vld [vmem:[#allocation13 + $0x614] ss:$48 sps:$4 sm:$0xff]   ;;  %v19137_v2 = vld [vmem:[#allocation13 + $0x610] ss:$48 sps:$4 sm:$0xff]   ;;  %v19242_v38 = vld [vmem:[#allocation13 + $0x68] ss:$48 sps:$4 sm:$0xff]   ;;  %8149 = vmatprep.subr.bf16.mxu1 %v19244_v36 }
 0x633   : > { %8320 = vmatprep.subr.bf16.mxu0 %v19112_v48  ;;  %v19142_v34 = vld [vmem:[#allocation13 + $0x674] ss:$48 sps:$4 sm:$0xff]   ;;  %v19140_v11 = vld [vmem:[#allocation13 + $0x670] ss:$48 sps:$4 sm:$0xff]   ;;  %v19250_v41 = vld [vmem:[#allocation13 + $0xcc] ss:$48 sps:$4 sm:$0xff]  }
 0x634   : > { %v19145_v40 = vld [vmem:[#allocation13 + $0x6d4] ss:$48 sps:$4 sm:$0xff]   ;;  %v19143_v15 = vld [vmem:[#allocation13 + $0x6d0] ss:$48 sps:$4 sm:$0xff]   ;;  %v19248_v48 = vld [vmem:[#allocation13 + $0xc8] ss:$48 sps:$4 sm:$0xff]  }
 0x635   : > { %8150 = vmatpush1.bf16.msra.mxu1 %v19242_v38  ;;  %v19163_v26 = vld [vmem:[#allocation13 + $0x914] ss:$48 sps:$4 sm:$0xff]   ;;  %v19161_v31 = vld [vmem:[#allocation13 + $0x910] ss:$48 sps:$4 sm:$0xff]  }
 0x636   : > { %8321 = vmatpush1.bf16.msra.mxu0 %v19110_v57  ;;  %v19148_v57 = vld [vmem:[#allocation13 + $0x734] ss:$48 sps:$4 sm:$0xff]   ;;  %8151 = vmatprep.subr.bf16.mxu1 %v19250_v41  ;;  %v19164_v38 = vld [vmem:[#allocation13 + $0x970] ss:$48 sps:$4 sm:$0xff]  }
 0x637   : > { %8322 = vmatprep.subr.bf16.mxu0 %v19115_v33  ;;  %v19256_v33 = vld [vmem:[#allocation13 + $0x12c] ss:$48 sps:$4 sm:$0xff]   ;;  %v19166_v36 = vld [vmem:[#allocation13 + $0x974] ss:$48 sps:$4 sm:$0xff]  }
 0x638   : > { %v19169_v41 = vld [vmem:[#allocation13 + $0x9d4] ss:$48 sps:$4 sm:$0xff]  }
 0x639   : > { %8152 = vmatpush1.bf16.msra.mxu1 %v19248_v48  ;;  %v19167_v48 = vld [vmem:[#allocation13 + $0x9d0] ss:$48 sps:$4 sm:$0xff]  }
 0x63a   : > { %8323 = vmatpush1.bf16.msra.mxu0 %v19113_v17  ;;  %v19146_v17 = vld [vmem:[#allocation13 + $0x730] ss:$48 sps:$4 sm:$0xff]   ;;  %8153 = vmatprep.subr.bf16.mxu1 %v19256_v33  ;;  %v19172_v33 = vld [vmem:[#allocation13 + $0xa34] ss:$48 sps:$4 sm:$0xff]  }
 0x63b   : > { %8324 = vmatprep.subr.bf16.mxu0 %v19118_v61  ;;  %v19151_v61 = vld [vmem:[#allocation13 + $0x794] ss:$48 sps:$4 sm:$0xff]  }
 0x63e   : > { %8325 = vmatpush1.bf16.msra.mxu0 %v19116_v62  ;;  %v19262_v62 = vld [vmem:[#allocation13 + $0x18c] ss:$48 sps:$4 sm:$0xff]  }
 0x63f   : > { %8326 = vmatprep.subr.bf16.mxu0 %v19121_v63  ;;  %v19149_v63 = vld [vmem:[#allocation13 + $0x790] ss:$48 sps:$4 sm:$0xff]  }
 0x642   : > { %8327 = vmatpush1.bf16.msra.mxu0 %v19119_v1  ;;  %v19260_v1 = vld [vmem:[#allocation13 + $0x188] ss:$48 sps:$4 sm:$0xff]  }
 0x643   : > { %8328 = vmatprep.subr.bf16.mxu0 %v19124_v54  ;;  %v19154_v54 = vld [vmem:[#allocation13 + $0x7f4] ss:$48 sps:$4 sm:$0xff]  }
 0x646   : > { %8329 = vmatpush1.bf16.msra.mxu0 %v19122_v4  ;;  %v19268_v4 = vld [vmem:[#allocation13 + $0x1ec] ss:$48 sps:$4 sm:$0xff]  }
 0x647   : > { %8330 = vmatprep.subr.bf16.mxu0 %v19127_v37  ;;  %v19152_v37 = vld [vmem:[#allocation13 + $0x7f0] ss:$48 sps:$4 sm:$0xff]  }
 0x64a   : > { %8331 = vmatpush1.bf16.msra.mxu0 %v19125_v35  ;;  %v19266_v35 = vld [vmem:[#allocation13 + $0x1e8] ss:$48 sps:$4 sm:$0xff]  }
 0x64b   : > { %8332 = vmatprep.subr.bf16.mxu0 %v19130_v53  ;;  %v19157_v53 = vld [vmem:[#allocation13 + $0x854] ss:$48 sps:$4 sm:$0xff]  }
 0x64e   : > { %8333 = vmatpush1.bf16.msra.mxu0 %v19128_v21  ;;  %v19155_v21 = vld [vmem:[#allocation13 + $0x850] ss:$48 sps:$4 sm:$0xff]  }
 0x64f   : > { %8334 = vmatprep.subr.bf16.mxu0 %v19133_v32  ;;  %v19272_v32 = vld [vmem:[#allocation13 + $0x248] ss:$48 sps:$4 sm:$0xff]  }
 0x652   : > { %8335 = vmatpush1.bf16.msra.mxu0 %v19131_v20  ;;  %v19160_v20 = vld [vmem:[#allocation13 + $0x8b4] ss:$48 sps:$4 sm:$0xff]  }
 0x653   : > { %8336 = vmatprep.subr.bf16.mxu0 %v19136_v8  ;;  %v19280_v8 = vld [vmem:[#allocation13 + $0x2ac] ss:$48 sps:$4 sm:$0xff]  }
 0x656   : > { %8337 = vmatpush1.bf16.msra.mxu0 %v19134_v58  ;;  %v19158_v58 = vld [vmem:[#allocation13 + $0x8b0] ss:$48 sps:$4 sm:$0xff]  }
 0x657   : > { %8359 = vmatprep.subr.bf16.mxu0 %v19139_v5  ;;  %v19278_v5 = vld [vmem:[#allocation13 + $0x2a8] ss:$48 sps:$4 sm:$0xff]  }
 0x659   : > { %8339 = vmatmul.mubr.bf16.vlgmr.msra.gmra.mrb[20].mxu0 %v22351_v7 }
 0x65a   : > { %8360 = vmatpush1.bf16.msra.mxu0 %v19137_v2  ;;  %8348 = vmatprep.mubr.bf16.mxu0 %v22354_v60  ;;  %v19254_v60 = vld [vmem:[#allocation13 + $0x128] ss:$48 sps:$4 sm:$0xff]   ;;  %v19286_v2 = vld [vmem:[#allocation13 + $0x30c] ss:$48 sps:$4 sm:$0xff]  }
 0x65b   : > { %8361 = vmatprep.subr.bf16.mxu0 %v19142_v34  ;;  %8154 = vmatpush1.bf16.msra.mxu1 %v19254_v60  ;;  %v19284_v34 = vld [vmem:[#allocation13 + $0x308] ss:$48 sps:$4 sm:$0xff]   ;;  %v19170_v60 = vld [vmem:[#allocation13 + $0xa30] ss:$48 sps:$4 sm:$0xff]  }
 0x65c   : > { %8155 = vmatprep.subr.bf16.mxu1 %v19262_v62  ;;  %v19175_v62 = vld [vmem:[#allocation13 + $0xa94] ss:$48 sps:$4 sm:$0xff]  }
 0x65e   : > { %8362 = vmatpush1.bf16.msra.mxu0 %v19140_v11  ;;  %v19292_v11 = vld [vmem:[#allocation13 + $0x36c] ss:$48 sps:$4 sm:$0xff]  }
 0x65f   : > { %8363 = vmatprep.subr.bf16.mxu0 %v19145_v40  ;;  %8156 = vmatpush1.bf16.msra.mxu1 %v19260_v1  ;;  %v19290_v40 = vld [vmem:[#allocation13 + $0x368] ss:$48 sps:$4 sm:$0xff]   ;;  %v19173_v1 = vld [vmem:[#allocation13 + $0xa90] ss:$48 sps:$4 sm:$0xff]  }
 0x660   : > { %8157 = vmatprep.subr.bf16.mxu1 %v19268_v4  ;;  %v19178_v4 = vld [vmem:[#allocation13 + $0xaf4] ss:$48 sps:$4 sm:$0xff]  }
 0x661   : > { %8349 = vmatmul.mubr.bf16.gmra.mrb[24].mxu0 %v22361_v25 }
 0x662   : > { %8364 = vmatpush1.bf16.msra.mxu0 %v19143_v15  ;;  %8391 = vmatprep.mubr.bf16.mxu0 %v22364_v28  ;;  %v19274_v28 = vld [vmem:[#allocation13 + $0x24c] ss:$48 sps:$4 sm:$0xff]  }
 0x663   : > { %8365 = vmatprep.subr.bf16.mxu0 %v19148_v57  ;;  %8158 = vmatpush1.bf16.msra.mxu1 %v19266_v35  ;;  %v19298_v15 = vld [vmem:[#allocation13 + $0x3cc] ss:$48 sps:$4 sm:$0xff]   ;;  %v19296_v57 = vld [vmem:[#allocation13 + $0x3c8] ss:$48 sps:$4 sm:$0xff]   ;;  %v19176_v35 = vld [vmem:[#allocation13 + $0xaf0] ss:$48 sps:$4 sm:$0xff]  }
 0x664   : > { %8159 = vmatprep.subr.bf16.mxu1 %v19274_v28  ;;  %v19181_v28 = vld [vmem:[#allocation13 + $0xb54] ss:$48 sps:$4 sm:$0xff]  }
 0x666   : > { %8366 = vmatpush1.bf16.msra.mxu0 %v19146_v17  ;;  %v19304_v17 = vld [vmem:[#allocation13 + $0x42c] ss:$48 sps:$4 sm:$0xff]  }
 0x667   : > { %8367 = vmatprep.subr.bf16.mxu0 %v19151_v61  ;;  %8160 = vmatpush1.bf16.msra.mxu1 %v19272_v32  ;;  %v19302_v61 = vld [vmem:[#allocation13 + $0x428] ss:$48 sps:$4 sm:$0xff]   ;;  %v19179_v32 = vld [vmem:[#allocation13 + $0xb50] ss:$48 sps:$4 sm:$0xff]  }
 0x668   : > { %8161 = vmatprep.subr.bf16.mxu1 %v19280_v8  ;;  %v19184_v8 = vld [vmem:[#allocation13 + $0xbb4] ss:$48 sps:$4 sm:$0xff]  }
 0x66a   : > { %8368 = vmatpush1.bf16.msra.mxu0 %v19149_v63  ;;  %v19310_v63 = vld [vmem:[#allocation13 + $0x48c] ss:$48 sps:$4 sm:$0xff]  }
 0x66b   : > { %8369 = vmatprep.subr.bf16.mxu0 %v19154_v54  ;;  %8162 = vmatpush1.bf16.msra.mxu1 %v19278_v5  ;;  %v19308_v54 = vld [vmem:[#allocation13 + $0x488] ss:$48 sps:$4 sm:$0xff]   ;;  %v19182_v5 = vld [vmem:[#allocation13 + $0xbb0] ss:$48 sps:$4 sm:$0xff]  }
 0x66c   : > { %8163 = vmatprep.subr.bf16.mxu1 %v19286_v2  ;;  %v19187_v2 = vld [vmem:[#allocation13 + $0xc14] ss:$48 sps:$4 sm:$0xff]  }
 0x66e   : > { %8370 = vmatpush1.bf16.msra.mxu0 %v19152_v37  ;;  %v19316_v37 = vld [vmem:[#allocation13 + $0x4ec] ss:$48 sps:$4 sm:$0xff]  }
 0x66f   : > { %8371 = vmatprep.subr.bf16.mxu0 %v19157_v53  ;;  %8164 = vmatpush1.bf16.msra.mxu1 %v19284_v34  ;;  %v19314_v53 = vld [vmem:[#allocation13 + $0x4e8] ss:$48 sps:$4 sm:$0xff]   ;;  %v19185_v34 = vld [vmem:[#allocation13 + $0xc10] ss:$48 sps:$4 sm:$0xff]  }
 0x670   : > { %8165 = vmatprep.subr.bf16.mxu1 %v19292_v11  ;;  %v19190_v11 = vld [vmem:[#allocation13 + $0xc74] ss:$48 sps:$4 sm:$0xff]  }
 0x672   : > { %8372 = vmatpush1.bf16.msra.mxu0 %v19155_v21  ;;  %v19322_v21 = vld [vmem:[#allocation13 + $0x54c] ss:$48 sps:$4 sm:$0xff]  }
 0x673   : > { %8373 = vmatprep.subr.bf16.mxu0 %v19160_v20  ;;  %8166 = vmatpush1.bf16.msra.mxu1 %v19290_v40  ;;  %v19320_v20 = vld [vmem:[#allocation13 + $0x548] ss:$48 sps:$4 sm:$0xff]   ;;  %v19188_v40 = vld [vmem:[#allocation13 + $0xc70] ss:$48 sps:$4 sm:$0xff]  }
 0x674   : > { %8167 = vmatprep.subr.bf16.mxu1 %v19298_v15  ;;  %v19193_v15 = vld [vmem:[#allocation13 + $0xcd4] ss:$48 sps:$4 sm:$0xff]  }
 0x676   : > { %8374 = vmatpush1.bf16.msra.mxu0 %v19158_v58  ;;  %v19328_v58 = vld [vmem:[#allocation13 + $0x5ac] ss:$48 sps:$4 sm:$0xff]  }
 0x677   : > { %8375 = vmatprep.subr.bf16.mxu0 %v19163_v26  ;;  %8168 = vmatpush1.bf16.msra.mxu1 %v19296_v57  ;;  %v19326_v26 = vld [vmem:[#allocation13 + $0x5a8] ss:$48 sps:$4 sm:$0xff]   ;;  %v19346_v57 = vld [vmem:[#allocation13 + $0x6cc] ss:$48 sps:$4 sm:$0xff]  }
 0x678   : > { %8169 = vmatprep.subr.bf16.mxu1 %v19304_v17  ;;  %v19196_v17 = vld [vmem:[#allocation13 + $0xd34] ss:$48 sps:$4 sm:$0xff]  }
 0x67a   : > { %8376 = vmatpush1.bf16.msra.mxu0 %v19161_v31  ;;  %v19334_v31 = vld [vmem:[#allocation13 + $0x60c] ss:$48 sps:$4 sm:$0xff]  }
 0x67b   : > { %8377 = vmatprep.subr.bf16.mxu0 %v19166_v36  ;;  %8170 = vmatpush1.bf16.msra.mxu1 %v19302_v61  ;;  %v19332_v36 = vld [vmem:[#allocation13 + $0x608] ss:$48 sps:$4 sm:$0xff]  }
 0x67c   : > { %8171 = vmatprep.subr.bf16.mxu1 %v19310_v63  ;;  %v19350_v61 = vld [vmem:[#allocation13 + $0x728] ss:$48 sps:$4 sm:$0xff]   ;;  %v22434_v63 = vld [vmem:[%s22333_s3 + $0xc] ss:$24 sps:$4 sm:$0xff]  }
 0x67e   : > { %8378 = vmatpush1.bf16.msra.mxu0 %v19164_v38  ;;  %v19340_v38 = vld [vmem:[#allocation13 + $0x66c] ss:$48 sps:$4 sm:$0xff]  }
 0x67f   : > { %8379 = vmatprep.subr.bf16.mxu0 %v19169_v41  ;;  %8172 = vmatpush1.bf16.msra.mxu1 %v19308_v54  ;;  %v19338_v41 = vld [vmem:[#allocation13 + $0x668] ss:$48 sps:$4 sm:$0xff]  }
 0x680   : > { %8173 = vmatprep.subr.bf16.mxu1 %v19316_v37  ;;  %v19356_v54 = vld [vmem:[#allocation13 + $0x788] ss:$48 sps:$4 sm:$0xff]   ;;  %v19364_v37 = vld [vmem:[#allocation13 + $0x7ec] ss:$48 sps:$4 sm:$0xff]  }
 0x682   : > { %8380 = vmatpush1.bf16.msra.mxu0 %v19167_v48  ;;  %v22427_v48 = vld [vmem:[%s22333_s3 + $0x34] ss:$24 sps:$4 sm:$0xff]  }
 0x683   : > { %8381 = vmatprep.subr.bf16.mxu0 %v19172_v33  ;;  %8174 = vmatpush1.bf16.msra.mxu1 %v19314_v53  ;;  %v19344_v33 = vld [vmem:[#allocation13 + $0x6c8] ss:$48 sps:$4 sm:$0xff]   ;;  %v19205_v53 = vld [vmem:[#allocation13 + $0xe54] ss:$48 sps:$4 sm:$0xff]  }
 0x684   : > { %8175 = vmatprep.subr.bf16.mxu1 %v19322_v21  ;;  %v19203_v21 = vld [vmem:[#allocation13 + $0xe50] ss:$48 sps:$4 sm:$0xff]  }
 0x686   : > { %8382 = vmatpush1.bf16.msra.mxu0 %v19170_v60  ;;  %v19194_v60 = vld [vmem:[#allocation13 + $0xd30] ss:$48 sps:$4 sm:$0xff]  }
 0x687   : > { %8383 = vmatprep.subr.bf16.mxu0 %v19175_v62  ;;  %8176 = vmatpush1.bf16.msra.mxu1 %v19320_v20  ;;  %v19199_v62 = vld [vmem:[#allocation13 + $0xd94] ss:$48 sps:$4 sm:$0xff]  }
 0x688   : > { %8177 = vmatprep.subr.bf16.mxu1 %v19328_v58  ;;  %v19208_v20 = vld [vmem:[#allocation13 + $0xeb4] ss:$48 sps:$4 sm:$0xff]   ;;  %v19206_v58 = vld [vmem:[#allocation13 + $0xeb0] ss:$48 sps:$4 sm:$0xff]  }
 0x68a   : > { %8384 = vmatpush1.bf16.msra.mxu0 %v19173_v1  ;;  %v19358_v1 = vld [vmem:[#allocation13 + $0x78c] ss:$48 sps:$4 sm:$0xff]  }
 0x68b   : > { %8385 = vmatprep.subr.bf16.mxu0 %v19178_v4  ;;  %8178 = vmatpush1.bf16.msra.mxu1 %v19326_v26  ;;  %v19202_v4 = vld [vmem:[#allocation13 + $0xdf4] ss:$48 sps:$4 sm:$0xff]  }
 0x68c   : > { %8200 = vmatprep.subr.bf16.mxu1 %v19334_v31  ;;  %v19211_v26 = vld [vmem:[#allocation13 + $0xf14] ss:$48 sps:$4 sm:$0xff]   ;;  %v19209_v31 = vld [vmem:[#allocation13 + $0xf10] ss:$48 sps:$4 sm:$0xff]  }
 0x68e   : > { %8386 = vmatpush1.bf16.msra.mxu0 %v19176_v35  ;;  %8180 = vmatmul.mubr.bf16.vlgmr.msra.gmra.mrb[16].mxu1 %v22351_v7  ;;  %v19191_v7 = vld [vmem:[#allocation13 + $0xcd0] ss:$48 sps:$4 sm:$0xff]   ;;  %v19362_v35 = vld [vmem:[#allocation13 + $0x7e8] ss:$48 sps:$4 sm:$0xff]  }
 0x68f   : > { %8387 = vmatprep.subr.bf16.mxu0 %v19181_v28  ;;  %8201 = vmatpush1.bf16.msra.mxu1 %v19332_v36  ;;  %v19370_v28 = vld [vmem:[#allocation13 + $0x84c] ss:$48 sps:$4 sm:$0xff]   ;;  %v19214_v36 = vld [vmem:[#allocation13 + $0xf74] ss:$48 sps:$4 sm:$0xff]  }
 0x690   : > { %8202 = vmatprep.subr.bf16.mxu1 %v19340_v38  ;;  %8189 = vmatprep.mubr.bf16.mxu1 %v22427_v48  ;;  %v19212_v38 = vld [vmem:[#allocation13 + $0xf70] ss:$48 sps:$4 sm:$0xff]  }
 0x692   : > { %8388 = vmatpush1.bf16.msra.mxu0 %v19179_v32  ;;  %v19368_v32 = vld [vmem:[#allocation13 + $0x848] ss:$48 sps:$4 sm:$0xff]  }
 0x693   : > { %8389 = vmatprep.subr.bf16.mxu0 %v19184_v8  ;;  %8203 = vmatpush1.bf16.msra.mxu1 %v19338_v41  ;;  %v19376_v8 = vld [vmem:[#allocation13 + $0x8ac] ss:$48 sps:$4 sm:$0xff]   ;;  %v19217_v41 = vld [vmem:[#allocation13 + $0xfd4] ss:$48 sps:$4 sm:$0xff]  }
 0x694   : > { %8204 = vmatprep.subr.bf16.mxu1 %v19346_v57  ;;  %v19215_v57 = vld [vmem:[#allocation13 + $0xfd0] ss:$48 sps:$4 sm:$0xff]  }
 0x696   : > { %8390 = vmatpush1.bf16.msra.mxu0 %v19182_v5  ;;  %8190 = vmatmul.mubr.bf16.gmra.mrb[20].mxu1 %v22361_v25  ;;  %v19197_v25 = vld [vmem:[#allocation13 + $0xd90] ss:$48 sps:$4 sm:$0xff]   ;;  %v19374_v5 = vld [vmem:[#allocation13 + $0x8a8] ss:$48 sps:$4 sm:$0xff]  }
 0x697   : > { %8412 = vmatprep.subr.bf16.mxu0 %v19187_v2  ;;  %8205 = vmatpush1.bf16.msra.mxu1 %v19344_v33  ;;  %v19382_v2 = vld [vmem:[#allocation13 + $0x90c] ss:$48 sps:$4 sm:$0xff]   ;;  %v19220_v33 = vld [vmem:[#allocation13 + $0x1034] ss:$48 sps:$4 sm:$0xff]  }
 0x698   : > { %8232 = vmatprep.mubr.bf16.mxu1 %v22434_v63 }
 0x699   : > { %8392 = vmatmul.mubr.bf16.vlgmr.msra.gmra.mrb[20].mxu0 %v22369_v14 }
 0x69a   : > { %8413 = vmatpush1.bf16.msra.mxu0 %v19185_v34  ;;  %8401 = vmatprep.mubr.bf16.mxu0 %v22372_v59  ;;  %v19352_v59 = vld [vmem:[#allocation13 + $0x72c] ss:$48 sps:$4 sm:$0xff]   ;;  %v19380_v34 = vld [vmem:[#allocation13 + $0x908] ss:$48 sps:$4 sm:$0xff]  }
 0x69b   : > { %8414 = vmatprep.subr.bf16.mxu0 %v19190_v11  ;;  %8206 = vmatprep.subr.bf16.mxu1 %v19352_v59  ;;  %v19388_v11 = vld [vmem:[#allocation13 + $0x96c] ss:$48 sps:$4 sm:$0xff]   ;;  %v19218_v59 = vld [vmem:[#allocation13 + $0x1030] ss:$48 sps:$4 sm:$0xff]  }
 0x69c   : > { %8207 = vmatpush1.bf16.msra.mxu1 %v19350_v61  ;;  %v19223_v61 = vld [vmem:[#allocation13 + $0x1094] ss:$48 sps:$4 sm:$0xff]  }
 0x69d   : > { %8208 = vmatprep.subr.bf16.mxu1 %v19358_v1  ;;  %v19221_v1 = vld [vmem:[#allocation13 + $0x1090] ss:$48 sps:$4 sm:$0xff]  }
 0x69e   : > { %8415 = vmatpush1.bf16.msra.mxu0 %v19188_v40  ;;  %v19386_v40 = vld [vmem:[#allocation13 + $0x968] ss:$48 sps:$4 sm:$0xff]  }
 0x69f   : > { %8416 = vmatprep.subr.bf16.mxu0 %v19193_v15  ;;  %v19394_v15 = vld [vmem:[#allocation13 + $0x9cc] ss:$48 sps:$4 sm:$0xff]  }
 0x6a0   : > { %8209 = vmatpush1.bf16.msra.mxu1 %v19356_v54  ;;  %v19226_v54 = vld [vmem:[#allocation13 + $0x10f4] ss:$48 sps:$4 sm:$0xff]  }
 0x6a1   : > { %8402 = vmatmul.mubr.bf16.gmra.mrb[24].mxu0 %v22379_v9  ;;  %8210 = vmatprep.subr.bf16.mxu1 %v19364_v37  ;;  %v19224_v37 = vld [vmem:[#allocation13 + $0x10f0] ss:$48 sps:$4 sm:$0xff]  }
 0x6a2   : > { %8417 = vmatpush1.bf16.msra.mxu0 %v19191_v7  ;;  %8444 = vmatprep.mubr.bf16.mxu0 %v22382_v12  ;;  %v19200_v12 = vld [vmem:[#allocation13 + $0xdf0] ss:$48 sps:$4 sm:$0xff]   ;;  %v19392_v7 = vld [vmem:[#allocation13 + $0x9c8] ss:$48 sps:$4 sm:$0xff]  }
 0x6a3   : > { %8418 = vmatprep.subr.bf16.mxu0 %v19196_v17  ;;  %v19400_v17 = vld [vmem:[#allocation13 + $0xa2c] ss:$48 sps:$4 sm:$0xff]  }
 0x6a4   : > { %8211 = vmatpush1.bf16.msra.mxu1 %v19362_v35  ;;  %v19229_v35 = vld [vmem:[#allocation13 + $0x1154] ss:$48 sps:$4 sm:$0xff]  }
 0x6a5   : > { %8212 = vmatprep.subr.bf16.mxu1 %v19370_v28  ;;  %v19227_v28 = vld [vmem:[#allocation13 + $0x1150] ss:$48 sps:$4 sm:$0xff]  }
 0x6a6   : > { %8419 = vmatpush1.bf16.msra.mxu0 %v19194_v60  ;;  %v19398_v60 = vld [vmem:[#allocation13 + $0xa28] ss:$48 sps:$4 sm:$0xff]  }
 0x6a7   : > { %8420 = vmatprep.subr.bf16.mxu0 %v19199_v62  ;;  %v19406_v62 = vld [vmem:[#allocation13 + $0xa8c] ss:$48 sps:$4 sm:$0xff]  }
 0x6a8   : > { %8213 = vmatpush1.bf16.msra.mxu1 %v19368_v32  ;;  %v19232_v32 = vld [vmem:[#allocation13 + $0x11b4] ss:$48 sps:$4 sm:$0xff]  }
 0x6a9   : > { %8214 = vmatprep.subr.bf16.mxu1 %v19376_v8  ;;  %v19230_v8 = vld [vmem:[#allocation13 + $0x11b0] ss:$48 sps:$4 sm:$0xff]  }
 0x6aa   : > { %8421 = vmatpush1.bf16.msra.mxu0 %v19197_v25  ;;  %v19404_v25 = vld [vmem:[#allocation13 + $0xa88] ss:$48 sps:$4 sm:$0xff]  }
 0x6ab   : > { %8422 = vmatprep.subr.bf16.mxu0 %v19202_v4  ;;  %v19412_v4 = vld [vmem:[#allocation13 + $0xaec] ss:$48 sps:$4 sm:$0xff]  }
 0x6ac   : > { %8215 = vmatpush1.bf16.msra.mxu1 %v19374_v5  ;;  %v19235_v5 = vld [vmem:[#allocation13 + $0x24] ss:$48 sps:$4 sm:$0xff]  }
 0x6ad   : > { %8216 = vmatprep.subr.bf16.mxu1 %v19382_v2  ;;  %v19233_v2 = vld [vmem:[#allocation13 + $0x20] ss:$48 sps:$4 sm:$0xff]  }
 0x6ae   : > { %8423 = vmatpush1.bf16.msra.mxu0 %v19200_v12  ;;  %v19410_v12 = vld [vmem:[#allocation13 + $0xae8] ss:$48 sps:$4 sm:$0xff]  }
 0x6af   : > { %8424 = vmatprep.subr.bf16.mxu0 %v19205_v53  ;;  %v19418_v53 = vld [vmem:[#allocation13 + $0xb4c] ss:$48 sps:$4 sm:$0xff]  }
 0x6b0   : > { %8217 = vmatpush1.bf16.msra.mxu1 %v19380_v34  ;;  %v19241_v34 = vld [vmem:[#allocation13 + $0x84] ss:$48 sps:$4 sm:$0xff]  }
 0x6b1   : > { %8218 = vmatprep.subr.bf16.mxu1 %v19388_v11  ;;  %v19239_v11 = vld [vmem:[#allocation13 + $0x80] ss:$48 sps:$4 sm:$0xff]  }
 0x6b2   : > { %8425 = vmatpush1.bf16.msra.mxu0 %v19203_v21  ;;  %v19416_v21 = vld [vmem:[#allocation13 + $0xb48] ss:$48 sps:$4 sm:$0xff]  }
 0x6b3   : > { %8426 = vmatprep.subr.bf16.mxu0 %v19208_v20  ;;  %v19424_v20 = vld [vmem:[#allocation13 + $0xbac] ss:$48 sps:$4 sm:$0xff]  }
 0x6b4   : > { %8219 = vmatpush1.bf16.msra.mxu1 %v19386_v40  ;;  %v19247_v40 = vld [vmem:[#allocation13 + $0xe4] ss:$48 sps:$4 sm:$0xff]  }
 0x6b5   : > { %8220 = vmatprep.subr.bf16.mxu1 %v19394_v15  ;;  %v19442_v15 = vld [vmem:[#allocation13 + $0xccc] ss:$48 sps:$4 sm:$0xff]  }
 0x6b6   : > { %8427 = vmatpush1.bf16.msra.mxu0 %v19206_v58  ;;  %v19422_v58 = vld [vmem:[#allocation13 + $0xba8] ss:$48 sps:$4 sm:$0xff]  }
 0x6b7   : > { %8428 = vmatprep.subr.bf16.mxu0 %v19211_v26  ;;  %v19430_v26 = vld [vmem:[#allocation13 + $0xc0c] ss:$48 sps:$4 sm:$0xff]  }
 0x6b8   : > { %8221 = vmatpush1.bf16.msra.mxu1 %v19392_v7  ;;  %v19251_v7 = vld [vmem:[#allocation13 + $0x140] ss:$48 sps:$4 sm:$0xff]  }
 0x6b9   : > { %8222 = vmatprep.subr.bf16.mxu1 %v19400_v17  ;;  %v19446_v17 = vld [vmem:[#allocation13 + $0xd28] ss:$48 sps:$4 sm:$0xff]  }
 0x6ba   : > { %8429 = vmatpush1.bf16.msra.mxu0 %v19209_v31  ;;  %v19428_v31 = vld [vmem:[#allocation13 + $0xc08] ss:$48 sps:$4 sm:$0xff]  }
 0x6bb   : > { %8430 = vmatprep.subr.bf16.mxu0 %v19214_v36  ;;  %v19436_v36 = vld [vmem:[#allocation13 + $0xc6c] ss:$48 sps:$4 sm:$0xff]  }
 0x6bc   : > { %8223 = vmatpush1.bf16.msra.mxu1 %v19398_v60  ;;  %v22451_v60 = vld [vmem:[%s22333_s3 + $0x14] ss:$24 sps:$4 sm:$0xff]  }
 0x6bd   : > { %8224 = vmatprep.subr.bf16.mxu1 %v19406_v62  ;;  %v19265_v62 = vld [vmem:[#allocation13 + $0x204] ss:$48 sps:$4 sm:$0xff]  }
 0x6be   : > { %8431 = vmatpush1.bf16.msra.mxu0 %v19212_v38  ;;  %v19434_v38 = vld [vmem:[#allocation13 + $0xc68] ss:$48 sps:$4 sm:$0xff]  }
 0x6bf   : > { %8432 = vmatprep.subr.bf16.mxu0 %v19217_v41  ;;  %v22441_v41 = vld [vmem:[%s22333_s3 + $0x3c] ss:$24 sps:$4 sm:$0xff]  }
 0x6c0   : > { %8225 = vmatpush1.bf16.msra.mxu1 %v19404_v25  ;;  %v2564_v25 = vrot.slane %v22401_v22, %v22162_v55 }
 0x6c1   : > { %8226 = vmatprep.subr.bf16.mxu1 %v19412_v4 }
 0x6c2   : > { %8433 = vmatpush1.bf16.msra.mxu0 %v19215_v57  ;;  %v19253_v57 = vld [vmem:[#allocation13 + $0x144] ss:$48 sps:$4 sm:$0xff]  }
 0x6c3   : > { %8434 = vmatprep.subr.bf16.mxu0 %v19220_v33  ;;  %v22447_v33 = vld [vmem:[%s22333_s3 + $0x4] ss:$24 sps:$4 sm:$0xff]  }
 0x6c4   : > { %8227 = vmatpush1.bf16.msra.mxu1 %v19410_v12  ;;  %v19263_v12 = vld [vmem:[#allocation13 + $0x200] ss:$48 sps:$4 sm:$0xff]  }
 0x6c5   : > { %8228 = vmatprep.subr.bf16.mxu1 %v19418_v53 }
 0x6c6   : > { %8435 = vmatpush1.bf16.msra.mxu0 %v19218_v59  ;;  %v19259_v59 = vld [vmem:[#allocation13 + $0x1a4] ss:$48 sps:$4 sm:$0xff]  }
 0x6c7   : > { %8436 = vmatprep.subr.bf16.mxu0 %v19223_v61  ;;  %v19452_v61 = vld [vmem:[#allocation13 + $0xd88] ss:$48 sps:$4 sm:$0xff]  }
 0x6c8   : > { %8229 = vmatpush1.bf16.msra.mxu1 %v19416_v21  ;;  %v19458_v21 = vld [vmem:[#allocation13 + $0xde8] ss:$48 sps:$4 sm:$0xff]  }
 0x6c9   : > { %8230 = vmatprep.subr.bf16.mxu1 %v19424_v20 }
 0x6ca   : > { %8437 = vmatpush1.bf16.msra.mxu0 %v19221_v1  ;;  %v22454_v1 = vld [vmem:[#allocation14] sm:$0xff] }
 0x6cb   : > { %8438 = vmatprep.subr.bf16.mxu0 %v19226_v54  ;;  %v19460_v54 = vld [vmem:[#allocation13 + $0xdec] ss:$48 sps:$4 sm:$0xff]   ;;  %v4995_v20 = vrot.slane %v22454_v1, %v22139_v30 }
 0x6cc   : > { %8231 = vmatpush1.bf16.msra.mxu1 %v19422_v58 }
 0x6cd   : > { %8253 = vmatprep.subr.bf16.mxu1 %v19430_v26 }
 0x6ce   : > { %8439 = vmatpush1.bf16.msra.mxu0 %v19224_v37  ;;  %v2568_v37 = vrot.slane %v22401_v22, %v22165_v56  ;;  %v19466_v22 = vld [vmem:[#allocation13 + $0xe4c] ss:$48 sps:$4 sm:$0xff]  }
 0x6cf   : > { %8440 = vmatprep.subr.bf16.mxu0 %v19229_v35  ;;  %8233 = vmatmul.mubr.bf16.vlgmr.msra.gmra.mrb[16].mxu1 %v22369_v14  ;;  %v19245_v14 = vld [vmem:[#allocation13 + $0xe0] ss:$48 sps:$4 sm:$0xff]   ;;  %v4991_v35 = vrot.slane %v22454_v1, %v22136_v29 }
 0x6d0   : > { %8254 = vmatpush1.bf16.msra.mxu1 %v19428_v31  ;;  %8242 = vmatprep.mubr.bf16.mxu1 %v22441_v41 }
 0x6d1   : > { %8255 = vmatprep.subr.bf16.mxu1 %v19436_v36 }
 0x6d2   : > { %8441 = vmatpush1.bf16.msra.mxu0 %v19227_v28  ;;  %v19271_v28 = vld [vmem:[#allocation13 + $0x264] ss:$48 sps:$4 sm:$0xff]  }
 0x6d3   : > { %8442 = vmatprep.subr.bf16.mxu0 %v19232_v32 }
 0x6d4   : > { %8256 = vmatpush1.bf16.msra.mxu1 %v19434_v38 }
 0x6d5   : > { %8257 = vmatprep.subr.bf16.mxu1 %v19442_v15 }
 0x6d6   : > { %8443 = vmatpush1.bf16.msra.mxu0 %v19230_v8 }
 0x6d7   : > { %8624 = vmatprep.subr.bf16.mxu0 %v19235_v5  ;;  %8243 = vmatmul.mubr.bf16.gmra.mrb[20].mxu1 %v22379_v9  ;;  %v19454_v9 = vld [vmem:[#allocation13 + $0xd8c] ss:$48 sps:$4 sm:$0xff]  }
 0x6d8   : > { %8285 = vmatprep.mubr.bf16.mxu1 %v22451_v60 }
 0x6d9   : > { %8445 = vmatmul.mubr.bf16.vlgmr.msra.gmra.mrb[20].mxu0 %v22387_v46  ;;  %v19440_v46 = vld [vmem:[#allocation13 + $0xcc8] ss:$48 sps:$4 sm:$0xff]  }
 0x6da   : > { %8625 = vmatpush1.bf16.msra.mxu0 %v19233_v2  ;;  %8454 = vmatprep.mubr.bf16.mxu0 %v22390_v47  ;;  %v19448_v47 = vld [vmem:[#allocation13 + $0xd2c] ss:$48 sps:$4 sm:$0xff]  }
 0x6db   : > { %8626 = vmatprep.subr.bf16.mxu0 %v19241_v34  ;;  %8258 = vmatpush1.bf16.msra.mxu1 %v19440_v46  ;;  %v19277_v46 = vld [vmem:[#allocation13 + $0x2c4] ss:$48 sps:$4 sm:$0xff]  }
 0x6dc   : > { %8259 = vmatprep.subr.bf16.mxu1 %v19448_v47 }
 0x6de   : > { %8627 = vmatpush1.bf16.msra.mxu0 %v19239_v11  ;;  %v19269_v11 = vld [vmem:[#allocation13 + $0x260] ss:$48 sps:$4 sm:$0xff]  }
 0x6df   : > { %8628 = vmatprep.subr.bf16.mxu0 %v19247_v40  ;;  %8260 = vmatpush1.bf16.msra.mxu1 %v19446_v17 }
 0x6e0   : > { %8261 = vmatprep.subr.bf16.mxu1 %v19454_v9  ;;  %v19472_v9 = vld [vmem:[#allocation13 + $0xeac] ss:$48 sps:$4 sm:$0xff]  }
 0x6e1   : > { %8455 = vmatmul.mubr.bf16.gmra.mrb[24].mxu0 %v22397_v51  ;;  %v19257_v51 = vld [vmem:[#allocation13 + $0x1a0] ss:$48 sps:$4 sm:$0xff]  }
 0x6e2   : > { %8629 = vmatpush1.bf16.msra.mxu0 %v19245_v14  ;;  %8656 = vmatprep.mubr.bf16.mxu0 %v22447_v33 }
 0x6e3   : > { %8630 = vmatprep.subr.bf16.mxu0 %v19253_v57  ;;  %8262 = vmatpush1.bf16.msra.mxu1 %v19452_v61  ;;  %v19464_v57 = vld [vmem:[#allocation13 + $0xe48] ss:$48 sps:$4 sm:$0xff]   ;;  %v19275_v61 = vld [vmem:[#allocation13 + $0x2c0] ss:$48 sps:$4 sm:$0xff]  }
 0x6e4   : > { %8263 = vmatprep.subr.bf16.mxu1 %v19460_v54 }
 0x6e6   : > { %8631 = vmatpush1.bf16.msra.mxu0 %v19251_v7 }
 0x6e7   : > { %8632 = vmatprep.subr.bf16.mxu0 %v19259_v59  ;;  %8264 = vmatpush1.bf16.msra.mxu1 %v19458_v21  ;;  %v19281_v21 = vld [vmem:[#allocation13 + $0x320] ss:$48 sps:$4 sm:$0xff]  }
 0x6e8   : > { %8265 = vmatprep.subr.bf16.mxu1 %v19466_v22  ;;  %v19484_v22 = vld [vmem:[#allocation13 + $0xf6c] ss:$48 sps:$4 sm:$0xff]  }
 0x6ea   : > { %8633 = vmatpush1.bf16.msra.mxu0 %v19257_v51  ;;  %v4393_v4 = vpop.f32.mrb[12].mxu1 }
 0x6eb   : > { %v4395_v53 = vpop.f32.mrb[13].mxu1  ;;  %8634 = vmatprep.subr.bf16.mxu0 %v19265_v62  ;;  %v17776_v58 = vadd.f32 %v4393_v4, %v2564_v25  ;;  %8266 = vmatpush1.bf16.msra.mxu1 %v19464_v57  ;;  %v19283_v62 = vld [vmem:[#allocation13 + $0x324] ss:$48 sps:$4 sm:$0xff]   ;;  %v19496_v57 = vld [vmem:[#allocation13 + $0x102c] ss:$48 sps:$4 sm:$0xff]  }
 0x6ec   : > { %v8128_v32 = vpop.f32.mrb[12].mxu0  ;;  %v4397_v8 = vpop.f32.mrb[14].mxu1  ;;  %v17777_v31 = vadd.f32 %v4395_v53, %v2568_v37  ;;  %8267 = vmatprep.subr.bf16.mxu1 %v19472_v9  ;;  %v19299_v9 = vld [vmem:[#allocation13 + $0x440] ss:$48 sps:$4 sm:$0xff]  }
 0x6ed   : > { %v8130_v5 = vpop.f32.mrb[13].mxu0  ;;  %v17778_v26 = vadd.f32 %v4397_v8, %v2564_v25  ;;  %v4399_v2 = vpop.f32.mrb[15].mxu1  ;;  %v22464_v38 = vadd.f32 %v8128_v32, %v4991_v35  ;;  %v19470_v25 = vld [vmem:[#allocation13 + $0xea8] ss:$48 sps:$4 sm:$0xff]  }
 0x6ee   : > { %v8132_v34 = vpop.f32.mrb[14].mxu0  ;;  %8635 = vmatpush1.bf16.msra.mxu0 %v19263_v12  ;;  %v17779_v36 = vadd.f32 %v4399_v2, %v2568_v37  ;;  %v22470_v47 = vadd.f32 %v8130_v5, %v4995_v20  ;;  %v19478_v12 = vld [vmem:[#allocation13 + $0xf0c] ss:$48 sps:$4 sm:$0xff]   ;;  %v19476_v5 = vld [vmem:[#allocation13 + $0xf08] ss:$48 sps:$4 sm:$0xff]  }
 0x6ef   : > { %v22466_v40 = vpack.c.bf16 %v17778_v26, %v17776_v58  ;;  %v22468_v15 = vadd.f32 %v8132_v34, %v4991_v35  ;;  %v8134_v14 = vpop.f32.mrb[15].mxu0  ;;  %8636 = vmatprep.subr.bf16.mxu0 %v19271_v28  ;;  %8268 = vmatpush1.bf16.msra.mxu1 %v19470_v25  ;;  %v19289_v58 = vld [vmem:[#allocation13 + $0x384] ss:$48 sps:$4 sm:$0xff]   ;;  %v19287_v34 = vld [vmem:[#allocation13 + $0x380] ss:$48 sps:$4 sm:$0xff]  }
 0x6f0   : > { %v22472_v7 = vpack.c.bf16 %v17779_v36, %v17777_v31  ;;  %v22474_v17 = vadd.f32 %v8134_v14, %v4995_v20  ;;  %8269 = vmatprep.subr.bf16.mxu1 %v19478_v12  ;;  %v19482_v36 = vld [vmem:[#allocation13 + $0xf68] ss:$48 sps:$4 sm:$0xff]   ;;  %v19293_v14 = vld [vmem:[#allocation13 + $0x3e0] ss:$48 sps:$4 sm:$0xff]   ;;  %v19502_v25 = vld [vmem:[#allocation13 + $0x108c] ss:$48 sps:$4 sm:$0xff]  }
 0x6f1   : > { %v8942_v59 = vpack.c.bf16 %v22468_v15, %v22464_v38  ;;  %v19313_v12 = vld [vmem:[#allocation13 + $0x504] ss:$48 sps:$4 sm:$0xff]   ;;  %v19634_v38 = vld [vmem:[#allocation13 + $0xdfc] ss:$48 sps:$4 sm:$0xff]   ;;  %v19632_v15 = vld [vmem:[#allocation13 + $0xdf8] ss:$48 sps:$4 sm:$0xff]  }
 0x6f2   : > { %8637 = vmatpush1.bf16.msra.mxu0 %v19269_v11  ;;  %v19490_v11 = vld [vmem:[#allocation13 + $0xfcc] ss:$48 sps:$4 sm:$0xff]   ;;  %v19644_v31 = vld [vmem:[#allocation13 + $0xf78] ss:$48 sps:$4 sm:$0xff]  }
 0x6f3   : > { %8638 = vmatprep.subr.bf16.mxu0 %v19277_v46  ;;  %8270 = vmatpush1.bf16.msra.mxu1 %v19476_v5  ;;  %v19301_v46 = vld [vmem:[#allocation13 + $0x444] ss:$48 sps:$4 sm:$0xff]   ;;  %v19514_v5 = vld [vmem:[#allocation13 + $0x114c] ss:$48 sps:$4 sm:$0xff]  }
 0x6f4   : > { %v8138_v54 = vpop.f32.mrb[16].mxu0  ;;  %8271 = vmatprep.subr.bf16.mxu1 %v19484_v22  ;;  %v19317_v22 = vld [vmem:[#allocation13 + $0x560] ss:$48 sps:$4 sm:$0xff]   ;;  %v19670_v2 = vld [vmem:[#allocation13 + $0x8c] ss:$48 sps:$4 sm:$0xff]  }
 0x6f5   : > { %v22480_v4 = vadd.f32 %v8138_v54, %v4991_v35  ;;  %v8140_v37 = vpop.f32.mrb[17].mxu0  ;;  %v19305_v54 = vld [vmem:[#allocation13 + $0x4a0] ss:$48 sps:$4 sm:$0xff]  }
 0x6f6   : > { %v22482_v53 = vadd.f32 %v8140_v37, %v4995_v20  ;;  %v8142_v28 = vpop.f32.mrb[18].mxu0  ;;  %8639 = vmatpush1.bf16.msra.mxu0 %v19275_v61  ;;  %v19494_v61 = vld [vmem:[#allocation13 + $0x1028] ss:$48 sps:$4 sm:$0xff]  }
 0x6f7   : > { %v22484_v32 = vadd.f32 %v8142_v28, %v4991_v35  ;;  %v8144_v8 = vpop.f32.mrb[19].mxu0  ;;  %8640 = vmatprep.subr.bf16.mxu0 %v19283_v62  ;;  %v19295_v35 = vld [vmem:[#allocation13 + $0x3e4] ss:$48 sps:$4 sm:$0xff]   ;;  %8272 = vmatpush1.bf16.msra.mxu1 %v19482_v36  ;;  %v19500_v37 = vld [vmem:[#allocation13 + $0x1088] ss:$48 sps:$4 sm:$0xff]  }
 0x6f8   : > { %v22486_v26 = vadd.f32 %v8144_v8, %v4995_v20  ;;  %v19488_v20 = vld [vmem:[#allocation13 + $0xfc8] ss:$48 sps:$4 sm:$0xff]   ;;  %8273 = vmatprep.subr.bf16.mxu1 %v19490_v11  ;;  %v19307_v62 = vld [vmem:[#allocation13 + $0x4a4] ss:$48 sps:$4 sm:$0xff]   ;;  %v19508_v28 = vld [vmem:[#allocation13 + $0x10ec] ss:$48 sps:$4 sm:$0xff]  }
 0x6f9   : > { %v19506_v8 = vld [vmem:[#allocation13 + $0x10e8] ss:$48 sps:$4 sm:$0xff]   ;;  %v19325_v36 = vld [vmem:[#allocation13 + $0x5c4] ss:$48 sps:$4 sm:$0xff]   ;;  %v19323_v11 = vld [vmem:[#allocation13 + $0x5c0] ss:$48 sps:$4 sm:$0xff]  }
 0x6fa   : > { %8641 = vmatpush1.bf16.msra.mxu0 %v19281_v21  ;;  %v19311_v21 = vld [vmem:[#allocation13 + $0x500] ss:$48 sps:$4 sm:$0xff]  }
 0x6fb   : > { %8642 = vmatprep.subr.bf16.mxu0 %v19289_v58  ;;  %8274 = vmatpush1.bf16.msra.mxu1 %v19488_v20  ;;  %v19319_v58 = vld [vmem:[#allocation13 + $0x564] ss:$48 sps:$4 sm:$0xff]  }
 0x6fc   : > { %8275 = vmatprep.subr.bf16.mxu1 %v19496_v57  ;;  %v19331_v20 = vld [vmem:[#allocation13 + $0x624] ss:$48 sps:$4 sm:$0xff]   ;;  %v19329_v57 = vld [vmem:[#allocation13 + $0x620] ss:$48 sps:$4 sm:$0xff]  }
 0x6fe   : > { %8643 = vmatpush1.bf16.msra.mxu0 %v19287_v34  ;;  %v19512_v34 = vld [vmem:[#allocation13 + $0x1148] ss:$48 sps:$4 sm:$0xff]  }
 0x6ff   : > { %8644 = vmatprep.subr.bf16.mxu0 %v19295_v35  ;;  %8276 = vmatpush1.bf16.msra.mxu1 %v19494_v61  ;;  %v19520_v35 = vld [vmem:[#allocation13 + $0x11ac] ss:$48 sps:$4 sm:$0xff]   ;;  %v19337_v61 = vld [vmem:[#allocation13 + $0x684] ss:$48 sps:$4 sm:$0xff]  }
 0x700   : > { %8277 = vmatprep.subr.bf16.mxu1 %v19502_v25  ;;  %v22497_v25 = vld [vmem:[%s22333_s3] ss:$24 sps:$4 sm:$0xff]  }
 0x702   : > { %8645 = vmatpush1.bf16.msra.mxu0 %v19293_v14  ;;  %v19518_v14 = vld [vmem:[#allocation13 + $0x11a8] ss:$48 sps:$4 sm:$0xff]  }
 0x703   : > { %8646 = vmatprep.subr.bf16.mxu0 %v19301_v46  ;;  %8278 = vmatpush1.bf16.msra.mxu1 %v19500_v37  ;;  %v19523_v46 = vld [vmem:[#allocation13 + $0x1c] ss:$48 sps:$4 sm:$0xff]   ;;  %v19335_v37 = vld [vmem:[#allocation13 + $0x680] ss:$48 sps:$4 sm:$0xff]  }
 0x704   : > { %8279 = vmatprep.subr.bf16.mxu1 %v19508_v28  ;;  %v19343_v28 = vld [vmem:[#allocation13 + $0x6e4] ss:$48 sps:$4 sm:$0xff]  }
 0x706   : > { %8647 = vmatpush1.bf16.msra.mxu0 %v19299_v9  ;;  %v19521_v9 = vld [vmem:[#allocation13 + $0x18] ss:$48 sps:$4 sm:$0xff]  }
 0x707   : > { %8648 = vmatprep.subr.bf16.mxu0 %v19307_v62  ;;  %8280 = vmatpush1.bf16.msra.mxu1 %v19506_v8  ;;  %v22493_v62 = vld [vmem:[%s22333_s3 + $0x10] ss:$24 sps:$4 sm:$0xff]   ;;  %v19529_v8 = vld [vmem:[#allocation13 + $0xdc] ss:$48 sps:$4 sm:$0xff]  }
 0x708   : > { %8281 = vmatprep.subr.bf16.mxu1 %v19514_v5  ;;  %v19527_v5 = vld [vmem:[#allocation13 + $0xd8] ss:$48 sps:$4 sm:$0xff]  }
 0x70a   : > { %8649 = vmatpush1.bf16.msra.mxu0 %v19305_v54  ;;  %v19526_v54 = vld [vmem:[#allocation13 + $0x7c] ss:$48 sps:$4 sm:$0xff]  }
 0x70b   : > { %8650 = vmatprep.subr.bf16.mxu0 %v19313_v12  ;;  %8282 = vmatpush1.bf16.msra.mxu1 %v19512_v34  ;;  %v19524_v12 = vld [vmem:[#allocation13 + $0x78] ss:$48 sps:$4 sm:$0xff]  }
 0x70c   : > { %8283 = vmatprep.subr.bf16.mxu1 %v19520_v35  ;;  %v22506_v34 = vld [vmem:[%s22333_s3 + $0x40] ss:$24 sps:$4 sm:$0xff]  }
 0x70d   : > { %v19530_v35 = vld [vmem:[#allocation13 + $0x138] ss:$48 sps:$4 sm:$0xff]  }
 0x70e   : > { %8651 = vmatpush1.bf16.msra.mxu0 %v19311_v21  ;;  %v22502_v21 = vld [vmem:[%s22333_s3 + $0x44] ss:$24 sps:$4 sm:$0xff]  }
 0x70f   : > { %8652 = vmatprep.subr.bf16.mxu0 %v19319_v58  ;;  %8284 = vmatpush1.bf16.msra.mxu1 %v19518_v14  ;;  %v19341_v58 = vld [vmem:[#allocation13 + $0x6e0] ss:$48 sps:$4 sm:$0xff]  }
 0x710   : > { %8465 = vmatprep.subr.bf16.mxu1 %v19523_v46  ;;  %v19347_v14 = vld [vmem:[#allocation13 + $0x740] ss:$48 sps:$4 sm:$0xff]   ;;  %v19535_v46 = vld [vmem:[#allocation13 + $0x19c] ss:$48 sps:$4 sm:$0xff]  }
 0x712   : > { %8653 = vmatpush1.bf16.msra.mxu0 %v19317_v22  ;;  %8286 = vmatmul.mubr.bf16.vlgmr.msra.gmra.mrb[16].mxu1 %v22493_v62  ;;  %v19349_v22 = vld [vmem:[#allocation13 + $0x744] ss:$48 sps:$4 sm:$0xff]  }
 0x713   : > { %8654 = vmatprep.subr.bf16.mxu0 %v19325_v36  ;;  %8466 = vmatpush1.bf16.msra.mxu1 %v19521_v9  ;;  %v22510_v36 = vld [vmem:[%s22333_s3 + $0x30] ss:$24 sps:$4 sm:$0xff]  }
 0x714   : > { %8467 = vmatprep.subr.bf16.mxu1 %v19526_v54  ;;  %8295 = vmatprep.mubr.bf16.mxu1 %v22502_v21  ;;  %v19533_v9 = vld [vmem:[#allocation13 + $0x198] ss:$48 sps:$4 sm:$0xff]   ;;  %v19538_v54 = vld [vmem:[#allocation13 + $0x1fc] ss:$48 sps:$4 sm:$0xff]  }
 0x716   : > { %8655 = vmatpush1.bf16.msra.mxu0 %v19323_v11  ;;  %v19532_v11 = vld [vmem:[#allocation13 + $0x13c] ss:$48 sps:$4 sm:$0xff]  }
 0x717   : > { %8677 = vmatprep.subr.bf16.mxu0 %v19331_v20  ;;  %8468 = vmatpush1.bf16.msra.mxu1 %v19524_v12  ;;  %v19355_v20 = vld [vmem:[#allocation13 + $0x7a4] ss:$48 sps:$4 sm:$0xff]   ;;  %v19536_v12 = vld [vmem:[#allocation13 + $0x1f8] ss:$48 sps:$4 sm:$0xff]  }
 0x718   : > { %8469 = vmatprep.subr.bf16.mxu1 %v19529_v8  ;;  %v19541_v8 = vld [vmem:[#allocation13 + $0x25c] ss:$48 sps:$4 sm:$0xff]  }
 0x719   : > { %8657 = vmatmul.mubr.bf16.vlgmr.msra.gmra.mrb[28].mxu0 %v22497_v25 }
 0x71a   : > { %8678 = vmatpush1.bf16.msra.mxu0 %v19329_v57  ;;  %8666 = vmatprep.mubr.bf16.mxu0 %v22427_v48  ;;  %v19353_v57 = vld [vmem:[#allocation13 + $0x7a0] ss:$48 sps:$4 sm:$0xff]  }
 0x71b   : > { %8679 = vmatprep.subr.bf16.mxu0 %v19337_v61  ;;  %8296 = vmatmul.mubr.bf16.gmra.mrb[20].mxu1 %v22506_v34  ;;  %v19361_v61 = vld [vmem:[#allocation13 + $0x804] ss:$48 sps:$4 sm:$0xff]  }
 0x71c   : > { %8470 = vmatpush1.bf16.msra.mxu1 %v19527_v5  ;;  %8497 = vmatprep.mubr.bf16.mxu1 %v22447_v33  ;;  %v19365_v33 = vld [vmem:[#allocation13 + $0x860] ss:$48 sps:$4 sm:$0xff]   ;;  %v19373_v5 = vld [vmem:[#allocation13 + $0x8c4] ss:$48 sps:$4 sm:$0xff]  }
 0x71d   : > { %8471 = vmatprep.subr.bf16.mxu1 %v19532_v11  ;;  %v19542_v11 = vld [vmem:[#allocation13 + $0x2b8] ss:$48 sps:$4 sm:$0xff]  }
 0x71e   : > { %8680 = vmatpush1.bf16.msra.mxu0 %v19335_v37  ;;  %v19359_v37 = vld [vmem:[#allocation13 + $0x800] ss:$48 sps:$4 sm:$0xff]  }
 0x71f   : > { %8681 = vmatprep.subr.bf16.mxu0 %v19343_v28  ;;  %v19367_v28 = vld [vmem:[#allocation13 + $0x864] ss:$48 sps:$4 sm:$0xff]  }
 0x720   : > { %8472 = vmatpush1.bf16.msra.mxu1 %v19530_v35  ;;  %v19371_v35 = vld [vmem:[#allocation13 + $0x8c0] ss:$48 sps:$4 sm:$0xff]  }
 0x721   : > { %8667 = vmatmul.mubr.bf16.gmra.mrb[32].mxu0 %v22510_v36  ;;  %8473 = vmatprep.subr.bf16.mxu1 %v19535_v46  ;;  %v19377_v46 = vld [vmem:[#allocation13 + $0x920] ss:$48 sps:$4 sm:$0xff]  }
 0x722   : > { %8682 = vmatpush1.bf16.msra.mxu0 %v19341_v58  ;;  %8709 = vmatprep.mubr.bf16.mxu0 %v22434_v63  ;;  %v19539_v58 = vld [vmem:[#allocation13 + $0x258] ss:$48 sps:$4 sm:$0xff]  }
 0x723   : > { %8683 = vmatprep.subr.bf16.mxu0 %v19349_v22  ;;  %v19544_v22 = vld [vmem:[#allocation13 + $0x2bc] ss:$48 sps:$4 sm:$0xff]  }
 0x724   : > { %8474 = vmatpush1.bf16.msra.mxu1 %v19533_v9  ;;  %v19385_v9 = vld [vmem:[#allocation13 + $0x984] ss:$48 sps:$4 sm:$0xff]  }
 0x725   : > { %8475 = vmatprep.subr.bf16.mxu1 %v19538_v54  ;;  %v19383_v54 = vld [vmem:[#allocation13 + $0x980] ss:$48 sps:$4 sm:$0xff]  }
 0x726   : > { %8684 = vmatpush1.bf16.msra.mxu0 %v19347_v14  ;;  %v19379_v14 = vld [vmem:[#allocation13 + $0x924] ss:$48 sps:$4 sm:$0xff]  }
 0x727   : > { %8685 = vmatprep.subr.bf16.mxu0 %v19355_v20  ;;  %v19547_v20 = vld [vmem:[#allocation13 + $0x31c] ss:$48 sps:$4 sm:$0xff]  }
 0x728   : > { %8476 = vmatpush1.bf16.msra.mxu1 %v19536_v12  ;;  %v19553_v12 = vld [vmem:[#allocation13 + $0x3dc] ss:$48 sps:$4 sm:$0xff]  }
 0x729   : > { %8477 = vmatprep.subr.bf16.mxu1 %v19541_v8  ;;  %v19551_v8 = vld [vmem:[#allocation13 + $0x3d8] ss:$48 sps:$4 sm:$0xff]  }
 0x72a   : > { %8686 = vmatpush1.bf16.msra.mxu0 %v19353_v57  ;;  %v19545_v57 = vld [vmem:[#allocation13 + $0x318] ss:$48 sps:$4 sm:$0xff]  }
 0x72b   : > { %8687 = vmatprep.subr.bf16.mxu0 %v19361_v61  ;;  %v19550_v61 = vld [vmem:[#allocation13 + $0x37c] ss:$48 sps:$4 sm:$0xff]  }
 0x72c   : > { %8478 = vmatpush1.bf16.msra.mxu1 %v19539_v58  ;;  %v19556_v58 = vld [vmem:[#allocation13 + $0x43c] ss:$48 sps:$4 sm:$0xff]  }
 0x72d   : > { %8479 = vmatprep.subr.bf16.mxu1 %v19544_v22  ;;  %v19554_v22 = vld [vmem:[#allocation13 + $0x438] ss:$48 sps:$4 sm:$0xff]  }
 0x72e   : > { %8688 = vmatpush1.bf16.msra.mxu0 %v19359_v37  ;;  %v19548_v37 = vld [vmem:[#allocation13 + $0x378] ss:$48 sps:$4 sm:$0xff]  }
 0x72f   : > { %8689 = vmatprep.subr.bf16.mxu0 %v19367_v28  ;;  %v19391_v28 = vld [vmem:[#allocation13 + $0x9e4] ss:$48 sps:$4 sm:$0xff]  }
 0x730   : > { %8480 = vmatpush1.bf16.msra.mxu1 %v19542_v11  ;;  %v19559_v11 = vld [vmem:[#allocation13 + $0x49c] ss:$48 sps:$4 sm:$0xff]  }
 0x731   : > { %8481 = vmatprep.subr.bf16.mxu1 %v19547_v20  ;;  %v19557_v20 = vld [vmem:[#allocation13 + $0x498] ss:$48 sps:$4 sm:$0xff]  }
 0x732   : > { %8690 = vmatpush1.bf16.msra.mxu0 %v19365_v33  ;;  %v19389_v33 = vld [vmem:[#allocation13 + $0x9e0] ss:$48 sps:$4 sm:$0xff]  }
 0x733   : > { %8691 = vmatprep.subr.bf16.mxu0 %v19373_v5  ;;  %v19397_v5 = vld [vmem:[#allocation13 + $0xa44] ss:$48 sps:$4 sm:$0xff]  }
 0x734   : > { %8482 = vmatpush1.bf16.msra.mxu1 %v19545_v57  ;;  %v19562_v57 = vld [vmem:[#allocation13 + $0x4fc] ss:$48 sps:$4 sm:$0xff]  }
 0x735   : > { %8483 = vmatprep.subr.bf16.mxu1 %v19550_v61  ;;  %v19560_v61 = vld [vmem:[#allocation13 + $0x4f8] ss:$48 sps:$4 sm:$0xff]  }
 0x736   : > { %8692 = vmatpush1.bf16.msra.mxu0 %v19371_v35  ;;  %v19395_v35 = vld [vmem:[#allocation13 + $0xa40] ss:$48 sps:$4 sm:$0xff]  }
 0x737   : > { %8693 = vmatprep.subr.bf16.mxu0 %v19379_v14  ;;  %v19403_v14 = vld [vmem:[#allocation13 + $0xaa4] ss:$48 sps:$4 sm:$0xff]  }
 0x738   : > { %8484 = vmatpush1.bf16.msra.mxu1 %v19548_v37  ;;  %v19565_v37 = vld [vmem:[#allocation13 + $0x55c] ss:$48 sps:$4 sm:$0xff]  }
 0x739   : > { %8485 = vmatprep.subr.bf16.mxu1 %v19553_v12  ;;  %v19415_v12 = vld [vmem:[#allocation13 + $0xb64] ss:$48 sps:$4 sm:$0xff]  }
 0x73a   : > { %8694 = vmatpush1.bf16.msra.mxu0 %v19377_v46  ;;  %v19401_v46 = vld [vmem:[#allocation13 + $0xaa0] ss:$48 sps:$4 sm:$0xff]  }
 0x73b   : > { %8695 = vmatprep.subr.bf16.mxu0 %v19385_v9  ;;  %v19409_v9 = vld [vmem:[#allocation13 + $0xb04] ss:$48 sps:$4 sm:$0xff]  }
 0x73c   : > { %8486 = vmatpush1.bf16.msra.mxu1 %v19551_v8  ;;  %v19413_v8 = vld [vmem:[#allocation13 + $0xb60] ss:$48 sps:$4 sm:$0xff]  }
 0x73d   : > { %8487 = vmatprep.subr.bf16.mxu1 %v19556_v58  ;;  %v19421_v58 = vld [vmem:[#allocation13 + $0xbc4] ss:$48 sps:$4 sm:$0xff]  }
 0x73e   : > { %8696 = vmatpush1.bf16.msra.mxu0 %v19383_v54  ;;  %v19407_v54 = vld [vmem:[#allocation13 + $0xb00] ss:$48 sps:$4 sm:$0xff]  }
 0x73f   : > { %8697 = vmatprep.subr.bf16.mxu0 %v19391_v28  ;;  %v19563_v28 = vld [vmem:[#allocation13 + $0x558] ss:$48 sps:$4 sm:$0xff]  }
 0x740   : > { %8488 = vmatpush1.bf16.msra.mxu1 %v19554_v22  ;;  %v19419_v22 = vld [vmem:[#allocation13 + $0xbc0] ss:$48 sps:$4 sm:$0xff]  }
 0x741   : > { %8489 = vmatprep.subr.bf16.mxu1 %v19559_v11  ;;  %v19427_v11 = vld [vmem:[#allocation13 + $0xc24] ss:$48 sps:$4 sm:$0xff]  }
 0x742   : > { %8698 = vmatpush1.bf16.msra.mxu0 %v19389_v33  ;;  %v19568_v33 = vld [vmem:[#allocation13 + $0x5bc] ss:$48 sps:$4 sm:$0xff]  }
 0x743   : > { %8699 = vmatprep.subr.bf16.mxu0 %v19397_v5  ;;  %v19566_v5 = vld [vmem:[#allocation13 + $0x5b8] ss:$48 sps:$4 sm:$0xff]  }
 0x744   : > { %8490 = vmatpush1.bf16.msra.mxu1 %v19557_v20  ;;  %v19425_v20 = vld [vmem:[#allocation13 + $0xc20] ss:$48 sps:$4 sm:$0xff]  }
 0x745   : > { %8491 = vmatprep.subr.bf16.mxu1 %v19562_v57  ;;  %v19574_v57 = vld [vmem:[#allocation13 + $0x67c] ss:$48 sps:$4 sm:$0xff]  }
 0x746   : > { %8700 = vmatpush1.bf16.msra.mxu0 %v19395_v35  ;;  %v19571_v35 = vld [vmem:[#allocation13 + $0x61c] ss:$48 sps:$4 sm:$0xff]  }
 0x747   : > { %8701 = vmatprep.subr.bf16.mxu0 %v19403_v14  ;;  %v19569_v14 = vld [vmem:[#allocation13 + $0x618] ss:$48 sps:$4 sm:$0xff]  }
 0x748   : > { %8492 = vmatpush1.bf16.msra.mxu1 %v19560_v61  ;;  %v19572_v61 = vld [vmem:[#allocation13 + $0x678] ss:$48 sps:$4 sm:$0xff]  }
 0x749   : > { %8493 = vmatprep.subr.bf16.mxu1 %v19565_v37  ;;  %v19577_v37 = vld [vmem:[#allocation13 + $0x6dc] ss:$48 sps:$4 sm:$0xff]  }
 0x74a   : > { %8702 = vmatpush1.bf16.msra.mxu0 %v19401_v46  ;;  %v19433_v46 = vld [vmem:[#allocation13 + $0xc84] ss:$48 sps:$4 sm:$0xff]  }
 0x74b   : > { %8703 = vmatprep.subr.bf16.mxu0 %v19409_v9  ;;  %v22517_v9 = vld [vmem:[%s22333_s3 + $0x8] ss:$24 sps:$4 sm:$0xff]  }
 0x74c   : > { %8494 = vmatpush1.bf16.msra.mxu1 %v19563_v28  ;;  %v19575_v28 = vld [vmem:[#allocation13 + $0x6d8] ss:$48 sps:$4 sm:$0xff]  }
 0x74d   : > { %8495 = vmatprep.subr.bf16.mxu1 %v19568_v33  ;;  %v19445_v33 = vld [vmem:[#allocation13 + $0xd44] ss:$48 sps:$4 sm:$0xff]  }
 0x74e   : > { %8704 = vmatpush1.bf16.msra.mxu0 %v19407_v54  ;;  %v19431_v54 = vld [vmem:[#allocation13 + $0xc80] ss:$48 sps:$4 sm:$0xff]  }
 0x74f   : > { %8705 = vmatprep.subr.bf16.mxu0 %v19415_v12  ;;  %v19439_v12 = vld [vmem:[#allocation13 + $0xce4] ss:$48 sps:$4 sm:$0xff]  }
 0x750   : > { %8496 = vmatpush1.bf16.msra.mxu1 %v19566_v5  ;;  %v22524_v5 = vld [vmem:[%s22333_s3 + $0x38] ss:$24 sps:$4 sm:$0xff]  }
 0x751   : > { %8518 = vmatprep.subr.bf16.mxu1 %v19571_v35  ;;  %v19443_v35 = vld [vmem:[#allocation13 + $0xd40] ss:$48 sps:$4 sm:$0xff]  }
 0x752   : > { %8706 = vmatpush1.bf16.msra.mxu0 %v19413_v8  ;;  %v19437_v8 = vld [vmem:[#allocation13 + $0xce0] ss:$48 sps:$4 sm:$0xff]  }
 0x753   : > { %8707 = vmatprep.subr.bf16.mxu0 %v19421_v58  ;;  %8498 = vmatmul.mubr.bf16.vlgmr.msra.gmra.mrb[24].mxu1 %v22497_v25  ;;  %v19580_v58 = vld [vmem:[#allocation13 + $0x73c] ss:$48 sps:$4 sm:$0xff]  }
 0x754   : > { %8519 = vmatpush1.bf16.msra.mxu1 %v19569_v14  ;;  %8507 = vmatprep.mubr.bf16.mxu1 %v22427_v48  ;;  %v19583_v48 = vld [vmem:[#allocation13 + $0x79c] ss:$48 sps:$4 sm:$0xff]   ;;  %v19581_v14 = vld [vmem:[#allocation13 + $0x798] ss:$48 sps:$4 sm:$0xff]  }
 0x755   : > { %8520 = vmatprep.subr.bf16.mxu1 %v19574_v57  ;;  %v19457_v57 = vld [vmem:[#allocation13 + $0xe04] ss:$48 sps:$4 sm:$0xff]  }
 0x756   : > { %8708 = vmatpush1.bf16.msra.mxu0 %v19419_v22  ;;  %v19578_v22 = vld [vmem:[#allocation13 + $0x738] ss:$48 sps:$4 sm:$0xff]  }
 0x757   : > { %8730 = vmatprep.subr.bf16.mxu0 %v19427_v11  ;;  %v19451_v11 = vld [vmem:[#allocation13 + $0xda4] ss:$48 sps:$4 sm:$0xff]  }
 0x758   : > { %8521 = vmatpush1.bf16.msra.mxu1 %v19572_v61  ;;  %v19584_v61 = vld [vmem:[#allocation13 + $0x7f8] ss:$48 sps:$4 sm:$0xff]  }
 0x759   : > { %8710 = vmatmul.mubr.bf16.vlgmr.msra.gmra.mrb[28].mxu0 %v22517_v9  ;;  %8522 = vmatprep.subr.bf16.mxu1 %v19577_v37  ;;  %v19589_v37 = vld [vmem:[#allocation13 + $0x85c] ss:$48 sps:$4 sm:$0xff]  }
 0x75a   : > { %8731 = vmatpush1.bf16.msra.mxu0 %v19425_v20  ;;  %8719 = vmatprep.mubr.bf16.mxu0 %v22441_v41  ;;  %v19449_v20 = vld [vmem:[#allocation13 + $0xda0] ss:$48 sps:$4 sm:$0xff]  }
 0x75b   : > { %8732 = vmatprep.subr.bf16.mxu0 %v19433_v46  ;;  %8508 = vmatmul.mubr.bf16.gmra.mrb[28].mxu1 %v22510_v36  ;;  %v19586_v46 = vld [vmem:[#allocation13 + $0x7fc] ss:$48 sps:$4 sm:$0xff]  }
 0x75c   : > { %8523 = vmatpush1.bf16.msra.mxu1 %v19575_v28  ;;  %8550 = vmatprep.mubr.bf16.mxu1 %v22434_v63  ;;  %v19587_v28 = vld [vmem:[#allocation13 + $0x858] ss:$48 sps:$4 sm:$0xff]   ;;  %v19461_v63 = vld [vmem:[#allocation13 + $0xe60] ss:$48 sps:$4 sm:$0xff]  }
 0x75d   : > { %8524 = vmatprep.subr.bf16.mxu1 %v19580_v58  ;;  %v19590_v58 = vld [vmem:[#allocation13 + $0x8b8] ss:$48 sps:$4 sm:$0xff]  }
 0x75e   : > { %8733 = vmatpush1.bf16.msra.mxu0 %v19431_v54  ;;  %v19455_v54 = vld [vmem:[#allocation13 + $0xe00] ss:$48 sps:$4 sm:$0xff]  }
 0x75f   : > { %8734 = vmatprep.subr.bf16.mxu0 %v19439_v12  ;;  %v19463_v12 = vld [vmem:[#allocation13 + $0xe64] ss:$48 sps:$4 sm:$0xff]  }
 0x760   : > { %8525 = vmatpush1.bf16.msra.mxu1 %v19578_v22  ;;  %v19467_v22 = vld [vmem:[#allocation13 + $0xec0] ss:$48 sps:$4 sm:$0xff]  }
 0x761   : > { %8720 = vmatmul.mubr.bf16.gmra.mrb[32].mxu0 %v22524_v5  ;;  %8526 = vmatprep.subr.bf16.mxu1 %v19583_v48  ;;  %v19475_v48 = vld [vmem:[#allocation13 + $0xf24] ss:$48 sps:$4 sm:$0xff]  }
 0x762   : > { %8735 = vmatpush1.bf16.msra.mxu0 %v19437_v8  ;;  %8762 = vmatprep.mubr.bf16.mxu0 %v22451_v60  ;;  %v19592_v8 = vld [vmem:[#allocation13 + $0x8bc] ss:$48 sps:$4 sm:$0xff]  }
 0x763   : > { %8736 = vmatprep.subr.bf16.mxu0 %v19445_v33  ;;  %v19469_v33 = vld [vmem:[#allocation13 + $0xec4] ss:$48 sps:$4 sm:$0xff]  }
 0x764   : > { %8527 = vmatpush1.bf16.msra.mxu1 %v19581_v14  ;;  %v19473_v14 = vld [vmem:[#allocation13 + $0xf20] ss:$48 sps:$4 sm:$0xff]  }
 0x765   : > { %8528 = vmatprep.subr.bf16.mxu1 %v19586_v46  ;;  %v19481_v46 = vld [vmem:[#allocation13 + $0xf84] ss:$48 sps:$4 sm:$0xff]  }
 0x766   : > { %8737 = vmatpush1.bf16.msra.mxu0 %v19443_v35  ;;  %v19595_v35 = vld [vmem:[#allocation13 + $0x91c] ss:$48 sps:$4 sm:$0xff]  }
 0x767   : > { %8738 = vmatprep.subr.bf16.mxu0 %v19451_v11  ;;  %v19593_v11 = vld [vmem:[#allocation13 + $0x918] ss:$48 sps:$4 sm:$0xff]  }
 0x768   : > { %8529 = vmatpush1.bf16.msra.mxu1 %v19584_v61  ;;  %v19479_v61 = vld [vmem:[#allocation13 + $0xf80] ss:$48 sps:$4 sm:$0xff]  }
 0x769   : > { %8530 = vmatprep.subr.bf16.mxu1 %v19589_v37  ;;  %v19487_v37 = vld [vmem:[#allocation13 + $0xfe4] ss:$48 sps:$4 sm:$0xff]  }
 0x76a   : > { %8739 = vmatpush1.bf16.msra.mxu0 %v19449_v20  ;;  %v19598_v20 = vld [vmem:[#allocation13 + $0x97c] ss:$48 sps:$4 sm:$0xff]  }
 0x76b   : > { %8740 = vmatprep.subr.bf16.mxu0 %v19457_v57  ;;  %v19596_v57 = vld [vmem:[#allocation13 + $0x978] ss:$48 sps:$4 sm:$0xff]  }
 0x76c   : > { %8531 = vmatpush1.bf16.msra.mxu1 %v19587_v28  ;;  %v19485_v28 = vld [vmem:[#allocation13 + $0xfe0] ss:$48 sps:$4 sm:$0xff]  }
 0x76d   : > { %8532 = vmatprep.subr.bf16.mxu1 %v19592_v8  ;;  %v19493_v8 = vld [vmem:[#allocation13 + $0x1044] ss:$48 sps:$4 sm:$0xff]  }
 0x76e   : > { %8741 = vmatpush1.bf16.msra.mxu0 %v19455_v54  ;;  %v19601_v54 = vld [vmem:[#allocation13 + $0x9dc] ss:$48 sps:$4 sm:$0xff]  }
 0x76f   : > { %8742 = vmatprep.subr.bf16.mxu0 %v19463_v12  ;;  %v19599_v12 = vld [vmem:[#allocation13 + $0x9d8] ss:$48 sps:$4 sm:$0xff]  }
 0x770   : > { %8533 = vmatpush1.bf16.msra.mxu1 %v19590_v58  ;;  %v19491_v58 = vld [vmem:[#allocation13 + $0x1040] ss:$48 sps:$4 sm:$0xff]  }
 0x771   : > { %8534 = vmatprep.subr.bf16.mxu1 %v19595_v35  ;;  %v19499_v35 = vld [vmem:[#allocation13 + $0x10a4] ss:$48 sps:$4 sm:$0xff]  }
 0x772   : > { %8743 = vmatpush1.bf16.msra.mxu0 %v19461_v63  ;;  %v19604_v63 = vld [vmem:[#allocation13 + $0xa3c] ss:$48 sps:$4 sm:$0xff]  }
 0x773   : > { %8744 = vmatprep.subr.bf16.mxu0 %v19469_v33  ;;  %v19602_v33 = vld [vmem:[#allocation13 + $0xa38] ss:$48 sps:$4 sm:$0xff]  }
 0x774   : > { %8535 = vmatpush1.bf16.msra.mxu1 %v19593_v11  ;;  %v19497_v11 = vld [vmem:[#allocation13 + $0x10a0] ss:$48 sps:$4 sm:$0xff]  }
 0x775   : > { %8536 = vmatprep.subr.bf16.mxu1 %v19598_v20  ;;  %v19505_v20 = vld [vmem:[#allocation13 + $0x1104] ss:$48 sps:$4 sm:$0xff]  }
 0x776   : > { %8745 = vmatpush1.bf16.msra.mxu0 %v19467_v22  ;;  %v19607_v22 = vld [vmem:[#allocation13 + $0xa9c] ss:$48 sps:$4 sm:$0xff]  }
 0x777   : > { %8746 = vmatprep.subr.bf16.mxu0 %v19475_v48  ;;  %v19605_v48 = vld [vmem:[#allocation13 + $0xa98] ss:$48 sps:$4 sm:$0xff]  }
 0x778   : > { %8537 = vmatpush1.bf16.msra.mxu1 %v19596_v57  ;;  %v19503_v57 = vld [vmem:[#allocation13 + $0x1100] ss:$48 sps:$4 sm:$0xff]  }
 0x779   : > { %8538 = vmatprep.subr.bf16.mxu1 %v19601_v54  ;;  %v19511_v54 = vld [vmem:[#allocation13 + $0x1164] ss:$48 sps:$4 sm:$0xff]  }
 0x77a   : > { %8747 = vmatpush1.bf16.msra.mxu0 %v19473_v14  ;;  %v19610_v14 = vld [vmem:[#allocation13 + $0xafc] ss:$48 sps:$4 sm:$0xff]  }
 0x77b   : > { %8748 = vmatprep.subr.bf16.mxu0 %v19481_v46  ;;  %v19608_v46 = vld [vmem:[#allocation13 + $0xaf8] ss:$48 sps:$4 sm:$0xff]  }
 0x77c   : > { %8539 = vmatpush1.bf16.msra.mxu1 %v19599_v12  ;;  %v19509_v12 = vld [vmem:[#allocation13 + $0x1160] ss:$48 sps:$4 sm:$0xff]  }
 0x77d   : > { %8540 = vmatprep.subr.bf16.mxu1 %v19604_v63  ;;  %v19517_v63 = vld [vmem:[#allocation13 + $0x11c4] ss:$48 sps:$4 sm:$0xff]  }
 0x77e   : > { %8749 = vmatpush1.bf16.msra.mxu0 %v19479_v61  ;;  %v19613_v61 = vld [vmem:[#allocation13 + $0xb5c] ss:$48 sps:$4 sm:$0xff]  }
 0x77f   : > { %8750 = vmatprep.subr.bf16.mxu0 %v19487_v37  ;;  %v19611_v37 = vld [vmem:[#allocation13 + $0xb58] ss:$48 sps:$4 sm:$0xff]  }
 0x780   : > { %8541 = vmatpush1.bf16.msra.mxu1 %v19602_v33  ;;  %v19515_v33 = vld [vmem:[#allocation13 + $0x11c0] ss:$48 sps:$4 sm:$0xff]  }
 0x781   : > { %8542 = vmatprep.subr.bf16.mxu1 %v19607_v22  ;;  %v19617_v22 = vld [vmem:[#allocation13 + $0xc18] ss:$48 sps:$4 sm:$0xff]  }
 0x782   : > { %8751 = vmatpush1.bf16.msra.mxu0 %v19485_v28  ;;  %v19616_v28 = vld [vmem:[#allocation13 + $0xbbc] ss:$48 sps:$4 sm:$0xff]  }
 0x783   : > { %8752 = vmatprep.subr.bf16.mxu0 %v19493_v8  ;;  %v19614_v8 = vld [vmem:[#allocation13 + $0xbb8] ss:$48 sps:$4 sm:$0xff]  }
 0x784   : > { %8543 = vmatpush1.bf16.msra.mxu1 %v19605_v48  ;;  %v23255_v48 = vmov 0.0  }
 0x785   : > { %8544 = vmatprep.subr.bf16.mxu1 %v19610_v14  ;;  %v19625_v14 = vld [vmem:[#allocation13 + $0xcdc] ss:$48 sps:$4 sm:$0xff]  }
 0x786   : > { %8753 = vmatpush1.bf16.msra.mxu0 %v19491_v58  ;;  %v19619_v58 = vld [vmem:[#allocation13 + $0xc1c] ss:$48 sps:$4 sm:$0xff]  }
 0x787   : > { %8754 = vmatprep.subr.bf16.mxu0 %v19499_v35  ;;  %v19622_v35 = vld [vmem:[#allocation13 + $0xc7c] ss:$48 sps:$4 sm:$0xff]  }
 0x788   : > { %8545 = vmatpush1.bf16.msra.mxu1 %v19608_v46  ;;  %v19628_v46 = vld [vmem:[#allocation13 + $0xd3c] ss:$48 sps:$4 sm:$0xff]  }
 0x789   : > { %8546 = vmatprep.subr.bf16.mxu1 %v19613_v61  ;;  %v19629_v61 = vld [vmem:[#allocation13 + $0xd98] ss:$48 sps:$4 sm:$0xff]  }
 0x78a   : > { %8755 = vmatpush1.bf16.msra.mxu0 %v19497_v11  ;;  %v19620_v11 = vld [vmem:[#allocation13 + $0xc78] ss:$48 sps:$4 sm:$0xff]  }
 0x78b   : > { %8756 = vmatprep.subr.bf16.mxu0 %v19505_v20  ;;  %v19623_v20 = vld [vmem:[#allocation13 + $0xcd8] ss:$48 sps:$4 sm:$0xff]  }
 0x78c   : > { %8547 = vmatpush1.bf16.msra.mxu1 %v19611_v37 }
 0x78d   : > { %8548 = vmatprep.subr.bf16.mxu1 %v19616_v28  ;;  %v19635_v28 = vld [vmem:[#allocation13 + $0xe58] ss:$48 sps:$4 sm:$0xff]  }
 0x78e   : > { %8757 = vmatpush1.bf16.msra.mxu0 %v19503_v57  ;;  %v19626_v57 = vld [vmem:[#allocation13 + $0xd38] ss:$48 sps:$4 sm:$0xff]  }
 0x78f   : > { %8758 = vmatprep.subr.bf16.mxu0 %v19511_v54  ;;  %v5007_v54 = vrot.slane %v22454_v1, %v22162_v55 }
 0x790   : > { %8549 = vmatpush1.bf16.msra.mxu1 %v19614_v8  ;;  %v19640_v8 = vld [vmem:[#allocation13 + $0xebc] ss:$48 sps:$4 sm:$0xff]  }
 0x791   : > { %8571 = vmatprep.subr.bf16.mxu1 %v19619_v58 }
 0x792   : > { %8759 = vmatpush1.bf16.msra.mxu0 %v19509_v12 }
 0x793   : > { %8760 = vmatprep.subr.bf16.mxu0 %v19517_v63  ;;  %8551 = vmatmul.mubr.bf16.vlgmr.msra.gmra.mrb[24].mxu1 %v22517_v9 }
 0x794   : > { %8572 = vmatpush1.bf16.msra.mxu1 %v19617_v22  ;;  %8560 = vmatprep.mubr.bf16.mxu1 %v22441_v41  ;;  %v19631_v41 = vld [vmem:[#allocation13 + $0xd9c] ss:$48 sps:$4 sm:$0xff]  }
 0x795   : > { %8573 = vmatprep.subr.bf16.mxu1 %v19622_v35 }
 0x796   : > { %8761 = vmatpush1.bf16.msra.mxu0 %v19515_v33 }
 0x797   : > { %17608 = vmatprep.subr.bf16.mxu0 %v23255_v48 }
 0x798   : > { %8574 = vmatpush1.bf16.msra.mxu1 %v19620_v11 }
 0x799   : > { %8763 = vmatmul.mubr.bf16.vlgmr.msra.gmra.mrb[28].mxu0 %v22493_v62  ;;  %8575 = vmatprep.subr.bf16.mxu1 %v19625_v14  ;;  %v19668_v14 = vld [vmem:[#allocation13 + $0x88] ss:$48 sps:$4 sm:$0xff]  }
 0x79a   : > { %8772 = vmatprep.mubr.bf16.mxu0 %v22502_v21 }
 0x79b   : > { %8561 = vmatmul.mubr.bf16.gmra.mrb[28].mxu1 %v22524_v5 }
 0x79c   : > { %8576 = vmatpush1.bf16.msra.mxu1 %v19623_v20  ;;  %8603 = vmatprep.mubr.bf16.mxu1 %v22451_v60  ;;  %v5011_v60 = vrot.slane %v22454_v1, %v22165_v56  ;;  %v19638_v20 = vld [vmem:[#allocation13 + $0xeb8] ss:$48 sps:$4 sm:$0xff]  }
 0x79d   : > { %8577 = vmatprep.subr.bf16.mxu1 %v19628_v46 }
 0x79f   : > { %17609 = vmatpush3.bf16.xpose.msra.mxu0 %v8942_v59  ;;  %v19637_v59 = vld [vmem:[#allocation13 + $0xe5c] ss:$48 sps:$4 sm:$0xff]  }
 0x7a0   : > { %17614 = vmatprep.subr.bf16.mxu0 %v23255_v48  ;;  %8578 = vmatpush1.bf16.msra.mxu1 %v19626_v57  ;;  %v19643_v57 = vld [vmem:[#allocation13 + $0xf1c] ss:$48 sps:$4 sm:$0xff]  }
 0x7a1   : > { %8773 = vmatmul.mubr.bf16.gmra.mrb[32].mxu0 %v22506_v34  ;;  %8579 = vmatprep.subr.bf16.mxu1 %v19631_v41 }
 0x7a2   : > { %17610 = vmatprep.mubr.msk.bf16.mxu0 %vm21533_vm1, %v23255_v48 }
 0x7a4   : > { %8580 = vmatpush1.bf16.msra.mxu1 %v19629_v61 }
 0x7a5   : > { %8581 = vmatprep.subr.bf16.mxu1 %v19634_v38 }
 0x7a8   : > { %8582 = vmatpush1.bf16.msra.mxu1 %v19632_v15  ;;  %v19641_v15 = vld [vmem:[#allocation13 + $0xf18] ss:$48 sps:$4 sm:$0xff]  }
 0x7a9   : > { %17611 = vmatmul.mubr.bf16.vlgmr.msra.gmra.mrb[36].mxu0 %v22411_v43  ;;  %8583 = vmatprep.subr.bf16.mxu1 %v19637_v59 }
 0x7aa   : > { %17616 = vmatprep.mubr.msk.bf16.mxu0 %vm21533_vm1, %v23255_v48  ;;  %v19676_v48 = vld [vmem:[#allocation13 + $0x14c] ss:$48 sps:$4 sm:$0xff]  }
 0x7ac   : > { %v8446_v37 = vpop.f32.mrb[20].mxu0  ;;  %8584 = vmatpush1.bf16.msra.mxu1 %v19635_v28 }
 0x7ad   : > { %v8448_v12 = vpop.f32.mrb[21].mxu0  ;;  %v22550_v33 = vadd.f32 %v8446_v37, %v5007_v54  ;;  %8585 = vmatprep.subr.bf16.mxu1 %v19640_v8  ;;  %v19661_v8 = vld [vmem:[#allocation13 + $0x115c] ss:$48 sps:$4 sm:$0xff]  }
 0x7ae   : > { %v8450_v63 = vpop.f32.mrb[22].mxu0  ;;  %v22554_v35 = vadd.f32 %v8448_v12, %v5011_v60  ;;  %v19646_v12 = vld [vmem:[#allocation13 + $0xf7c] ss:$48 sps:$4 sm:$0xff]  }
 0x7af   : > { %v22552_v58 = vadd.f32 %v8450_v63, %v5007_v54  ;;  %v8452_v22 = vpop.f32.mrb[23].mxu0 }
 0x7b0   : > { %v22556_v11 = vadd.f32 %v8452_v22, %v5011_v60  ;;  %8586 = vmatpush1.bf16.msra.mxu1 %v19638_v20  ;;  %v19649_v20 = vld [vmem:[#allocation13 + $0xfdc] ss:$48 sps:$4 sm:$0xff]  }
 0x7b1   : > { %8587 = vmatprep.subr.bf16.mxu1 %v19643_v57  ;;  %v19652_v57 = vld [vmem:[#allocation13 + $0x103c] ss:$48 sps:$4 sm:$0xff]  }
 0x7b4   : > { %v8456_v41 = vpop.f32.mrb[24].mxu0  ;;  %8588 = vmatpush1.bf16.msra.mxu1 %v19641_v15  ;;  %v19656_v15 = vld [vmem:[#allocation13 + $0x10f8] ss:$48 sps:$4 sm:$0xff]  }
 0x7b5   : > { %v22562_v61 = vadd.f32 %v8456_v41, %v5007_v54  ;;  %v8458_v38 = vpop.f32.mrb[25].mxu0  ;;  %8589 = vmatprep.subr.bf16.mxu1 %v19646_v12  ;;  %v19659_v12 = vld [vmem:[#allocation13 + $0x1158] ss:$48 sps:$4 sm:$0xff]  }
 0x7b6   : > { %v22564_v59 = vadd.f32 %v8458_v38, %v5011_v60  ;;  %v8460_v37 = vpop.f32.mrb[26].mxu0  ;;  %v19647_v38 = vld [vmem:[#allocation13 + $0xfd8] ss:$48 sps:$4 sm:$0xff]  }
 0x7b7   : > { %v22566_v63 = vadd.f32 %v8460_v37, %v5007_v54  ;;  %v8462_v28 = vpop.f32.mrb[27].mxu0  ;;  %v19650_v54 = vld [vmem:[#allocation13 + $0x1038] ss:$48 sps:$4 sm:$0xff]   ;;  %v19655_v37 = vld [vmem:[#allocation13 + $0x109c] ss:$48 sps:$4 sm:$0xff]  }
 0x7b8   : > { %v22568_v22 = vadd.f32 %v8462_v28, %v5011_v60  ;;  %8590 = vmatpush1.bf16.msra.mxu1 %v19644_v31  ;;  %v19653_v60 = vld [vmem:[#allocation13 + $0x1098] ss:$48 sps:$4 sm:$0xff]   ;;  %v19658_v28 = vld [vmem:[#allocation13 + $0x10fc] ss:$48 sps:$4 sm:$0xff]  }
 0x7b9   : > { %8591 = vmatprep.subr.bf16.mxu1 %v19649_v20  ;;  %v19664_v31 = vld [vmem:[#allocation13 + $0x11bc] ss:$48 sps:$4 sm:$0xff]   ;;  %v19662_v20 = vld [vmem:[#allocation13 + $0x11b8] ss:$48 sps:$4 sm:$0xff]  }
 0x7bc   : > { %8592 = vmatpush1.bf16.msra.mxu1 %v19647_v38  ;;  %v20890_v38 = vld [vmem:[%s22333_s3 + $0x4] ss:$24 sps:$4 sm:$0xff]  }
 0x7bd   : > { %8593 = vmatprep.subr.bf16.mxu1 %v19652_v57 }
 0x7c0   : > { %8594 = vmatpush1.bf16.msra.mxu1 %v19650_v54  ;;  %v4999_v54 = vrot.slane %v22454_v1, %v22152_v50 }
 0x7c1   : > { %8595 = vmatprep.subr.bf16.mxu1 %v19655_v37 }
 0x7c4   : > { %8596 = vmatpush1.bf16.msra.mxu1 %v19653_v60 }
 0x7c5   : > { %8597 = vmatprep.subr.bf16.mxu1 %v19658_v28 }
 0x7c8   : > { %8598 = vmatpush1.bf16.msra.mxu1 %v19656_v15 }
 0x7c9   : > { %8599 = vmatprep.subr.bf16.mxu1 %v19661_v8  ;;  %v5003_v8 = vrot.slane %v22454_v1, %v22156_v52  ;;  %v19667_v1 = vld [vmem:[#allocation13 + $0x2c] ss:$48 sps:$4 sm:$0xff]  }
 0x7cc   : > { %8600 = vmatpush1.bf16.msra.mxu1 %v19659_v12 }
 0x7cd   : > { %8601 = vmatprep.subr.bf16.mxu1 %v19664_v31  ;;  %v19673_v31 = vld [vmem:[#allocation13 + $0xec] ss:$48 sps:$4 sm:$0xff]  }
 0x7d0   : > { %8602 = vmatpush1.bf16.msra.mxu1 %v19662_v20 }
 0x7d1   : > { %8783 = vmatprep.subr.bf16.mxu1 %v19667_v1  ;;  %v19679_v1 = vld [vmem:[#allocation13 + $0x1ac] ss:$48 sps:$4 sm:$0xff]  }
 0x7d3   : > { %8604 = vmatmul.mubr.bf16.vlgmr.msra.gmra.mrb[24].mxu1 %v22493_v62 }
 0x7d4   : > { %8613 = vmatprep.mubr.bf16.mxu1 %v22502_v21 }
 0x7db   : > { %8614 = vmatmul.mubr.bf16.gmra.mrb[28].mxu1 %v22506_v34 }
 0x7dc   : > { %8815 = vmatprep.mubr.bf16.mxu1 %v20890_v38  ;;  %v19665_v38 = vld [vmem:[#allocation13 + $0x28] ss:$48 sps:$4 sm:$0xff]  }
 0x7dd   : > { %8784 = vmatpush1.bf16.msra.mxu1 %v19665_v38  ;;  %v19677_v38 = vld [vmem:[#allocation13 + $0x1a8] ss:$48 sps:$4 sm:$0xff]  }
 0x7de   : > { %8785 = vmatprep.subr.bf16.mxu1 %v19670_v2  ;;  %v19680_v2 = vld [vmem:[#allocation13 + $0x208] ss:$48 sps:$4 sm:$0xff]  }
 0x7e1   : > { %8786 = vmatpush1.bf16.msra.mxu1 %v19668_v14  ;;  %v19686_v14 = vld [vmem:[#allocation13 + $0x2c8] ss:$48 sps:$4 sm:$0xff]  }
 0x7e2   : > { %8787 = vmatprep.subr.bf16.mxu1 %v19673_v31  ;;  %v19691_v31 = vld [vmem:[#allocation13 + $0x32c] ss:$48 sps:$4 sm:$0xff]  }
 0x7e5   : > { %v8287_v57 = vpop.f32.mrb[16].mxu1 }
 0x7e6   : > { %v8289_v37 = vpop.f32.mrb[17].mxu1  ;;  %v22582_v28 = vadd.f32 %v8287_v57, %v4999_v54 }
 0x7e7   : > { %v8291_v60 = vpop.f32.mrb[18].mxu1  ;;  %v22584_v15 = vadd.f32 %v8289_v37, %v5003_v8 }
 0x7e8   : > { %v22586_v62 = vadd.f32 %v8291_v60, %v4999_v54  ;;  %v8293_v21 = vpop.f32.mrb[19].mxu1 }
 0x7e9   : > { %v22588_v12 = vadd.f32 %v8293_v21, %v5003_v8 }
 0x7ee   : > { %v8297_v20 = vpop.f32.mrb[20].mxu1 }
 0x7ef   : > { %v22594_v41 = vadd.f32 %v8297_v20, %v4999_v54  ;;  %v8299_v57 = vpop.f32.mrb[21].mxu1  ;;  %v19688_v20 = vld [vmem:[#allocation13 + $0x2cc] ss:$48 sps:$4 sm:$0xff]  }
 0x7f0   : > { %v22596_v37 = vadd.f32 %v8299_v57, %v5003_v8  ;;  %v8301_v60 = vpop.f32.mrb[22].mxu1  ;;  %v19671_v57 = vld [vmem:[#allocation13 + $0xe8] ss:$48 sps:$4 sm:$0xff]  }
 0x7f1   : > { %v22598_v46 = vadd.f32 %v8301_v60, %v4999_v54  ;;  %v8303_v21 = vpop.f32.mrb[23].mxu1  ;;  %8788 = vmatpush1.bf16.msra.mxu1 %v19671_v57  ;;  %v19674_v54 = vld [vmem:[#allocation13 + $0x148] ss:$48 sps:$4 sm:$0xff]   ;;  %v19685_v60 = vld [vmem:[#allocation13 + $0x26c] ss:$48 sps:$4 sm:$0xff]  }
 0x7f2   : > { %v22600_v34 = vadd.f32 %v8303_v21, %v5003_v8  ;;  %8789 = vmatprep.subr.bf16.mxu1 %v19676_v48  ;;  %v19682_v8 = vld [vmem:[#allocation13 + $0x20c] ss:$48 sps:$4 sm:$0xff]   ;;  %v19683_v21 = vld [vmem:[#allocation13 + $0x268] ss:$48 sps:$4 sm:$0xff]  }
 0x7f3   : > { %v19689_v57 = vld [vmem:[#allocation13 + $0x328] ss:$48 sps:$4 sm:$0xff]   ;;  %v19694_v48 = vld [vmem:[#allocation13 + $0x38c] ss:$48 sps:$4 sm:$0xff]  }
 0x7f5   : > { %8790 = vmatpush1.bf16.msra.mxu1 %v19674_v54  ;;  %v19692_v54 = vld [vmem:[#allocation13 + $0x388] ss:$48 sps:$4 sm:$0xff]  }
 0x7f6   : > { %8791 = vmatprep.subr.bf16.mxu1 %v19679_v1  ;;  %v19697_v1 = vld [vmem:[#allocation13 + $0x3ec] ss:$48 sps:$4 sm:$0xff]  }
 0x7f9   : > { %8792 = vmatpush1.bf16.msra.mxu1 %v19677_v38  ;;  %v19695_v38 = vld [vmem:[#allocation13 + $0x3e8] ss:$48 sps:$4 sm:$0xff]  }
 0x7fa   : > { %8793 = vmatprep.subr.bf16.mxu1 %v19682_v8  ;;  %v19700_v8 = vld [vmem:[#allocation13 + $0x44c] ss:$48 sps:$4 sm:$0xff]  }
 0x7fd   : > { %8794 = vmatpush1.bf16.msra.mxu1 %v19680_v2  ;;  %v19698_v2 = vld [vmem:[#allocation13 + $0x448] ss:$48 sps:$4 sm:$0xff]  }
 0x7fe   : > { %8795 = vmatprep.subr.bf16.mxu1 %v19685_v60  ;;  %v19703_v60 = vld [vmem:[#allocation13 + $0x4ac] ss:$48 sps:$4 sm:$0xff]  }
 0x801   : > { %8796 = vmatpush1.bf16.msra.mxu1 %v19683_v21  ;;  %v19701_v21 = vld [vmem:[#allocation13 + $0x4a8] ss:$48 sps:$4 sm:$0xff]  }
 0x802   : > { %8797 = vmatprep.subr.bf16.mxu1 %v19688_v20  ;;  %v19706_v20 = vld [vmem:[#allocation13 + $0x50c] ss:$48 sps:$4 sm:$0xff]  }
 0x805   : > { %8798 = vmatpush1.bf16.msra.mxu1 %v19686_v14  ;;  %v19704_v14 = vld [vmem:[#allocation13 + $0x508] ss:$48 sps:$4 sm:$0xff]  }
 0x806   : > { %8799 = vmatprep.subr.bf16.mxu1 %v19691_v31  ;;  %v19709_v31 = vld [vmem:[#allocation13 + $0x56c] ss:$48 sps:$4 sm:$0xff]  }
 0x809   : > { %8800 = vmatpush1.bf16.msra.mxu1 %v19689_v57  ;;  %v19707_v57 = vld [vmem:[#allocation13 + $0x568] ss:$48 sps:$4 sm:$0xff]  }
 0x80a   : > { %8801 = vmatprep.subr.bf16.mxu1 %v19694_v48  ;;  %v19712_v48 = vld [vmem:[#allocation13 + $0x5cc] ss:$48 sps:$4 sm:$0xff]  }
 0x80d   : > { %8802 = vmatpush1.bf16.msra.mxu1 %v19692_v54  ;;  %v19710_v54 = vld [vmem:[#allocation13 + $0x5c8] ss:$48 sps:$4 sm:$0xff]  }
 0x80e   : > { %8803 = vmatprep.subr.bf16.mxu1 %v19697_v1  ;;  %v19715_v1 = vld [vmem:[#allocation13 + $0x62c] ss:$48 sps:$4 sm:$0xff]  }
 0x811   : > { %8804 = vmatpush1.bf16.msra.mxu1 %v19695_v38  ;;  %v19713_v38 = vld [vmem:[#allocation13 + $0x628] ss:$48 sps:$4 sm:$0xff]  }
 0x812   : > { %8805 = vmatprep.subr.bf16.mxu1 %v19700_v8  ;;  %v19718_v8 = vld [vmem:[#allocation13 + $0x68c] ss:$48 sps:$4 sm:$0xff]  }
 0x815   : > { %8806 = vmatpush1.bf16.msra.mxu1 %v19698_v2  ;;  %v19716_v2 = vld [vmem:[#allocation13 + $0x688] ss:$48 sps:$4 sm:$0xff]  }
 0x816   : > { %8807 = vmatprep.subr.bf16.mxu1 %v19703_v60  ;;  %v20891_v60 = vld [vmem:[%s22333_s3 + $0x34] ss:$24 sps:$4 sm:$0xff]  }
 0x819   : > { %8808 = vmatpush1.bf16.msra.mxu1 %v19701_v21  ;;  %v19721_v21 = vld [vmem:[#allocation13 + $0x6ec] ss:$48 sps:$4 sm:$0xff]  }
 0x81a   : > { %8809 = vmatprep.subr.bf16.mxu1 %v19706_v20  ;;  %v19719_v20 = vld [vmem:[#allocation13 + $0x6e8] ss:$48 sps:$4 sm:$0xff]  }
 0x81d   : > { %8810 = vmatpush1.bf16.msra.mxu1 %v19704_v14  ;;  %v19724_v14 = vld [vmem:[#allocation13 + $0x74c] ss:$48 sps:$4 sm:$0xff]  }
 0x81e   : > { %8811 = vmatprep.subr.bf16.mxu1 %v19709_v31  ;;  %v19722_v31 = vld [vmem:[#allocation13 + $0x748] ss:$48 sps:$4 sm:$0xff]  }
 0x821   : > { %8812 = vmatpush1.bf16.msra.mxu1 %v19707_v57  ;;  %v20892_v57 = vld [vmem:[%s22333_s3 + $0xc] ss:$24 sps:$4 sm:$0xff]  }
 0x822   : > { %8813 = vmatprep.subr.bf16.mxu1 %v19712_v48  ;;  %v19727_v48 = vld [vmem:[#allocation13 + $0x7ac] ss:$48 sps:$4 sm:$0xff]  }
 0x825   : > { %8814 = vmatpush1.bf16.msra.mxu1 %v19710_v54  ;;  %v19730_v54 = vld [vmem:[#allocation13 + $0x80c] ss:$48 sps:$4 sm:$0xff]  }
 0x826   : > { %8836 = vmatprep.subr.bf16.mxu1 %v19715_v1  ;;  %v19728_v1 = vld [vmem:[#allocation13 + $0x808] ss:$48 sps:$4 sm:$0xff]  }
 0x828   : > { %8816 = vmatmul.mubr.bf16.vlgmr.msra.gmra.mrb[32].mxu1 %v22497_v25  ;;  %v19725_v25 = vld [vmem:[#allocation13 + $0x7a8] ss:$48 sps:$4 sm:$0xff]  }
 0x829   : > { %8837 = vmatpush1.bf16.msra.mxu1 %v19713_v38  ;;  %8825 = vmatprep.mubr.bf16.mxu1 %v20891_v60  ;;  %v19733_v38 = vld [vmem:[#allocation13 + $0x86c] ss:$48 sps:$4 sm:$0xff]   ;;  %v22610_v60 = vld [vmem:[#allocation14 + $0x8] sm:$0xf] }
 0x82a   : > { %8838 = vmatprep.subr.bf16.mxu1 %v19718_v8  ;;  %v19731_v8 = vld [vmem:[#allocation13 + $0x868] ss:$48 sps:$4 sm:$0xff]  }
 0x82d   : > { %8839 = vmatpush1.bf16.msra.mxu1 %v19716_v2  ;;  %v19736_v2 = vld [vmem:[#allocation13 + $0x8cc] ss:$48 sps:$4 sm:$0xff]  }
 0x82e   : > { %8840 = vmatprep.subr.bf16.mxu1 %v19721_v21  ;;  %v5023_v21 = vrot.slane %v22610_v60, %v22136_v29 }
 0x830   : > { %8826 = vmatmul.mubr.bf16.gmra.mrb[36].mxu1 %v22510_v36  ;;  %v19734_v36 = vld [vmem:[#allocation13 + $0x8c8] ss:$48 sps:$4 sm:$0xff]  }
 0x831   : > { %8841 = vmatpush1.bf16.msra.mxu1 %v19719_v20  ;;  %8868 = vmatprep.mubr.bf16.mxu1 %v20892_v57 }
 0x832   : > { %8842 = vmatprep.subr.bf16.mxu1 %v19724_v14  ;;  %v5027_v14 = vrot.slane %v22610_v60, %v22139_v30 }
 0x835   : > { %8843 = vmatpush1.bf16.msra.mxu1 %v19722_v31 }
 0x836   : > { %8844 = vmatprep.subr.bf16.mxu1 %v19727_v48 }
 0x839   : > { %8845 = vmatpush1.bf16.msra.mxu1 %v19725_v25 }
 0x83a   : > { %8846 = vmatprep.subr.bf16.mxu1 %v19730_v54 }
 0x83d   : > { %8847 = vmatpush1.bf16.msra.mxu1 %v19728_v1 }
 0x83e   : > { %8848 = vmatprep.subr.bf16.mxu1 %v19733_v38 }
 0x841   : > { %8849 = vmatpush1.bf16.msra.mxu1 %v19731_v8  ;;  %v19745_v8 = vld [vmem:[#allocation13 + $0x9ec] ss:$48 sps:$4 sm:$0xff]  }
 0x842   : > { %8850 = vmatprep.subr.bf16.mxu1 %v19736_v2 }
 0x845   : > { %8851 = vmatpush1.bf16.msra.mxu1 %v19734_v36 }
 0x86c   : > { %v8764_v20 = vpop.f32.mrb[28].mxu0 }
 0x86d   : > { %v8766_v31 = vpop.f32.mrb[29].mxu0  ;;  %v22616_v48 = vadd.f32 %v8764_v20, %v5023_v21 }
 0x86e   : > { %v8768_v57 = vpop.f32.mrb[30].mxu0  ;;  %v22620_v1 = vadd.f32 %v8766_v31, %v5027_v14 }
 0x86f   : > { %v22618_v25 = vadd.f32 %v8768_v57, %v5023_v21  ;;  %v8770_v54 = vpop.f32.mrb[31].mxu0 }
 0x870   : > { %v22622_v38 = vadd.f32 %v8770_v54, %v5027_v14  ;;  %v19740_v54 = vld [vmem:[#allocation13 + $0x988] ss:$48 sps:$4 sm:$0xff]  }
 0x874   : > { %v8774_v36 = vpop.f32.mrb[32].mxu0 }
 0x875   : > { %v22628_v51 = vadd.f32 %v8774_v36, %v5023_v21  ;;  %v8776_v23 = vpop.f32.mrb[33].mxu0 }
 0x876   : > { %v22630_v45 = vadd.f32 %v8776_v23, %v5027_v14  ;;  %v8778_v20 = vpop.f32.mrb[34].mxu0 }
 0x877   : > { %v22632_v57 = vadd.f32 %v8778_v20, %v5023_v21  ;;  %v8780_v10 = vpop.f32.mrb[35].mxu0  ;;  %v19739_v20 = vld [vmem:[#allocation13 + $0x92c] ss:$48 sps:$4 sm:$0xff]  }
 0x878   : > { %v22634_v31 = vadd.f32 %v8780_v10, %v5027_v14  ;;  %v19737_v10 = vld [vmem:[#allocation13 + $0x928] ss:$48 sps:$4 sm:$0xff]   ;;  %8852 = vmatprep.subr.bf16.mxu1 %v19739_v20  ;;  %v19742_v14 = vld [vmem:[#allocation13 + $0x98c] ss:$48 sps:$4 sm:$0xff]  }
 0x879   : > { %8853 = vmatpush1.bf16.msra.mxu1 %v19737_v10  ;;  %v19755_v20 = vld [vmem:[#allocation13 + $0xb68] ss:$48 sps:$4 sm:$0xff]   ;;  %v19757_v10 = vld [vmem:[#allocation13 + $0xb6c] ss:$48 sps:$4 sm:$0xff]  }
 0x87a   : > { %8854 = vmatprep.subr.bf16.mxu1 %v19742_v14  ;;  %v19760_v14 = vld [vmem:[#allocation13 + $0xbcc] ss:$48 sps:$4 sm:$0xff]  }
 0x87c   : > { %v9000_v13 = vpop.f32.mrb[36].mxu0 }
 0x87d   : > { %v22640_v2 = vmul.f32 0.088388346, %v9000_v13  ;;  %v17612_v36 = vpop.f32.mrb[37].mxu0  ;;  %8855 = vmatpush1.bf16.msra.mxu1 %v19740_v54  ;;  %v19746_v13 = vld [vmem:[#allocation13 + $0xa48] ss:$48 sps:$4 sm:$0xff]   ;;  %v5014_v54 = vsub.s32 6, %v22133_v27 }
 0x87e   : > { %v9003_v19 = vpop.f32.mrb[38].mxu0  ;;  %8856 = vmatprep.subr.bf16.mxu1 %v19745_v8  ;;  %v19748_v36 = vld [vmem:[#allocation13 + $0xa4c] ss:$48 sps:$4 sm:$0xff]   ;;  %v19758_v8 = vld [vmem:[#allocation13 + $0xbc8] ss:$48 sps:$4 sm:$0xff]  }
 0x87f   : > { %v17613_v23 = vpop.f32.mrb[39].mxu0  ;;  %v9008_v21 = vsel %vm9007_vm2, %v22640_v2, -inf  ;;  %v19751_v19 = vld [vmem:[#allocation13 + $0xaac] ss:$48 sps:$4 sm:$0xff]  }
 0x880   : > { %9009 = vmax.xlane.f32.xlu0 %v9008_v21  ;;  %v19749_v23 = vld [vmem:[#allocation13 + $0xaa8] ss:$48 sps:$4 sm:$0xff]   ;;  %v19754_v21 = vld [vmem:[#allocation13 + $0xb0c] ss:$48 sps:$4 sm:$0xff]  }
 0x881   : > { %8857 = vmatpush1.bf16.msra.mxu1 %v19743_v44  ;;  %v19763_v44 = vld [vmem:[#allocation13 + $0xc2c] ss:$48 sps:$4 sm:$0xff]  }
 0x882   : > { %8858 = vmatprep.subr.bf16.mxu1 %v19748_v36  ;;  %v19761_v36 = vld [vmem:[#allocation13 + $0xc28] ss:$48 sps:$4 sm:$0xff]  }
 0x885   : > { %8859 = vmatpush1.bf16.msra.mxu1 %v19746_v13  ;;  %v5018_v13 = vsub.s32 7, %v22133_v27 }
 0x886   : > { %8860 = vmatprep.subr.bf16.mxu1 %v19751_v19  ;;  %v19766_v19 = vld [vmem:[#allocation13 + $0xc8c] ss:$48 sps:$4 sm:$0xff]  }
 0x889   : > { %8861 = vmatpush1.bf16.msra.mxu1 %v19749_v23  ;;  %v20893_v23 = vld [vmem:[#allocation14] sm:$0xff] }
 0x88a   : > { %8862 = vmatprep.subr.bf16.mxu1 %v19754_v21  ;;  %v5015_v21 = vrot.slane %v20893_v23, %v5014_v54  ;;  %v19767_v54 = vld [vmem:[#allocation13 + $0xce8] ss:$48 sps:$4 sm:$0xff]  }
 0x88d   : > { %8863 = vmatpush1.bf16.msra.mxu1 %v19752_v0  ;;  %v5019_v0 = vrot.slane %v20893_v23, %v5018_v13  ;;  %v20895_v23 = vld [vmem:[%s22333_s3 + $0x14] ss:$24 sps:$4 sm:$0xff]  }
 0x88e   : > { %8864 = vmatprep.subr.bf16.mxu1 %v19757_v10  ;;  %v19764_v10 = vld [vmem:[#allocation13 + $0xc88] ss:$48 sps:$4 sm:$0xff]  }
 0x891   : > { %8865 = vmatpush1.bf16.msra.mxu1 %v19755_v20  ;;  %v20894_v20 = vld [vmem:[%s22333_s3 + $0x3c] ss:$24 sps:$4 sm:$0xff]  }
 0x892   : > { %8866 = vmatprep.subr.bf16.mxu1 %v19760_v14  ;;  %v19769_v14 = vld [vmem:[#allocation13 + $0xcec] ss:$48 sps:$4 sm:$0xff]  }
 0x895   : > { %8867 = vmatpush1.bf16.msra.mxu1 %v19758_v8 }
 0x896   : > { %8889 = vmatprep.subr.bf16.mxu1 %v19763_v44 }
 0x898   : > { %8869 = vmatmul.mubr.bf16.vlgmr.msra.gmra.mrb[32].mxu1 %v22517_v9  ;;  %v19772_v9 = vld [vmem:[#allocation13 + $0xd4c] ss:$48 sps:$4 sm:$0xff]  }
 0x899   : > { %8890 = vmatpush1.bf16.msra.mxu1 %v19761_v36  ;;  %8878 = vmatprep.mubr.bf16.mxu1 %v20894_v20 }
 0x89a   : > { %8891 = vmatprep.subr.bf16.mxu1 %v19766_v19 }
 0x89d   : > { %8892 = vmatpush1.bf16.msra.mxu1 %v19764_v10 }
 0x89e   : > { %8893 = vmatprep.subr.bf16.mxu1 %v19769_v14 }
 0x8a0   : > { %8879 = vmatmul.mubr.bf16.gmra.mrb[36].mxu1 %v22524_v5  ;;  %v19778_v5 = vld [vmem:[#allocation13 + $0xe0c] ss:$48 sps:$4 sm:$0xff]  }
 0x8a1   : > { %8894 = vmatpush1.bf16.msra.mxu1 %v19767_v54  ;;  %8921 = vmatprep.mubr.bf16.mxu1 %v20895_v23  ;;  %v19781_v23 = vld [vmem:[#allocation13 + $0xe6c] ss:$48 sps:$4 sm:$0xff]  }
 0x8a2   : > { %8895 = vmatprep.subr.bf16.mxu1 %v19772_v9 }
 0x8a6   : > { %v8605_v56 = vpop.f32.mrb[24].mxu1 }
 0x8a7   : > { %v17804_v55 = vadd.f32 %v8605_v56, %v5015_v21  ;;  %v8607_v3 = vpop.f32.mrb[25].mxu1  ;;  %v19770_v56 = vld [vmem:[#allocation13 + $0xd48] ss:$48 sps:$4 sm:$0xff]  }
 0x8a8   : > { %v22648_v18 = vadd.f32 %v8607_v3, %v5019_v0  ;;  %v8609_v27 = vpop.f32.mrb[26].mxu1  ;;  %v19775_v3 = vld [vmem:[#allocation13 + $0xdac] ss:$48 sps:$4 sm:$0xff]   ;;  %8896 = vmatpush1.bf16.msra.mxu1 %v19770_v56  ;;  %v19782_v56 = vld [vmem:[#allocation13 + $0xec8] ss:$48 sps:$4 sm:$0xff]  }
 0x8a9   : > { %v17806_v8 = vadd.f32 %v8609_v27, %v5015_v21  ;;  %v8611_v44 = vpop.f32.mrb[27].mxu1  ;;  %v23343_v27 = vmov 0.0   ;;  %8897 = vmatprep.subr.bf16.mxu1 %v19775_v3  ;;  %v19785_v3 = vld [vmem:[#allocation13 + $0xf28] ss:$48 sps:$4 sm:$0xff]  }
 0x8aa   : > { %v22650_v24 = vadd.f32 %v8611_v44, %v5019_v0 }
 0x8ab   : > { %v8954_v13 = vpack.c.bf16 %v17806_v8, %v17804_v55  ;;  %v19773_v8 = vld [vmem:[#allocation13 + $0xda8] ss:$48 sps:$4 sm:$0xff]  }
 0x8ac   : > { %8898 = vmatpush1.bf16.msra.mxu1 %v19773_v8  ;;  %v19796_v8 = vld [vmem:[#allocation13 + $0x104c] ss:$48 sps:$4 sm:$0xff]  }
 0x8ad   : > { %17615 = vmatpush3.bf16.msra.mxu0 %v8954_v13  ;;  %8899 = vmatprep.subr.bf16.mxu1 %v19778_v5  ;;  %v19799_v5 = vld [vmem:[#allocation13 + $0x10ac] ss:$48 sps:$4 sm:$0xff]  }
 0x8ae   : > { %v8615_v19 = vpop.f32.mrb[28].mxu1  ;;  %17620 = vmatprep.subr.bf16.mxu0 %v23343_v27 }
 0x8af   : > { %v17808_v10 = vadd.f32 %v8615_v19, %v5015_v21  ;;  %v8617_v20 = vpop.f32.mrb[29].mxu1  ;;  %v19776_v19 = vld [vmem:[#allocation13 + $0xe08] ss:$48 sps:$4 sm:$0xff]  }
 0x8b0   : > { %v22657_v14 = vadd.f32 %v8617_v20, %v5019_v0  ;;  %v8619_v55 = vpop.f32.mrb[30].mxu1  ;;  %8900 = vmatpush1.bf16.msra.mxu1 %v19776_v19  ;;  %v19779_v20 = vld [vmem:[#allocation13 + $0xe68] ss:$48 sps:$4 sm:$0xff]  }
 0x8b1   : > { %v17810_v44 = vadd.f32 %v8619_v55, %v5015_v21  ;;  %v8621_v36 = vpop.f32.mrb[31].mxu1  ;;  %8901 = vmatprep.subr.bf16.mxu1 %v19781_v23  ;;  %v19787_v21 = vld [vmem:[#allocation13 + $0xf2c] ss:$48 sps:$4 sm:$0xff]   ;;  %v19791_v55 = vld [vmem:[#allocation13 + $0xfe8] ss:$48 sps:$4 sm:$0xff]  }
 0x8b2   : > { %v22659_v54 = vadd.f32 %v8621_v36, %v5019_v0  ;;  %v19790_v0 = vld [vmem:[#allocation13 + $0xf8c] ss:$48 sps:$4 sm:$0xff]   ;;  %v19788_v36 = vld [vmem:[#allocation13 + $0xf88] ss:$48 sps:$4 sm:$0xff]  }
 0x8b3   : > { %v8960_v9 = vpack.c.bf16 %v17810_v44, %v17808_v10  ;;  %v19793_v10 = vld [vmem:[#allocation13 + $0xfec] ss:$48 sps:$4 sm:$0xff]   ;;  %v19794_v44 = vld [vmem:[#allocation13 + $0x1048] ss:$48 sps:$4 sm:$0xff]  }
 0x8b4   : > { %v8961_v13 = vpack.c.bf16 %v22659_v54, %v22657_v14  ;;  %8902 = vmatpush1.bf16.msra.mxu1 %v19779_v20  ;;  %v19797_v19 = vld [vmem:[#allocation13 + $0x10a8] ss:$48 sps:$4 sm:$0xff]   ;;  %v19805_v20 = vld [vmem:[#allocation13 + $0x116c] ss:$48 sps:$4 sm:$0xff]   ;;  %v23358_v14 = vpack.c.bf16 %v22632_v57, %v22628_v51  ;;  %v23359_v51 = vpack.c.bf16 %v22634_v31, %v22630_v45 }
 0x8b5   : > { %8903 = vmatprep.subr.bf16.mxu1 %v19784_v39  ;;  %v19802_v39 = vld [vmem:[#allocation13 + $0x110c] ss:$48 sps:$4 sm:$0xff]   ;;  %v19800_v23 = vld [vmem:[#allocation13 + $0x1108] ss:$48 sps:$4 sm:$0xff]  }
 0x8b6   : > { %v19811_v45 = vld [vmem:[#allocation16 + $0x4] ss:$24 sps:$4 sm:$0xff]   ;;  %v19809_v31 = vld [vmem:[#allocation16] ss:$24 sps:$4 sm:$0xff]  }
 0x8b8   : > { %8904 = vmatpush1.bf16.msra.mxu1 %v19782_v56  ;;  %v19803_v56 = vld [vmem:[#allocation13 + $0x1168] ss:$48 sps:$4 sm:$0xff]  }
 0x8b9   : > { %8905 = vmatprep.subr.bf16.mxu1 %v19787_v21  ;;  %v19808_v21 = vld [vmem:[#allocation13 + $0x11cc] ss:$48 sps:$4 sm:$0xff]  }
 0x8bc   : > { %8906 = vmatpush1.bf16.msra.mxu1 %v19785_v3  ;;  %v19806_v3 = vld [vmem:[#allocation13 + $0x11c8] ss:$48 sps:$4 sm:$0xff]  }
 0x8bd   : > { %8907 = vmatprep.subr.bf16.mxu1 %v19790_v0  ;;  %v20896_v0 = vld [vmem:[%s22333_s3 + $0x10] ss:$24 sps:$4 sm:$0xff]  }
 0x8c0   : > { %8908 = vmatpush1.bf16.msra.mxu1 %v19788_v36  ;;  %v20897_v36 = vld [vmem:[%s22333_s3 + $0x44] ss:$24 sps:$4 sm:$0xff]  }
 0x8c1   : > { %8909 = vmatprep.subr.bf16.mxu1 %v19793_v10  ;;  %v20898_v10 = vld [vmem:[%s22333_s3 + $0x40] ss:$24 sps:$4 sm:$0xff]  }
 0x8c4   : > { %8910 = vmatpush1.bf16.msra.mxu1 %v19791_v55 }
 0x8c5   : > { %8911 = vmatprep.subr.bf16.mxu1 %v19796_v8 }
 0x8c8   : > { %8912 = vmatpush1.bf16.msra.mxu1 %v19794_v44 }
 0x8c9   : > { %8913 = vmatprep.subr.bf16.mxu1 %v19799_v5 }
 0x8cc   : > { %8914 = vmatpush1.bf16.msra.mxu1 %v19797_v19 }
 0x8cd   : > { %8915 = vmatprep.subr.bf16.mxu1 %v19802_v39 }
 0x8d0   : > { %8916 = vmatpush1.bf16.msra.mxu1 %v19800_v23 }
 0x8d1   : > { %8917 = vmatprep.subr.bf16.mxu1 %v19805_v20 }
 0x8d4   : > { %8918 = vmatpush1.bf16.msra.mxu1 %v19803_v56  ;;  %v23344_v56 = vpack.c.bf16 %v22474_v17, %v22470_v47 }
 0x8d5   : > { %8919 = vmatprep.subr.bf16.mxu1 %v19808_v21 }
 0x8d8   : > { %8920 = vmatpush1.bf16.msra.mxu1 %v19806_v3 }
 0x8d9   : > { %17686 = vmatprep.subr.bf16.mxu1 %v23343_v27 }
 0x8db   : > { %8922 = vmatmul.mubr.bf16.vlgmr.msra.gmra.mrb[32].mxu1 %v20896_v0 }
 0x8dc   : > { %17687 = vmatpush3.bf16.msra.mxu1 %v8960_v9  ;;  %8931 = vmatprep.mubr.bf16.mxu1 %v20897_v36 }
 0x8dd   : > { %17698 = vmatprep.subr.bf16.mxu1 %v23343_v27 }
 0x8e3   : > { %8932 = vmatmul.mubr.bf16.gmra.mrb[36].mxu1 %v20898_v10 }
 0x8e4   : > { %17688 = vmatprep.mubr.msk.bf16.mxu1 %vm21533_vm1, %v23343_v27 }
 0x90d   : > { %v9010_v55 = vpop.xlane.xlu0 %9009 }
 0x90e   : > { %v9011_v8 = vsub.f32 %v22640_v2, %v9010_v55  ;;  %v23345_v2 = vpack.c.bf16 %v22650_v24, %v22648_v18 }
 0x910   : > { %v9012_v44 = vmul.f32 1.442695, %v9011_v8 }
 0x912   : > { %20821 = vpow2.f32 %v9012_v44 }
 0x91c   : > { %v20822_v5 = vpop.eup %20821 }
 0x91d   : > { %v9014_v19 = vsel %vm9007_vm2, %v20822_v5, 0.0 }
 0x91e   : > { %9015 = vadd.xlane.f32.xlu1 %v9014_v19 }
 0x9ab   : > { %v9016_v39 = vpop.xlane.xlu1 %9015 }
 0x9ac   : > { %20823 = vrcp.f32 %v9016_v39 }
 0x9b6   : > { %v20824_v9 = vpop.eup %20823 }
 0x9b7   : > { %v9018_v23 = vmul.f32 %v20824_v9, %v20822_v5 }
 0x9b9   : > { %v9019_v20 = vpack.c.bf16 %v9018_v23, %v9018_v23 }
 0x9bb   : > { %17617 = vmatmul.mubr.msk.bf16.vlgmr.msra.gmra.mrb[40].mxu0 %vm9007_vm2, %v9019_v20 }
 0x9bc   : > { %17621 = vmatpush3.bf16.xpose.msra.mxu0 %v23344_v56  ;;  %17622 = vmatprep.mubr.msk.bf16.mxu0 %vm21533_vm1, %v23343_v27 }
 0x9bd   : > { %17626 = vmatprep.subr.bf16.mxu0 %v23343_v27 }
 0x9c3   : > { %17623 = vmatmul.mubr.bf16.vlgmr.msra.gmra.mrb[44].mxu0 %v22415_v42 }
 0x9c4   : > { %17627 = vmatpush3.bf16.msra.mxu0 %v23345_v2  ;;  %17628 = vmatprep.mubr.msk.bf16.mxu0 %vm21533_vm1, %v23343_v27  ;;  %v23346_v2 = vpack.c.bf16 %v22586_v62, %v22582_v28 }
 0x9c5   : > { %17632 = vmatprep.subr.bf16.mxu0 %v23343_v27 }
 0xa8e   : > { %v22686_v21 = vpop.f32.mrb[40].mxu0 }
 0xa8f   : > { %v17618_v47 = vpop.f32.mrb[41].mxu0 }
 0xa90   : > { %v9060_v17 = vpop.f32.mrb[42].mxu0  ;;  %v23347_v47 = vpack.c.bf16 %v22618_v25, %v22616_v48 }
 0xa91   : > { %v17619_v3 = vpop.f32.mrb[43].mxu0 }
 0xa96   : > { %v9097_v0 = vpop.f32.mrb[44].mxu0 }
 0xa97   : > { %v9103_v36 = vmul.f32 0.088388346, %v9097_v0  ;;  %v17624_v10 = vpop.f32.mrb[45].mxu0 }
 0xa98   : > { %v9100_v55 = vpop.f32.mrb[46].mxu0 }
 0xa99   : > { %v17625_v8 = vpop.f32.mrb[47].mxu0  ;;  %v9104_v44 = vsel %vm9007_vm2, %v9103_v36, -inf }
 0xa9a   : > { %9105 = vmax.xlane.f32.xlu0 %v9104_v44 }
 0xb27   : > { %v9106_v18 = vpop.xlane.xlu0 %9105 }
 0xb28   : > { %v9107_v24 = vsub.f32 %v9103_v36, %v9106_v18 }
 0xb2a   : > { %v9108_v5 = vmul.f32 1.442695, %v9107_v24 }
 0xb2c   : > { %20825 = vpow2.f32 %v9108_v5 }
 0xb36   : > { %v20826_v19 = vpop.eup %20825 }
 0xb37   : > { %v9110_v39 = vsel %vm9007_vm2, %v20826_v19, 0.0 }
 0xb38   : > { %9111 = vadd.xlane.f32.xlu1 %v9110_v39 }
 0xbc5   : > { %v9112_v9 = vpop.xlane.xlu1 %9111 }
 0xbc6   : > { %20827 = vrcp.f32 %v9112_v9 }
 0xbd0   : > { %v20828_v23 = vpop.eup %20827 }
 0xbd1   : > { %v9114_v20 = vmul.f32 %v20828_v23, %v20826_v19 }
 0xbd3   : > { %v9115_v56 = vpack.c.bf16 %v9114_v20, %v9114_v20  ;;  %v23348_v20 = vpack.c.bf16 %v22588_v12, %v22584_v15 }
 0xbd5   : > { %17629 = vmatmul.mubr.msk.bf16.vlgmr.msra.gmra.mrb[48].mxu0 %vm9007_vm2, %v9115_v56  ;;  %v23349_v56 = vpack.c.bf16 %v22622_v38, %v22620_v1 }
 0xbd6   : > { %17633 = vmatpush3.bf16.xpose.msra.mxu0 %v23346_v2  ;;  %17634 = vmatprep.mubr.msk.bf16.mxu0 %vm21533_vm1, %v23343_v27 }
 0xbd7   : > { %17638 = vmatprep.subr.bf16.mxu0 %v23343_v27 }
 0xbdd   : > { %17635 = vmatmul.mubr.bf16.vlgmr.msra.gmra.mrb[52].mxu0 %v22413_v49 }
 0xbde   : > { %17639 = vmatpush3.bf16.msra.mxu0 %v23347_v47  ;;  %17640 = vmatprep.mubr.msk.bf16.mxu0 %vm21533_vm1, %v23343_v27 }
 0xbdf   : > { %17644 = vmatprep.subr.bf16.mxu0 %v23343_v27 }
 0xca8   : > { %v22704_v17 = vpop.f32.mrb[48].mxu0 }
 0xca9   : > { %v17630_v28 = vpop.f32.mrb[49].mxu0 }
 0xcaa   : > { %v9156_v62 = vpop.f32.mrb[50].mxu0 }
 0xcab   : > { %v17631_v3 = vpop.f32.mrb[51].mxu0 }
 0xcb0   : > { %v9193_v0 = vpop.f32.mrb[52].mxu0 }
 0xcb1   : > { %v9199_v36 = vmul.f32 0.088388346, %v9193_v0  ;;  %v17636_v10 = vpop.f32.mrb[53].mxu0 }
 0xcb2   : > { %v9196_v55 = vpop.f32.mrb[54].mxu0 }
 0xcb3   : > { %v17637_v8 = vpop.f32.mrb[55].mxu0  ;;  %v9200_v44 = vsel %vm9007_vm2, %v9199_v36, -inf }
 0xcb4   : > { %9201 = vmax.xlane.f32.xlu0 %v9200_v44 }
 0xd41   : > { %v9202_v48 = vpop.xlane.xlu0 %9201 }
 0xd42   : > { %v9203_v25 = vsub.f32 %v9199_v36, %v9202_v48 }
 0xd44   : > { %v9204_v18 = vmul.f32 1.442695, %v9203_v25 }
 0xd46   : > { %20829 = vpow2.f32 %v9204_v18 }
 0xd50   : > { %v20830_v24 = vpop.eup %20829 }
 0xd51   : > { %v9206_v5 = vsel %vm9007_vm2, %v20830_v24, 0.0 }
 0xd52   : > { %9207 = vadd.xlane.f32.xlu1 %v9206_v5  ;;  %v23350_v5 = vpack.c.bf16 %v22552_v58, %v22550_v33 }
 0xddf   : > { %v9208_v19 = vpop.xlane.xlu1 %9207 }
 0xde0   : > { %20831 = vrcp.f32 %v9208_v19 }
 0xdea   : > { %v20832_v39 = vpop.eup %20831 }
 0xdeb   : > { %v9210_v9 = vmul.f32 %v20832_v39, %v20830_v24 }
 0xded   : > { %v9211_v23 = vpack.c.bf16 %v9210_v9, %v9210_v9 }
 0xdef   : > { %17641 = vmatmul.mubr.msk.bf16.vlgmr.msra.gmra.mrb[56].mxu0 %vm9007_vm2, %v9211_v23 }
 0xdf0   : > { %17645 = vmatpush3.bf16.xpose.msra.mxu0 %v23348_v20  ;;  %17646 = vmatprep.mubr.msk.bf16.mxu0 %vm21533_vm1, %v23343_v27 }
 0xdf1   : > { %17650 = vmatprep.subr.bf16.mxu0 %v23343_v27 }
 0xdf7   : > { %17647 = vmatmul.mubr.bf16.vlgmr.msra.gmra.mrb[60].mxu0 %v22417_v16 }
 0xdf8   : > { %17651 = vmatpush3.bf16.msra.mxu0 %v23349_v56  ;;  %17652 = vmatprep.mubr.msk.bf16.mxu0 %vm21533_vm1, %v23343_v27 }
 0xdf9   : > { %17656 = vmatprep.subr.bf16.mxu0 %v23343_v27 }
 0xec2   : > { %v22722_v2 = vpop.f32.mrb[56].mxu0 }
 0xec3   : > { %v17642_v15 = vpop.f32.mrb[57].mxu0 }
 0xec4   : > { %v9252_v12 = vpop.f32.mrb[58].mxu0 }
 0xec5   : > { %v17643_v47 = vpop.f32.mrb[59].mxu0 }
 0xec6   : > { %v5031_v47 = vrot.slane %v22610_v60, %v22152_v50 }
 0xeca   : > { %v9289_v28 = vpop.f32.mrb[60].mxu0 }
 0xecb   : > { %v9295_v62 = vmul.f32 0.088388346, %v9289_v28  ;;  %v17648_v3 = vpop.f32.mrb[61].mxu0  ;;  %v8923_v28 = vpop.f32.mrb[32].mxu1 }
 0xecc   : > { %v9292_v0 = vpop.f32.mrb[62].mxu0  ;;  %v8925_v3 = vpop.f32.mrb[33].mxu1 }
 0xecd   : > { %v17649_v36 = vpop.f32.mrb[63].mxu0  ;;  %v9296_v10 = vsel %vm9007_vm2, %v9295_v62, -inf  ;;  %v17820_v0 = vadd.f32 %v8923_v28, %v5031_v47 }
 0xece   : > { %9297 = vmax.xlane.f32.xlu0 %v9296_v10  ;;  %v8927_v10 = vpop.f32.mrb[34].mxu1 }
 0xf5b   : > { %v9298_v1 = vpop.xlane.xlu0 %9297 }
 0xf5c   : > { %v9299_v38 = vsub.f32 %v9295_v62, %v9298_v1  ;;  %v5035_v62 = vrot.slane %v22610_v60, %v22156_v52  ;;  %v17822_v1 = vadd.f32 %v8927_v10, %v5031_v47 }
 0xf5e   : > { %v9300_v55 = vmul.f32 1.442695, %v9299_v38  ;;  %v17821_v36 = vadd.f32 %v8925_v3, %v5035_v62  ;;  %v8929_v38 = vpop.f32.mrb[35].mxu1 }
 0xf60   : > { %20833 = vpow2.f32 %v9300_v55  ;;  %v17823_v55 = vadd.f32 %v8929_v38, %v5035_v62 }
 0xf6a   : > { %v20834_v8 = vpop.eup %20833 }
 0xf6b   : > { %v9302_v44 = vsel %vm9007_vm2, %v20834_v8, 0.0 }
 0xf6c   : > { %9303 = vadd.xlane.f32.xlu1 %v9302_v44  ;;  %v8958_v44 = vpack.c.bf16 %v17822_v1, %v17820_v0 }
 0xff9   : > { %v9304_v48 = vpop.xlane.xlu1 %9303 }
 0xffa   : > { %20835 = vrcp.f32 %v9304_v48 }
0x1004   : > { %v20836_v25 = vpop.eup %20835 }
0x1005   : > { %v9306_v18 = vmul.f32 %v20836_v25, %v20834_v8  ;;  %v8933_v8 = vpop.f32.mrb[36].mxu1 }
0x1006   : > { %v22743_v48 = vadd.f32 %v8933_v8, %v5031_v47  ;;  %v8935_v25 = vpop.f32.mrb[37].mxu1 }
0x1007   : > { %v9307_v24 = vpack.c.bf16 %v9306_v18, %v9306_v18  ;;  %v8959_v18 = vpack.c.bf16 %v17823_v55, %v17821_v36  ;;  %v23351_v36 = vpack.c.bf16 %v22556_v11, %v22554_v35 }
0x1009   : > { %17653 = vmatmul.mubr.msk.bf16.vlgmr.msra.gmra.mrb[64].mxu0 %vm9007_vm2, %v9307_v24  ;;  %v22745_v24 = vadd.f32 %v8935_v25, %v5035_v62 }
0x100a   : > { %17657 = vmatpush3.bf16.xpose.msra.mxu0 %v23350_v5  ;;  %17658 = vmatprep.mubr.msk.bf16.mxu0 %vm21533_vm1, %v23343_v27  ;;  %v8937_v5 = vpop.f32.mrb[38].mxu1 }
0x100b   : > { %17662 = vmatprep.subr.bf16.mxu0 %v23343_v27  ;;  %v8939_v60 = vpop.f32.mrb[39].mxu1 }
0x1011   : > { %17659 = vmatmul.mubr.bf16.vlgmr.msra.gmra.mrb[68].mxu0 %v22466_v40 }
0x1012   : > { %17664 = vmatprep.mubr.msk.bf16.mxu0 %vm21533_vm1, %v23343_v27  ;;  %17663 = vmatpush3.bf16.msra.mxu0 %v8958_v44 }
0x1013   : > { %17668 = vmatprep.subr.bf16.mxu0 %v23343_v27 }
0x10dc   : > { %v22736_v19 = vpop.f32.mrb[64].mxu0 }
0x10dd   : > { %v17654_v39 = vpop.f32.mrb[65].mxu0 }
0x10de   : > { %v9348_v9 = vpop.f32.mrb[66].mxu0  ;;  %v22747_v39 = vadd.f32 %v8937_v5, %v5031_v47 }
0x10df   : > { %v17655_v23 = vpop.f32.mrb[67].mxu0  ;;  %v22749_v9 = vadd.f32 %v8939_v60, %v5035_v62 }
0x10e0   : > { %v8964_v23 = vpack.c.bf16 %v22747_v39, %v22743_v48  ;;  %v19823_v48 = vld [vmem:[#allocation16 + $0x94] ss:$24 sps:$4 sm:$0xff]   ;;  %v19829_v39 = vld [vmem:[#allocation16 + $0xc4] ss:$24 sps:$4 sm:$0xff]  }
0x10e4   : > { %v9385_v20 = vpop.f32.mrb[68].mxu0 }
0x10e5   : > { %v9391_v56 = vmul.f32 0.088388346, %v9385_v20  ;;  %v17660_v15 = vpop.f32.mrb[69].mxu0  ;;  %v8965_v20 = vpack.c.bf16 %v22749_v9, %v22745_v24  ;;  %v19838_v24 = vld [vmem:[#allocation16 + $0x9c] ss:$24 sps:$4 sm:$0xff]  }
0x10e6   : > { %v9388_v33 = vpop.f32.mrb[70].mxu0  ;;  %v19836_v9 = vld [vmem:[#allocation16 + $0x98] ss:$24 sps:$4 sm:$0xff]  }
0x10e7   : > { %v17661_v58 = vpop.f32.mrb[71].mxu0  ;;  %v9392_v12 = vsel %vm9007_vm2, %v9391_v56, -inf }
0x10e8   : > { %9393 = vmax.xlane.f32.xlu0 %v9392_v12 }
0x1175   : > { %v9394_v15 = vpop.xlane.xlu0 %9393 }
0x1176   : > { %v9395_v33 = vsub.f32 %v9391_v56, %v9394_v15 }
0x1178   : > { %v9396_v58 = vmul.f32 1.442695, %v9395_v33 }
0x117a   : > { %20837 = vpow2.f32 %v9396_v58 }
0x1184   : > { %v20838_v12 = vpop.eup %20837 }
0x1185   : > { %v9398_v28 = vsel %vm9007_vm2, %v20838_v12, 0.0 }
0x1186   : > { %9399 = vadd.xlane.f32.xlu1 %v9398_v28 }
0x1213   : > { %v9400_v47 = vpop.xlane.xlu1 %9399 }
0x1214   : > { %20839 = vrcp.f32 %v9400_v47 }
0x121e   : > { %v20840_v62 = vpop.eup %20839 }
0x121f   : > { %v9402_v3 = vmul.f32 %v20840_v62, %v20838_v12  ;;  %v23352_v62 = vpack.c.bf16 %v22484_v32, %v22480_v4  ;;  %v9643_v4 = vrot.slane %v22415_v42, 4  ;;  %v23354_v32 = vpack.c.bf16 %v22598_v46, %v22594_v41 }
0x1220   : > { %v9841_v42 = vrot.slane %v22417_v16, 4  ;;  %v23357_v46 = vpack.c.bf16 %v22568_v22, %v22564_v59  ;;  %v10039_v16 = vrot.slane %v22472_v7, 4 }
0x1221   : > { %v9403_v0 = vpack.c.bf16 %v9402_v3, %v9402_v3  ;;  %v9544_v3 = vrot.slane %v22411_v43, 4  ;;  %v9742_v43 = vrot.slane %v22413_v49, 4  ;;  %v9940_v49 = vrot.slane %v22466_v40, 4 }
0x1223   : > { %17665 = vmatmul.mubr.msk.bf16.vlgmr.msra.gmra.mrb[72].mxu0 %vm9007_vm2, %v9403_v0  ;;  %v23353_v0 = vpack.c.bf16 %v22486_v26, %v22482_v53  ;;  %v23355_v53 = vpack.c.bf16 %v22600_v34, %v22596_v37  ;;  %v23356_v26 = vpack.c.bf16 %v22566_v63, %v22562_v61 }
0x1224   : > { %17669 = vmatpush3.bf16.xpose.msra.mxu0 %v23351_v36  ;;  %17670 = vmatprep.mubr.msk.bf16.mxu0 %vm21533_vm1, %v23343_v27 }
0x1225   : > { %17674 = vmatprep.subr.bf16.mxu0 %v23343_v27 }
0x122b   : > { %17671 = vmatmul.mubr.bf16.vlgmr.msra.gmra.mrb[76].mxu0 %v22472_v7 }
0x122c   : > { %17675 = vmatpush3.bf16.msra.mxu0 %v8959_v18  ;;  %17676 = vmatprep.mubr.msk.bf16.mxu0 %vm21533_vm1, %v23343_v27 }
0x122d   : > { %17680 = vmatprep.subr.bf16.mxu0 %v23343_v27 }
0x12f6   : > { %v22768_v56 = vpop.f32.mrb[72].mxu0 }
0x12f7   : > { %v17666_v10 = vpop.f32.mrb[73].mxu0 }
0x12f8   : > { %v9444_v1 = vpop.f32.mrb[74].mxu0 }
0x12f9   : > { %v17667_v38 = vpop.f32.mrb[75].mxu0 }
0x12fe   : > { %v9481_v35 = vpop.f32.mrb[76].mxu0 }
0x12ff   : > { %v9487_v11 = vmul.f32 0.088388346, %v9481_v35  ;;  %v17672_v55 = vpop.f32.mrb[77].mxu0 }
0x1300   : > { %v9484_v8 = vpop.f32.mrb[78].mxu0 }
0x1301   : > { %v17673_v44 = vpop.f32.mrb[79].mxu0  ;;  %v9488_v25 = vsel %vm9007_vm2, %v9487_v11, -inf }
0x1302   : > { %9489 = vmax.xlane.f32.xlu0 %v9488_v25 }
0x138f   : > { %v9490_v5 = vpop.xlane.xlu0 %9489 }
0x1390   : > { %v9491_v18 = vsub.f32 %v9487_v11, %v9490_v5 }
0x1392   : > { %v9492_v60 = vmul.f32 1.442695, %v9491_v18 }
0x1394   : > { %20841 = vpow2.f32 %v9492_v60 }
0x139e   : > { %v20842_v15 = vpop.eup %20841 }
0x139f   : > { %v9494_v33 = vsel %vm9007_vm2, %v20842_v15, 0.0 }
0x13a0   : > { %9495 = vadd.xlane.f32.xlu1 %v9494_v33 }
0x142d   : > { %v9496_v58 = vpop.xlane.xlu1 %9495 }
0x142e   : > { %20843 = vrcp.f32 %v9496_v58 }
0x1438   : > { %v20844_v12 = vpop.eup %20843 }
0x1439   : > { %v9498_v28 = vmul.f32 %v20844_v12, %v20842_v15 }
0x143b   : > { %v9499_v47 = vpack.c.bf16 %v9498_v28, %v9498_v28 }
0x143d   : > { %17677 = vmatmul.mubr.msk.bf16.vlgmr.msra.gmra.mrb[80].mxu0 %vm9007_vm2, %v9499_v47 }
0x143e   : > { %17681 = vmatpush3.bf16.xpose.msra.mxu0 %v23352_v62  ;;  %17682 = vmatprep.mubr.msk.bf16.mxu0 %vm21533_vm1, %v23343_v27 }
0x143f   : > { %17692 = vmatprep.subr.bf16.mxu0 %v23343_v27 }
0x1445   : > { %17683 = vmatmul.mubr.bf16.vlgmr.msra.gmra.mrb[84].mxu0 %v9544_v3 }
0x1446   : > { %17693 = vmatpush3.bf16.xpose.msra.mxu0 %v23353_v0  ;;  %17694 = vmatprep.mubr.msk.bf16.mxu0 %vm21533_vm1, %v23343_v27 }
0x1447   : > { %17704 = vmatprep.subr.bf16.mxu0 %v23343_v27 }
0x144d   : > { %17695 = vmatmul.mubr.bf16.vlgmr.msra.gmra.mrb[88].mxu0 %v9643_v4 }
0x144e   : > { %17705 = vmatpush3.bf16.xpose.msra.mxu0 %v23354_v32  ;;  %17706 = vmatprep.mubr.msk.bf16.mxu0 %vm21533_vm1, %v23343_v27 }
0x144f   : > { %17716 = vmatprep.subr.bf16.mxu0 %v23343_v27 }
0x1455   : > { %17707 = vmatmul.mubr.bf16.vlgmr.msra.gmra.mrb[92].mxu0 %v9742_v43 }
0x1456   : > { %17717 = vmatpush3.bf16.xpose.msra.mxu0 %v23355_v53  ;;  %17718 = vmatprep.mubr.msk.bf16.mxu0 %vm21533_vm1, %v23343_v27 }
0x1457   : > { %17728 = vmatprep.subr.bf16.mxu0 %v23343_v27 }
0x145d   : > { %17719 = vmatmul.mubr.bf16.vlgmr.msra.gmra.mrb[96].mxu0 %v9841_v42 }
0x145e   : > { %17729 = vmatpush3.bf16.xpose.msra.mxu0 %v23356_v26  ;;  %17730 = vmatprep.mubr.msk.bf16.mxu0 %vm21533_vm1, %v23343_v27 }
0x145f   : > { %17740 = vmatprep.subr.bf16.mxu0 %v23343_v27 }
0x1465   : > { %17731 = vmatmul.mubr.bf16.vlgmr.msra.gmra.mrb[100].mxu0 %v9940_v49 }
0x1466   : > { %17741 = vmatpush3.bf16.xpose.msra.mxu0 %v23357_v46  ;;  %17742 = vmatprep.mubr.msk.bf16.mxu0 %vm21533_vm1, %v23343_v27 }
0x1467   : > { %11903 = vmatprep.subr.bf16.mxu0 %v19811_v45  ;;  %v19856_v45 = vld [vmem:[#allocation16 + $0x12c] ss:$24 sps:$4 sm:$0xff]  }
0x146d   : > { %17743 = vmatmul.mubr.bf16.vlgmr.msra.gmra.mrb[104].mxu0 %v10039_v16 }
0x146e   : > { %11904 = vmatpush1.bf16.msra.mxu0 %v19809_v31  ;;  %v19854_v31 = vld [vmem:[#allocation16 + $0x128] ss:$24 sps:$4 sm:$0xff]  }
0x1510   : > { %v22814_v61 = vpop.f32.mrb[80].mxu0 }
0x1511   : > { %v17678_v63 = vpop.f32.mrb[81].mxu0 }
0x1512   : > { %v9540_v41 = vpop.f32.mrb[82].mxu0 }
0x1513   : > { %v17679_v34 = vpop.f32.mrb[83].mxu0 }
0x1518   : > { %v9580_v37 = vpop.f32.mrb[84].mxu0 }
0x1519   : > { %v9586_v36 = vmul.f32 0.088388346, %v9580_v37  ;;  %v17684_v10 = vpop.f32.mrb[85].mxu0 }
0x151a   : > { %v9583_v40 = vpop.f32.mrb[86].mxu0 }
0x151b   : > { %v17685_v1 = vpop.f32.mrb[87].mxu0  ;;  %v9587_v38 = vsel %vm9007_vm2, %v9586_v36, -inf }
0x151c   : > { %9588 = vmax.xlane.f32.xlu0 %v9587_v38 }
0x1520   : > { %v9679_v59 = vpop.f32.mrb[88].mxu0 }
0x1521   : > { %v9685_v22 = vmul.f32 0.088388346, %v9679_v59  ;;  %v17696_v35 = vpop.f32.mrb[89].mxu0 }
0x1522   : > { %v9682_v11 = vpop.f32.mrb[90].mxu0 }
0x1523   : > { %v17697_v55 = vpop.f32.mrb[91].mxu0  ;;  %v9686_v7 = vsel %vm9007_vm2, %v9685_v22, -inf }
0x1524   : > { %9687 = vmax.xlane.f32.xlu1 %v9686_v7 }
0x1528   : > { %v9778_v8 = vpop.f32.mrb[92].mxu0 }
0x1529   : > { %v9784_v44 = vmul.f32 0.088388346, %v9778_v8  ;;  %v17708_v25 = vpop.f32.mrb[93].mxu0 }
0x152a   : > { %v9781_v5 = vpop.f32.mrb[94].mxu0 }
0x152b   : > { %v17709_v18 = vpop.f32.mrb[95].mxu0  ;;  %v9785_v60 = vsel %vm9007_vm2, %v9784_v44, -inf }
0x152c   : > { %9786 = vmax.xlane.f32.xlu0 %v9785_v60 }
0x1530   : > { %v9877_v15 = vpop.f32.mrb[96].mxu0 }
0x1531   : > { %v9883_v33 = vmul.f32 0.088388346, %v9877_v15  ;;  %v17720_v58 = vpop.f32.mrb[97].mxu0 }
0x1532   : > { %v9880_v12 = vpop.f32.mrb[98].mxu0 }
0x1533   : > { %v17721_v28 = vpop.f32.mrb[99].mxu0  ;;  %v9884_v47 = vsel %vm9007_vm2, %v9883_v33, -inf }
0x1534   : > { %9885 = vmax.xlane.f32.xlu1 %v9884_v47 }
0x1538   : > { %v9976_v62 = vpop.f32.mrb[100].mxu0 }
0x1539   : > { %v17732_v3 = vpop.f32.mrb[101].mxu0  ;;  %v9982_v37 = vmul.f32 0.088388346, %v9976_v62 }
0x153a   : > { %v9979_v0 = vpop.f32.mrb[102].mxu0 }
0x153b   : > { %v17733_v4 = vpop.f32.mrb[103].mxu0  ;;  %v9983_v59 = vsel %vm9007_vm2, %v9982_v37, -inf }
0x1540   : > { %v10075_v32 = vpop.f32.mrb[104].mxu0 }
0x1541   : > { %v17744_v43 = vpop.f32.mrb[105].mxu0 }
0x1542   : > { %v10078_v53 = vpop.f32.mrb[106].mxu0 }
0x1543   : > { %v17745_v42 = vpop.f32.mrb[107].mxu0 }
0x15a9   : > { %v9589_v26 = vpop.xlane.xlu0 %9588 }
0x15aa   : > { %v9590_v49 = vsub.f32 %v9586_v36, %v9589_v26  ;;  %v10081_v36 = vmul.f32 0.088388346, %v10075_v32 }
0x15ac   : > { %v9591_v46 = vmul.f32 1.442695, %v9590_v49  ;;  %v10082_v8 = vsel %vm9007_vm2, %v10081_v36, -inf }
0x15ae   : > { %20845 = vpow2.f32 %v9591_v46 }
0x15b1   : > { %v9688_v16 = vpop.xlane.xlu1 %9687 }
0x15b2   : > { %v9689_v63 = vsub.f32 %v9685_v22, %v9688_v16 }
0x15b4   : > { %v9690_v41 = vmul.f32 1.442695, %v9689_v63 }
0x15b6   : > { %20847 = vpow2.f32 %v9690_v41 }
0x15b8   : > { %v20846_v34 = vpop.eup %20845 }
0x15b9   : > { %v9787_v10 = vpop.xlane.xlu0 %9786  ;;  %v9593_v40 = vsel %vm9007_vm2, %v20846_v34, 0.0 }
0x15ba   : > { %v9788_v1 = vsub.f32 %v9784_v44, %v9787_v10  ;;  %9594 = vadd.xlane.f32.xlu0 %v9593_v40  ;;  %v19814_v10 = vld [vmem:[#allocation16 + $0x34] ss:$24 sps:$4 sm:$0xff]   ;;  %v19812_v40 = vld [vmem:[#allocation16 + $0x30] ss:$24 sps:$4 sm:$0xff]  }
0x15bb   : > { %11905 = vmatprep.subr.bf16.mxu0 %v19814_v10  ;;  %v19862_v10 = vld [vmem:[#allocation16 + $0x15c] ss:$24 sps:$4 sm:$0xff]  }
0x15bc   : > { %v9789_v38 = vmul.f32 1.442695, %v9788_v1  ;;  %11906 = vmatpush1.bf16.msra.mxu0 %v19812_v40  ;;  %v19815_v1 = vld [vmem:[#allocation16 + $0x60] ss:$24 sps:$4 sm:$0xff]  }
0x15bd   : > { %v19860_v40 = vld [vmem:[#allocation16 + $0x158] ss:$24 sps:$4 sm:$0xff]  }
0x15be   : > { %20849 = vpow2.f32 %v9789_v38  ;;  %9984 = vmax.xlane.f32.xlu0 %v9983_v59  ;;  %v19817_v38 = vld [vmem:[#allocation16 + $0x64] ss:$24 sps:$4 sm:$0xff]   ;;  %v19821_v59 = vld [vmem:[#allocation16 + $0x90] ss:$24 sps:$4 sm:$0xff]  }
0x15bf   : > { %11907 = vmatprep.subr.bf16.mxu0 %v19817_v38  ;;  %v19866_v38 = vld [vmem:[#allocation16 + $0x188] ss:$24 sps:$4 sm:$0xff]  }
0x15c0   : > { %v20848_v35 = vpop.eup %20847  ;;  %11908 = vmatpush1.bf16.msra.mxu0 %v19815_v1  ;;  %v19868_v1 = vld [vmem:[#allocation16 + $0x18c] ss:$24 sps:$4 sm:$0xff]  }
0x15c1   : > { %v9886_v11 = vpop.xlane.xlu1 %9885  ;;  %v9692_v55 = vsel %vm9007_vm2, %v20848_v35, 0.0  ;;  %11909 = vmatprep.subr.bf16.mxu0 %v19823_v48  ;;  %v19872_v48 = vld [vmem:[#allocation16 + $0x1b8] ss:$24 sps:$4 sm:$0xff]  }
0x15c2   : > { %v9887_v22 = vsub.f32 %v9883_v33, %v9886_v11  ;;  %9693 = vadd.xlane.f32.xlu1 %v9692_v55  ;;  %v19841_v11 = vld [vmem:[#allocation16 + $0x124] ss:$24 sps:$4 sm:$0xff]   ;;  %v19839_v55 = vld [vmem:[#allocation16 + $0x120] ss:$24 sps:$4 sm:$0xff]  }
0x15c4   : > { %v9888_v7 = vmul.f32 1.442695, %v9887_v22  ;;  %11910 = vmatpush1.bf16.msra.mxu0 %v19821_v59  ;;  %v19847_v22 = vld [vmem:[#allocation16 + $0x154] ss:$24 sps:$4 sm:$0xff]  }
0x15c5   : > { %11911 = vmatprep.subr.bf16.mxu0 %v19829_v39  ;;  %v19874_v59 = vld [vmem:[#allocation16 + $0x1bc] ss:$24 sps:$4 sm:$0xff]   ;;  %v19880_v39 = vld [vmem:[#allocation16 + $0x1ec] ss:$24 sps:$4 sm:$0xff]  }
0x15c6   : > { %20851 = vpow2.f32 %v9888_v7  ;;  %10083 = vmax.xlane.f32.xlu1 %v10082_v8  ;;  %v19845_v7 = vld [vmem:[#allocation16 + $0x150] ss:$24 sps:$4 sm:$0xff]   ;;  %v19853_v8 = vld [vmem:[#allocation16 + $0x184] ss:$24 sps:$4 sm:$0xff]  }
0x15c8   : > { %v20850_v25 = vpop.eup %20849 }
0x15c9   : > { %v9791_v44 = vsel %vm9007_vm2, %v20850_v25, 0.0 }
0x15ca   : > { %9792 = vadd.xlane.f32.xlu0 %v9791_v44  ;;  %v19859_v44 = vld [vmem:[#allocation16 + $0x1b4] ss:$24 sps:$4 sm:$0xff]  }
0x15d0   : > { %v20852_v5 = vpop.eup %20851 }
0x15d1   : > { %v9890_v18 = vsel %vm9007_vm2, %v20852_v5, 0.0 }
0x15d2   : > { %9891 = vadd.xlane.f32.xlu1 %v9890_v18  ;;  %v19865_v18 = vld [vmem:[#allocation16 + $0x1e4] ss:$24 sps:$4 sm:$0xff]  }
0x1647   : > { %v9595_v60 = vpop.xlane.xlu0 %9594 }
0x1648   : > { %20853 = vrcp.f32 %v9595_v60  ;;  %v19863_v60 = vld [vmem:[#allocation16 + $0x1e0] ss:$24 sps:$4 sm:$0xff]  }
0x164b   : > { %v9985_v15 = vpop.xlane.xlu0 %9984 }
0x164c   : > { %v9986_v58 = vsub.f32 %v9982_v37, %v9985_v15  ;;  %v19871_v15 = vld [vmem:[#allocation16 + $0x214] ss:$24 sps:$4 sm:$0xff]  }
0x164e   : > { %v9987_v12 = vmul.f32 1.442695, %v9986_v58  ;;  %v19869_v58 = vld [vmem:[#allocation16 + $0x210] ss:$24 sps:$4 sm:$0xff]  }
0x164f   : > { %v9694_v33 = vpop.xlane.xlu1 %9693 }
0x1650   : > { %20855 = vpow2.f32 %v9987_v12  ;;  %v19877_v12 = vld [vmem:[#allocation16 + $0x244] ss:$24 sps:$4 sm:$0xff]  }
0x1651   : > { %20857 = vrcp.f32 %v9694_v33  ;;  %v19875_v33 = vld [vmem:[#allocation16 + $0x240] ss:$24 sps:$4 sm:$0xff]  }
0x1652   : > { %v20854_v28 = vpop.eup %20853 }
0x1653   : > { %v9597_v47 = vmul.f32 %v20854_v28, %v20846_v34  ;;  %v10084_v62 = vpop.xlane.xlu1 %10083  ;;  %v19883_v28 = vld [vmem:[#allocation16 + $0x274] ss:$24 sps:$4 sm:$0xff]  }
0x1654   : > { %v10085_v3 = vsub.f32 %v10081_v36, %v10084_v62  ;;  %v19833_v36 = vld [vmem:[#allocation16 + $0xf0] ss:$24 sps:$4 sm:$0xff]   ;;  %v19887_v62 = vld [vmem:[#allocation16 + $0x2a0] ss:$24 sps:$4 sm:$0xff]  }
0x1655   : > { %v9598_v0 = vpack.c.bf16 %v9597_v47, %v9597_v47  ;;  %v19881_v47 = vld [vmem:[#allocation16 + $0x270] ss:$24 sps:$4 sm:$0xff]  }
0x1656   : > { %v10086_v4 = vmul.f32 1.442695, %v10085_v3  ;;  %v19889_v3 = vld [vmem:[#allocation16 + $0x2a4] ss:$24 sps:$4 sm:$0xff]  }
0x1657   : > { %17689 = vmatmul.mubr.msk.bf16.vlgmr.msra.gmra.mrb[40].mxu1 %vm9007_vm2, %v9598_v0  ;;  %v9793_v32 = vpop.xlane.xlu0 %9792  ;;  %v19895_v0 = vld [vmem:[#allocation16 + $0x2d4] ss:$24 sps:$4 sm:$0xff]  }
0x1658   : > { %20859 = vpow2.f32 %v10086_v4  ;;  %17699 = vmatpush3.bf16.msra.mxu1 %v8961_v13  ;;  %17700 = vmatprep.mubr.msk.bf16.mxu1 %vm21533_vm1, %v23343_v27  ;;  %v19893_v4 = vld [vmem:[#allocation16 + $0x2d0] ss:$24 sps:$4 sm:$0xff]  }
0x1659   : > { %20861 = vrcp.f32 %v9793_v32  ;;  %17710 = vmatprep.subr.bf16.mxu1 %v23343_v27  ;;  %v19901_v32 = vld [vmem:[#allocation16 + $0x304] ss:$24 sps:$4 sm:$0xff]  }
0x165a   : > { %v22833_v43 = vpop.eup %20855 }
0x165b   : > { %v20858_v53 = vpop.eup %20857  ;;  %v9989_v42 = vsel %vm9007_vm2, %v22833_v43, 0.0 }
0x165c   : > { %v9696_v26 = vmul.f32 %v20858_v53, %v20848_v35  ;;  %9990 = vadd.xlane.f32.xlu0 %v9989_v42  ;;  %v19835_v35 = vld [vmem:[#allocation16 + $0xf4] ss:$24 sps:$4 sm:$0xff]  }
0x165e   : > { %v9697_v49 = vpack.c.bf16 %v9696_v26, %v9696_v26 }
0x165f   : > { %v9892_v46 = vpop.xlane.xlu1 %9891 }
0x1660   : > { %17701 = vmatmul.mubr.msk.bf16.vlgmr.msra.gmra.mrb[44].mxu1 %vm9007_vm2, %v9697_v49  ;;  %20863 = vrcp.f32 %v9892_v46 }
0x1661   : > { %17711 = vmatpush3.bf16.msra.mxu1 %v23358_v14  ;;  %17712 = vmatprep.mubr.msk.bf16.mxu1 %vm21533_vm1, %v23343_v27  ;;  %v19820_v14 = vld [vmem:[#allocation16 + $0xc] ss:$24 sps:$4 sm:$0xff]  }
0x1662   : > { %v22843_v54 = vpop.eup %20859  ;;  %17722 = vmatprep.subr.bf16.mxu1 %v23343_v27 }
0x1663   : > { %v20862_v13 = vpop.eup %20861  ;;  %v10088_v16 = vsel %vm9007_vm2, %v22843_v54, 0.0 }
0x1664   : > { %v9795_v63 = vmul.f32 %v20862_v13, %v20850_v25  ;;  %10089 = vadd.xlane.f32.xlu1 %v10088_v16  ;;  %v19851_v25 = vld [vmem:[#allocation16 + $0x180] ss:$24 sps:$4 sm:$0xff]  }
0x1666   : > { %v9796_v41 = vpack.c.bf16 %v9795_v63, %v9795_v63  ;;  %v19818_v63 = vld [vmem:[#allocation16 + $0x8] ss:$24 sps:$4 sm:$0xff]  }
0x1668   : > { %17713 = vmatmul.mubr.msk.bf16.vlgmr.msra.gmra.mrb[48].mxu1 %vm9007_vm2, %v9796_v41 }
0x1669   : > { %17723 = vmatpush3.bf16.msra.mxu1 %v23359_v51  ;;  %17724 = vmatprep.mubr.msk.bf16.mxu1 %vm21533_vm1, %v23343_v27  ;;  %v19826_v51 = vld [vmem:[#allocation16 + $0x3c] ss:$24 sps:$4 sm:$0xff]  }
0x166a   : > { %v20864_v57 = vpop.eup %20863  ;;  %17734 = vmatprep.subr.bf16.mxu1 %v23343_v27 }
0x166b   : > { %v9894_v34 = vmul.f32 %v20864_v57, %v20852_v5  ;;  %v19857_v5 = vld [vmem:[#allocation16 + $0x1b0] ss:$24 sps:$4 sm:$0xff]   ;;  %v19832_v57 = vld [vmem:[#allocation16 + $0x6c] ss:$24 sps:$4 sm:$0xff]  }
0x166d   : > { %v9895_v37 = vpack.c.bf16 %v9894_v34, %v9894_v34  ;;  %v19830_v34 = vld [vmem:[#allocation16 + $0x68] ss:$24 sps:$4 sm:$0xff]  }
0x1670   : > { %17725 = vmatmul.mubr.msk.bf16.vlgmr.msra.gmra.mrb[52].mxu1 %vm9007_vm2, %v9895_v37  ;;  %v19848_v37 = vld [vmem:[#allocation16 + $0xf8] ss:$24 sps:$4 sm:$0xff]  }
0x1671   : > { %17735 = vmatpush3.bf16.msra.mxu1 %v8964_v23  ;;  %17736 = vmatprep.mubr.msk.bf16.mxu1 %vm21533_vm1, %v23343_v27  ;;  %v19827_v23 = vld [vmem:[#allocation16 + $0xc0] ss:$24 sps:$4 sm:$0xff]  }
0x1672   : > { %17746 = vmatprep.subr.bf16.mxu1 %v23343_v27  ;;  %11912 = vmatpush1.bf16.msra.mxu0 %v19827_v23  ;;  %v19878_v23 = vld [vmem:[#allocation16 + $0x1e8] ss:$24 sps:$4 sm:$0xff]  }
0x1673   : > { %11913 = vmatprep.subr.bf16.mxu0 %v19835_v35  ;;  %v19886_v35 = vld [vmem:[#allocation16 + $0x21c] ss:$24 sps:$4 sm:$0xff]  }
0x1676   : > { %11914 = vmatpush1.bf16.msra.mxu0 %v19833_v36 }
0x1677   : > { %11915 = vmatprep.subr.bf16.mxu0 %v19841_v11  ;;  %v19884_v11 = vld [vmem:[#allocation16 + $0x218] ss:$24 sps:$4 sm:$0xff]  }
0x167a   : > { %11916 = vmatpush1.bf16.msra.mxu0 %v19839_v55 }
0x167b   : > { %11917 = vmatprep.subr.bf16.mxu0 %v19847_v22 }
0x167e   : > { %11918 = vmatpush1.bf16.msra.mxu0 %v19845_v7  ;;  %v19892_v7 = vld [vmem:[#allocation16 + $0x24c] ss:$24 sps:$4 sm:$0xff]  }
0x167f   : > { %11919 = vmatprep.subr.bf16.mxu0 %v19853_v8 }
0x1682   : > { %11920 = vmatpush1.bf16.msra.mxu0 %v19851_v25 }
0x1683   : > { %11921 = vmatprep.subr.bf16.mxu0 %v19859_v44  ;;  %v19890_v44 = vld [vmem:[#allocation16 + $0x248] ss:$24 sps:$4 sm:$0xff]  }
0x1686   : > { %11922 = vmatpush1.bf16.msra.mxu0 %v19857_v5  ;;  %v19898_v5 = vld [vmem:[#allocation16 + $0x27c] ss:$24 sps:$4 sm:$0xff]  }
0x1687   : > { %11923 = vmatprep.subr.bf16.mxu0 %v19865_v18  ;;  %v19896_v18 = vld [vmem:[#allocation16 + $0x278] ss:$24 sps:$4 sm:$0xff]  }
0x168a   : > { %11924 = vmatpush1.bf16.msra.mxu0 %v19863_v60 }
0x168b   : > { %11925 = vmatprep.subr.bf16.mxu0 %v19871_v15 }
0x168e   : > { %11926 = vmatpush1.bf16.msra.mxu0 %v19869_v58 }
0x168f   : > { %11927 = vmatprep.subr.bf16.mxu0 %v19877_v12  ;;  %v19899_v12 = vld [vmem:[#allocation16 + $0x300] ss:$24 sps:$4 sm:$0xff]  }
0x1692   : > { %11928 = vmatpush1.bf16.msra.mxu0 %v19875_v33 }
0x1693   : > { %11929 = vmatprep.subr.bf16.mxu0 %v19883_v28  ;;  %v19907_v28 = vld [vmem:[#allocation16 + $0x334] ss:$24 sps:$4 sm:$0xff]  }
0x1696   : > { %11930 = vmatpush1.bf16.msra.mxu0 %v19881_v47 }
0x1697   : > { %11931 = vmatprep.subr.bf16.mxu0 %v19889_v3  ;;  %v19910_v3 = vld [vmem:[#allocation16 + $0x2dc] ss:$24 sps:$4 sm:$0xff]  }
0x169a   : > { %11932 = vmatpush1.bf16.msra.mxu0 %v19887_v62  ;;  %v19902_v62 = vld [vmem:[#allocation16 + $0x2a8] ss:$24 sps:$4 sm:$0xff]  }
0x169b   : > { %11933 = vmatprep.subr.bf16.mxu0 %v19895_v0  ;;  %v19905_v0 = vld [vmem:[#allocation16 + $0x330] ss:$24 sps:$4 sm:$0xff]  }
0x169e   : > { %11934 = vmatpush1.bf16.msra.mxu0 %v19893_v4  ;;  %v19908_v4 = vld [vmem:[#allocation16 + $0x2d8] ss:$24 sps:$4 sm:$0xff]  }
0x169f   : > { %11946 = vmatprep.subr.bf16.mxu0 %v19901_v32 }
0x16e9   : > { %v9991_v53 = vpop.xlane.xlu0 %9990 }
0x16ea   : > { %20865 = vrcp.f32 %v9991_v53  ;;  %v19916_v53 = vld [vmem:[#allocation16 + $0x30c] ss:$24 sps:$4 sm:$0xff]  }
0x16f1   : > { %v10090_v42 = vpop.xlane.xlu1 %10089 }
0x16f2   : > { %20867 = vrcp.f32 %v10090_v42 }
0x16f4   : > { %v20866_v26 = vpop.eup %20865 }
0x16f5   : > { %v9993_v49 = vmul.f32 %v20866_v26, %v22833_v43  ;;  %v19824_v43 = vld [vmem:[#allocation16 + $0x38] ss:$24 sps:$4 sm:$0xff]  }
0x16f7   : > { %v9994_v46 = vpack.c.bf16 %v9993_v49, %v9993_v49  ;;  %v19911_v49 = vld [vmem:[#allocation16 + $0x360] ss:$24 sps:$4 sm:$0xff]  }
0x16f9   : > { %17737 = vmatmul.mubr.msk.bf16.vlgmr.msra.gmra.mrb[56].mxu1 %vm9007_vm2, %v9994_v46 }
0x16fa   : > { %17747 = vmatpush3.bf16.msra.mxu1 %v8965_v20  ;;  %17748 = vmatprep.mubr.msk.bf16.mxu1 %vm21533_vm1, %v23343_v27  ;;  %v19844_v27 = vld [vmem:[#allocation16 + $0xcc] ss:$24 sps:$4 sm:$0xff]   ;;  %v19842_v20 = vld [vmem:[#allocation16 + $0xc8] ss:$24 sps:$4 sm:$0xff]  }
0x16fb   : > { %12032 = vmatprep.subr.bf16.mxu1 %v19820_v14  ;;  %v19919_v14 = vld [vmem:[#allocation16 + $0x394] ss:$24 sps:$4 sm:$0xff]  }
0x16fc   : > { %v20868_v13 = vpop.eup %20867 }
0x16fd   : > { %v10092_v16 = vmul.f32 %v20868_v13, %v22843_v54  ;;  %v19850_v54 = vld [vmem:[#allocation16 + $0xfc] ss:$24 sps:$4 sm:$0xff]  }
0x16ff   : > { %v10093_v41 = vpack.c.bf16 %v10092_v16, %v10092_v16  ;;  %v19914_v16 = vld [vmem:[#allocation16 + $0x308] ss:$24 sps:$4 sm:$0xff]  }
0x1701   : > { %17749 = vmatmul.mubr.msk.bf16.vlgmr.msra.gmra.mrb[60].mxu1 %vm9007_vm2, %v10093_v41  ;;  %v19917_v41 = vld [vmem:[#allocation16 + $0x390] ss:$24 sps:$4 sm:$0xff]  }
0x1702   : > { %12033 = vmatpush1.bf16.msra.mxu1 %v19818_v63  ;;  %v19922_v63 = vld [vmem:[#allocation16 + $0x33c] ss:$24 sps:$4 sm:$0xff]  }
0x1703   : > { %12034 = vmatprep.subr.bf16.mxu1 %v19826_v51  ;;  %v19925_v51 = vld [vmem:[#allocation16 + $0x3c4] ss:$24 sps:$4 sm:$0xff]  }
0x1706   : > { %12035 = vmatpush1.bf16.msra.mxu1 %v19824_v43 }
0x1707   : > { %12036 = vmatprep.subr.bf16.mxu1 %v19832_v57  ;;  %v19928_v57 = vld [vmem:[#allocation16 + $0x36c] ss:$24 sps:$4 sm:$0xff]  }
0x170a   : > { %12037 = vmatpush1.bf16.msra.mxu1 %v19830_v34 }
0x170b   : > { %12038 = vmatprep.subr.bf16.mxu1 %v19838_v24 }
0x170e   : > { %12039 = vmatpush1.bf16.msra.mxu1 %v19836_v9  ;;  %v19923_v9 = vld [vmem:[#allocation16 + $0x3c0] ss:$24 sps:$4 sm:$0xff]  }
0x170f   : > { %12040 = vmatprep.subr.bf16.mxu1 %v19844_v27 }
0x1712   : > { %12041 = vmatpush1.bf16.msra.mxu1 %v19842_v20  ;;  %v19931_v20 = vld [vmem:[#allocation16 + $0x3f4] ss:$24 sps:$4 sm:$0xff]  }
0x1713   : > { %12042 = vmatprep.subr.bf16.mxu1 %v19850_v54 }
0x1716   : > { %12043 = vmatpush1.bf16.msra.mxu1 %v19848_v37  ;;  %v19926_v37 = vld [vmem:[#allocation16 + $0x368] ss:$24 sps:$4 sm:$0xff]  }
0x1717   : > { %12044 = vmatprep.subr.bf16.mxu1 %v19856_v45  ;;  %v19934_v45 = vld [vmem:[#allocation16 + $0x39c] ss:$24 sps:$4 sm:$0xff]  }
0x171a   : > { %12045 = vmatpush1.bf16.msra.mxu1 %v19854_v31  ;;  %v19929_v31 = vld [vmem:[#allocation16 + $0x3f0] ss:$24 sps:$4 sm:$0xff]  }
0x171b   : > { %12046 = vmatprep.subr.bf16.mxu1 %v19862_v10  ;;  %v19932_v10 = vld [vmem:[#allocation16 + $0x398] ss:$24 sps:$4 sm:$0xff]  }
0x171e   : > { %12047 = vmatpush1.bf16.msra.mxu1 %v19860_v40  ;;  %v19940_v40 = vld [vmem:[#allocation16 + $0x3cc] ss:$24 sps:$4 sm:$0xff]  }
0x171f   : > { %12048 = vmatprep.subr.bf16.mxu1 %v19868_v1  ;;  %v19935_v1 = vld [vmem:[#allocation16 + $0x420] ss:$24 sps:$4 sm:$0xff]  }
0x1722   : > { %12049 = vmatpush1.bf16.msra.mxu1 %v19866_v38  ;;  %v19943_v38 = vld [vmem:[#allocation16 + $0x454] ss:$24 sps:$4 sm:$0xff]  }
0x1723   : > { %12050 = vmatprep.subr.bf16.mxu1 %v19874_v59  ;;  %v19938_v59 = vld [vmem:[#allocation16 + $0x3c8] ss:$24 sps:$4 sm:$0xff]  }
0x1726   : > { %12051 = vmatpush1.bf16.msra.mxu1 %v19872_v48  ;;  %v19946_v48 = vld [vmem:[#allocation16 + $0x3fc] ss:$24 sps:$4 sm:$0xff]  }
0x1727   : > { %12052 = vmatprep.subr.bf16.mxu1 %v19880_v39  ;;  %v19941_v39 = vld [vmem:[#allocation16 + $0x450] ss:$24 sps:$4 sm:$0xff]  }
0x172a   : > { %12053 = vmatpush1.bf16.msra.mxu1 %v19878_v23  ;;  %v9636_v36 = vpop.f32.mrb[40].mxu1  ;;  %v19949_v23 = vld [vmem:[#allocation16 + $0x484] ss:$24 sps:$4 sm:$0xff]  }
0x172b   : > { %v22872_v55 = vpack.c.bf16 %v9636_v36, %v22686_v21  ;;  %v17690_v22 = vpop.f32.mrb[41].mxu1  ;;  %12054 = vmatprep.subr.bf16.mxu1 %v19886_v35  ;;  %v19904_v21 = vld [vmem:[#allocation16 + $0x2ac] ss:$24 sps:$4 sm:$0xff]   ;;  %v19944_v35 = vld [vmem:[#allocation16 + $0x3f8] ss:$24 sps:$4 sm:$0xff]  }
0x172c   : > { %v9639_v8 = vpop.f32.mrb[42].mxu1  ;;  %v19952_v36 = vld [vmem:[#allocation16 + $0x42c] ss:$24 sps:$4 sm:$0xff]  }
0x172d   : > { %v17691_v25 = vpop.f32.mrb[43].mxu1  ;;  %v19955_v22 = vld [vmem:[#allocation16 + $0x4b4] ss:$24 sps:$4 sm:$0xff]  }
0x172e   : > { %12055 = vmatpush1.bf16.msra.mxu1 %v19884_v11  ;;  %v19947_v11 = vld [vmem:[#allocation16 + $0x480] ss:$24 sps:$4 sm:$0xff]   ;;  %v19958_v8 = vld [vmem:[#allocation16 + $0x45c] ss:$24 sps:$4 sm:$0xff]   ;;  %v19953_v25 = vld [vmem:[#allocation16 + $0x4b0] ss:$24 sps:$4 sm:$0xff]  }
0x172f   : > { %12056 = vmatprep.subr.bf16.mxu1 %v19892_v7  ;;  %v19950_v7 = vld [vmem:[#allocation16 + $0x428] ss:$24 sps:$4 sm:$0xff]  }
0x1732   : > { %12057 = vmatpush1.bf16.msra.mxu1 %v19890_v44  ;;  %v19961_v44 = vld [vmem:[#allocation16 + $0x4e4] ss:$24 sps:$4 sm:$0xff]  }
0x1733   : > { %v9735_v60 = vpop.f32.mrb[44].mxu1  ;;  %12058 = vmatprep.subr.bf16.mxu1 %v19898_v5  ;;  %v19956_v5 = vld [vmem:[#allocation16 + $0x458] ss:$24 sps:$4 sm:$0xff]  }
0x1734   : > { %v22875_v15 = vpack.c.bf16 %v9735_v60, %v22704_v17  ;;  %v17702_v58 = vpop.f32.mrb[45].mxu1  ;;  %v19913_v17 = vld [vmem:[#allocation16 + $0x364] ss:$24 sps:$4 sm:$0xff]   ;;  %v19959_v60 = vld [vmem:[#allocation16 + $0x4e0] ss:$24 sps:$4 sm:$0xff]  }
0x1735   : > { %v9738_v33 = vpop.f32.mrb[46].mxu1  ;;  %v19967_v58 = vld [vmem:[#allocation16 + $0x514] ss:$24 sps:$4 sm:$0xff]  }
0x1736   : > { %v17703_v47 = vpop.f32.mrb[47].mxu1  ;;  %11935 = vmatprep.mubr.bf16.mxu0 %v22875_v15  ;;  %12059 = vmatpush1.bf16.msra.mxu1 %v19896_v18  ;;  %v19964_v18 = vld [vmem:[#allocation16 + $0x48c] ss:$24 sps:$4 sm:$0xff]   ;;  %v19965_v33 = vld [vmem:[#allocation16 + $0x510] ss:$24 sps:$4 sm:$0xff]  }
0x1737   : > { %12064 = vmatprep.mubr.bf16.mxu1 %v22875_v15  ;;  %11936 = vmatmul.mubr.bf16.vlgmr.msra.gmra.mrb[108].mxu0 %v22872_v55  ;;  %v19968_v47 = vld [vmem:[#allocation16 + $0x4b8] ss:$24 sps:$4 sm:$0xff]  }
0x1738   : > { %11947 = vmatpush1.bf16.msra.mxu0 %v19899_v12  ;;  %12060 = vmatprep.subr.bf16.mxu1 %v19904_v21  ;;  %v19962_v12 = vld [vmem:[#allocation16 + $0x488] ss:$24 sps:$4 sm:$0xff]   ;;  %v19970_v21 = vld [vmem:[#allocation16 + $0x4bc] ss:$24 sps:$4 sm:$0xff]  }
0x1739   : > { %11948 = vmatprep.subr.bf16.mxu0 %v19907_v28  ;;  %v19973_v28 = vld [vmem:[#allocation16 + $0x544] ss:$24 sps:$4 sm:$0xff]  }
0x173a   : > { %12061 = vmatpush1.bf16.msra.mxu1 %v19902_v62  ;;  %v19976_v62 = vld [vmem:[#allocation16 + $0x4ec] ss:$24 sps:$4 sm:$0xff]  }
0x173b   : > { %v9834_v32 = vpop.f32.mrb[48].mxu1  ;;  %12062 = vmatprep.subr.bf16.mxu1 %v19910_v3  ;;  %v19971_v3 = vld [vmem:[#allocation16 + $0x540] ss:$24 sps:$4 sm:$0xff]  }
0x173c   : > { %v22881_v42 = vpack.c.bf16 %v9834_v32, %v22722_v2  ;;  %11949 = vmatpush1.bf16.msra.mxu0 %v19905_v0  ;;  %v17714_v26 = vpop.f32.mrb[49].mxu1  ;;  %v19920_v2 = vld [vmem:[#allocation16 + $0x338] ss:$24 sps:$4 sm:$0xff]   ;;  %v19979_v0 = vld [vmem:[#allocation16 + $0x574] ss:$24 sps:$4 sm:$0xff]  }
0x173d   : > { %v9837_v46 = vpop.f32.mrb[50].mxu1  ;;  %11950 = vmatprep.subr.bf16.mxu0 %v19913_v17  ;;  %v19974_v17 = vld [vmem:[#allocation16 + $0x4e8] ss:$24 sps:$4 sm:$0xff]   ;;  %v19980_v26 = vld [vmem:[#allocation16 + $0x518] ss:$24 sps:$4 sm:$0xff]  }
0x173e   : > { %v17715_v13 = vpop.f32.mrb[51].mxu1  ;;  %12063 = vmatpush1.bf16.msra.mxu1 %v19908_v4  ;;  %v19982_v4 = vld [vmem:[#allocation16 + $0x51c] ss:$24 sps:$4 sm:$0xff]   ;;  %v19977_v32 = vld [vmem:[#allocation16 + $0x570] ss:$24 sps:$4 sm:$0xff]  }
0x173f   : > { %12075 = vmatprep.subr.bf16.mxu1 %v19916_v53  ;;  %v19985_v53 = vld [vmem:[#allocation16 + $0x5a4] ss:$24 sps:$4 sm:$0xff]   ;;  %v19983_v46 = vld [vmem:[#allocation16 + $0x5a0] ss:$24 sps:$4 sm:$0xff]  }
0x1740   : > { %11951 = vmatpush1.bf16.msra.mxu0 %v19911_v49  ;;  %v19988_v49 = vld [vmem:[#allocation16 + $0x54c] ss:$24 sps:$4 sm:$0xff]   ;;  %v19986_v13 = vld [vmem:[#allocation16 + $0x548] ss:$24 sps:$4 sm:$0xff]  }
0x1741   : > { %12065 = vmatmul.mubr.bf16.vlgmr.msra.gmra.mrb[64].mxu1 %v22872_v55  ;;  %11952 = vmatprep.subr.bf16.mxu0 %v19919_v14  ;;  %v19991_v14 = vld [vmem:[#allocation16 + $0x5d4] ss:$24 sps:$4 sm:$0xff]  }
0x1742   : > { %12076 = vmatpush1.bf16.msra.mxu1 %v19914_v16  ;;  %v19994_v16 = vld [vmem:[#allocation16 + $0x57c] ss:$24 sps:$4 sm:$0xff]  }
0x1743   : > { %v9933_v43 = vpop.f32.mrb[52].mxu1  ;;  %12077 = vmatprep.subr.bf16.mxu1 %v19922_v63  ;;  %v19989_v63 = vld [vmem:[#allocation16 + $0x5d0] ss:$24 sps:$4 sm:$0xff]  }
0x1744   : > { %v22885_v34 = vpack.c.bf16 %v9933_v43, %v22736_v19  ;;  %11953 = vmatpush1.bf16.msra.mxu0 %v19917_v41  ;;  %v17726_v24 = vpop.f32.mrb[53].mxu1  ;;  %v19937_v19 = vld [vmem:[#allocation16 + $0x424] ss:$24 sps:$4 sm:$0xff]   ;;  %v20001_v43 = vld [vmem:[#allocation16 + $0x600] ss:$24 sps:$4 sm:$0xff]  }
0x1745   : > { %v9936_v27 = vpop.f32.mrb[54].mxu1  ;;  %11954 = vmatprep.subr.bf16.mxu0 %v19925_v51  ;;  %v20003_v41 = vld [vmem:[#allocation16 + $0x604] ss:$24 sps:$4 sm:$0xff]   ;;  %v19992_v51 = vld [vmem:[#allocation16 + $0x578] ss:$24 sps:$4 sm:$0xff]  }
0x1746   : > { %v17727_v54 = vpop.f32.mrb[55].mxu1  ;;  %11978 = vmatprep.mubr.bf16.mxu0 %v22885_v34  ;;  %12078 = vmatpush1.bf16.msra.mxu1 %v19920_v2  ;;  %v19997_v2 = vld [vmem:[#allocation16 + $0x5ac] ss:$24 sps:$4 sm:$0xff]   ;;  %v19995_v24 = vld [vmem:[#allocation16 + $0x5a8] ss:$24 sps:$4 sm:$0xff]  }
0x1747   : > { %12107 = vmatprep.mubr.bf16.mxu1 %v22885_v34  ;;  %12079 = vmatprep.subr.bf16.mxu1 %v19928_v57  ;;  %v20009_v57 = vld [vmem:[#allocation16 + $0x634] ss:$24 sps:$4 sm:$0xff]   ;;  %v20007_v27 = vld [vmem:[#allocation16 + $0x630] ss:$24 sps:$4 sm:$0xff]  }
0x1748   : > { %11955 = vmatpush1.bf16.msra.mxu0 %v19923_v9  ;;  %v20000_v9 = vld [vmem:[#allocation16 + $0x5dc] ss:$24 sps:$4 sm:$0xff]   ;;  %v19998_v54 = vld [vmem:[#allocation16 + $0x5d8] ss:$24 sps:$4 sm:$0xff]  }
0x1749   : > { %11956 = vmatprep.subr.bf16.mxu0 %v19931_v20  ;;  %v20015_v20 = vld [vmem:[#allocation16 + $0x664] ss:$24 sps:$4 sm:$0xff]  }
0x174a   : > { %12080 = vmatpush1.bf16.msra.mxu1 %v19926_v37  ;;  %v20006_v37 = vld [vmem:[#allocation16 + $0x60c] ss:$24 sps:$4 sm:$0xff]  }
0x174b   : > { %12081 = vmatprep.subr.bf16.mxu1 %v19934_v45  ;;  %v20013_v45 = vld [vmem:[#allocation16 + $0x660] ss:$24 sps:$4 sm:$0xff]  }
0x174c   : > { %11957 = vmatpush1.bf16.msra.mxu0 %v19929_v31  ;;  %v20021_v31 = vld [vmem:[#allocation16 + $0x694] ss:$24 sps:$4 sm:$0xff]  }
0x174d   : > { %11958 = vmatprep.subr.bf16.mxu0 %v19937_v19  ;;  %v20004_v19 = vld [vmem:[#allocation16 + $0x608] ss:$24 sps:$4 sm:$0xff]  }
0x174e   : > { %12082 = vmatpush1.bf16.msra.mxu1 %v19932_v10  ;;  %v20012_v10 = vld [vmem:[#allocation16 + $0x63c] ss:$24 sps:$4 sm:$0xff]  }
0x174f   : > { %12083 = vmatprep.subr.bf16.mxu1 %v19940_v40  ;;  %v20019_v40 = vld [vmem:[#allocation16 + $0x690] ss:$24 sps:$4 sm:$0xff]  }
0x1750   : > { %11959 = vmatpush1.bf16.msra.mxu0 %v19935_v1  ;;  %v20027_v1 = vld [vmem:[#allocation16 + $0x6c4] ss:$24 sps:$4 sm:$0xff]  }
0x1751   : > { %11960 = vmatprep.subr.bf16.mxu0 %v19943_v38  ;;  %v20010_v38 = vld [vmem:[#allocation16 + $0x638] ss:$24 sps:$4 sm:$0xff]  }
0x1752   : > { %12084 = vmatpush1.bf16.msra.mxu1 %v19938_v59  ;;  %v20018_v59 = vld [vmem:[#allocation16 + $0x66c] ss:$24 sps:$4 sm:$0xff]  }
0x1753   : > { %12085 = vmatprep.subr.bf16.mxu1 %v19946_v48  ;;  %v20025_v48 = vld [vmem:[#allocation16 + $0x6c0] ss:$24 sps:$4 sm:$0xff]  }
0x1754   : > { %11961 = vmatpush1.bf16.msra.mxu0 %v19941_v39  ;;  %v20033_v39 = vld [vmem:[#allocation16 + $0x6f4] ss:$24 sps:$4 sm:$0xff]  }
0x1755   : > { %11962 = vmatprep.subr.bf16.mxu0 %v19949_v23  ;;  %v20016_v23 = vld [vmem:[#allocation16 + $0x668] ss:$24 sps:$4 sm:$0xff]  }
0x1756   : > { %12086 = vmatpush1.bf16.msra.mxu1 %v19944_v35  ;;  %v20024_v35 = vld [vmem:[#allocation16 + $0x69c] ss:$24 sps:$4 sm:$0xff]  }
0x1757   : > { %12087 = vmatprep.subr.bf16.mxu1 %v19952_v36  ;;  %v20031_v36 = vld [vmem:[#allocation16 + $0x6f0] ss:$24 sps:$4 sm:$0xff]  }
0x1758   : > { %11963 = vmatpush1.bf16.msra.mxu0 %v19947_v11  ;;  %v20039_v11 = vld [vmem:[#allocation16 + $0x724] ss:$24 sps:$4 sm:$0xff]  }
0x1759   : > { %11964 = vmatprep.subr.bf16.mxu0 %v19955_v22  ;;  %v20022_v22 = vld [vmem:[#allocation16 + $0x698] ss:$24 sps:$4 sm:$0xff]  }
0x175a   : > { %12088 = vmatpush1.bf16.msra.mxu1 %v19950_v7  ;;  %v20030_v7 = vld [vmem:[#allocation16 + $0x6cc] ss:$24 sps:$4 sm:$0xff]  }
0x175b   : > { %12089 = vmatprep.subr.bf16.mxu1 %v19958_v8  ;;  %v20037_v8 = vld [vmem:[#allocation16 + $0x720] ss:$24 sps:$4 sm:$0xff]  }
0x175c   : > { %11965 = vmatpush1.bf16.msra.mxu0 %v19953_v25  ;;  %v20045_v25 = vld [vmem:[#allocation16 + $0x754] ss:$24 sps:$4 sm:$0xff]  }
0x175d   : > { %11966 = vmatprep.subr.bf16.mxu0 %v19961_v44  ;;  %v20028_v44 = vld [vmem:[#allocation16 + $0x6c8] ss:$24 sps:$4 sm:$0xff]  }
0x175e   : > { %12090 = vmatpush1.bf16.msra.mxu1 %v19956_v5  ;;  %v20036_v5 = vld [vmem:[#allocation16 + $0x6fc] ss:$24 sps:$4 sm:$0xff]  }
0x175f   : > { %12091 = vmatprep.subr.bf16.mxu1 %v19964_v18  ;;  %v20043_v18 = vld [vmem:[#allocation16 + $0x750] ss:$24 sps:$4 sm:$0xff]  }
0x1760   : > { %11967 = vmatpush1.bf16.msra.mxu0 %v19959_v60  ;;  %v20051_v60 = vld [vmem:[#allocation16 + $0x784] ss:$24 sps:$4 sm:$0xff]  }
0x1761   : > { %11968 = vmatprep.subr.bf16.mxu0 %v19967_v58  ;;  %v20034_v58 = vld [vmem:[#allocation16 + $0x6f8] ss:$24 sps:$4 sm:$0xff]  }
0x1762   : > { %12092 = vmatpush1.bf16.msra.mxu1 %v19962_v12  ;;  %v20042_v12 = vld [vmem:[#allocation16 + $0x72c] ss:$24 sps:$4 sm:$0xff]  }
0x1763   : > { %12093 = vmatprep.subr.bf16.mxu1 %v19970_v21  ;;  %v20049_v21 = vld [vmem:[#allocation16 + $0x780] ss:$24 sps:$4 sm:$0xff]  }
0x1764   : > { %11969 = vmatpush1.bf16.msra.mxu0 %v19965_v33  ;;  %v20057_v33 = vld [vmem:[#allocation16 + $0x7b4] ss:$24 sps:$4 sm:$0xff]  }
0x1765   : > { %11970 = vmatprep.subr.bf16.mxu0 %v19973_v28  ;;  %v20040_v28 = vld [vmem:[#allocation16 + $0x728] ss:$24 sps:$4 sm:$0xff]  }
0x1766   : > { %12094 = vmatpush1.bf16.msra.mxu1 %v19968_v47  ;;  %v20048_v47 = vld [vmem:[#allocation16 + $0x75c] ss:$24 sps:$4 sm:$0xff]  }
0x1767   : > { %12095 = vmatprep.subr.bf16.mxu1 %v19976_v62  ;;  %v20055_v62 = vld [vmem:[#allocation16 + $0x7b0] ss:$24 sps:$4 sm:$0xff]  }
0x1768   : > { %11971 = vmatpush1.bf16.msra.mxu0 %v19971_v3  ;;  %v20063_v3 = vld [vmem:[#allocation16 + $0x7e4] ss:$24 sps:$4 sm:$0xff]  }
0x1769   : > { %11972 = vmatprep.subr.bf16.mxu0 %v19979_v0  ;;  %v20046_v0 = vld [vmem:[#allocation16 + $0x758] ss:$24 sps:$4 sm:$0xff]  }
0x176a   : > { %12096 = vmatpush1.bf16.msra.mxu1 %v19974_v17  ;;  %v20054_v17 = vld [vmem:[#allocation16 + $0x78c] ss:$24 sps:$4 sm:$0xff]  }
0x176b   : > { %12097 = vmatprep.subr.bf16.mxu1 %v19982_v4  ;;  %v20061_v4 = vld [vmem:[#allocation16 + $0x7e0] ss:$24 sps:$4 sm:$0xff]  }
0x176c   : > { %11973 = vmatpush1.bf16.msra.mxu0 %v19977_v32  ;;  %v20069_v32 = vld [vmem:[#allocation16 + $0x814] ss:$24 sps:$4 sm:$0xff]  }
0x176d   : > { %11974 = vmatprep.subr.bf16.mxu0 %v19985_v53  ;;  %v20052_v53 = vld [vmem:[#allocation16 + $0x788] ss:$24 sps:$4 sm:$0xff]  }
0x176e   : > { %12098 = vmatpush1.bf16.msra.mxu1 %v19980_v26  ;;  %v20060_v26 = vld [vmem:[#allocation16 + $0x7bc] ss:$24 sps:$4 sm:$0xff]  }
0x176f   : > { %12099 = vmatprep.subr.bf16.mxu1 %v19988_v49  ;;  %v20067_v49 = vld [vmem:[#allocation16 + $0x810] ss:$24 sps:$4 sm:$0xff]  }
0x1770   : > { %11975 = vmatpush1.bf16.msra.mxu0 %v19983_v46  ;;  %v20075_v46 = vld [vmem:[#allocation16 + $0x844] ss:$24 sps:$4 sm:$0xff]  }
0x1771   : > { %11976 = vmatprep.subr.bf16.mxu0 %v19991_v14  ;;  %v20058_v14 = vld [vmem:[#allocation16 + $0x7b8] ss:$24 sps:$4 sm:$0xff]  }
0x1772   : > { %12100 = vmatpush1.bf16.msra.mxu1 %v19986_v13  ;;  %v20066_v13 = vld [vmem:[#allocation16 + $0x7ec] ss:$24 sps:$4 sm:$0xff]  }
0x1773   : > { %12101 = vmatprep.subr.bf16.mxu1 %v19994_v16  ;;  %v20073_v16 = vld [vmem:[#allocation16 + $0x840] ss:$24 sps:$4 sm:$0xff]  }
0x1774   : > { %11977 = vmatpush1.bf16.msra.mxu0 %v19989_v63  ;;  %v20081_v63 = vld [vmem:[#allocation16 + $0x874] ss:$24 sps:$4 sm:$0xff]  }
0x1775   : > { %11989 = vmatprep.subr.bf16.mxu0 %v20003_v41  ;;  %v20064_v41 = vld [vmem:[#allocation16 + $0x7e8] ss:$24 sps:$4 sm:$0xff]  }
0x1776   : > { %12102 = vmatpush1.bf16.msra.mxu1 %v19992_v51  ;;  %v20072_v51 = vld [vmem:[#allocation16 + $0x81c] ss:$24 sps:$4 sm:$0xff]  }
0x1777   : > { %11979 = vmatmul.mubr.bf16.vlgmr.msra.gmra.mrb[108].mxu0 %v22881_v42  ;;  %12103 = vmatprep.subr.bf16.mxu1 %v19997_v2  ;;  %v20079_v2 = vld [vmem:[#allocation16 + $0x870] ss:$24 sps:$4 sm:$0xff]  }
0x1778   : > { %11990 = vmatpush1.bf16.msra.mxu0 %v20001_v43  ;;  %v20087_v43 = vld [vmem:[#allocation16 + $0x8a4] ss:$24 sps:$4 sm:$0xff]  }
0x1779   : > { %11991 = vmatprep.subr.bf16.mxu0 %v20009_v57  ;;  %v20070_v57 = vld [vmem:[#allocation16 + $0x818] ss:$24 sps:$4 sm:$0xff]  }
0x177a   : > { %12104 = vmatpush1.bf16.msra.mxu1 %v19995_v24  ;;  %v20078_v24 = vld [vmem:[#allocation16 + $0x84c] ss:$24 sps:$4 sm:$0xff]  }
0x177b   : > { %12105 = vmatprep.subr.bf16.mxu1 %v20000_v9  ;;  %v20085_v9 = vld [vmem:[#allocation16 + $0x8a0] ss:$24 sps:$4 sm:$0xff]  }
0x177c   : > { %11992 = vmatpush1.bf16.msra.mxu0 %v20007_v27  ;;  %v20093_v27 = vld [vmem:[#allocation16 + $0x8d4] ss:$24 sps:$4 sm:$0xff]  }
0x177d   : > { %11993 = vmatprep.subr.bf16.mxu0 %v20015_v20  ;;  %v20076_v20 = vld [vmem:[#allocation16 + $0x848] ss:$24 sps:$4 sm:$0xff]  }
0x177e   : > { %12106 = vmatpush1.bf16.msra.mxu1 %v19998_v54  ;;  %v20084_v54 = vld [vmem:[#allocation16 + $0x87c] ss:$24 sps:$4 sm:$0xff]  }
0x177f   : > { %12118 = vmatprep.subr.bf16.mxu1 %v20006_v37  ;;  %v20091_v37 = vld [vmem:[#allocation16 + $0x8d0] ss:$24 sps:$4 sm:$0xff]  }
0x1780   : > { %11994 = vmatpush1.bf16.msra.mxu0 %v20013_v45  ;;  %v20099_v45 = vld [vmem:[#allocation16 + $0x14] ss:$24 sps:$4 sm:$0xff]  }
0x1781   : > { %12108 = vmatmul.mubr.bf16.vlgmr.msra.gmra.mrb[64].mxu1 %v22881_v42  ;;  %11995 = vmatprep.subr.bf16.mxu0 %v20021_v31  ;;  %v20082_v31 = vld [vmem:[#allocation16 + $0x878] ss:$24 sps:$4 sm:$0xff]  }
0x1782   : > { %12119 = vmatpush1.bf16.msra.mxu1 %v20004_v19  ;;  %v20090_v19 = vld [vmem:[#allocation16 + $0x8ac] ss:$24 sps:$4 sm:$0xff]  }
0x1783   : > { %12120 = vmatprep.subr.bf16.mxu1 %v20012_v10  ;;  %v20088_v10 = vld [vmem:[#allocation16 + $0x8a8] ss:$24 sps:$4 sm:$0xff]  }
0x1784   : > { %11996 = vmatpush1.bf16.msra.mxu0 %v20019_v40  ;;  %v20096_v40 = vld [vmem:[#allocation16 + $0x8dc] ss:$24 sps:$4 sm:$0xff]  }
0x1785   : > { %11997 = vmatprep.subr.bf16.mxu0 %v20027_v1  ;;  %v20094_v1 = vld [vmem:[#allocation16 + $0x8d8] ss:$24 sps:$4 sm:$0xff]  }
0x1786   : > { %12121 = vmatpush1.bf16.msra.mxu1 %v20010_v38 }
0x1787   : > { %12122 = vmatprep.subr.bf16.mxu1 %v20018_v59 }
0x1788   : > { %11998 = vmatpush1.bf16.msra.mxu0 %v20025_v48 }
0x1789   : > { %11999 = vmatprep.subr.bf16.mxu0 %v20033_v39 }
0x178a   : > { %12123 = vmatpush1.bf16.msra.mxu1 %v20016_v23 }
0x178b   : > { %12124 = vmatprep.subr.bf16.mxu1 %v20024_v35 }
0x178c   : > { %12000 = vmatpush1.bf16.msra.mxu0 %v20031_v36 }
0x178d   : > { %12001 = vmatprep.subr.bf16.mxu0 %v20039_v11 }
0x178e   : > { %12125 = vmatpush1.bf16.msra.mxu1 %v20022_v22  ;;  %v20097_v22 = vld [vmem:[#allocation16 + $0x10] ss:$24 sps:$4 sm:$0xff]  }
0x178f   : > { %12126 = vmatprep.subr.bf16.mxu1 %v20030_v7 }
0x1790   : > { %12002 = vmatpush1.bf16.msra.mxu0 %v20037_v8  ;;  %v20102_v8 = vld [vmem:[#allocation16 + $0x44] ss:$24 sps:$4 sm:$0xff]  }
0x1791   : > { %12003 = vmatprep.subr.bf16.mxu0 %v20045_v25 }
0x1792   : > { %12127 = vmatpush1.bf16.msra.mxu1 %v20028_v44  ;;  %v20103_v44 = vld [vmem:[#allocation16 + $0x70] ss:$24 sps:$4 sm:$0xff]  }
0x1793   : > { %12128 = vmatprep.subr.bf16.mxu1 %v20036_v5  ;;  %v20108_v5 = vld [vmem:[#allocation16 + $0xa4] ss:$24 sps:$4 sm:$0xff]  }
0x1794   : > { %12004 = vmatpush1.bf16.msra.mxu0 %v20043_v18  ;;  %v20106_v18 = vld [vmem:[#allocation16 + $0xa0] ss:$24 sps:$4 sm:$0xff]  }
0x1795   : > { %12005 = vmatprep.subr.bf16.mxu0 %v20051_v60  ;;  %v20111_v60 = vld [vmem:[#allocation16 + $0xd4] ss:$24 sps:$4 sm:$0xff]  }
0x1796   : > { %12129 = vmatpush1.bf16.msra.mxu1 %v20034_v58  ;;  %v20109_v58 = vld [vmem:[#allocation16 + $0xd0] ss:$24 sps:$4 sm:$0xff]  }
0x1797   : > { %12130 = vmatprep.subr.bf16.mxu1 %v20042_v12  ;;  %v20114_v12 = vld [vmem:[#allocation16 + $0x104] ss:$24 sps:$4 sm:$0xff]  }
0x1798   : > { %12006 = vmatpush1.bf16.msra.mxu0 %v20049_v21  ;;  %v20112_v21 = vld [vmem:[#allocation16 + $0x100] ss:$24 sps:$4 sm:$0xff]  }
0x1799   : > { %12007 = vmatprep.subr.bf16.mxu0 %v20057_v33  ;;  %v20117_v33 = vld [vmem:[#allocation16 + $0x134] ss:$24 sps:$4 sm:$0xff]  }
0x179a   : > { %12131 = vmatpush1.bf16.msra.mxu1 %v20040_v28  ;;  %v20120_v28 = vld [vmem:[#allocation16 + $0x164] ss:$24 sps:$4 sm:$0xff]  }
0x179b   : > { %12132 = vmatprep.subr.bf16.mxu1 %v20048_v47  ;;  %v20118_v47 = vld [vmem:[#allocation16 + $0x160] ss:$24 sps:$4 sm:$0xff]  }
0x179c   : > { %12008 = vmatpush1.bf16.msra.mxu0 %v20055_v62  ;;  %v20123_v62 = vld [vmem:[#allocation16 + $0x194] ss:$24 sps:$4 sm:$0xff]  }
0x179d   : > { %12009 = vmatprep.subr.bf16.mxu0 %v20063_v3  ;;  %v20121_v3 = vld [vmem:[#allocation16 + $0x190] ss:$24 sps:$4 sm:$0xff]  }
0x179e   : > { %12133 = vmatpush1.bf16.msra.mxu1 %v20046_v0  ;;  %v20126_v0 = vld [vmem:[#allocation16 + $0x1c4] ss:$24 sps:$4 sm:$0xff]  }
0x179f   : > { %12134 = vmatprep.subr.bf16.mxu1 %v20054_v17  ;;  %v20124_v17 = vld [vmem:[#allocation16 + $0x1c0] ss:$24 sps:$4 sm:$0xff]  }
0x17a0   : > { %12010 = vmatpush1.bf16.msra.mxu0 %v20061_v4  ;;  %v20129_v4 = vld [vmem:[#allocation16 + $0x1f4] ss:$24 sps:$4 sm:$0xff]  }
0x17a1   : > { %12011 = vmatprep.subr.bf16.mxu0 %v20069_v32  ;;  %v20127_v32 = vld [vmem:[#allocation16 + $0x1f0] ss:$24 sps:$4 sm:$0xff]  }
0x17a2   : > { %12135 = vmatpush1.bf16.msra.mxu1 %v20052_v53  ;;  %v20132_v53 = vld [vmem:[#allocation16 + $0x224] ss:$24 sps:$4 sm:$0xff]  }
0x17a3   : > { %12136 = vmatprep.subr.bf16.mxu1 %v20060_v26  ;;  %v20130_v26 = vld [vmem:[#allocation16 + $0x220] ss:$24 sps:$4 sm:$0xff]  }
0x17a4   : > { %12012 = vmatpush1.bf16.msra.mxu0 %v20067_v49  ;;  %v20135_v49 = vld [vmem:[#allocation16 + $0x254] ss:$24 sps:$4 sm:$0xff]  }
0x17a5   : > { %12013 = vmatprep.subr.bf16.mxu0 %v20075_v46  ;;  %v20133_v46 = vld [vmem:[#allocation16 + $0x250] ss:$24 sps:$4 sm:$0xff]  }
0x17a6   : > { %12137 = vmatpush1.bf16.msra.mxu1 %v20058_v14  ;;  %v20138_v14 = vld [vmem:[#allocation16 + $0x284] ss:$24 sps:$4 sm:$0xff]  }
0x17a7   : > { %12138 = vmatprep.subr.bf16.mxu1 %v20066_v13  ;;  %v20136_v13 = vld [vmem:[#allocation16 + $0x280] ss:$24 sps:$4 sm:$0xff]  }
0x17a8   : > { %12014 = vmatpush1.bf16.msra.mxu0 %v20073_v16  ;;  %v20141_v16 = vld [vmem:[#allocation16 + $0x2b4] ss:$24 sps:$4 sm:$0xff]  }
0x17a9   : > { %12015 = vmatprep.subr.bf16.mxu0 %v20081_v63  ;;  %v20139_v63 = vld [vmem:[#allocation16 + $0x2b0] ss:$24 sps:$4 sm:$0xff]  }
0x17aa   : > { %12139 = vmatpush1.bf16.msra.mxu1 %v20064_v41  ;;  %v20144_v41 = vld [vmem:[#allocation16 + $0x2e4] ss:$24 sps:$4 sm:$0xff]  }
0x17ab   : > { %12140 = vmatprep.subr.bf16.mxu1 %v20072_v51  ;;  %v20142_v51 = vld [vmem:[#allocation16 + $0x2e0] ss:$24 sps:$4 sm:$0xff]  }
0x17ac   : > { %12016 = vmatpush1.bf16.msra.mxu0 %v20079_v2  ;;  %v20147_v2 = vld [vmem:[#allocation16 + $0x314] ss:$24 sps:$4 sm:$0xff]  }
0x17ad   : > { %12017 = vmatprep.subr.bf16.mxu0 %v20087_v43  ;;  %v20145_v43 = vld [vmem:[#allocation16 + $0x310] ss:$24 sps:$4 sm:$0xff]  }
0x17ae   : > { %12141 = vmatpush1.bf16.msra.mxu1 %v20070_v57  ;;  %v20150_v57 = vld [vmem:[#allocation16 + $0x344] ss:$24 sps:$4 sm:$0xff]  }
0x17af   : > { %12142 = vmatprep.subr.bf16.mxu1 %v20078_v24  ;;  %v20148_v24 = vld [vmem:[#allocation16 + $0x340] ss:$24 sps:$4 sm:$0xff]  }
0x17b0   : > { %12018 = vmatpush1.bf16.msra.mxu0 %v20085_v9  ;;  %v20153_v9 = vld [vmem:[#allocation16 + $0x374] ss:$24 sps:$4 sm:$0xff]  }
0x17b1   : > { %12019 = vmatprep.subr.bf16.mxu0 %v20093_v27  ;;  %v20151_v27 = vld [vmem:[#allocation16 + $0x370] ss:$24 sps:$4 sm:$0xff]  }
0x17b2   : > { %12143 = vmatpush1.bf16.msra.mxu1 %v20076_v20  ;;  %v20156_v20 = vld [vmem:[#allocation16 + $0x3a4] ss:$24 sps:$4 sm:$0xff]  }
0x17b3   : > { %12144 = vmatprep.subr.bf16.mxu1 %v20084_v54  ;;  %v20154_v54 = vld [vmem:[#allocation16 + $0x3a0] ss:$24 sps:$4 sm:$0xff]  }
0x17b4   : > { %12020 = vmatpush1.bf16.msra.mxu0 %v20091_v37  ;;  %v20159_v37 = vld [vmem:[#allocation16 + $0x3d4] ss:$24 sps:$4 sm:$0xff]  }
0x17b5   : > { %12161 = vmatprep.subr.bf16.mxu0 %v20099_v45  ;;  %v20157_v45 = vld [vmem:[#allocation16 + $0x3d0] ss:$24 sps:$4 sm:$0xff]  }
0x17b6   : > { %12145 = vmatpush1.bf16.msra.mxu1 %v20082_v31  ;;  %v20162_v31 = vld [vmem:[#allocation16 + $0x404] ss:$24 sps:$4 sm:$0xff]  }
0x17b7   : > { %12146 = vmatprep.subr.bf16.mxu1 %v20090_v19  ;;  %v20165_v19 = vld [vmem:[#allocation16 + $0x434] ss:$24 sps:$4 sm:$0xff]  }
0x17ba   : > { %12147 = vmatpush1.bf16.msra.mxu1 %v20088_v10  ;;  %v20168_v10 = vld [vmem:[#allocation16 + $0x464] ss:$24 sps:$4 sm:$0xff]  }
0x17bb   : > { %12148 = vmatprep.subr.bf16.mxu1 %v20096_v40  ;;  %v20166_v40 = vld [vmem:[#allocation16 + $0x460] ss:$24 sps:$4 sm:$0xff]  }
0x17be   : > { %12149 = vmatpush1.bf16.msra.mxu1 %v20094_v1  ;;  %v20171_v1 = vld [vmem:[#allocation16 + $0x494] ss:$24 sps:$4 sm:$0xff]  }
0x17cc   : > { %v10032_v38 = vpop.f32.mrb[56].mxu1 }
0x17cd   : > { %v22892_v59 = vpack.c.bf16 %v10032_v38, %v22768_v56  ;;  %v17738_v48 = vpop.f32.mrb[57].mxu1  ;;  %v20100_v56 = vld [vmem:[#allocation16 + $0x40] ss:$24 sps:$4 sm:$0xff]   ;;  %v20169_v38 = vld [vmem:[#allocation16 + $0x490] ss:$24 sps:$4 sm:$0xff]  }
0x17ce   : > { %v10035_v39 = vpop.f32.mrb[58].mxu1  ;;  %v20174_v48 = vld [vmem:[#allocation16 + $0x4c4] ss:$24 sps:$4 sm:$0xff]  }
0x17cf   : > { %v17739_v23 = vpop.f32.mrb[59].mxu1  ;;  %v20172_v39 = vld [vmem:[#allocation16 + $0x4c0] ss:$24 sps:$4 sm:$0xff]  }
0x17d0   : > { %v20177_v23 = vld [vmem:[#allocation16 + $0x4f4] ss:$24 sps:$4 sm:$0xff]  }
0x17d4   : > { %v10131_v35 = vpop.f32.mrb[60].mxu1 }
0x17d5   : > { %v22895_v36 = vpack.c.bf16 %v10131_v35, %v22814_v61  ;;  %v17750_v11 = vpop.f32.mrb[61].mxu1  ;;  %v20105_v61 = vld [vmem:[#allocation16 + $0x74] ss:$24 sps:$4 sm:$0xff]   ;;  %v20175_v35 = vld [vmem:[#allocation16 + $0x4f0] ss:$24 sps:$4 sm:$0xff]  }
0x17d6   : > { %v10134_v7 = vpop.f32.mrb[62].mxu1  ;;  %v20180_v11 = vld [vmem:[#allocation16 + $0x524] ss:$24 sps:$4 sm:$0xff]  }
0x17d7   : > { %v17751_v25 = vpop.f32.mrb[63].mxu1  ;;  %12021 = vmatprep.mubr.bf16.mxu0 %v22895_v36  ;;  %12150 = vmatprep.mubr.bf16.mxu1 %v22895_v36  ;;  %v20183_v7 = vld [vmem:[#allocation16 + $0x554] ss:$24 sps:$4 sm:$0xff]  }
0x17d8   : > { %12022 = vmatmul.mubr.bf16.vlgmr.msra.gmra.mrb[108].mxu0 %v22892_v59  ;;  %12151 = vmatmul.mubr.bf16.vlgmr.msra.gmra.mrb[64].mxu1 %v22892_v59  ;;  %v20186_v25 = vld [vmem:[#allocation16 + $0x584] ss:$24 sps:$4 sm:$0xff]  }
0x17d9   : > { %12162 = vmatpush1.bf16.msra.mxu0 %v20097_v22  ;;  %12193 = vmatprep.mubr.bf16.mxu0 %v22875_v15  ;;  %v20115_v15 = vld [vmem:[#allocation16 + $0x130] ss:$24 sps:$4 sm:$0xff]   ;;  %v20178_v22 = vld [vmem:[#allocation16 + $0x520] ss:$24 sps:$4 sm:$0xff]  }
0x17da   : > { %12163 = vmatprep.subr.bf16.mxu0 %v20102_v8  ;;  %v20181_v8 = vld [vmem:[#allocation16 + $0x550] ss:$24 sps:$4 sm:$0xff]  }
0x17dd   : > { %12164 = vmatpush1.bf16.msra.mxu0 %v20100_v56  ;;  %v20184_v56 = vld [vmem:[#allocation16 + $0x580] ss:$24 sps:$4 sm:$0xff]  }
0x17de   : > { %12165 = vmatprep.subr.bf16.mxu0 %v20105_v61  ;;  %v20189_v61 = vld [vmem:[#allocation16 + $0x5b4] ss:$24 sps:$4 sm:$0xff]  }
0x17e1   : > { %12166 = vmatpush1.bf16.msra.mxu0 %v20103_v44  ;;  %v20187_v44 = vld [vmem:[#allocation16 + $0x5b0] ss:$24 sps:$4 sm:$0xff]  }
0x17e2   : > { %12167 = vmatprep.subr.bf16.mxu0 %v20108_v5  ;;  %v20192_v5 = vld [vmem:[#allocation16 + $0x5e4] ss:$24 sps:$4 sm:$0xff]  }
0x17e5   : > { %12168 = vmatpush1.bf16.msra.mxu0 %v20106_v18  ;;  %v20190_v18 = vld [vmem:[#allocation16 + $0x5e0] ss:$24 sps:$4 sm:$0xff]  }
0x17e6   : > { %12169 = vmatprep.subr.bf16.mxu0 %v20111_v60  ;;  %v20195_v60 = vld [vmem:[#allocation16 + $0x614] ss:$24 sps:$4 sm:$0xff]  }
0x17e9   : > { %12170 = vmatpush1.bf16.msra.mxu0 %v20109_v58  ;;  %v20193_v58 = vld [vmem:[#allocation16 + $0x610] ss:$24 sps:$4 sm:$0xff]  }
0x17ea   : > { %12171 = vmatprep.subr.bf16.mxu0 %v20114_v12  ;;  %v20198_v12 = vld [vmem:[#allocation16 + $0x644] ss:$24 sps:$4 sm:$0xff]  }
0x17ed   : > { %12172 = vmatpush1.bf16.msra.mxu0 %v20112_v21  ;;  %v20196_v21 = vld [vmem:[#allocation16 + $0x640] ss:$24 sps:$4 sm:$0xff]  }
0x17ee   : > { %12173 = vmatprep.subr.bf16.mxu0 %v20117_v33  ;;  %v20201_v33 = vld [vmem:[#allocation16 + $0x674] ss:$24 sps:$4 sm:$0xff]  }
0x17f1   : > { %12174 = vmatpush1.bf16.msra.mxu0 %v20115_v15  ;;  %v20199_v15 = vld [vmem:[#allocation16 + $0x670] ss:$24 sps:$4 sm:$0xff]  }
0x17f2   : > { %12175 = vmatprep.subr.bf16.mxu0 %v20120_v28  ;;  %v20204_v28 = vld [vmem:[#allocation16 + $0x6a4] ss:$24 sps:$4 sm:$0xff]  }
0x17f5   : > { %12176 = vmatpush1.bf16.msra.mxu0 %v20118_v47  ;;  %v20202_v47 = vld [vmem:[#allocation16 + $0x6a0] ss:$24 sps:$4 sm:$0xff]  }
0x17f6   : > { %12177 = vmatprep.subr.bf16.mxu0 %v20123_v62  ;;  %v20207_v62 = vld [vmem:[#allocation16 + $0x6d4] ss:$24 sps:$4 sm:$0xff]  }
0x17f9   : > { %12178 = vmatpush1.bf16.msra.mxu0 %v20121_v3  ;;  %v20205_v3 = vld [vmem:[#allocation16 + $0x6d0] ss:$24 sps:$4 sm:$0xff]  }
0x17fa   : > { %12179 = vmatprep.subr.bf16.mxu0 %v20126_v0  ;;  %v20210_v0 = vld [vmem:[#allocation16 + $0x704] ss:$24 sps:$4 sm:$0xff]  }
0x17fd   : > { %12180 = vmatpush1.bf16.msra.mxu0 %v20124_v17  ;;  %v20213_v17 = vld [vmem:[#allocation16 + $0x734] ss:$24 sps:$4 sm:$0xff]  }
0x17fe   : > { %12181 = vmatprep.subr.bf16.mxu0 %v20129_v4  ;;  %v20216_v4 = vld [vmem:[#allocation16 + $0x764] ss:$24 sps:$4 sm:$0xff]  }
0x1801   : > { %12182 = vmatpush1.bf16.msra.mxu0 %v20127_v32  ;;  %v20214_v32 = vld [vmem:[#allocation16 + $0x760] ss:$24 sps:$4 sm:$0xff]  }
0x1802   : > { %12183 = vmatprep.subr.bf16.mxu0 %v20132_v53  ;;  %v20219_v53 = vld [vmem:[#allocation16 + $0x794] ss:$24 sps:$4 sm:$0xff]  }
0x1805   : > { %12184 = vmatpush1.bf16.msra.mxu0 %v20130_v26  ;;  %v20217_v26 = vld [vmem:[#allocation16 + $0x790] ss:$24 sps:$4 sm:$0xff]  }
0x1806   : > { %12185 = vmatprep.subr.bf16.mxu0 %v20135_v49  ;;  %v20222_v49 = vld [vmem:[#allocation16 + $0x7c4] ss:$24 sps:$4 sm:$0xff]  }
0x1809   : > { %12186 = vmatpush1.bf16.msra.mxu0 %v20133_v46  ;;  %v20220_v46 = vld [vmem:[#allocation16 + $0x7c0] ss:$24 sps:$4 sm:$0xff]  }
0x180a   : > { %12187 = vmatprep.subr.bf16.mxu0 %v20138_v14  ;;  %v20225_v14 = vld [vmem:[#allocation16 + $0x7f4] ss:$24 sps:$4 sm:$0xff]  }
0x180d   : > { %12188 = vmatpush1.bf16.msra.mxu0 %v20136_v13  ;;  %v20223_v13 = vld [vmem:[#allocation16 + $0x7f0] ss:$24 sps:$4 sm:$0xff]  }
0x180e   : > { %12189 = vmatprep.subr.bf16.mxu0 %v20141_v16  ;;  %v20228_v16 = vld [vmem:[#allocation16 + $0x824] ss:$24 sps:$4 sm:$0xff]  }
0x1811   : > { %12190 = vmatpush1.bf16.msra.mxu0 %v20139_v63  ;;  %v20226_v63 = vld [vmem:[#allocation16 + $0x820] ss:$24 sps:$4 sm:$0xff]  }
0x1812   : > { %12191 = vmatprep.subr.bf16.mxu0 %v20144_v41  ;;  %v20231_v41 = vld [vmem:[#allocation16 + $0x854] ss:$24 sps:$4 sm:$0xff]  }
0x1815   : > { %12192 = vmatpush1.bf16.msra.mxu0 %v20142_v51  ;;  %v20229_v51 = vld [vmem:[#allocation16 + $0x850] ss:$24 sps:$4 sm:$0xff]  }
0x1816   : > { %12204 = vmatprep.subr.bf16.mxu0 %v20147_v2  ;;  %v20234_v2 = vld [vmem:[#allocation16 + $0x884] ss:$24 sps:$4 sm:$0xff]  }
0x1818   : > { %12194 = vmatmul.mubr.bf16.vlgmr.msra.gmra.mrb[112].mxu0 %v22872_v55  ;;  %v20160_v55 = vld [vmem:[#allocation16 + $0x400] ss:$24 sps:$4 sm:$0xff]  }
0x1819   : > { %12205 = vmatpush1.bf16.msra.mxu0 %v20145_v43  ;;  %12236 = vmatprep.mubr.bf16.mxu0 %v22885_v34  ;;  %v20163_v34 = vld [vmem:[#allocation16 + $0x430] ss:$24 sps:$4 sm:$0xff]   ;;  %v20232_v43 = vld [vmem:[#allocation16 + $0x880] ss:$24 sps:$4 sm:$0xff]  }
0x181a   : > { %12206 = vmatprep.subr.bf16.mxu0 %v20150_v57  ;;  %v20237_v57 = vld [vmem:[#allocation16 + $0x8b4] ss:$24 sps:$4 sm:$0xff]  }
0x181d   : > { %12207 = vmatpush1.bf16.msra.mxu0 %v20148_v24  ;;  %v20235_v24 = vld [vmem:[#allocation16 + $0x8b0] ss:$24 sps:$4 sm:$0xff]  }
0x181e   : > { %12208 = vmatprep.subr.bf16.mxu0 %v20153_v9  ;;  %v20240_v9 = vld [vmem:[#allocation16 + $0x8e4] ss:$24 sps:$4 sm:$0xff]  }
0x1821   : > { %12209 = vmatpush1.bf16.msra.mxu0 %v20151_v27  ;;  %v20238_v27 = vld [vmem:[#allocation16 + $0x8e0] ss:$24 sps:$4 sm:$0xff]  }
0x1822   : > { %12210 = vmatprep.subr.bf16.mxu0 %v20156_v20 }
0x1825   : > { %12211 = vmatpush1.bf16.msra.mxu0 %v20154_v54 }
0x1826   : > { %12212 = vmatprep.subr.bf16.mxu0 %v20159_v37 }
0x1829   : > { %12213 = vmatpush1.bf16.msra.mxu0 %v20157_v45 }
0x182a   : > { %12214 = vmatprep.subr.bf16.mxu0 %v20162_v31 }
0x182d   : > { %12215 = vmatpush1.bf16.msra.mxu0 %v20160_v55 }
0x182e   : > { %12216 = vmatprep.subr.bf16.mxu0 %v20165_v19 }
0x1831   : > { %12217 = vmatpush1.bf16.msra.mxu0 %v20163_v34 }
0x1832   : > { %12218 = vmatprep.subr.bf16.mxu0 %v20168_v10  ;;  %v10431_v10 = vld [vmem:[#allocation17] sm:$0x3f] }
0x1835   : > { %12219 = vmatpush1.bf16.msra.mxu0 %v20166_v40  ;;  %v10436_v40 = vrot.slane %v10431_v10, %v22136_v29 }
0x1836   : > { %12220 = vmatprep.subr.bf16.mxu0 %v20171_v1  ;;  %v10440_v1 = vrot.slane %v10431_v10, %v22139_v30 }
0x1839   : > { %12221 = vmatpush1.bf16.msra.mxu0 %v20169_v38 }
0x183a   : > { %12222 = vmatprep.subr.bf16.mxu0 %v20174_v48 }
0x183d   : > { %12223 = vmatpush1.bf16.msra.mxu0 %v20172_v39  ;;  %v10444_v39 = vrot.slane %v10431_v10, %v22152_v50 }
0x183e   : > { %12224 = vmatprep.subr.bf16.mxu0 %v20177_v23 }
0x1841   : > { %12225 = vmatpush1.bf16.msra.mxu0 %v20175_v35 }
0x1842   : > { %12226 = vmatprep.subr.bf16.mxu0 %v20180_v11  ;;  %v23360_v11 = vld [vmem:[#allocation54_spill] sm:$0xff] }
0x1845   : > { %12227 = vmatpush1.bf16.msra.mxu0 %v20178_v22 }
0x1846   : > { %12228 = vmatprep.subr.bf16.mxu0 %v20183_v7 }
0x1849   : > { %12229 = vmatpush1.bf16.msra.mxu0 %v20181_v8  ;;  %v10448_v8 = vrot.slane %v10431_v10, %v22156_v52 }
0x184a   : > { %12230 = vmatprep.subr.bf16.mxu0 %v20186_v25  ;;  %v23361_v25 = vld [vmem:[#allocation59_spill] sm:$0xff] }
0x184d   : > { %12231 = vmatpush1.bf16.msra.mxu0 %v20184_v56 }
0x184e   : > { %12232 = vmatprep.subr.bf16.mxu0 %v20189_v61  ;;  %v23362_v61 = vld [vmem:[#allocation58_spill] sm:$0xff] }
0x1851   : > { %12233 = vmatpush1.bf16.msra.mxu0 %v20187_v44 }
0x1852   : > { %12234 = vmatprep.subr.bf16.mxu0 %v20192_v5 }
0x1855   : > { %12235 = vmatpush1.bf16.msra.mxu0 %v20190_v18 }
0x1856   : > { %12247 = vmatprep.subr.bf16.mxu0 %v20195_v60  ;;  %v23363_v60 = vld [vmem:[#allocation55_spill] sm:$0xff] }
0x1858   : > { %12237 = vmatmul.mubr.bf16.vlgmr.msra.gmra.mrb[112].mxu0 %v22881_v42  ;;  %v20208_v42 = vld [vmem:[#allocation16 + $0x700] ss:$24 sps:$4 sm:$0xff]  }
0x1859   : > { %12248 = vmatpush1.bf16.msra.mxu0 %v20193_v58  ;;  %12279 = vmatprep.mubr.bf16.mxu0 %v22895_v36  ;;  %v20211_v36 = vld [vmem:[#allocation16 + $0x730] ss:$24 sps:$4 sm:$0xff]  }
0x185a   : > { %12249 = vmatprep.subr.bf16.mxu0 %v20198_v12 }
0x185d   : > { %12250 = vmatpush1.bf16.msra.mxu0 %v20196_v21  ;;  %v23364_v21 = vld [vmem:[#allocation52_spill] sm:$0xff] }
0x185e   : > { %12251 = vmatprep.subr.bf16.mxu0 %v20201_v33  ;;  %v10452_v33 = vrot.slane %v10431_v10, %v23364_v21 }
0x1861   : > { %12252 = vmatpush1.bf16.msra.mxu0 %v20199_v15  ;;  %v23365_v15 = vld [vmem:[#allocation53_spill] sm:$0xff] }
0x1862   : > { %12253 = vmatprep.subr.bf16.mxu0 %v20204_v28  ;;  %v10456_v28 = vrot.slane %v10431_v10, %v23365_v15  ;;  %v20244_v10 = vld [vmem:[#allocation22 + $0x8] ss:$16 sps:$4 sm:$0xff]  }
0x1865   : > { %12254 = vmatpush1.bf16.msra.mxu0 %v20202_v47 }
0x1866   : > { %12255 = vmatprep.subr.bf16.mxu0 %v20207_v62  ;;  %v23366_v62 = vld [vmem:[#allocation61_spill] sm:$0xff] }
0x1869   : > { %12256 = vmatpush1.bf16.msra.mxu0 %v20205_v3 }
0x186a   : > { %12257 = vmatprep.subr.bf16.mxu0 %v20210_v0 }
0x186d   : > { %12258 = vmatpush1.bf16.msra.mxu0 %v20208_v42 }
0x186e   : > { %12259 = vmatprep.subr.bf16.mxu0 %v20213_v17  ;;  %v23367_v17 = vld [vmem:[#allocation63_spill] sm:$0xff] }
0x1871   : > { %12260 = vmatpush1.bf16.msra.mxu0 %v20211_v36 }
0x1872   : > { %12261 = vmatprep.subr.bf16.mxu0 %v20216_v4 }
0x1875   : > { %12262 = vmatpush1.bf16.msra.mxu0 %v20214_v32 }
0x1876   : > { %12263 = vmatprep.subr.bf16.mxu0 %v20219_v53 }
0x1879   : > { %12264 = vmatpush1.bf16.msra.mxu0 %v20217_v26 }
0x187a   : > { %12265 = vmatprep.subr.bf16.mxu0 %v20222_v49 }
0x187d   : > { %12266 = vmatpush1.bf16.msra.mxu0 %v20220_v46 }
0x187e   : > { %12267 = vmatprep.subr.bf16.mxu0 %v20225_v14  ;;  %v23368_v14 = vld [vmem:[#allocation60_spill] sm:$0xff] }
0x1881   : > { %12268 = vmatpush1.bf16.msra.mxu0 %v20223_v13 }
0x1882   : > { %12269 = vmatprep.subr.bf16.mxu0 %v20228_v16  ;;  %v23369_v16 = vld [vmem:[#allocation57_spill] sm:$0xff] }
0x1885   : > { %12270 = vmatpush1.bf16.msra.mxu0 %v20226_v63 }
0x1886   : > { %12271 = vmatprep.subr.bf16.mxu0 %v20231_v41 }
0x1889   : > { %12272 = vmatpush1.bf16.msra.mxu0 %v20229_v51 }
0x188a   : > { %12273 = vmatprep.subr.bf16.mxu0 %v20234_v2  ;;  %v23370_v2 = vld [vmem:[#allocation56_spill] sm:$0xff] }
0x188d   : > { %12274 = vmatpush1.bf16.msra.mxu0 %v20232_v43 }
0x188e   : > { %12275 = vmatprep.subr.bf16.mxu0 %v20237_v57 }
0x1891   : > { %12276 = vmatpush1.bf16.msra.mxu0 %v20235_v24 }
0x1892   : > { %12277 = vmatprep.subr.bf16.mxu0 %v20240_v9  ;;  %v23371_v9 = vld [vmem:[#allocation64_spill] sm:$0xff] }
0x1895   : > { %12278 = vmatpush1.bf16.msra.mxu0 %v20238_v27 }
0x1898   : > { %12280 = vmatmul.mubr.bf16.vlgmr.msra.gmra.mrb[112].mxu0 %v22892_v59 }
0x18ab   : > { %v12023_v20 = vpop.f32.mrb[108].mxu0  ;;  %v12152_v54 = vpop.f32.mrb[64].mxu1 }
0x18ac   : > { %v12025_v37 = vpop.f32.mrb[109].mxu0  ;;  %v12154_v45 = vpop.f32.mrb[65].mxu1  ;;  %v17828_v38 = vadd.f32 %v12023_v20, %v10436_v40  ;;  %v17832_v7 = vadd.f32 %v12152_v54, %v10444_v39  ;;  %v23372_v54 = vld [vmem:[#allocation62_spill] sm:$0xff] }
0x18ad   : > { %v12027_v31 = vpop.f32.mrb[110].mxu0  ;;  %v12156_v55 = vpop.f32.mrb[66].mxu1  ;;  %v17829_v48 = vadd.f32 %v12025_v37, %v10440_v1 }
0x18ae   : > { %v12029_v19 = vpop.f32.mrb[111].mxu0  ;;  %v12158_v34 = vpop.f32.mrb[67].mxu1  ;;  %v17830_v23 = vadd.f32 %v12027_v31, %v10436_v40  ;;  %v22911_v59 = vadd.f32 %v17828_v38, %v22289_v6  ;;  %v17834_v18 = vadd.f32 %v12156_v55, %v10444_v39  ;;  %v22926_v58 = vadd.f32 %v17832_v7, %v23363_v60  ;;  %v20246_v40 = vld [vmem:[#allocation22 + $0xc] ss:$16 sps:$4 sm:$0xff]   ;;  %v20250_v39 = vld [vmem:[#allocation22 + $0x28] ss:$16 sps:$4 sm:$0xff]  }
0x18af   : > { %v17831_v35 = vadd.f32 %v12029_v19, %v10440_v1  ;;  %v22914_v22 = vadd.f32 %v17829_v48, %v23360_v11  ;;  %v17833_v6 = vadd.f32 %v12154_v45, %v10448_v8  ;;  %v17835_v0 = vadd.f32 %v12158_v34, %v10448_v8  ;;  %v20241_v19 = vld [vmem:[#allocation22] ss:$16 sps:$4 sm:$0xff]   ;;  %v20243_v34 = vld [vmem:[#allocation22 + $0x4] ss:$16 sps:$4 sm:$0xff]   ;;  %v20252_v38 = vld [vmem:[#allocation22 + $0x2c] ss:$16 sps:$4 sm:$0xff]   ;;  %13771 = vmatprep.subr.bf16.mxu0 %v20246_v40 }
0x18b0   : > { %v22918_v56 = vadd.f32 %v17830_v23, %v23361_v25  ;;  %v22934_v3 = vadd.f32 %v17834_v18, %v23366_v62  ;;  %v20249_v1 = vld [vmem:[#allocation22 + $0x24] ss:$16 sps:$4 sm:$0xff]   ;;  %13642 = vmatprep.subr.bf16.mxu1 %v20243_v34  ;;  %v20247_v48 = vld [vmem:[#allocation22 + $0x20] ss:$16 sps:$4 sm:$0xff]   ;;  %13772 = vmatpush1.bf16.msra.mxu0 %v20244_v10  ;;  %v20256_v7 = vld [vmem:[#allocation22 + $0x48] ss:$16 sps:$4 sm:$0xff]  }
0x18b1   : > { %v22921_v44 = vadd.f32 %v17831_v35, %v23362_v61  ;;  %v12304_v5 = vadd.f32 %v22914_v22, %v22911_v59  ;;  %v22937_v36 = vadd.f32 %v17833_v6, %v23367_v17  ;;  %v22942_v13 = vadd.f32 %v17835_v0, %v23368_v14  ;;  %13643 = vmatpush1.bf16.msra.mxu1 %v20241_v19  ;;  %v20255_v23 = vld [vmem:[#allocation22 + $0x44] ss:$16 sps:$4 sm:$0xff]   ;;  %v20258_v35 = vld [vmem:[#allocation22 + $0x4c] ss:$16 sps:$4 sm:$0xff]   ;;  %v20253_v11 = vld [vmem:[#allocation22 + $0x40] ss:$16 sps:$4 sm:$0xff]  }
0x18b2   : > { %13644 = vmatprep.subr.bf16.mxu1 %v20249_v1  ;;  %13773 = vmatprep.subr.bf16.mxu0 %v20252_v38  ;;  %v20261_v8 = vld [vmem:[#allocation22 + $0x64] ss:$16 sps:$4 sm:$0xff]   ;;  %v20264_v25 = vld [vmem:[#allocation22 + $0x6c] ss:$16 sps:$4 sm:$0xff]   ;;  %v20259_v61 = vld [vmem:[#allocation22 + $0x60] ss:$16 sps:$4 sm:$0xff]  }
0x18b3   : > { %v12311_v12 = vadd.f32 %v22921_v44, %v22918_v56  ;;  %v12305_v47 = vadd.f32 %v12304_v5, %v22926_v58  ;;  %v20262_v5 = vld [vmem:[#allocation22 + $0x68] ss:$16 sps:$4 sm:$0xff]   ;;  %v20267_v18 = vld [vmem:[#allocation22 + $0x84] ss:$16 sps:$4 sm:$0xff]   ;;  %v20270_v60 = vld [vmem:[#allocation22 + $0x8c] ss:$16 sps:$4 sm:$0xff]  }
0x18b4   : > { %13774 = vmatpush1.bf16.msra.mxu0 %v20250_v39  ;;  %v20265_v6 = vld [vmem:[#allocation22 + $0x80] ss:$16 sps:$4 sm:$0xff]   ;;  %v20274_v62 = vld [vmem:[#allocation22 + $0xa8] ss:$16 sps:$4 sm:$0xff]   ;;  %v20279_v0 = vld [vmem:[#allocation22 + $0xc4] ss:$16 sps:$4 sm:$0xff]  }
0x18b5   : > { %v12312_v4 = vadd.f32 %v12311_v12, %v22934_v3  ;;  %v12306_v46 = vadd.f32 %v12305_v47, %v22937_v36  ;;  %13645 = vmatpush1.bf16.msra.mxu1 %v20247_v48  ;;  %13775 = vmatprep.subr.bf16.mxu0 %v20258_v35  ;;  %v20268_v12 = vld [vmem:[#allocation22 + $0x88] ss:$16 sps:$4 sm:$0xff]   ;;  %v20271_v47 = vld [vmem:[#allocation22 + $0xa0] ss:$16 sps:$4 sm:$0xff]   ;;  %v20294_v14 = vld [vmem:[#allocation22 + $0x10c] ss:$16 sps:$4 sm:$0xff]  }
0x18b6   : > { %13646 = vmatprep.subr.bf16.mxu1 %v20255_v23  ;;  %v20277_v17 = vld [vmem:[#allocation22 + $0xc0] ss:$16 sps:$4 sm:$0xff]  }
0x18b7   : > { %v12313_v24 = vadd.f32 %v12312_v4, %v22942_v13  ;;  %v20280_v4 = vld [vmem:[#allocation22 + $0xc8] ss:$16 sps:$4 sm:$0xff]  }
0x18b8   : > { %13776 = vmatpush1.bf16.msra.mxu0 %v20256_v7 }
0x18b9   : > { %13647 = vmatpush1.bf16.msra.mxu1 %v20253_v11  ;;  %13777 = vmatprep.subr.bf16.mxu0 %v20264_v25 }
0x18ba   : > { %13648 = vmatprep.subr.bf16.mxu1 %v20261_v8 }
0x18bc   : > { %13778 = vmatpush1.bf16.msra.mxu0 %v20262_v5 }
0x18bd   : > { %13649 = vmatpush1.bf16.msra.mxu1 %v20259_v61  ;;  %13779 = vmatprep.subr.bf16.mxu0 %v20270_v60 }
0x18be   : > { %13650 = vmatprep.subr.bf16.mxu1 %v20267_v18 }
0x18c0   : > { %13780 = vmatpush1.bf16.msra.mxu0 %v20268_v12 }
0x18c1   : > { %13651 = vmatpush1.bf16.msra.mxu1 %v20265_v6 }
0x196b   : > { %v12281_v42 = vpop.f32.mrb[112].mxu0 }
0x196c   : > { %v17836_v32 = vadd.f32 %v12281_v42, %v10452_v33  ;;  %v12283_v53 = vpop.f32.mrb[113].mxu0  ;;  %v20282_v42 = vld [vmem:[#allocation22 + $0xcc] ss:$16 sps:$4 sm:$0xff]  }
0x196d   : > { %v17837_v26 = vadd.f32 %v12283_v53, %v10456_v28  ;;  %v12285_v49 = vpop.f32.mrb[114].mxu0  ;;  %v20288_v53 = vld [vmem:[#allocation22 + $0xec] ss:$16 sps:$4 sm:$0xff]  }
0x196e   : > { %v22945_v63 = vadd.f32 %v17836_v32, %v23369_v16  ;;  %v17838_v41 = vadd.f32 %v12285_v49, %v10452_v33  ;;  %v12287_v51 = vpop.f32.mrb[115].mxu0  ;;  %v20273_v33 = vld [vmem:[#allocation22 + $0xa4] ss:$16 sps:$4 sm:$0xff]   ;;  %v20286_v49 = vld [vmem:[#allocation22 + $0xe8] ss:$16 sps:$4 sm:$0xff]  }
0x196f   : > { %v22948_v43 = vadd.f32 %v17837_v26, %v23370_v2  ;;  %v17839_v57 = vadd.f32 %v12287_v51, %v10456_v28  ;;  %v20276_v28 = vld [vmem:[#allocation22 + $0xac] ss:$16 sps:$4 sm:$0xff]   ;;  %13652 = vmatprep.subr.bf16.mxu1 %v20273_v33  ;;  %v20285_v32 = vld [vmem:[#allocation22 + $0xe4] ss:$16 sps:$4 sm:$0xff]   ;;  %v20283_v26 = vld [vmem:[#allocation22 + $0xe0] ss:$16 sps:$4 sm:$0xff]  }
0x1970   : > { %v22952_v27 = vadd.f32 %v17838_v41, %v23371_v9  ;;  %v12307_v20 = vadd.f32 %v12306_v46, %v22945_v63  ;;  %13781 = vmatprep.subr.bf16.mxu0 %v20276_v28  ;;  %13653 = vmatpush1.bf16.msra.mxu1 %v20271_v47  ;;  %v20291_v46 = vld [vmem:[#allocation22 + $0x104] ss:$16 sps:$4 sm:$0xff]   ;;  %v20289_v16 = vld [vmem:[#allocation22 + $0x100] ss:$16 sps:$4 sm:$0xff]   ;;  %v20292_v41 = vld [vmem:[#allocation22 + $0x108] ss:$16 sps:$4 sm:$0xff]  }
0x1971   : > { %v22956_v37 = vadd.f32 %v17839_v57, %v23372_v54  ;;  %13782 = vmatpush1.bf16.msra.mxu0 %v20274_v62  ;;  %13654 = vmatprep.subr.bf16.mxu1 %v20279_v0  ;;  %v20297_v51 = vld [vmem:[#allocation22 + $0x124] ss:$16 sps:$4 sm:$0xff]   ;;  %v20300_v2 = vld [vmem:[#allocation22 + $0x12c] ss:$16 sps:$4 sm:$0xff]   ;;  %v20295_v57 = vld [vmem:[#allocation22 + $0x120] ss:$16 sps:$4 sm:$0xff]  }
0x1972   : > { %v12308_v45 = vadd.f32 %v12307_v20, %v22948_v43  ;;  %v12314_v31 = vadd.f32 %v12313_v24, %v22952_v27  ;;  %13783 = vmatprep.subr.bf16.mxu0 %v20282_v42  ;;  %v20298_v24 = vld [vmem:[#allocation22 + $0x128] ss:$16 sps:$4 sm:$0xff]   ;;  %v20303_v33 = vld [vmem:[#allocation22 + $0x144] ss:$16 sps:$4 sm:$0xff]   ;;  %v20306_v28 = vld [vmem:[#allocation22 + $0x14c] ss:$16 sps:$4 sm:$0xff]  }
0x1973   : > { %v20301_v47 = vld [vmem:[#allocation22 + $0x140] ss:$16 sps:$4 sm:$0xff]   ;;  %v20304_v62 = vld [vmem:[#allocation22 + $0x148] ss:$16 sps:$4 sm:$0xff]   ;;  %v20309_v0 = vld [vmem:[#allocation22 + $0x164] ss:$16 sps:$4 sm:$0xff]  }
0x1974   : > { %12309 = vadd.xlane.f32.xlu0 %v12308_v45  ;;  %v12315_v55 = vadd.f32 %v12314_v31, %v22956_v37  ;;  %13655 = vmatpush1.bf16.msra.mxu1 %v20277_v17  ;;  %v20312_v42 = vld [vmem:[#allocation22 + $0x16c] ss:$16 sps:$4 sm:$0xff]   ;;  %v20307_v17 = vld [vmem:[#allocation22 + $0x160] ss:$16 sps:$4 sm:$0xff]  }
0x1975   : > { %13784 = vmatpush1.bf16.msra.mxu0 %v20280_v4  ;;  %13656 = vmatprep.subr.bf16.mxu1 %v20285_v32  ;;  %v20310_v4 = vld [vmem:[#allocation22 + $0x168] ss:$16 sps:$4 sm:$0xff]   ;;  %v20315_v32 = vld [vmem:[#allocation22 + $0x184] ss:$16 sps:$4 sm:$0xff]  }
0x1976   : > { %12316 = vadd.xlane.f32.xlu1 %v12315_v55  ;;  %13785 = vmatprep.subr.bf16.mxu0 %v20288_v53  ;;  %v20318_v53 = vld [vmem:[#allocation22 + $0x18c] ss:$16 sps:$4 sm:$0xff]  }
0x1978   : > { %13657 = vmatpush1.bf16.msra.mxu1 %v20283_v26  ;;  %v20313_v26 = vld [vmem:[#allocation22 + $0x180] ss:$16 sps:$4 sm:$0xff]  }
0x1979   : > { %13786 = vmatpush1.bf16.msra.mxu0 %v20286_v49  ;;  %13658 = vmatprep.subr.bf16.mxu1 %v20291_v46  ;;  %v20316_v49 = vld [vmem:[#allocation22 + $0x188] ss:$16 sps:$4 sm:$0xff]   ;;  %v20321_v46 = vld [vmem:[#allocation22 + $0x1a4] ss:$16 sps:$4 sm:$0xff]  }
0x197a   : > { %13787 = vmatprep.subr.bf16.mxu0 %v20294_v14  ;;  %v20324_v14 = vld [vmem:[#allocation22 + $0x1ac] ss:$16 sps:$4 sm:$0xff]  }
0x197c   : > { %13659 = vmatpush1.bf16.msra.mxu1 %v20289_v16  ;;  %v20319_v16 = vld [vmem:[#allocation22 + $0x1a0] ss:$16 sps:$4 sm:$0xff]  }
0x197d   : > { %13788 = vmatpush1.bf16.msra.mxu0 %v20292_v41  ;;  %13660 = vmatprep.subr.bf16.mxu1 %v20297_v51  ;;  %v20322_v41 = vld [vmem:[#allocation22 + $0x1a8] ss:$16 sps:$4 sm:$0xff]   ;;  %v20327_v51 = vld [vmem:[#allocation22 + $0x1c4] ss:$16 sps:$4 sm:$0xff]  }
0x197e   : > { %13789 = vmatprep.subr.bf16.mxu0 %v20300_v2  ;;  %v20330_v2 = vld [vmem:[#allocation22 + $0x1cc] ss:$16 sps:$4 sm:$0xff]  }
0x1980   : > { %13661 = vmatpush1.bf16.msra.mxu1 %v20295_v57  ;;  %v20325_v57 = vld [vmem:[#allocation22 + $0x1c0] ss:$16 sps:$4 sm:$0xff]  }
0x1981   : > { %13790 = vmatpush1.bf16.msra.mxu0 %v20298_v24  ;;  %13662 = vmatprep.subr.bf16.mxu1 %v20303_v33  ;;  %v20328_v24 = vld [vmem:[#allocation22 + $0x1c8] ss:$16 sps:$4 sm:$0xff]  }
0x1982   : > { %13791 = vmatprep.subr.bf16.mxu0 %v20306_v28 }
0x1984   : > { %13663 = vmatpush1.bf16.msra.mxu1 %v20301_v47 }
0x1985   : > { %13792 = vmatpush1.bf16.msra.mxu0 %v20304_v62  ;;  %13664 = vmatprep.subr.bf16.mxu1 %v20309_v0 }
0x1986   : > { %13793 = vmatprep.subr.bf16.mxu0 %v20312_v42 }
0x1988   : > { %13665 = vmatpush1.bf16.msra.mxu1 %v20307_v17 }
0x1989   : > { %13794 = vmatpush1.bf16.msra.mxu0 %v20310_v4  ;;  %13666 = vmatprep.subr.bf16.mxu1 %v20315_v32 }
0x198a   : > { %13795 = vmatprep.subr.bf16.mxu0 %v20318_v53 }
0x198c   : > { %13667 = vmatpush1.bf16.msra.mxu1 %v20313_v26 }
0x198d   : > { %13796 = vmatpush1.bf16.msra.mxu0 %v20316_v49  ;;  %13668 = vmatprep.subr.bf16.mxu1 %v20321_v46 }
0x198e   : > { %13797 = vmatprep.subr.bf16.mxu0 %v20324_v14 }
0x1990   : > { %13669 = vmatpush1.bf16.msra.mxu1 %v20319_v16 }
0x1991   : > { %13798 = vmatpush1.bf16.msra.mxu0 %v20322_v41  ;;  %13670 = vmatprep.subr.bf16.mxu1 %v20327_v51 }
0x1992   : > { %13799 = vmatprep.subr.bf16.mxu0 %v20330_v2 }
0x1994   : > { %13671 = vmatpush1.bf16.msra.mxu1 %v20325_v57 }
0x1995   : > { %13800 = vmatpush1.bf16.msra.mxu0 %v20328_v24 }
0x1a01   : > { %v12310_v9 = vpop.xlane.xlu0 %12309 }
0x1a02   : > { %v12318_v20 = vmul.f32 0.0013020834, %v12310_v9  ;;  %v20333_v9 = vld [vmem:[#allocation22 + $0x1e4] ss:$16 sps:$4 sm:$0xff]  }
0x1a03   : > { %v12317_v54 = vpop.xlane.xlu1 %12316  ;;  %13672 = vmatprep.subr.bf16.mxu1 %v20333_v9 }
0x1a04   : > { %v12319_v45 = vmul.f32 0.0013020834, %v12317_v54  ;;  %v22962_v31 = vsub.f32 %v22911_v59, %v12318_v20  ;;  %v22965_v55 = vsub.f32 %v22914_v22, %v12318_v20  ;;  %v22968_v19 = vsub.f32 %v22926_v58, %v12318_v20  ;;  %v20331_v54 = vld [vmem:[#allocation22 + $0x1e0] ss:$16 sps:$4 sm:$0xff]  }
0x1a05   : > { %v22971_v34 = vsub.f32 %v22937_v36, %v12318_v20  ;;  %v22984_v22 = vsub.f32 %v22945_v63, %v12318_v20  ;;  %v22999_v39 = vsub.f32 %v22948_v43, %v12318_v20  ;;  %v20336_v20 = vld [vmem:[#allocation22 + $0x1ec] ss:$16 sps:$4 sm:$0xff]   ;;  %13673 = vmatpush1.bf16.msra.mxu1 %v20331_v54 }
0x1a06   : > { %v12332_v10 = vmul.f32 %v22962_v31, %v22962_v31  ;;  %v12333_v40 = vmul.f32 %v22965_v55, %v22965_v55  ;;  %v22978_v1 = vsub.f32 %v22918_v56, %v12319_v45  ;;  %v22981_v59 = vsub.f32 %v22921_v44, %v12319_v45  ;;  %13801 = vmatprep.subr.bf16.mxu0 %v20336_v20 }
0x1a07   : > { %v12334_v58 = vmul.f32 %v22968_v19, %v22968_v19  ;;  %v22989_v38 = vsub.f32 %v22934_v3, %v12319_v45  ;;  %v22992_v48 = vsub.f32 %v22942_v13, %v12319_v45  ;;  %v12335_v63 = vmul.f32 %v22971_v34, %v22971_v34 }
0x1a08   : > { %v12344_v36 = vadd.f32 %v12333_v40, %v12332_v10  ;;  %v12338_v56 = vmul.f32 %v22978_v1, %v22978_v1  ;;  %v12339_v44 = vmul.f32 %v22981_v59, %v22981_v59  ;;  %v23004_v35 = vsub.f32 %v22952_v27, %v12319_v45  ;;  %v20339_v10 = vld [vmem:[#allocation22 + $0x204] ss:$16 sps:$4 sm:$0xff]   ;;  %v20342_v40 = vld [vmem:[#allocation22 + $0x20c] ss:$16 sps:$4 sm:$0xff]  }
0x1a09   : > { %v12340_v3 = vmul.f32 %v22989_v38, %v22989_v38  ;;  %v12336_v11 = vmul.f32 %v22984_v22, %v22984_v22  ;;  %v23011_v8 = vsub.f32 %v22956_v37, %v12319_v45  ;;  %v12341_v43 = vmul.f32 %v22992_v48, %v22992_v48  ;;  %v20334_v45 = vld [vmem:[#allocation22 + $0x1e8] ss:$16 sps:$4 sm:$0xff]   ;;  %13685 = vmatprep.subr.bf16.mxu1 %v20339_v10 }
0x1a0a   : > { %v12345_v23 = vadd.f32 %v12344_v36, %v12334_v58  ;;  %v12351_v13 = vadd.f32 %v12339_v44, %v12338_v56  ;;  %v12337_v61 = vmul.f32 %v22999_v39, %v22999_v39  ;;  %v12342_v5 = vmul.f32 %v23004_v35, %v23004_v35  ;;  %13802 = vmatpush1.bf16.msra.mxu0 %v20334_v45 }
0x1a0b   : > { %v12343_v6 = vmul.f32 %v23011_v8, %v23011_v8  ;;  %13814 = vmatprep.subr.bf16.mxu0 %v20342_v40  ;;  %v20337_v40 = vld [vmem:[#allocation22 + $0x200] ss:$16 sps:$4 sm:$0xff]  }
0x1a0c   : > { %v12346_v7 = vadd.f32 %v12345_v23, %v12335_v63  ;;  %v12352_v25 = vadd.f32 %v12351_v13, %v12340_v3  ;;  %v12302_v3 = vld [vmem:[#allocation19] sm:$0x3f]  ;;  %v12303_v13 = vld [vmem:[#allocation20] sm:$0x3f] }
0x1a0d   : > { %v12435_v47 = vrot.slane %v12303_v13, %v22156_v52  ;;  %v12443_v0 = vrot.slane %v12303_v13, %v23365_v15  ;;  %v12439_v42 = vrot.slane %v12303_v13, %v23364_v21 }
0x1a0e   : > { %v12347_v27 = vadd.f32 %v12346_v7, %v12336_v11  ;;  %v12353_v18 = vadd.f32 %v12352_v25, %v12341_v43  ;;  %v12384_v11 = vrot.slane %v12302_v3, %v22139_v30  ;;  %v12380_v7 = vrot.slane %v12302_v3, %v22136_v29 }
0x1a0f   : > { %v12392_v43 = vrot.slane %v12302_v3, %v22156_v52  ;;  %v12388_v25 = vrot.slane %v12302_v3, %v22152_v50 }
0x1a10   : > { %v12348_v60 = vadd.f32 %v12347_v27, %v12337_v61  ;;  %v12354_v12 = vadd.f32 %v12353_v18, %v12342_v5  ;;  %v12400_v61 = vrot.slane %v12302_v3, %v23365_v15  ;;  %v12427_v5 = vrot.slane %v12303_v13, %v22139_v30 }
0x1a11   : > { %v12423_v18 = vrot.slane %v12303_v13, %v22136_v29 }
0x1a12   : > { %12349 = vadd.xlane.f32.xlu0 %v12348_v60  ;;  %v12355_v37 = vadd.f32 %v12354_v12, %v12343_v6  ;;  %v12431_v60 = vrot.slane %v12303_v13, %v22152_v50  ;;  %v12396_v6 = vrot.slane %v12302_v3, %v23364_v21  ;;  %v20343_v13 = vld [vmem:[#allocation22 + $0x220] ss:$16 sps:$4 sm:$0xff]  }
0x1a14   : > { %12356 = vadd.xlane.f32.xlu1 %v12355_v37 }
0x1a9f   : > { %v12350_v58 = vpop.xlane.xlu0 %12349 }
0x1aa0   : > { %v12358_v36 = vmul.f32 0.0013020834, %v12350_v58 }
0x1aa1   : > { %v12357_v44 = vpop.xlane.xlu1 %12356 }
0x1aa2   : > { %v12360_v56 = vadd.f32 1e-05, %v12358_v36  ;;  %v12359_v63 = vmul.f32 0.0013020834, %v12357_v44 }
0x1aa4   : > { %20869 = vrsqrt.f32 %v12360_v56  ;;  %v12361_v23 = vadd.f32 1e-05, %v12359_v63  ;;  %v20345_v63 = vld [vmem:[#allocation22 + $0x224] ss:$16 sps:$4 sm:$0xff]  }
0x1aa6   : > { %20871 = vrsqrt.f32 %v12361_v23  ;;  %v20348_v23 = vld [vmem:[#allocation22 + $0x22c] ss:$16 sps:$4 sm:$0xff]  }
0x1aae   : > { %v20870_v27 = vpop.eup %20869 }
0x1aaf   : > { %v12365_v12 = vmul.f32 %v20870_v27, %v22965_v55  ;;  %v12364_v37 = vmul.f32 %v20870_v27, %v22962_v31  ;;  %v12367_v33 = vmul.f32 %v20870_v27, %v22971_v34  ;;  %v12366_v28 = vmul.f32 %v20870_v27, %v22968_v19 }
0x1ab0   : > { %v12369_v62 = vmul.f32 %v20870_v27, %v22999_v39  ;;  %v20872_v17 = vpop.eup %20871  ;;  %v12368_v55 = vmul.f32 %v20870_v27, %v22984_v22  ;;  %v20357_v27 = vld [vmem:[#allocation22 + $0x264] ss:$16 sps:$4 sm:$0xff]  }
0x1ab1   : > { %v12408_v4 = vmul.f32 %v12384_v11, %v12365_v12  ;;  %v12407_v32 = vmul.f32 %v12380_v7, %v12364_v37  ;;  %v12409_v53 = vmul.f32 %v12388_v25, %v12366_v28  ;;  %v12371_v31 = vmul.f32 %v20872_v17, %v22981_v59  ;;  %v20366_v12 = vld [vmem:[#allocation22 + $0x28c] ss:$16 sps:$4 sm:$0xff]   ;;  %v20361_v37 = vld [vmem:[#allocation22 + $0x280] ss:$16 sps:$4 sm:$0xff]   ;;  %v20369_v28 = vld [vmem:[#allocation22 + $0x2a4] ss:$16 sps:$4 sm:$0xff]  }
0x1ab2   : > { %v12370_v34 = vmul.f32 %v20872_v17, %v22978_v1  ;;  %v12373_v19 = vmul.f32 %v20872_v17, %v22992_v48  ;;  %v12372_v26 = vmul.f32 %v20872_v17, %v22989_v38  ;;  %v12410_v46 = vmul.f32 %v12392_v43, %v12367_v33  ;;  %v20364_v33 = vld [vmem:[#allocation22 + $0x288] ss:$16 sps:$4 sm:$0xff]  }
0x1ab3   : > { %v23043_v49 = vadd.f32 %v12427_v5, %v12408_v4  ;;  %v23045_v39 = vadd.f32 %v12423_v18, %v12407_v32  ;;  %v23047_v14 = vadd.f32 %v12431_v60, %v12409_v53  ;;  %v12414_v16 = vmul.f32 %v12384_v11, %v12371_v31  ;;  %v20346_v11 = vld [vmem:[#allocation22 + $0x228] ss:$16 sps:$4 sm:$0xff]   ;;  %v20373_v4 = vld [vmem:[#allocation22 + $0x2c0] ss:$16 sps:$4 sm:$0xff]   ;;  %v20381_v53 = vld [vmem:[#allocation22 + $0x2e4] ss:$16 sps:$4 sm:$0xff]  }
0x1ab4   : > { %v12413_v41 = vmul.f32 %v12380_v7, %v12370_v34  ;;  %v12416_v51 = vmul.f32 %v12392_v43, %v12373_v19  ;;  %v12415_v2 = vmul.f32 %v12388_v25, %v12372_v26  ;;  %v12375_v22 = vmul.f32 %v20872_v17, %v23011_v8  ;;  %v20351_v7 = vld [vmem:[#allocation22 + $0x244] ss:$16 sps:$4 sm:$0xff]   ;;  %v20354_v43 = vld [vmem:[#allocation22 + $0x24c] ss:$16 sps:$4 sm:$0xff]   ;;  %v20349_v25 = vld [vmem:[#allocation22 + $0x240] ss:$16 sps:$4 sm:$0xff]  }
0x1ab5   : > { %v12412_v59 = vmul.f32 %v12400_v61, %v12369_v62  ;;  %v12374_v1 = vmul.f32 %v20872_v17, %v23004_v35  ;;  %v12411_v57 = vmul.f32 %v12396_v6, %v12368_v55  ;;  %v23051_v48 = vadd.f32 %v12427_v5, %v12414_v16  ;;  %v20340_v35 = vld [vmem:[#allocation22 + $0x208] ss:$16 sps:$4 sm:$0xff]   ;;  %v20360_v5 = vld [vmem:[#allocation22 + $0x26c] ss:$16 sps:$4 sm:$0xff]   ;;  %v20367_v62 = vld [vmem:[#allocation22 + $0x2a0] ss:$16 sps:$4 sm:$0xff]  }
0x1ab6   : > { %v23053_v38 = vadd.f32 %v12423_v18, %v12413_v41  ;;  %v23055_v24 = vadd.f32 %v12435_v47, %v12416_v51  ;;  %v23057_v9 = vadd.f32 %v12431_v60, %v12415_v2  ;;  %v12418_v20 = vmul.f32 %v12400_v61, %v12375_v22  ;;  %v20352_v61 = vld [vmem:[#allocation22 + $0x248] ss:$16 sps:$4 sm:$0xff]   ;;  %v20355_v18 = vld [vmem:[#allocation22 + $0x260] ss:$16 sps:$4 sm:$0xff]   ;;  %v20378_v17 = vld [vmem:[#allocation22 + $0x2cc] ss:$16 sps:$4 sm:$0xff]  }
0x1ab7   : > { %v23059_v54 = vadd.f32 %v12443_v0, %v12412_v59  ;;  %v12417_v45 = vmul.f32 %v12396_v6, %v12374_v1  ;;  %v23061_v10 = vadd.f32 %v12439_v42, %v12411_v57  ;;  %v12463_v8 = vpack.c.bf16 %v23051_v48, %v23043_v49  ;;  %v20358_v60 = vld [vmem:[#allocation22 + $0x268] ss:$16 sps:$4 sm:$0xff]   ;;  %v20363_v6 = vld [vmem:[#allocation22 + $0x284] ss:$16 sps:$4 sm:$0xff]   ;;  %v20384_v55 = vld [vmem:[#allocation22 + $0x2ec] ss:$16 sps:$4 sm:$0xff]  }
0x1ab8   : > { %v12462_v58 = vpack.c.bf16 %v23053_v38, %v23045_v39  ;;  %v23067_v36 = vadd.f32 %v12435_v47, %v12410_v46  ;;  %v23069_v56 = vadd.f32 %v12443_v0, %v12418_v20  ;;  %v20372_v47 = vld [vmem:[#allocation22 + $0x2ac] ss:$16 sps:$4 sm:$0xff]   ;;  %v20370_v0 = vld [vmem:[#allocation22 + $0x2a8] ss:$16 sps:$4 sm:$0xff]   ;;  %v20379_v31 = vld [vmem:[#allocation22 + $0x2e0] ss:$16 sps:$4 sm:$0xff]  }
0x1ab9   : > { %v23071_v44 = vadd.f32 %v12439_v42, %v12417_v45  ;;  %13674 = vmatprep.mubr.bf16.mxu1 %v12463_v8  ;;  %13803 = vmatprep.mubr.bf16.mxu0 %v12463_v8  ;;  %v20375_v42 = vld [vmem:[#allocation22 + $0x2c4] ss:$16 sps:$4 sm:$0xff]   ;;  %v20376_v32 = vld [vmem:[#allocation22 + $0x2c8] ss:$16 sps:$4 sm:$0xff]   ;;  %v20390_v26 = vld [vmem:[#allocation22 + $0x30c] ss:$16 sps:$4 sm:$0xff]  }
0x1aba   : > { %13675 = vmatmul.mubr.bf16.vlgmr.msra.gmra.mrb[68].mxu1 %v12462_v58  ;;  %13804 = vmatmul.mubr.bf16.vlgmr.msra.gmra.mrb[116].mxu0 %v12462_v58  ;;  %v12465_v3 = vpack.c.bf16 %v23055_v24, %v23067_v36  ;;  %v20382_v34 = vld [vmem:[#allocation22 + $0x2e8] ss:$16 sps:$4 sm:$0xff]   ;;  %v20387_v19 = vld [vmem:[#allocation22 + $0x304] ss:$16 sps:$4 sm:$0xff]   ;;  %v20385_v46 = vld [vmem:[#allocation22 + $0x300] ss:$16 sps:$4 sm:$0xff]  }
0x1abb   : > { %13686 = vmatpush1.bf16.msra.mxu1 %v20337_v40  ;;  %13815 = vmatpush1.bf16.msra.mxu0 %v20340_v35  ;;  %v20388_v16 = vld [vmem:[#allocation22 + $0x308] ss:$16 sps:$4 sm:$0xff]   ;;  %v20393_v41 = vld [vmem:[#allocation22 + $0x324] ss:$16 sps:$4 sm:$0xff]   ;;  %v20396_v51 = vld [vmem:[#allocation22 + $0x32c] ss:$16 sps:$4 sm:$0xff]  }
0x1abc   : > { %13717 = vmatprep.mubr.bf16.mxu1 %v12465_v3  ;;  %13846 = vmatprep.mubr.bf16.mxu0 %v12465_v3  ;;  %v20391_v2 = vld [vmem:[#allocation22 + $0x320] ss:$16 sps:$4 sm:$0xff]   ;;  %v20394_v22 = vld [vmem:[#allocation22 + $0x328] ss:$16 sps:$4 sm:$0xff]   ;;  %v20399_v59 = vld [vmem:[#allocation22 + $0x344] ss:$16 sps:$4 sm:$0xff]  }
0x1abd   : > { %13687 = vmatprep.subr.bf16.mxu1 %v20345_v63  ;;  %13816 = vmatprep.subr.bf16.mxu0 %v20348_v23  ;;  %v20402_v1 = vld [vmem:[#allocation22 + $0x34c] ss:$16 sps:$4 sm:$0xff]   ;;  %v20397_v57 = vld [vmem:[#allocation22 + $0x340] ss:$16 sps:$4 sm:$0xff]   ;;  %v20400_v20 = vld [vmem:[#allocation22 + $0x348] ss:$16 sps:$4 sm:$0xff]  }
0x1abe   : > { %v20405_v45 = vld [vmem:[#allocation22 + $0x364] ss:$16 sps:$4 sm:$0xff]   ;;  %v20408_v8 = vld [vmem:[#allocation22 + $0x36c] ss:$16 sps:$4 sm:$0xff]   ;;  %v20403_v40 = vld [vmem:[#allocation22 + $0x360] ss:$16 sps:$4 sm:$0xff]  }
0x1abf   : > { %13688 = vmatpush1.bf16.msra.mxu1 %v20343_v13  ;;  %13817 = vmatpush1.bf16.msra.mxu0 %v20346_v11  ;;  %v20406_v35 = vld [vmem:[#allocation22 + $0x368] ss:$16 sps:$4 sm:$0xff]   ;;  %v20411_v58 = vld [vmem:[#allocation22 + $0x384] ss:$16 sps:$4 sm:$0xff]   ;;  %v20414_v63 = vld [vmem:[#allocation22 + $0x38c] ss:$16 sps:$4 sm:$0xff]  }
0x1ac0   : > { %13689 = vmatprep.subr.bf16.mxu1 %v20351_v7  ;;  %13818 = vmatprep.subr.bf16.mxu0 %v20354_v43  ;;  %v20409_v23 = vld [vmem:[#allocation22 + $0x380] ss:$16 sps:$4 sm:$0xff]   ;;  %v20412_v3 = vld [vmem:[#allocation22 + $0x388] ss:$16 sps:$4 sm:$0xff]   ;;  %v20417_v13 = vld [vmem:[#allocation22 + $0x3a4] ss:$16 sps:$4 sm:$0xff]  }
0x1ac1   : > { %v20420_v11 = vld [vmem:[#allocation22 + $0x3ac] ss:$16 sps:$4 sm:$0xff]   ;;  %v20415_v7 = vld [vmem:[#allocation22 + $0x3a0] ss:$16 sps:$4 sm:$0xff]   ;;  %v20418_v43 = vld [vmem:[#allocation22 + $0x3a8] ss:$16 sps:$4 sm:$0xff]  }
0x1ac3   : > { %13690 = vmatpush1.bf16.msra.mxu1 %v20349_v25  ;;  %13819 = vmatpush1.bf16.msra.mxu0 %v20352_v61  ;;  %v20423_v25 = vld [vmem:[#allocation22 + $0x3c4] ss:$16 sps:$4 sm:$0xff]   ;;  %v20426_v61 = vld [vmem:[#allocation22 + $0x3cc] ss:$16 sps:$4 sm:$0xff]  }
0x1ac4   : > { %13691 = vmatprep.subr.bf16.mxu1 %v20357_v27  ;;  %13820 = vmatprep.subr.bf16.mxu0 %v20360_v5  ;;  %v20421_v27 = vld [vmem:[#allocation22 + $0x3c0] ss:$16 sps:$4 sm:$0xff]   ;;  %v20424_v5 = vld [vmem:[#allocation22 + $0x3c8] ss:$16 sps:$4 sm:$0xff]  }
0x1ac7   : > { %13692 = vmatpush1.bf16.msra.mxu1 %v20355_v18  ;;  %13821 = vmatpush1.bf16.msra.mxu0 %v20358_v60  ;;  %v20429_v18 = vld [vmem:[#allocation22 + $0x3e4] ss:$16 sps:$4 sm:$0xff]   ;;  %v20432_v60 = vld [vmem:[#allocation22 + $0x3ec] ss:$16 sps:$4 sm:$0xff]  }
0x1ac8   : > { %13693 = vmatprep.subr.bf16.mxu1 %v20363_v6  ;;  %13822 = vmatprep.subr.bf16.mxu0 %v20366_v12  ;;  %v20427_v6 = vld [vmem:[#allocation22 + $0x3e0] ss:$16 sps:$4 sm:$0xff]   ;;  %v20430_v12 = vld [vmem:[#allocation22 + $0x3e8] ss:$16 sps:$4 sm:$0xff]  }
0x1acb   : > { %13694 = vmatpush1.bf16.msra.mxu1 %v20361_v37  ;;  %13823 = vmatpush1.bf16.msra.mxu0 %v20364_v33  ;;  %v20435_v37 = vld [vmem:[#allocation22 + $0x404] ss:$16 sps:$4 sm:$0xff]   ;;  %v20438_v33 = vld [vmem:[#allocation22 + $0x40c] ss:$16 sps:$4 sm:$0xff]  }
0x1acc   : > { %13695 = vmatprep.subr.bf16.mxu1 %v20369_v28  ;;  %13824 = vmatprep.subr.bf16.mxu0 %v20372_v47  ;;  %v20433_v28 = vld [vmem:[#allocation22 + $0x400] ss:$16 sps:$4 sm:$0xff]   ;;  %v12464_v47 = vpack.c.bf16 %v23057_v9, %v23047_v14 }
0x1acf   : > { %13696 = vmatpush1.bf16.msra.mxu1 %v20367_v62  ;;  %13825 = vmatpush1.bf16.msra.mxu0 %v20370_v0  ;;  %v20436_v62 = vld [vmem:[#allocation22 + $0x408] ss:$16 sps:$4 sm:$0xff]   ;;  %v12467_v0 = vpack.c.bf16 %v23069_v56, %v23059_v54 }
0x1ad0   : > { %13697 = vmatprep.subr.bf16.mxu1 %v20375_v42  ;;  %13826 = vmatprep.subr.bf16.mxu0 %v20378_v17  ;;  %v20441_v42 = vld [vmem:[#allocation22 + $0x424] ss:$16 sps:$4 sm:$0xff]   ;;  %v20444_v17 = vld [vmem:[#allocation22 + $0x42c] ss:$16 sps:$4 sm:$0xff]  }
0x1ad3   : > { %13698 = vmatpush1.bf16.msra.mxu1 %v20373_v4  ;;  %13827 = vmatpush1.bf16.msra.mxu0 %v20376_v32  ;;  %v20439_v4 = vld [vmem:[#allocation22 + $0x420] ss:$16 sps:$4 sm:$0xff]   ;;  %v20442_v32 = vld [vmem:[#allocation22 + $0x428] ss:$16 sps:$4 sm:$0xff]  }
0x1ad4   : > { %13699 = vmatprep.subr.bf16.mxu1 %v20381_v53  ;;  %13828 = vmatprep.subr.bf16.mxu0 %v20384_v55  ;;  %v20447_v53 = vld [vmem:[#allocation22 + $0x444] ss:$16 sps:$4 sm:$0xff]   ;;  %v20450_v55 = vld [vmem:[#allocation22 + $0x44c] ss:$16 sps:$4 sm:$0xff]  }
0x1ad7   : > { %13700 = vmatpush1.bf16.msra.mxu1 %v20379_v31  ;;  %13829 = vmatpush1.bf16.msra.mxu0 %v20382_v34  ;;  %v20445_v31 = vld [vmem:[#allocation22 + $0x440] ss:$16 sps:$4 sm:$0xff]   ;;  %v20448_v34 = vld [vmem:[#allocation22 + $0x448] ss:$16 sps:$4 sm:$0xff]  }
0x1ad8   : > { %13701 = vmatprep.subr.bf16.mxu1 %v20387_v19  ;;  %13830 = vmatprep.subr.bf16.mxu0 %v20390_v26  ;;  %v20453_v19 = vld [vmem:[#allocation22 + $0x464] ss:$16 sps:$4 sm:$0xff]   ;;  %v20456_v26 = vld [vmem:[#allocation22 + $0x46c] ss:$16 sps:$4 sm:$0xff]  }
0x1adb   : > { %13702 = vmatpush1.bf16.msra.mxu1 %v20385_v46  ;;  %13831 = vmatpush1.bf16.msra.mxu0 %v20388_v16  ;;  %v20451_v46 = vld [vmem:[#allocation22 + $0x460] ss:$16 sps:$4 sm:$0xff]   ;;  %v20454_v16 = vld [vmem:[#allocation22 + $0x468] ss:$16 sps:$4 sm:$0xff]  }
0x1adc   : > { %13703 = vmatprep.subr.bf16.mxu1 %v20393_v41  ;;  %13832 = vmatprep.subr.bf16.mxu0 %v20396_v51  ;;  %v20459_v41 = vld [vmem:[#allocation22 + $0x484] ss:$16 sps:$4 sm:$0xff]   ;;  %v20462_v51 = vld [vmem:[#allocation22 + $0x48c] ss:$16 sps:$4 sm:$0xff]  }
0x1adf   : > { %13704 = vmatpush1.bf16.msra.mxu1 %v20391_v2  ;;  %13833 = vmatpush1.bf16.msra.mxu0 %v20394_v22  ;;  %v20457_v2 = vld [vmem:[#allocation22 + $0x480] ss:$16 sps:$4 sm:$0xff]   ;;  %v20460_v22 = vld [vmem:[#allocation22 + $0x488] ss:$16 sps:$4 sm:$0xff]  }
0x1ae0   : > { %13705 = vmatprep.subr.bf16.mxu1 %v20399_v59  ;;  %13834 = vmatprep.subr.bf16.mxu0 %v20402_v1  ;;  %v20465_v59 = vld [vmem:[#allocation22 + $0x4a4] ss:$16 sps:$4 sm:$0xff]   ;;  %v20468_v1 = vld [vmem:[#allocation22 + $0x4ac] ss:$16 sps:$4 sm:$0xff]  }
0x1ae3   : > { %13706 = vmatpush1.bf16.msra.mxu1 %v20397_v57  ;;  %13835 = vmatpush1.bf16.msra.mxu0 %v20400_v20  ;;  %v20463_v57 = vld [vmem:[#allocation22 + $0x4a0] ss:$16 sps:$4 sm:$0xff]   ;;  %v20466_v20 = vld [vmem:[#allocation22 + $0x4a8] ss:$16 sps:$4 sm:$0xff]  }
0x1ae4   : > { %13707 = vmatprep.subr.bf16.mxu1 %v20405_v45  ;;  %13836 = vmatprep.subr.bf16.mxu0 %v20408_v8  ;;  %v20471_v45 = vld [vmem:[#allocation22 + $0x4c4] ss:$16 sps:$4 sm:$0xff]   ;;  %v20474_v8 = vld [vmem:[#allocation22 + $0x4cc] ss:$16 sps:$4 sm:$0xff]  }
0x1ae7   : > { %13708 = vmatpush1.bf16.msra.mxu1 %v20403_v40  ;;  %13837 = vmatpush1.bf16.msra.mxu0 %v20406_v35  ;;  %v20469_v40 = vld [vmem:[#allocation22 + $0x4c0] ss:$16 sps:$4 sm:$0xff]   ;;  %v20472_v35 = vld [vmem:[#allocation22 + $0x4c8] ss:$16 sps:$4 sm:$0xff]  }
0x1ae8   : > { %13709 = vmatprep.subr.bf16.mxu1 %v20411_v58  ;;  %13838 = vmatprep.subr.bf16.mxu0 %v20414_v63  ;;  %v20477_v58 = vld [vmem:[#allocation22 + $0x4e4] ss:$16 sps:$4 sm:$0xff]   ;;  %v20480_v63 = vld [vmem:[#allocation22 + $0x4ec] ss:$16 sps:$4 sm:$0xff]  }
0x1aeb   : > { %13710 = vmatpush1.bf16.msra.mxu1 %v20409_v23  ;;  %13839 = vmatpush1.bf16.msra.mxu0 %v20412_v3  ;;  %v20475_v23 = vld [vmem:[#allocation22 + $0x4e0] ss:$16 sps:$4 sm:$0xff]   ;;  %v20478_v3 = vld [vmem:[#allocation22 + $0x4e8] ss:$16 sps:$4 sm:$0xff]  }
0x1aec   : > { %13711 = vmatprep.subr.bf16.mxu1 %v20417_v13  ;;  %13840 = vmatprep.subr.bf16.mxu0 %v20420_v11  ;;  %v20483_v13 = vld [vmem:[#allocation22 + $0x504] ss:$16 sps:$4 sm:$0xff]   ;;  %v20486_v11 = vld [vmem:[#allocation22 + $0x50c] ss:$16 sps:$4 sm:$0xff]  }
0x1aef   : > { %13712 = vmatpush1.bf16.msra.mxu1 %v20415_v7  ;;  %13841 = vmatpush1.bf16.msra.mxu0 %v20418_v43  ;;  %v20481_v7 = vld [vmem:[#allocation22 + $0x500] ss:$16 sps:$4 sm:$0xff]   ;;  %v20484_v43 = vld [vmem:[#allocation22 + $0x508] ss:$16 sps:$4 sm:$0xff]  }
0x1af0   : > { %13713 = vmatprep.subr.bf16.mxu1 %v20423_v25  ;;  %13842 = vmatprep.subr.bf16.mxu0 %v20426_v61  ;;  %v20489_v25 = vld [vmem:[#allocation22 + $0x524] ss:$16 sps:$4 sm:$0xff]   ;;  %v20492_v61 = vld [vmem:[#allocation22 + $0x52c] ss:$16 sps:$4 sm:$0xff]  }
0x1af3   : > { %13714 = vmatpush1.bf16.msra.mxu1 %v20421_v27  ;;  %13843 = vmatpush1.bf16.msra.mxu0 %v20424_v5  ;;  %v20487_v27 = vld [vmem:[#allocation22 + $0x520] ss:$16 sps:$4 sm:$0xff]   ;;  %v20490_v5 = vld [vmem:[#allocation22 + $0x528] ss:$16 sps:$4 sm:$0xff]  }
0x1af4   : > { %13715 = vmatprep.subr.bf16.mxu1 %v20429_v18  ;;  %13844 = vmatprep.subr.bf16.mxu0 %v20432_v60  ;;  %v20495_v18 = vld [vmem:[#allocation22 + $0x544] ss:$16 sps:$4 sm:$0xff]   ;;  %v20498_v60 = vld [vmem:[#allocation22 + $0x54c] ss:$16 sps:$4 sm:$0xff]  }
0x1af7   : > { %13716 = vmatpush1.bf16.msra.mxu1 %v20427_v6  ;;  %13845 = vmatpush1.bf16.msra.mxu0 %v20430_v12  ;;  %v20493_v6 = vld [vmem:[#allocation22 + $0x540] ss:$16 sps:$4 sm:$0xff]   ;;  %v20496_v12 = vld [vmem:[#allocation22 + $0x548] ss:$16 sps:$4 sm:$0xff]  }
0x1af8   : > { %13728 = vmatprep.subr.bf16.mxu1 %v20435_v37  ;;  %13857 = vmatprep.subr.bf16.mxu0 %v20438_v33  ;;  %v20501_v37 = vld [vmem:[#allocation22 + $0x564] ss:$16 sps:$4 sm:$0xff]   ;;  %v20504_v33 = vld [vmem:[#allocation22 + $0x56c] ss:$16 sps:$4 sm:$0xff]  }
0x1afa   : > { %13718 = vmatmul.mubr.bf16.vlgmr.msra.gmra.mrb[68].mxu1 %v12464_v47  ;;  %13847 = vmatmul.mubr.bf16.vlgmr.msra.gmra.mrb[116].mxu0 %v12464_v47  ;;  %v20502_v47 = vld [vmem:[#allocation22 + $0x568] ss:$16 sps:$4 sm:$0xff]  }
0x1afb   : > { %13729 = vmatpush1.bf16.msra.mxu1 %v20433_v28  ;;  %13760 = vmatprep.mubr.bf16.mxu1 %v12467_v0  ;;  %v20499_v28 = vld [vmem:[#allocation22 + $0x560] ss:$16 sps:$4 sm:$0xff]  }
0x1afc   : > { %13858 = vmatpush1.bf16.msra.mxu0 %v20436_v62  ;;  %13889 = vmatprep.mubr.bf16.mxu0 %v12467_v0  ;;  %v20507_v62 = vld [vmem:[#allocation22 + $0x584] ss:$16 sps:$4 sm:$0xff]   ;;  %v20510_v0 = vld [vmem:[#allocation22 + $0x58c] ss:$16 sps:$4 sm:$0xff]  }
0x1afd   : > { %13730 = vmatprep.subr.bf16.mxu1 %v20441_v42  ;;  %13859 = vmatprep.subr.bf16.mxu0 %v20444_v17  ;;  %v20505_v42 = vld [vmem:[#allocation22 + $0x580] ss:$16 sps:$4 sm:$0xff]   ;;  %v20508_v17 = vld [vmem:[#allocation22 + $0x588] ss:$16 sps:$4 sm:$0xff]  }
0x1aff   : > { %13731 = vmatpush1.bf16.msra.mxu1 %v20439_v4  ;;  %v20513_v4 = vld [vmem:[#allocation22 + $0x5a4] ss:$16 sps:$4 sm:$0xff]  }
0x1b00   : > { %13860 = vmatpush1.bf16.msra.mxu0 %v20442_v32  ;;  %13732 = vmatprep.subr.bf16.mxu1 %v20447_v53  ;;  %v20516_v32 = vld [vmem:[#allocation22 + $0x5ac] ss:$16 sps:$4 sm:$0xff]   ;;  %v20511_v53 = vld [vmem:[#allocation22 + $0x5a0] ss:$16 sps:$4 sm:$0xff]  }
0x1b01   : > { %13861 = vmatprep.subr.bf16.mxu0 %v20450_v55  ;;  %v20514_v55 = vld [vmem:[#allocation22 + $0x5a8] ss:$16 sps:$4 sm:$0xff]  }
0x1b03   : > { %13733 = vmatpush1.bf16.msra.mxu1 %v20445_v31  ;;  %v20519_v31 = vld [vmem:[#allocation22 + $0x5c4] ss:$16 sps:$4 sm:$0xff]  }
0x1b04   : > { %13862 = vmatpush1.bf16.msra.mxu0 %v20448_v34  ;;  %13734 = vmatprep.subr.bf16.mxu1 %v20453_v19  ;;  %v20522_v34 = vld [vmem:[#allocation22 + $0x5cc] ss:$16 sps:$4 sm:$0xff]   ;;  %v20517_v19 = vld [vmem:[#allocation22 + $0x5c0] ss:$16 sps:$4 sm:$0xff]  }
0x1b05   : > { %13863 = vmatprep.subr.bf16.mxu0 %v20456_v26  ;;  %v20520_v26 = vld [vmem:[#allocation22 + $0x5c8] ss:$16 sps:$4 sm:$0xff]  }
0x1b07   : > { %13735 = vmatpush1.bf16.msra.mxu1 %v20451_v46  ;;  %v20525_v46 = vld [vmem:[#allocation22 + $0x5e4] ss:$16 sps:$4 sm:$0xff]  }
0x1b08   : > { %13864 = vmatpush1.bf16.msra.mxu0 %v20454_v16  ;;  %13736 = vmatprep.subr.bf16.mxu1 %v20459_v41  ;;  %v20528_v16 = vld [vmem:[#allocation22 + $0x5ec] ss:$16 sps:$4 sm:$0xff]   ;;  %v20523_v41 = vld [vmem:[#allocation22 + $0x5e0] ss:$16 sps:$4 sm:$0xff]  }
0x1b09   : > { %13865 = vmatprep.subr.bf16.mxu0 %v20462_v51  ;;  %v20526_v51 = vld [vmem:[#allocation22 + $0x5e8] ss:$16 sps:$4 sm:$0xff]  }
0x1b0b   : > { %13737 = vmatpush1.bf16.msra.mxu1 %v20457_v2  ;;  %v20531_v2 = vld [vmem:[#allocation25 + $0x4] ss:$24 sps:$4 sm:$0xff]  }
0x1b0c   : > { %13866 = vmatpush1.bf16.msra.mxu0 %v20460_v22  ;;  %13738 = vmatprep.subr.bf16.mxu1 %v20465_v59  ;;  %v20534_v22 = vld [vmem:[#allocation25 + $0x14] ss:$24 sps:$4 sm:$0xff]   ;;  %v20529_v59 = vld [vmem:[#allocation25] ss:$24 sps:$4 sm:$0xff]  }
0x1b0d   : > { %13867 = vmatprep.subr.bf16.mxu0 %v20468_v1  ;;  %v12466_v1 = vpack.c.bf16 %v23071_v44, %v23061_v10 }
0x1b0f   : > { %13739 = vmatpush1.bf16.msra.mxu1 %v20463_v57  ;;  %v20532_v57 = vld [vmem:[#allocation25 + $0x10] ss:$24 sps:$4 sm:$0xff]  }
0x1b10   : > { %13868 = vmatpush1.bf16.msra.mxu0 %v20466_v20  ;;  %13740 = vmatprep.subr.bf16.mxu1 %v20471_v45  ;;  %v20537_v20 = vld [vmem:[#allocation25 + $0x34] ss:$24 sps:$4 sm:$0xff]   ;;  %v20540_v45 = vld [vmem:[#allocation25 + $0x44] ss:$24 sps:$4 sm:$0xff]  }
0x1b11   : > { %13869 = vmatprep.subr.bf16.mxu0 %v20474_v8  ;;  %v20535_v8 = vld [vmem:[#allocation25 + $0x30] ss:$24 sps:$4 sm:$0xff]  }
0x1b13   : > { %13741 = vmatpush1.bf16.msra.mxu1 %v20469_v40  ;;  %v20538_v40 = vld [vmem:[#allocation25 + $0x40] ss:$24 sps:$4 sm:$0xff]  }
0x1b14   : > { %13870 = vmatpush1.bf16.msra.mxu0 %v20472_v35  ;;  %13742 = vmatprep.subr.bf16.mxu1 %v20477_v58  ;;  %v20543_v35 = vld [vmem:[#allocation25 + $0x64] ss:$24 sps:$4 sm:$0xff]   ;;  %v20546_v58 = vld [vmem:[#allocation25 + $0x74] ss:$24 sps:$4 sm:$0xff]  }
0x1b15   : > { %13871 = vmatprep.subr.bf16.mxu0 %v20480_v63  ;;  %v20541_v63 = vld [vmem:[#allocation25 + $0x60] ss:$24 sps:$4 sm:$0xff]  }
0x1b17   : > { %13743 = vmatpush1.bf16.msra.mxu1 %v20475_v23  ;;  %v20544_v23 = vld [vmem:[#allocation25 + $0x70] ss:$24 sps:$4 sm:$0xff]  }
0x1b18   : > { %13872 = vmatpush1.bf16.msra.mxu0 %v20478_v3  ;;  %13744 = vmatprep.subr.bf16.mxu1 %v20483_v13  ;;  %v20549_v3 = vld [vmem:[#allocation25 + $0x94] ss:$24 sps:$4 sm:$0xff]   ;;  %v20552_v13 = vld [vmem:[#allocation25 + $0xa4] ss:$24 sps:$4 sm:$0xff]  }
0x1b19   : > { %13873 = vmatprep.subr.bf16.mxu0 %v20486_v11  ;;  %v20547_v11 = vld [vmem:[#allocation25 + $0x90] ss:$24 sps:$4 sm:$0xff]  }
0x1b1b   : > { %13745 = vmatpush1.bf16.msra.mxu1 %v20481_v7  ;;  %v20550_v7 = vld [vmem:[#allocation25 + $0xa0] ss:$24 sps:$4 sm:$0xff]  }
0x1b1c   : > { %13874 = vmatpush1.bf16.msra.mxu0 %v20484_v43  ;;  %13746 = vmatprep.subr.bf16.mxu1 %v20489_v25  ;;  %v20555_v43 = vld [vmem:[#allocation25 + $0xc4] ss:$24 sps:$4 sm:$0xff]   ;;  %v20558_v25 = vld [vmem:[#allocation25 + $0xd4] ss:$24 sps:$4 sm:$0xff]  }
0x1b1d   : > { %13875 = vmatprep.subr.bf16.mxu0 %v20492_v61  ;;  %v20553_v61 = vld [vmem:[#allocation25 + $0xc0] ss:$24 sps:$4 sm:$0xff]  }
0x1b1f   : > { %13747 = vmatpush1.bf16.msra.mxu1 %v20487_v27  ;;  %v20556_v27 = vld [vmem:[#allocation25 + $0xd0] ss:$24 sps:$4 sm:$0xff]  }
0x1b20   : > { %13876 = vmatpush1.bf16.msra.mxu0 %v20490_v5  ;;  %13748 = vmatprep.subr.bf16.mxu1 %v20495_v18  ;;  %v20561_v5 = vld [vmem:[#allocation25 + $0xf4] ss:$24 sps:$4 sm:$0xff]   ;;  %v20564_v18 = vld [vmem:[#allocation25 + $0x104] ss:$24 sps:$4 sm:$0xff]  }
0x1b21   : > { %13877 = vmatprep.subr.bf16.mxu0 %v20498_v60  ;;  %v20559_v60 = vld [vmem:[#allocation25 + $0xf0] ss:$24 sps:$4 sm:$0xff]  }
0x1b23   : > { %13749 = vmatpush1.bf16.msra.mxu1 %v20493_v6  ;;  %v20562_v6 = vld [vmem:[#allocation25 + $0x100] ss:$24 sps:$4 sm:$0xff]  }
0x1b24   : > { %13878 = vmatpush1.bf16.msra.mxu0 %v20496_v12  ;;  %13750 = vmatprep.subr.bf16.mxu1 %v20501_v37  ;;  %v20567_v12 = vld [vmem:[#allocation25 + $0x124] ss:$24 sps:$4 sm:$0xff]   ;;  %v20570_v37 = vld [vmem:[#allocation25 + $0x134] ss:$24 sps:$4 sm:$0xff]  }
0x1b25   : > { %13879 = vmatprep.subr.bf16.mxu0 %v20504_v33  ;;  %v20565_v33 = vld [vmem:[#allocation25 + $0x120] ss:$24 sps:$4 sm:$0xff]  }
0x1b27   : > { %13751 = vmatpush1.bf16.msra.mxu1 %v20499_v28  ;;  %v20568_v28 = vld [vmem:[#allocation25 + $0x130] ss:$24 sps:$4 sm:$0xff]  }
0x1b28   : > { %13880 = vmatpush1.bf16.msra.mxu0 %v20502_v47  ;;  %13752 = vmatprep.subr.bf16.mxu1 %v20507_v62  ;;  %v20573_v47 = vld [vmem:[#allocation25 + $0x154] ss:$24 sps:$4 sm:$0xff]   ;;  %v20576_v62 = vld [vmem:[#allocation25 + $0x164] ss:$24 sps:$4 sm:$0xff]  }
0x1b29   : > { %13881 = vmatprep.subr.bf16.mxu0 %v20510_v0  ;;  %v20571_v0 = vld [vmem:[#allocation25 + $0x150] ss:$24 sps:$4 sm:$0xff]  }
0x1b2b   : > { %13753 = vmatpush1.bf16.msra.mxu1 %v20505_v42  ;;  %v20574_v42 = vld [vmem:[#allocation25 + $0x160] ss:$24 sps:$4 sm:$0xff]  }
0x1b2c   : > { %13882 = vmatpush1.bf16.msra.mxu0 %v20508_v17  ;;  %13754 = vmatprep.subr.bf16.mxu1 %v20513_v4  ;;  %v20579_v17 = vld [vmem:[#allocation25 + $0x184] ss:$24 sps:$4 sm:$0xff]   ;;  %v20582_v4 = vld [vmem:[#allocation25 + $0x194] ss:$24 sps:$4 sm:$0xff]  }
0x1b2d   : > { %13883 = vmatprep.subr.bf16.mxu0 %v20516_v32  ;;  %v20577_v32 = vld [vmem:[#allocation25 + $0x180] ss:$24 sps:$4 sm:$0xff]  }
0x1b2f   : > { %13755 = vmatpush1.bf16.msra.mxu1 %v20511_v53  ;;  %v20580_v53 = vld [vmem:[#allocation25 + $0x190] ss:$24 sps:$4 sm:$0xff]  }
0x1b30   : > { %13884 = vmatpush1.bf16.msra.mxu0 %v20514_v55  ;;  %13756 = vmatprep.subr.bf16.mxu1 %v20519_v31  ;;  %v20585_v55 = vld [vmem:[#allocation25 + $0x1b4] ss:$24 sps:$4 sm:$0xff]   ;;  %v20588_v31 = vld [vmem:[#allocation25 + $0x1c4] ss:$24 sps:$4 sm:$0xff]  }
0x1b31   : > { %13885 = vmatprep.subr.bf16.mxu0 %v20522_v34  ;;  %v20583_v34 = vld [vmem:[#allocation25 + $0x1b0] ss:$24 sps:$4 sm:$0xff]  }
0x1b33   : > { %13757 = vmatpush1.bf16.msra.mxu1 %v20517_v19  ;;  %v20586_v19 = vld [vmem:[#allocation25 + $0x1c0] ss:$24 sps:$4 sm:$0xff]  }
0x1b34   : > { %13886 = vmatpush1.bf16.msra.mxu0 %v20520_v26  ;;  %13758 = vmatprep.subr.bf16.mxu1 %v20525_v46  ;;  %v20591_v26 = vld [vmem:[#allocation25 + $0x1e4] ss:$24 sps:$4 sm:$0xff]   ;;  %v20594_v46 = vld [vmem:[#allocation25 + $0x1f4] ss:$24 sps:$4 sm:$0xff]  }
0x1b35   : > { %13887 = vmatprep.subr.bf16.mxu0 %v20528_v16  ;;  %v20589_v16 = vld [vmem:[#allocation25 + $0x1e0] ss:$24 sps:$4 sm:$0xff]  }
0x1b37   : > { %13759 = vmatpush1.bf16.msra.mxu1 %v20523_v41  ;;  %v20592_v41 = vld [vmem:[#allocation25 + $0x1f0] ss:$24 sps:$4 sm:$0xff]  }
0x1b38   : > { %13888 = vmatpush1.bf16.msra.mxu0 %v20526_v51  ;;  %15096 = vmatprep.subr.bf16.mxu1 %v20531_v2  ;;  %v20597_v51 = vld [vmem:[#allocation25 + $0x214] ss:$24 sps:$4 sm:$0xff]   ;;  %v20600_v2 = vld [vmem:[#allocation25 + $0x224] ss:$24 sps:$4 sm:$0xff]  }
0x1b39   : > { %15268 = vmatprep.subr.bf16.mxu0 %v20534_v22  ;;  %v20595_v22 = vld [vmem:[#allocation25 + $0x210] ss:$24 sps:$4 sm:$0xff]  }
0x1b3a   : > { %13761 = vmatmul.mubr.bf16.vlgmr.msra.gmra.mrb[68].mxu1 %v12466_v1 }
0x1b3b   : > { %13890 = vmatmul.mubr.bf16.vlgmr.msra.gmra.mrb[116].mxu0 %v12466_v1  ;;  %15097 = vmatpush1.bf16.msra.mxu1 %v20529_v59  ;;  %v20598_v59 = vld [vmem:[#allocation25 + $0x220] ss:$24 sps:$4 sm:$0xff]   ;;  %v20603_v1 = vld [vmem:[#allocation25 + $0x244] ss:$24 sps:$4 sm:$0xff]  }
0x1b3c   : > { %15269 = vmatpush1.bf16.msra.mxu0 %v20532_v57  ;;  %15098 = vmatprep.subr.bf16.mxu1 %v20537_v20  ;;  %v20606_v57 = vld [vmem:[#allocation25 + $0x254] ss:$24 sps:$4 sm:$0xff]   ;;  %v20601_v20 = vld [vmem:[#allocation25 + $0x240] ss:$24 sps:$4 sm:$0xff]  }
0x1b3d   : > { %15270 = vmatprep.subr.bf16.mxu0 %v20540_v45  ;;  %v20604_v45 = vld [vmem:[#allocation25 + $0x250] ss:$24 sps:$4 sm:$0xff]  }
0x1b3f   : > { %15099 = vmatpush1.bf16.msra.mxu1 %v20535_v8  ;;  %v20609_v8 = vld [vmem:[#allocation25 + $0x274] ss:$24 sps:$4 sm:$0xff]  }
0x1b40   : > { %15271 = vmatpush1.bf16.msra.mxu0 %v20538_v40  ;;  %15100 = vmatprep.subr.bf16.mxu1 %v20543_v35  ;;  %v20612_v40 = vld [vmem:[#allocation25 + $0x284] ss:$24 sps:$4 sm:$0xff]   ;;  %v20607_v35 = vld [vmem:[#allocation25 + $0x270] ss:$24 sps:$4 sm:$0xff]  }
0x1b41   : > { %15272 = vmatprep.subr.bf16.mxu0 %v20546_v58  ;;  %v20610_v58 = vld [vmem:[#allocation25 + $0x280] ss:$24 sps:$4 sm:$0xff]  }
0x1b43   : > { %15101 = vmatpush1.bf16.msra.mxu1 %v20541_v63  ;;  %v20615_v63 = vld [vmem:[#allocation25 + $0x2a4] ss:$24 sps:$4 sm:$0xff]  }
0x1b44   : > { %15273 = vmatpush1.bf16.msra.mxu0 %v20544_v23  ;;  %15102 = vmatprep.subr.bf16.mxu1 %v20549_v3  ;;  %v20618_v23 = vld [vmem:[#allocation25 + $0x2b4] ss:$24 sps:$4 sm:$0xff]   ;;  %v20613_v3 = vld [vmem:[#allocation25 + $0x2a0] ss:$24 sps:$4 sm:$0xff]  }
0x1b45   : > { %15274 = vmatprep.subr.bf16.mxu0 %v20552_v13  ;;  %v20616_v13 = vld [vmem:[#allocation25 + $0x2b0] ss:$24 sps:$4 sm:$0xff]  }
0x1b47   : > { %15103 = vmatpush1.bf16.msra.mxu1 %v20547_v11  ;;  %v20621_v11 = vld [vmem:[#allocation25 + $0x2d4] ss:$24 sps:$4 sm:$0xff]  }
0x1b48   : > { %15275 = vmatpush1.bf16.msra.mxu0 %v20550_v7  ;;  %15104 = vmatprep.subr.bf16.mxu1 %v20555_v43  ;;  %v20624_v7 = vld [vmem:[#allocation25 + $0x2e4] ss:$24 sps:$4 sm:$0xff]   ;;  %v20619_v43 = vld [vmem:[#allocation25 + $0x2d0] ss:$24 sps:$4 sm:$0xff]  }
0x1b49   : > { %15276 = vmatprep.subr.bf16.mxu0 %v20558_v25  ;;  %v20622_v25 = vld [vmem:[#allocation25 + $0x2e0] ss:$24 sps:$4 sm:$0xff]  }
0x1b4b   : > { %15105 = vmatpush1.bf16.msra.mxu1 %v20553_v61  ;;  %v20627_v61 = vld [vmem:[#allocation25 + $0x304] ss:$24 sps:$4 sm:$0xff]  }
0x1b4c   : > { %15277 = vmatpush1.bf16.msra.mxu0 %v20556_v27  ;;  %15106 = vmatprep.subr.bf16.mxu1 %v20561_v5  ;;  %v20630_v27 = vld [vmem:[#allocation25 + $0x314] ss:$24 sps:$4 sm:$0xff]   ;;  %v12660_v5 = vld [vmem:[#allocation23] sm:$0xf] }
0x1b4d   : > { %15278 = vmatprep.subr.bf16.mxu0 %v20564_v18  ;;  %v12665_v18 = vrot.slane %v12660_v5, %v22136_v29 }
0x1b4f   : > { %15107 = vmatpush1.bf16.msra.mxu1 %v20559_v60  ;;  %v12673_v60 = vrot.slane %v12660_v5, %v22152_v50 }
0x1b50   : > { %15279 = vmatpush1.bf16.msra.mxu0 %v20562_v6  ;;  %15108 = vmatprep.subr.bf16.mxu1 %v20567_v12  ;;  %v12669_v6 = vrot.slane %v12660_v5, %v22139_v30  ;;  %v12677_v12 = vrot.slane %v12660_v5, %v22156_v52  ;;  %v20646_v5 = vld [vmem:[#allocation25 + $0x3a0] ss:$24 sps:$4 sm:$0xff]  }
0x1b51   : > { %15280 = vmatprep.subr.bf16.mxu0 %v20570_v37 }
0x1b53   : > { %15109 = vmatpush1.bf16.msra.mxu1 %v20565_v33 }
0x1b54   : > { %15281 = vmatpush1.bf16.msra.mxu0 %v20568_v28  ;;  %15110 = vmatprep.subr.bf16.mxu1 %v20573_v47 }
0x1b55   : > { %15282 = vmatprep.subr.bf16.mxu0 %v20576_v62 }
0x1b57   : > { %15111 = vmatpush1.bf16.msra.mxu1 %v20571_v0 }
0x1b58   : > { %15283 = vmatpush1.bf16.msra.mxu0 %v20574_v42  ;;  %15112 = vmatprep.subr.bf16.mxu1 %v20579_v17 }
0x1b59   : > { %15284 = vmatprep.subr.bf16.mxu0 %v20582_v4 }
0x1b5b   : > { %15113 = vmatpush1.bf16.msra.mxu1 %v20577_v32 }
0x1b5c   : > { %15285 = vmatpush1.bf16.msra.mxu0 %v20580_v53  ;;  %15114 = vmatprep.subr.bf16.mxu1 %v20585_v55 }
0x1b5d   : > { %15286 = vmatprep.subr.bf16.mxu0 %v20588_v31 }
0x1b5f   : > { %15115 = vmatpush1.bf16.msra.mxu1 %v20583_v34 }
0x1b60   : > { %15287 = vmatpush1.bf16.msra.mxu0 %v20586_v19  ;;  %15116 = vmatprep.subr.bf16.mxu1 %v20591_v26 }
0x1b61   : > { %15288 = vmatprep.subr.bf16.mxu0 %v20594_v46 }
0x1b63   : > { %15117 = vmatpush1.bf16.msra.mxu1 %v20589_v16 }
0x1b64   : > { %15289 = vmatpush1.bf16.msra.mxu0 %v20592_v41  ;;  %15118 = vmatprep.subr.bf16.mxu1 %v20597_v51 }
0x1b65   : > { %15290 = vmatprep.subr.bf16.mxu0 %v20600_v2 }
0x1b67   : > { %15119 = vmatpush1.bf16.msra.mxu1 %v20595_v22 }
0x1b68   : > { %15291 = vmatpush1.bf16.msra.mxu0 %v20598_v59  ;;  %15120 = vmatprep.subr.bf16.mxu1 %v20603_v1 }
0x1b69   : > { %15292 = vmatprep.subr.bf16.mxu0 %v20606_v57 }
0x1b6b   : > { %15121 = vmatpush1.bf16.msra.mxu1 %v20601_v20 }
0x1b6c   : > { %15293 = vmatpush1.bf16.msra.mxu0 %v20604_v45  ;;  %15122 = vmatprep.subr.bf16.mxu1 %v20609_v8  ;;  %v20625_v8 = vld [vmem:[#allocation25 + $0x300] ss:$24 sps:$4 sm:$0xff]  }
0x1b6d   : > { %15294 = vmatprep.subr.bf16.mxu0 %v20612_v40  ;;  %v20628_v40 = vld [vmem:[#allocation25 + $0x310] ss:$24 sps:$4 sm:$0xff]  }
0x1b6f   : > { %15123 = vmatpush1.bf16.msra.mxu1 %v20607_v35 }
0x1b70   : > { %15295 = vmatpush1.bf16.msra.mxu0 %v20610_v58  ;;  %15124 = vmatprep.subr.bf16.mxu1 %v20615_v63  ;;  %v20633_v58 = vld [vmem:[#allocation25 + $0x334] ss:$24 sps:$4 sm:$0xff]   ;;  %v20636_v63 = vld [vmem:[#allocation25 + $0x344] ss:$24 sps:$4 sm:$0xff]  }
0x1b71   : > { %15296 = vmatprep.subr.bf16.mxu0 %v20618_v23  ;;  %v20631_v23 = vld [vmem:[#allocation25 + $0x330] ss:$24 sps:$4 sm:$0xff]  }
0x1b73   : > { %15125 = vmatpush1.bf16.msra.mxu1 %v20613_v3  ;;  %v20634_v3 = vld [vmem:[#allocation25 + $0x340] ss:$24 sps:$4 sm:$0xff]  }
0x1b74   : > { %15297 = vmatpush1.bf16.msra.mxu0 %v20616_v13  ;;  %15126 = vmatprep.subr.bf16.mxu1 %v20621_v11  ;;  %v20639_v13 = vld [vmem:[#allocation25 + $0x364] ss:$24 sps:$4 sm:$0xff]   ;;  %v20642_v11 = vld [vmem:[#allocation25 + $0x374] ss:$24 sps:$4 sm:$0xff]  }
0x1b75   : > { %15298 = vmatprep.subr.bf16.mxu0 %v20624_v7  ;;  %v20637_v7 = vld [vmem:[#allocation25 + $0x360] ss:$24 sps:$4 sm:$0xff]  }
0x1b77   : > { %15127 = vmatpush1.bf16.msra.mxu1 %v20619_v43  ;;  %v20640_v43 = vld [vmem:[#allocation25 + $0x370] ss:$24 sps:$4 sm:$0xff]  }
0x1b78   : > { %15299 = vmatpush1.bf16.msra.mxu0 %v20622_v25  ;;  %15139 = vmatprep.subr.bf16.mxu1 %v20627_v61  ;;  %v20645_v25 = vld [vmem:[#allocation25 + $0x394] ss:$24 sps:$4 sm:$0xff]   ;;  %v20648_v61 = vld [vmem:[#allocation25 + $0x3a4] ss:$24 sps:$4 sm:$0xff]  }
0x1b79   : > { %15311 = vmatprep.subr.bf16.mxu0 %v20630_v27  ;;  %v20643_v27 = vld [vmem:[#allocation25 + $0x390] ss:$24 sps:$4 sm:$0xff]  }
0x1c0d   : > { %v13762_v37 = vpop.f32.mrb[68].mxu1 }
0x1c0e   : > { %v17840_v33 = vadd.f32 %v13762_v37, %v12665_v18  ;;  %v13891_v28 = vpop.f32.mrb[116].mxu0  ;;  %v13764_v47 = vpop.f32.mrb[69].mxu1  ;;  %v20657_v37 = vld [vmem:[#allocation25 + $0x3f4] ss:$24 sps:$4 sm:$0xff]  }
0x1c0f   : > { %v17844_v62 = vadd.f32 %v13891_v28, %v12673_v60  ;;  %v17841_v0 = vadd.f32 %v13764_v47, %v12669_v6  ;;  %v13893_v42 = vpop.f32.mrb[117].mxu0  ;;  %v13766_v17 = vpop.f32.mrb[70].mxu1  ;;  %v20655_v28 = vld [vmem:[#allocation25 + $0x3f0] ss:$24 sps:$4 sm:$0xff]   ;;  %v20658_v47 = vld [vmem:[#allocation25 + $0x400] ss:$24 sps:$4 sm:$0xff]  }
0x1c10   : > { %v17845_v4 = vadd.f32 %v13893_v42, %v12677_v12  ;;  %v17842_v32 = vadd.f32 %v13766_v17, %v12665_v18  ;;  %v13895_v53 = vpop.f32.mrb[118].mxu0  ;;  %v13768_v55 = vpop.f32.mrb[71].mxu1  ;;  %v13900_v26 = vmax.f32 %v17840_v33, 0.0  ;;  %v20651_v18 = vld [vmem:[#allocation25 + $0x3c4] ss:$24 sps:$4 sm:$0xff]  }
0x1c11   : > { %v17846_v31 = vadd.f32 %v13895_v53, %v12673_v60  ;;  %v17843_v34 = vadd.f32 %v13768_v55, %v12669_v6  ;;  %v13897_v19 = vpop.f32.mrb[119].mxu0  ;;  %v13902_v41 = vmax.f32 %v17844_v62, 0.0  ;;  %v13901_v51 = vmax.f32 %v17841_v0, 0.0  ;;  %v20654_v60 = vld [vmem:[#allocation25 + $0x3d4] ss:$24 sps:$4 sm:$0xff]  }
0x1c12   : > { %v13904_v46 = vmax.f32 %v17842_v32, 0.0  ;;  %v17847_v16 = vadd.f32 %v13897_v19, %v12677_v12  ;;  %v13903_v59 = vmax.f32 %v17845_v4, 0.0  ;;  %v20649_v6 = vld [vmem:[#allocation25 + $0x3c0] ss:$24 sps:$4 sm:$0xff]   ;;  %v20652_v12 = vld [vmem:[#allocation25 + $0x3d0] ss:$24 sps:$4 sm:$0xff]  }
0x1c13   : > { %v13906_v2 = vmax.f32 %v17846_v31, 0.0  ;;  %v13905_v22 = vmax.f32 %v17843_v34, 0.0  ;;  %v20660_v33 = vld [vmem:[#allocation25 + $0x404] ss:$24 sps:$4 sm:$0xff]   ;;  %v20666_v0 = vld [vmem:[#allocation25 + $0x434] ss:$24 sps:$4 sm:$0xff]  }
0x1c14   : > { %v23085_v1 = vpack.c.bf16 %v13904_v46, %v13900_v26  ;;  %v13907_v57 = vmax.f32 %v17847_v16, 0.0  ;;  %v20663_v62 = vld [vmem:[#allocation25 + $0x424] ss:$24 sps:$4 sm:$0xff]   ;;  %v20661_v42 = vld [vmem:[#allocation25 + $0x420] ss:$24 sps:$4 sm:$0xff]  }
0x1c15   : > { %v23087_v20 = vpack.c.bf16 %v13906_v2, %v13902_v41  ;;  %v23089_v45 = vpack.c.bf16 %v13905_v22, %v13901_v51  ;;  %v20664_v17 = vld [vmem:[#allocation25 + $0x430] ss:$24 sps:$4 sm:$0xff]   ;;  %v20669_v4 = vld [vmem:[#allocation25 + $0x454] ss:$24 sps:$4 sm:$0xff]   ;;  %v20672_v32 = vld [vmem:[#allocation25 + $0x464] ss:$24 sps:$4 sm:$0xff]  }
0x1c16   : > { %v23091_v35 = vpack.c.bf16 %v13907_v57, %v13903_v59  ;;  %v20667_v53 = vld [vmem:[#allocation25 + $0x450] ss:$24 sps:$4 sm:$0xff]   ;;  %v20670_v55 = vld [vmem:[#allocation25 + $0x460] ss:$24 sps:$4 sm:$0xff]   ;;  %v20675_v31 = vld [vmem:[#allocation25 + $0x484] ss:$24 sps:$4 sm:$0xff]  }
0x1c17   : > { %15128 = vmatprep.mubr.bf16.mxu1 %v23089_v45  ;;  %15300 = vmatprep.mubr.bf16.mxu0 %v23089_v45  ;;  %v20678_v34 = vld [vmem:[#allocation25 + $0x494] ss:$24 sps:$4 sm:$0xff]   ;;  %v20673_v19 = vld [vmem:[#allocation25 + $0x480] ss:$24 sps:$4 sm:$0xff]   ;;  %v20676_v26 = vld [vmem:[#allocation25 + $0x490] ss:$24 sps:$4 sm:$0xff]  }
0x1c18   : > { %15129 = vmatmul.mubr.bf16.vlgmr.msra.gmra.mrb[72].mxu1 %v23085_v1  ;;  %15301 = vmatmul.mubr.bf16.vlgmr.msra.gmra.mrb[120].mxu0 %v23085_v1  ;;  %v20681_v46 = vld [vmem:[#allocation25 + $0x4b4] ss:$24 sps:$4 sm:$0xff]   ;;  %v20684_v16 = vld [vmem:[#allocation25 + $0x4c4] ss:$24 sps:$4 sm:$0xff]   ;;  %v20679_v41 = vld [vmem:[#allocation25 + $0x4b0] ss:$24 sps:$4 sm:$0xff]  }
0x1c19   : > { %15140 = vmatpush1.bf16.msra.mxu1 %v20625_v8  ;;  %15312 = vmatpush1.bf16.msra.mxu0 %v20628_v40  ;;  %v20682_v51 = vld [vmem:[#allocation25 + $0x4c0] ss:$24 sps:$4 sm:$0xff]   ;;  %v20687_v2 = vld [vmem:[#allocation25 + $0x4e4] ss:$24 sps:$4 sm:$0xff]   ;;  %v20690_v22 = vld [vmem:[#allocation25 + $0x4f4] ss:$24 sps:$4 sm:$0xff]  }
0x1c1a   : > { %15171 = vmatprep.mubr.bf16.mxu1 %v23091_v35  ;;  %15343 = vmatprep.mubr.bf16.mxu0 %v23091_v35  ;;  %v20685_v59 = vld [vmem:[#allocation25 + $0x4e0] ss:$24 sps:$4 sm:$0xff]   ;;  %v20688_v57 = vld [vmem:[#allocation25 + $0x4f0] ss:$24 sps:$4 sm:$0xff]   ;;  %v20693_v8 = vld [vmem:[#allocation25 + $0x514] ss:$24 sps:$4 sm:$0xff]  }
0x1c1b   : > { %15141 = vmatprep.subr.bf16.mxu1 %v20633_v58  ;;  %15313 = vmatprep.subr.bf16.mxu0 %v20636_v63  ;;  %v20696_v40 = vld [vmem:[#allocation25 + $0x524] ss:$24 sps:$4 sm:$0xff]   ;;  %v20691_v58 = vld [vmem:[#allocation25 + $0x510] ss:$24 sps:$4 sm:$0xff]   ;;  %v20694_v63 = vld [vmem:[#allocation25 + $0x520] ss:$24 sps:$4 sm:$0xff]  }
0x1c1d   : > { %15142 = vmatpush1.bf16.msra.mxu1 %v20631_v23  ;;  %15314 = vmatpush1.bf16.msra.mxu0 %v20634_v3  ;;  %v20699_v23 = vld [vmem:[#allocation25 + $0x544] ss:$24 sps:$4 sm:$0xff]   ;;  %v20702_v3 = vld [vmem:[#allocation25 + $0x554] ss:$24 sps:$4 sm:$0xff]  }
0x1c1e   : > { %15143 = vmatprep.subr.bf16.mxu1 %v20639_v13  ;;  %15315 = vmatprep.subr.bf16.mxu0 %v20642_v11  ;;  %v20697_v13 = vld [vmem:[#allocation25 + $0x540] ss:$24 sps:$4 sm:$0xff]   ;;  %v20700_v11 = vld [vmem:[#allocation25 + $0x550] ss:$24 sps:$4 sm:$0xff]  }
0x1c21   : > { %15144 = vmatpush1.bf16.msra.mxu1 %v20637_v7  ;;  %15316 = vmatpush1.bf16.msra.mxu0 %v20640_v43  ;;  %v20705_v7 = vld [vmem:[#allocation25 + $0x574] ss:$24 sps:$4 sm:$0xff]   ;;  %v20708_v43 = vld [vmem:[#allocation25 + $0x584] ss:$24 sps:$4 sm:$0xff]  }
0x1c22   : > { %15145 = vmatprep.subr.bf16.mxu1 %v20645_v25  ;;  %15317 = vmatprep.subr.bf16.mxu0 %v20648_v61  ;;  %v20703_v25 = vld [vmem:[#allocation25 + $0x570] ss:$24 sps:$4 sm:$0xff]   ;;  %v20706_v61 = vld [vmem:[#allocation25 + $0x580] ss:$24 sps:$4 sm:$0xff]  }
0x1c25   : > { %15146 = vmatpush1.bf16.msra.mxu1 %v20643_v27  ;;  %15318 = vmatpush1.bf16.msra.mxu0 %v20646_v5  ;;  %v20711_v27 = vld [vmem:[#allocation25 + $0x5a4] ss:$24 sps:$4 sm:$0xff]   ;;  %v20714_v5 = vld [vmem:[#allocation25 + $0x5b4] ss:$24 sps:$4 sm:$0xff]  }
0x1c26   : > { %15147 = vmatprep.subr.bf16.mxu1 %v20651_v18  ;;  %15319 = vmatprep.subr.bf16.mxu0 %v20654_v60  ;;  %v20709_v18 = vld [vmem:[#allocation25 + $0x5a0] ss:$24 sps:$4 sm:$0xff]   ;;  %v20712_v60 = vld [vmem:[#allocation25 + $0x5b0] ss:$24 sps:$4 sm:$0xff]  }
0x1c29   : > { %15148 = vmatpush1.bf16.msra.mxu1 %v20649_v6  ;;  %15320 = vmatpush1.bf16.msra.mxu0 %v20652_v12  ;;  %v20717_v6 = vld [vmem:[#allocation25 + $0x5d4] ss:$24 sps:$4 sm:$0xff]   ;;  %v20720_v12 = vld [vmem:[#allocation25 + $0x5e4] ss:$24 sps:$4 sm:$0xff]  }
0x1c2a   : > { %15149 = vmatprep.subr.bf16.mxu1 %v20657_v37  ;;  %15321 = vmatprep.subr.bf16.mxu0 %v20660_v33  ;;  %v20715_v37 = vld [vmem:[#allocation25 + $0x5d0] ss:$24 sps:$4 sm:$0xff]   ;;  %v20718_v33 = vld [vmem:[#allocation25 + $0x5e0] ss:$24 sps:$4 sm:$0xff]  }
0x1c2d   : > { %15150 = vmatpush1.bf16.msra.mxu1 %v20655_v28  ;;  %15322 = vmatpush1.bf16.msra.mxu0 %v20658_v47  ;;  %v20723_v28 = vld [vmem:[#allocation25 + $0xc] ss:$24 sps:$4 sm:$0xff]   ;;  %v20721_v47 = vld [vmem:[#allocation25 + $0x8] ss:$24 sps:$4 sm:$0xff]  }
0x1c2e   : > { %15151 = vmatprep.subr.bf16.mxu1 %v20663_v62  ;;  %15323 = vmatprep.subr.bf16.mxu0 %v20666_v0  ;;  %v20726_v62 = vld [vmem:[#allocation25 + $0x3c] ss:$24 sps:$4 sm:$0xff]   ;;  %v20724_v0 = vld [vmem:[#allocation25 + $0x38] ss:$24 sps:$4 sm:$0xff]  }
0x1c31   : > { %15152 = vmatpush1.bf16.msra.mxu1 %v20661_v42  ;;  %15324 = vmatpush1.bf16.msra.mxu0 %v20664_v17  ;;  %v20729_v42 = vld [vmem:[#allocation25 + $0x6c] ss:$24 sps:$4 sm:$0xff]   ;;  %v20727_v17 = vld [vmem:[#allocation25 + $0x68] ss:$24 sps:$4 sm:$0xff]  }
0x1c32   : > { %15153 = vmatprep.subr.bf16.mxu1 %v20669_v4  ;;  %15325 = vmatprep.subr.bf16.mxu0 %v20672_v32  ;;  %v20732_v4 = vld [vmem:[#allocation25 + $0x9c] ss:$24 sps:$4 sm:$0xff]   ;;  %v20730_v32 = vld [vmem:[#allocation25 + $0x98] ss:$24 sps:$4 sm:$0xff]  }
0x1c35   : > { %15154 = vmatpush1.bf16.msra.mxu1 %v20667_v53  ;;  %15326 = vmatpush1.bf16.msra.mxu0 %v20670_v55  ;;  %v20735_v53 = vld [vmem:[#allocation25 + $0xcc] ss:$24 sps:$4 sm:$0xff]   ;;  %v20733_v55 = vld [vmem:[#allocation25 + $0xc8] ss:$24 sps:$4 sm:$0xff]  }
0x1c36   : > { %15155 = vmatprep.subr.bf16.mxu1 %v20675_v31  ;;  %15327 = vmatprep.subr.bf16.mxu0 %v20678_v34  ;;  %v20738_v31 = vld [vmem:[#allocation25 + $0xfc] ss:$24 sps:$4 sm:$0xff]   ;;  %v20736_v34 = vld [vmem:[#allocation25 + $0xf8] ss:$24 sps:$4 sm:$0xff]  }
0x1c39   : > { %15156 = vmatpush1.bf16.msra.mxu1 %v20673_v19  ;;  %15328 = vmatpush1.bf16.msra.mxu0 %v20676_v26  ;;  %v20741_v19 = vld [vmem:[#allocation25 + $0x12c] ss:$24 sps:$4 sm:$0xff]   ;;  %v20744_v26 = vld [vmem:[#allocation25 + $0x15c] ss:$24 sps:$4 sm:$0xff]  }
0x1c3a   : > { %15157 = vmatprep.subr.bf16.mxu1 %v20681_v46  ;;  %15329 = vmatprep.subr.bf16.mxu0 %v20684_v16  ;;  %v20742_v46 = vld [vmem:[#allocation25 + $0x158] ss:$24 sps:$4 sm:$0xff]   ;;  %v20747_v16 = vld [vmem:[#allocation25 + $0x18c] ss:$24 sps:$4 sm:$0xff]  }
0x1c3d   : > { %15158 = vmatpush1.bf16.msra.mxu1 %v20679_v41  ;;  %15330 = vmatpush1.bf16.msra.mxu0 %v20682_v51  ;;  %v20745_v41 = vld [vmem:[#allocation25 + $0x188] ss:$24 sps:$4 sm:$0xff]   ;;  %v20750_v51 = vld [vmem:[#allocation25 + $0x1bc] ss:$24 sps:$4 sm:$0xff]  }
0x1c3e   : > { %15159 = vmatprep.subr.bf16.mxu1 %v20687_v2  ;;  %15331 = vmatprep.subr.bf16.mxu0 %v20690_v22  ;;  %v20748_v2 = vld [vmem:[#allocation25 + $0x1b8] ss:$24 sps:$4 sm:$0xff]   ;;  %v20753_v22 = vld [vmem:[#allocation25 + $0x1ec] ss:$24 sps:$4 sm:$0xff]  }
0x1c41   : > { %15160 = vmatpush1.bf16.msra.mxu1 %v20685_v59  ;;  %15332 = vmatpush1.bf16.msra.mxu0 %v20688_v57  ;;  %v20751_v59 = vld [vmem:[#allocation25 + $0x1e8] ss:$24 sps:$4 sm:$0xff]   ;;  %v20756_v57 = vld [vmem:[#allocation25 + $0x21c] ss:$24 sps:$4 sm:$0xff]  }
0x1c42   : > { %15161 = vmatprep.subr.bf16.mxu1 %v20693_v8  ;;  %15333 = vmatprep.subr.bf16.mxu0 %v20696_v40  ;;  %v20754_v8 = vld [vmem:[#allocation25 + $0x218] ss:$24 sps:$4 sm:$0xff]   ;;  %v20759_v40 = vld [vmem:[#allocation25 + $0x24c] ss:$24 sps:$4 sm:$0xff]  }
0x1c45   : > { %15162 = vmatpush1.bf16.msra.mxu1 %v20691_v58  ;;  %15334 = vmatpush1.bf16.msra.mxu0 %v20694_v63  ;;  %v20757_v58 = vld [vmem:[#allocation25 + $0x248] ss:$24 sps:$4 sm:$0xff]   ;;  %v20762_v63 = vld [vmem:[#allocation25 + $0x27c] ss:$24 sps:$4 sm:$0xff]  }
0x1c46   : > { %15163 = vmatprep.subr.bf16.mxu1 %v20699_v23  ;;  %15335 = vmatprep.subr.bf16.mxu0 %v20702_v3  ;;  %v20760_v23 = vld [vmem:[#allocation25 + $0x278] ss:$24 sps:$4 sm:$0xff]   ;;  %v20765_v3 = vld [vmem:[#allocation25 + $0x2ac] ss:$24 sps:$4 sm:$0xff]  }
0x1c49   : > { %15164 = vmatpush1.bf16.msra.mxu1 %v20697_v13  ;;  %15336 = vmatpush1.bf16.msra.mxu0 %v20700_v11  ;;  %v20763_v13 = vld [vmem:[#allocation25 + $0x2a8] ss:$24 sps:$4 sm:$0xff]   ;;  %v20768_v11 = vld [vmem:[#allocation25 + $0x2dc] ss:$24 sps:$4 sm:$0xff]  }
0x1c4a   : > { %15165 = vmatprep.subr.bf16.mxu1 %v20705_v7  ;;  %15337 = vmatprep.subr.bf16.mxu0 %v20708_v43  ;;  %v20766_v7 = vld [vmem:[#allocation25 + $0x2d8] ss:$24 sps:$4 sm:$0xff]   ;;  %v20771_v43 = vld [vmem:[#allocation25 + $0x30c] ss:$24 sps:$4 sm:$0xff]  }
0x1c4d   : > { %15166 = vmatpush1.bf16.msra.mxu1 %v20703_v25  ;;  %15338 = vmatpush1.bf16.msra.mxu0 %v20706_v61  ;;  %v20769_v25 = vld [vmem:[#allocation25 + $0x308] ss:$24 sps:$4 sm:$0xff]   ;;  %v20774_v61 = vld [vmem:[#allocation25 + $0x33c] ss:$24 sps:$4 sm:$0xff]  }
0x1c4e   : > { %15167 = vmatprep.subr.bf16.mxu1 %v20711_v27  ;;  %15339 = vmatprep.subr.bf16.mxu0 %v20714_v5  ;;  %v20772_v27 = vld [vmem:[#allocation25 + $0x338] ss:$24 sps:$4 sm:$0xff]   ;;  %v20777_v5 = vld [vmem:[#allocation25 + $0x36c] ss:$24 sps:$4 sm:$0xff]  }
0x1c51   : > { %15168 = vmatpush1.bf16.msra.mxu1 %v20709_v18  ;;  %15340 = vmatpush1.bf16.msra.mxu0 %v20712_v60  ;;  %v20775_v18 = vld [vmem:[#allocation25 + $0x368] ss:$24 sps:$4 sm:$0xff]   ;;  %v20780_v60 = vld [vmem:[#allocation25 + $0x39c] ss:$24 sps:$4 sm:$0xff]  }
0x1c52   : > { %15169 = vmatprep.subr.bf16.mxu1 %v20717_v6  ;;  %15341 = vmatprep.subr.bf16.mxu0 %v20720_v12  ;;  %v20778_v6 = vld [vmem:[#allocation25 + $0x398] ss:$24 sps:$4 sm:$0xff]   ;;  %v20783_v12 = vld [vmem:[#allocation25 + $0x3cc] ss:$24 sps:$4 sm:$0xff]  }
0x1c55   : > { %15170 = vmatpush1.bf16.msra.mxu1 %v20715_v37  ;;  %15342 = vmatpush1.bf16.msra.mxu0 %v20718_v33  ;;  %v20781_v37 = vld [vmem:[#allocation25 + $0x3c8] ss:$24 sps:$4 sm:$0xff]   ;;  %v20786_v33 = vld [vmem:[#allocation25 + $0x3fc] ss:$24 sps:$4 sm:$0xff]  }
0x1c56   : > { %15182 = vmatprep.subr.bf16.mxu1 %v20723_v28  ;;  %v20789_v28 = vld [vmem:[#allocation25 + $0x42c] ss:$24 sps:$4 sm:$0xff]  }
0x1c58   : > { %15172 = vmatmul.mubr.bf16.vlgmr.msra.gmra.mrb[72].mxu1 %v23087_v20  ;;  %15344 = vmatmul.mubr.bf16.vlgmr.msra.gmra.mrb[120].mxu0 %v23087_v20 }
0x1c59   : > { %15183 = vmatpush1.bf16.msra.mxu1 %v20721_v47  ;;  %15214 = vmatprep.mubr.bf16.mxu1 %v23089_v45  ;;  %v20739_v45 = vld [vmem:[#allocation25 + $0x128] ss:$24 sps:$4 sm:$0xff]   ;;  %v20792_v47 = vld [vmem:[#allocation25 + $0x45c] ss:$24 sps:$4 sm:$0xff]  }
0x1c5a   : > { %15184 = vmatprep.subr.bf16.mxu1 %v20726_v62  ;;  %v20790_v62 = vld [vmem:[#allocation25 + $0x458] ss:$24 sps:$4 sm:$0xff]  }
0x1c5d   : > { %15185 = vmatpush1.bf16.msra.mxu1 %v20724_v0  ;;  %v20795_v0 = vld [vmem:[#allocation25 + $0x48c] ss:$24 sps:$4 sm:$0xff]  }
0x1c5e   : > { %15186 = vmatprep.subr.bf16.mxu1 %v20729_v42  ;;  %v20793_v42 = vld [vmem:[#allocation25 + $0x488] ss:$24 sps:$4 sm:$0xff]  }
0x1c61   : > { %15187 = vmatpush1.bf16.msra.mxu1 %v20727_v17  ;;  %v20798_v17 = vld [vmem:[#allocation25 + $0x4bc] ss:$24 sps:$4 sm:$0xff]  }
0x1c62   : > { %15188 = vmatprep.subr.bf16.mxu1 %v20732_v4  ;;  %v20796_v4 = vld [vmem:[#allocation25 + $0x4b8] ss:$24 sps:$4 sm:$0xff]  }
0x1c65   : > { %15189 = vmatpush1.bf16.msra.mxu1 %v20730_v32  ;;  %v20801_v32 = vld [vmem:[#allocation25 + $0x4ec] ss:$24 sps:$4 sm:$0xff]  }
0x1c66   : > { %15190 = vmatprep.subr.bf16.mxu1 %v20735_v53  ;;  %v20799_v53 = vld [vmem:[#allocation25 + $0x4e8] ss:$24 sps:$4 sm:$0xff]  }
0x1c69   : > { %15191 = vmatpush1.bf16.msra.mxu1 %v20733_v55  ;;  %v20804_v55 = vld [vmem:[#allocation25 + $0x51c] ss:$24 sps:$4 sm:$0xff]  }
0x1c6a   : > { %15192 = vmatprep.subr.bf16.mxu1 %v20738_v31  ;;  %v20802_v31 = vld [vmem:[#allocation25 + $0x518] ss:$24 sps:$4 sm:$0xff]  }
0x1c6d   : > { %15193 = vmatpush1.bf16.msra.mxu1 %v20736_v34  ;;  %v20807_v34 = vld [vmem:[#allocation25 + $0x54c] ss:$24 sps:$4 sm:$0xff]  }
0x1c6e   : > { %15194 = vmatprep.subr.bf16.mxu1 %v20741_v19  ;;  %v20805_v19 = vld [vmem:[#allocation25 + $0x548] ss:$24 sps:$4 sm:$0xff]  }
0x1c71   : > { %15195 = vmatpush1.bf16.msra.mxu1 %v20739_v45  ;;  %v20810_v45 = vld [vmem:[#allocation25 + $0x57c] ss:$24 sps:$4 sm:$0xff]  }
0x1c72   : > { %15196 = vmatprep.subr.bf16.mxu1 %v20744_v26  ;;  %v20808_v26 = vld [vmem:[#allocation25 + $0x578] ss:$24 sps:$4 sm:$0xff]  }
0x1c75   : > { %15197 = vmatpush1.bf16.msra.mxu1 %v20742_v46  ;;  %v20813_v46 = vld [vmem:[#allocation25 + $0x5ac] ss:$24 sps:$4 sm:$0xff]  }
0x1c76   : > { %15198 = vmatprep.subr.bf16.mxu1 %v20747_v16  ;;  %v20811_v16 = vld [vmem:[#allocation25 + $0x5a8] ss:$24 sps:$4 sm:$0xff]  }
0x1c79   : > { %15199 = vmatpush1.bf16.msra.mxu1 %v20745_v41  ;;  %v20816_v41 = vld [vmem:[#allocation25 + $0x5dc] ss:$24 sps:$4 sm:$0xff]  }
0x1c7a   : > { %15200 = vmatprep.subr.bf16.mxu1 %v20750_v51  ;;  %v20814_v51 = vld [vmem:[#allocation25 + $0x5d8] ss:$24 sps:$4 sm:$0xff]  }
0x1c7d   : > { %15201 = vmatpush1.bf16.msra.mxu1 %v20748_v2 }
0x1c7e   : > { %15202 = vmatprep.subr.bf16.mxu1 %v20753_v22 }
0x1c81   : > { %15203 = vmatpush1.bf16.msra.mxu1 %v20751_v59 }
0x1c82   : > { %15204 = vmatprep.subr.bf16.mxu1 %v20756_v57 }
0x1c85   : > { %15205 = vmatpush1.bf16.msra.mxu1 %v20754_v8 }
0x1c86   : > { %15206 = vmatprep.subr.bf16.mxu1 %v20759_v40 }
0x1c89   : > { %15207 = vmatpush1.bf16.msra.mxu1 %v20757_v58 }
0x1c8a   : > { %15208 = vmatprep.subr.bf16.mxu1 %v20762_v63 }
0x1c8d   : > { %15209 = vmatpush1.bf16.msra.mxu1 %v20760_v23  ;;  %v14104_v23 = vld [vmem:[#allocation26] sm:$0x3f] }
0x1c8e   : > { %15210 = vmatprep.subr.bf16.mxu1 %v20765_v3  ;;  %v14109_v3 = vrot.slane %v14104_v23, %v22136_v29 }
0x1c91   : > { %15211 = vmatpush1.bf16.msra.mxu1 %v20763_v13  ;;  %v14113_v13 = vrot.slane %v14104_v23, %v22139_v30 }
0x1c92   : > { %15212 = vmatprep.subr.bf16.mxu1 %v20768_v11 }
0x1c95   : > { %15213 = vmatpush1.bf16.msra.mxu1 %v20766_v7 }
0x1c96   : > { %15225 = vmatprep.subr.bf16.mxu1 %v20771_v43 }
0x1c98   : > { %15215 = vmatmul.mubr.bf16.vlgmr.msra.gmra.mrb[76].mxu1 %v23085_v1  ;;  %v20784_v1 = vld [vmem:[#allocation25 + $0x3f8] ss:$24 sps:$4 sm:$0xff]  }
0x1c99   : > { %15226 = vmatpush1.bf16.msra.mxu1 %v20769_v25  ;;  %15257 = vmatprep.mubr.bf16.mxu1 %v23091_v35  ;;  %v20787_v35 = vld [vmem:[#allocation25 + $0x428] ss:$24 sps:$4 sm:$0xff]  }
0x1c9a   : > { %15227 = vmatprep.subr.bf16.mxu1 %v20774_v61  ;;  %v14117_v61 = vrot.slane %v14104_v23, %v22152_v50 }
0x1c9d   : > { %15228 = vmatpush1.bf16.msra.mxu1 %v20772_v27 }
0x1c9e   : > { %15229 = vmatprep.subr.bf16.mxu1 %v20777_v5  ;;  %v14125_v5 = vrot.slane %v14104_v23, %v23364_v21 }
0x1ca1   : > { %15230 = vmatpush1.bf16.msra.mxu1 %v20775_v18 }
0x1ca2   : > { %15231 = vmatprep.subr.bf16.mxu1 %v20780_v60  ;;  %v14129_v60 = vrot.slane %v14104_v23, %v23365_v15 }
0x1ca5   : > { %15232 = vmatpush1.bf16.msra.mxu1 %v20778_v6 }
0x1ca6   : > { %15233 = vmatprep.subr.bf16.mxu1 %v20783_v12 }
0x1ca9   : > { %15234 = vmatpush1.bf16.msra.mxu1 %v20781_v37 }
0x1caa   : > { %15235 = vmatprep.subr.bf16.mxu1 %v20786_v33 }
0x1cad   : > { %15236 = vmatpush1.bf16.msra.mxu1 %v20784_v1 }
0x1cae   : > { %15237 = vmatprep.subr.bf16.mxu1 %v20789_v28 }
0x1cb1   : > { %15238 = vmatpush1.bf16.msra.mxu1 %v20787_v35 }
0x1cb2   : > { %15239 = vmatprep.subr.bf16.mxu1 %v20792_v47 }
0x1cb5   : > { %15240 = vmatpush1.bf16.msra.mxu1 %v20790_v62 }
0x1cb6   : > { %15241 = vmatprep.subr.bf16.mxu1 %v20795_v0 }
0x1cb9   : > { %15242 = vmatpush1.bf16.msra.mxu1 %v20793_v42 }
0x1cba   : > { %15243 = vmatprep.subr.bf16.mxu1 %v20798_v17 }
0x1cbd   : > { %15244 = vmatpush1.bf16.msra.mxu1 %v20796_v4 }
0x1cbe   : > { %15245 = vmatprep.subr.bf16.mxu1 %v20801_v32 }
0x1cc1   : > { %15246 = vmatpush1.bf16.msra.mxu1 %v20799_v53 }
0x1cc2   : > { %15247 = vmatprep.subr.bf16.mxu1 %v20804_v55 }
0x1cc5   : > { %15248 = vmatpush1.bf16.msra.mxu1 %v20802_v31 }
0x1cc6   : > { %15249 = vmatprep.subr.bf16.mxu1 %v20807_v34 }
0x1cc9   : > { %15250 = vmatpush1.bf16.msra.mxu1 %v20805_v19 }
0x1cca   : > { %15251 = vmatprep.subr.bf16.mxu1 %v20810_v45 }
0x1ccd   : > { %15252 = vmatpush1.bf16.msra.mxu1 %v20808_v26 }
0x1cce   : > { %15253 = vmatprep.subr.bf16.mxu1 %v20813_v46 }
0x1cd1   : > { %15254 = vmatpush1.bf16.msra.mxu1 %v20811_v16 }
0x1cd2   : > { %15255 = vmatprep.subr.bf16.mxu1 %v20816_v41 }
0x1cd5   : > { %15256 = vmatpush1.bf16.msra.mxu1 %v20814_v51 }
0x1cd8   : > { %15258 = vmatmul.mubr.bf16.vlgmr.msra.gmra.mrb[76].mxu1 %v23087_v20  ;;  %v14121_v20 = vrot.slane %v14104_v23, %v22156_v52 }
0x1d2b   : > { %v15173_v2 = vpop.f32.mrb[72].mxu1  ;;  %v15345_v22 = vpop.f32.mrb[120].mxu0 }
0x1d2c   : > { %v15175_v59 = vpop.f32.mrb[73].mxu1  ;;  %v15347_v57 = vpop.f32.mrb[121].mxu0  ;;  %v17848_v11 = vadd.f32 %v15173_v2, %v14109_v3  ;;  %v17856_v47 = vadd.f32 %v15345_v22, %v14125_v5 }
0x1d2d   : > { %v15177_v8 = vpop.f32.mrb[74].mxu1  ;;  %v15349_v40 = vpop.f32.mrb[122].mxu0  ;;  %v17849_v7 = vadd.f32 %v15175_v59, %v14113_v13  ;;  %v17857_v17 = vadd.f32 %v15347_v57, %v14129_v60 }
0x1d2e   : > { %v15179_v58 = vpop.f32.mrb[75].mxu1  ;;  %v15351_v63 = vpop.f32.mrb[123].mxu0  ;;  %v17850_v43 = vadd.f32 %v15177_v8, %v14109_v3  ;;  %v15354_v27 = vadd.f32 %v17848_v11, %v23045_v39  ;;  %v17858_v32 = vadd.f32 %v15349_v40, %v14125_v5  ;;  %v15358_v31 = vadd.f32 %v17856_v47, %v23061_v10 }
0x1d2f   : > { %v17851_v25 = vadd.f32 %v15179_v58, %v14113_v13  ;;  %v15355_v18 = vadd.f32 %v17849_v7, %v23043_v49  ;;  %v17859_v34 = vadd.f32 %v15351_v63, %v14129_v60 }
0x1d30   : > { %v15360_v12 = vadd.f32 %v17850_v43, %v23053_v38  ;;  %v15364_v26 = vadd.f32 %v17858_v32, %v23071_v44 }
0x1d31   : > { %v15361_v37 = vadd.f32 %v17851_v25, %v23051_v48  ;;  %v15368_v62 = vadd.f32 %v15355_v18, %v15354_v27 }
0x1d33   : > { %v15375_v53 = vadd.f32 %v15361_v37, %v15360_v12 }
0x1dab   : > { %v15259_v6 = vpop.f32.mrb[76].mxu1 }
0x1dac   : > { %v17852_v33 = vadd.f32 %v15259_v6, %v14117_v61  ;;  %v15261_v1 = vpop.f32.mrb[77].mxu1 }
0x1dad   : > { %v17853_v28 = vadd.f32 %v15261_v1, %v14121_v20  ;;  %v15263_v35 = vpop.f32.mrb[78].mxu1 }
0x1dae   : > { %v15356_v0 = vadd.f32 %v17852_v33, %v23047_v14  ;;  %v17854_v39 = vadd.f32 %v15263_v35, %v14117_v61  ;;  %v15265_v42 = vpop.f32.mrb[79].mxu1  ;;  %v15359_v14 = vadd.f32 %v17857_v17, %v23059_v54 }
0x1daf   : > { %v15357_v49 = vadd.f32 %v17853_v28, %v23067_v36  ;;  %v17855_v4 = vadd.f32 %v15265_v42, %v14121_v20  ;;  %v15365_v36 = vadd.f32 %v17859_v34, %v23069_v56 }
0x1db0   : > { %v15369_v55 = vadd.f32 %v15368_v62, %v15356_v0  ;;  %v15362_v38 = vadd.f32 %v17854_v39, %v23057_v9 }
0x1db1   : > { %v15363_v48 = vadd.f32 %v17855_v4, %v23055_v24 }
0x1db2   : > { %v15370_v19 = vadd.f32 %v15369_v55, %v15357_v49  ;;  %v15376_v45 = vadd.f32 %v15375_v53, %v15362_v38 }
0x1db4   : > { %v15377_v46 = vadd.f32 %v15376_v45, %v15363_v48  ;;  %v15371_v16 = vadd.f32 %v15370_v19, %v15358_v31 }
0x1db6   : > { %v15372_v41 = vadd.f32 %v15371_v16, %v15359_v14  ;;  %v15378_v51 = vadd.f32 %v15377_v46, %v15364_v26 }
0x1db8   : > { %15373 = vadd.xlane.f32.xlu0 %v15372_v41  ;;  %v15379_v2 = vadd.f32 %v15378_v51, %v15365_v36 }
0x1dba   : > { %15380 = vadd.xlane.f32.xlu1 %v15379_v2 }
0x1e45   : > { %v15374_v9 = vpop.xlane.xlu0 %15373 }
0x1e46   : > { %v15382_v24 = vmul.f32 0.0013020834, %v15374_v9 }
0x1e47   : > { %v15381_v22 = vpop.xlane.xlu1 %15380 }
0x1e48   : > { %v15383_v10 = vmul.f32 0.0013020834, %v15381_v22  ;;  %v15384_v59 = vsub.f32 %v15354_v27, %v15382_v24  ;;  %v15385_v57 = vsub.f32 %v15355_v18, %v15382_v24  ;;  %v15386_v8 = vsub.f32 %v15356_v0, %v15382_v24 }
0x1e49   : > { %v15387_v40 = vsub.f32 %v15357_v49, %v15382_v24  ;;  %v15388_v56 = vsub.f32 %v15358_v31, %v15382_v24  ;;  %v15389_v25 = vsub.f32 %v15359_v14, %v15382_v24 }
0x1e4a   : > { %v15396_v54 = vmul.f32 %v15384_v59, %v15384_v59  ;;  %v15397_v58 = vmul.f32 %v15385_v57, %v15385_v57  ;;  %v23123_v44 = vsub.f32 %v15360_v12, %v15383_v10  ;;  %v23125_v63 = vsub.f32 %v15361_v37, %v15383_v10 }
0x1e4b   : > { %v15398_v23 = vmul.f32 %v15386_v8, %v15386_v8  ;;  %v23127_v13 = vsub.f32 %v15362_v38, %v15383_v10  ;;  %v23129_v11 = vsub.f32 %v15363_v48, %v15383_v10  ;;  %v15399_v61 = vmul.f32 %v15387_v40, %v15387_v40  ;;  %v15366_v38 = vld [vmem:[#allocation28] sm:$0x3f]  ;;  %v15367_v48 = vld [vmem:[#allocation29] sm:$0x3f] }
0x1e4c   : > { %v15408_v3 = vadd.f32 %v15397_v58, %v15396_v54  ;;  %v15402_v7 = vmul.f32 %v23123_v44, %v23123_v44  ;;  %v15403_v43 = vmul.f32 %v23125_v63, %v23125_v63  ;;  %v15394_v27 = vsub.f32 %v15364_v26, %v15383_v10 }
0x1e4d   : > { %v15404_v5 = vmul.f32 %v23127_v13, %v23127_v13  ;;  %v15400_v60 = vmul.f32 %v15388_v56, %v15388_v56  ;;  %v15395_v12 = vsub.f32 %v15365_v36, %v15383_v10  ;;  %v15405_v37 = vmul.f32 %v23129_v11, %v23129_v11 }
0x1e4e   : > { %v15409_v20 = vadd.f32 %v15408_v3, %v15398_v23  ;;  %v15415_v18 = vadd.f32 %v15403_v43, %v15402_v7  ;;  %v15401_v1 = vmul.f32 %v15389_v25, %v15389_v25  ;;  %v15406_v35 = vmul.f32 %v15394_v27, %v15394_v27 }
0x1e4f   : > { %v15407_v0 = vmul.f32 %v15395_v12, %v15395_v12  ;;  %v15444_v31 = vrot.slane %v15366_v38, %v22136_v29  ;;  %v15448_v34 = vrot.slane %v15366_v38, %v22139_v30  ;;  %v15452_v19 = vrot.slane %v15366_v38, %v22152_v50 }
0x1e50   : > { %v15410_v6 = vadd.f32 %v15409_v20, %v15399_v61  ;;  %v15416_v33 = vadd.f32 %v15415_v18, %v15404_v5  ;;  %v15456_v45 = vrot.slane %v15366_v38, %v22156_v52  ;;  %v15460_v14 = vrot.slane %v15366_v38, %v23364_v21 }
0x1e51   : > { %v15464_v26 = vrot.slane %v15366_v38, %v23365_v15  ;;  %v15487_v16 = vrot.slane %v15367_v48, %v22136_v29  ;;  %v15491_v36 = vrot.slane %v15367_v48, %v22139_v30  ;;  %v15495_v41 = vrot.slane %v15367_v48, %v22152_v50 }
0x1e52   : > { %v15411_v28 = vadd.f32 %v15410_v6, %v15400_v60  ;;  %v15417_v47 = vadd.f32 %v15416_v33, %v15405_v37  ;;  %v15499_v51 = vrot.slane %v15367_v48, %v22156_v52  ;;  %v15503_v58 = vrot.slane %v15367_v48, %v23364_v21 }
0x1e53   : > { %v15507_v23 = vrot.slane %v15367_v48, %v23365_v15 }
0x1e54   : > { %v15412_v62 = vadd.f32 %v15411_v28, %v15401_v1  ;;  %v15418_v39 = vadd.f32 %v15417_v47, %v15406_v35 }
0x1e56   : > { %15413 = vadd.xlane.f32.xlu0 %v15412_v62  ;;  %v15419_v42 = vadd.f32 %v15418_v39, %v15407_v0 }
0x1e58   : > { %15420 = vadd.xlane.f32.xlu1 %v15419_v42 }
0x1ee3   : > { %v15414_v17 = vpop.xlane.xlu0 %15413 }
0x1ee4   : > { %v15422_v49 = vmul.f32 0.0013020834, %v15414_v17 }
0x1ee5   : > { %v15421_v32 = vpop.xlane.xlu1 %15420 }
0x1ee6   : > { %v15424_v4 = vadd.f32 1e-05, %v15422_v49  ;;  %v15423_v53 = vmul.f32 0.0013020834, %v15421_v32 }
0x1ee8   : > { %20873 = vrsqrt.f32 %v15424_v4  ;;  %v15425_v55 = vadd.f32 1e-05, %v15423_v53 }
0x1eea   : > { %20875 = vrsqrt.f32 %v15425_v55 }
0x1ef2   : > { %v20874_v46 = vpop.eup %20873 }
0x1ef3   : > { %v15428_v2 = vmul.f32 %v20874_v46, %v15384_v59  ;;  %v15429_v9 = vmul.f32 %v20874_v46, %v15385_v57  ;;  %v15430_v24 = vmul.f32 %v20874_v46, %v15386_v8  ;;  %v15431_v22 = vmul.f32 %v20874_v46, %v15387_v40 }
0x1ef4   : > { %v15432_v10 = vmul.f32 %v20874_v46, %v15388_v56  ;;  %v15433_v54 = vmul.f32 %v20874_v46, %v15389_v25  ;;  %v20876_v3 = vpop.eup %20875 }
0x1ef5   : > { %v15471_v7 = vmul.f32 %v15444_v31, %v15428_v2  ;;  %v15472_v29 = vmul.f32 %v15448_v34, %v15429_v9  ;;  %v15473_v30 = vmul.f32 %v15452_v19, %v15430_v24  ;;  %v15474_v43 = vmul.f32 %v15456_v45, %v15431_v22 }
0x1ef6   : > { %v15434_v50 = vmul.f32 %v20876_v3, %v23123_v44  ;;  %v15435_v52 = vmul.f32 %v20876_v3, %v23125_v63  ;;  %v15436_v59 = vmul.f32 %v20876_v3, %v23127_v13  ;;  %v15437_v57 = vmul.f32 %v20876_v3, %v23129_v11 }
0x1ef7   : > { %v15438_v8 = vmul.f32 %v20876_v3, %v15394_v27  ;;  %v15439_v40 = vmul.f32 %v20876_v3, %v15395_v12  ;;  %v15475_v56 = vmul.f32 %v15460_v14, %v15432_v10  ;;  %v15476_v21 = vmul.f32 %v15464_v26, %v15433_v54 }
0x1ef8   : > { %v15477_v15 = vmul.f32 %v15444_v31, %v15434_v50  ;;  %v15478_v25 = vmul.f32 %v15448_v34, %v15435_v52  ;;  %v15479_v61 = vmul.f32 %v15452_v19, %v15436_v59  ;;  %v15480_v20 = vmul.f32 %v15456_v45, %v15437_v57 }
0x1ef9   : > { %v15481_v5 = vmul.f32 %v15460_v14, %v15438_v8  ;;  %v15482_v18 = vmul.f32 %v15464_v26, %v15439_v40  ;;  %v15514_v44 = vadd.f32 %v15487_v16, %v15471_v7  ;;  %v15515_v60 = vadd.f32 %v15491_v36, %v15472_v29 }
0x1efa   : > { %v15516_v63 = vadd.f32 %v15495_v41, %v15473_v30  ;;  %v15517_v6 = vadd.f32 %v15499_v51, %v15474_v43  ;;  %v15518_v13 = vadd.f32 %v15503_v58, %v15475_v56  ;;  %v15519_v37 = vadd.f32 %v15507_v23, %v15476_v21 }
0x1efb   : > { %v15520_v11 = vadd.f32 %v15487_v16, %v15477_v15  ;;  %v15521_v27 = vadd.f32 %v15491_v36, %v15478_v25  ;;  %v15522_v12 = vadd.f32 %v15495_v41, %v15479_v61  ;;  %v15523_v33 = vadd.f32 %v15499_v51, %v15480_v20  ;;  %15526 = vst [vmem:[%s881_s13] sm:$0xff] %v15514_v44 }
0x1efc   : > { %15527 = vst [vmem:[%s881_s13 + $0x8] sm:$0xff] %v15515_v60  ;;  %v15524_v1 = vadd.f32 %v15503_v58, %v15481_v5  ;;  %v15525_v28 = vadd.f32 %v15507_v23, %v15482_v18  ;;  %15528 = vst [vmem:[%s881_s13 + $0x10] sm:$0xff] %v15516_v63 }
0x1efd   : > { %15529 = vst [vmem:[%s881_s13 + $0x18] sm:$0xff] %v15517_v6  ;;  %15530 = vst [vmem:[%s881_s13 + $0x20] sm:$0xff] %v15518_v13 }
0x1efe   : > { %15531 = vst [vmem:[%s881_s13 + $0x28] sm:$0xff] %v15519_v37  ;;  %15532 = vst [vmem:[%s881_s13 + $0x30] sm:$0xff] %v15520_v11 }
0x1eff   : > { %15533 = vst [vmem:[%s881_s13 + $0x38] sm:$0xff] %v15521_v27  ;;  %15534 = vst [vmem:[%s881_s13 + $0x40] sm:$0xff] %v15522_v12 }
0x1f00   : > { %15535 = vst [vmem:[%s881_s13 + $0x48] sm:$0xff] %v15523_v33  ;;  %15536 = vst [vmem:[%s881_s13 + $0x50] sm:$0xff] %v15524_v1 }
0x1f01   : > { %15537 = vst [vmem:[%s881_s13 + $0x58] sm:$0xff] %v15525_v28 }
0x1f02   : > { %21416 = shalt.err (!%p21413_p0)
}
0x1f03   : > { %s21417_s22 = scalar_lea.hbm %s23165_s25, 1536  ;;  %s21421_s7 = scalar_lea.hbm %s23374_s27, 3072 }
0x1f04   : > { %p21418_p6 = scmp.ne.s32.totalorder %s23165_s25, %s21417_s22  ;;  %p21422_p12 = scmp.lt.u32.totalorder %s23165_s25, %s23374_s27 }
0x1f05   : > { %p21423_p10 = scmp.lt.u32.totalorder %s21421_s7, %s21417_s22  ;;  %p21425_p3 = scmp.lt.u32.totalorder %s21417_s22, %s23165_s25 }
0x1f06   : > { %p21419_p5 = pnand %p21418_p6, %p23376_p4 }
0x1f07   : > { %p21424_p2 = por %p21423_p10, %p21422_p12 }
0x1f08   : > { %p21420_p9 = pneg %p21419_p5 }
0x1f09   : > { %p21426_p7 = por %p21425_p3, %p21424_p2 }
0x1f0b   : > { %p21427_p8 = pnand %p21426_p7, %p21420_p9 }
0x1f0d   : > { %21430 = shalt.err (!%p21427_p8)
}
0x1f0e   : > { %s21535_s5 = smov 768   ;;  %s21536_s13 = smov 48  }
0x1f0f   : > { %18116 = dma.vmem_to_hbm [thread:$0]  (%p23376_p4), %s23167_s23, 1536, %s23165_s25, %s23171_s2, %s21535_s5, %s21535_s5, %s21536_s13  }
0x1f10 PF: > { %s23377_s0 = sld [smem:[#allocation46_spill]]  ;;  %s23378_s30 = sld [smem:[#allocation43_spill]] }
0x1f11   : > { %s23379_s11 = sld [smem:[#allocation51_spill]] }
0x1f16   : > { %p18213_p11 = scmp.ge.s32.totalorder %s23377_s0, 2  ;;  %s15568_s24 = sand.u32 1, %s23378_s30  }
0x1f17   : > { %p23380_p13 = scmp.ne.s32.totalorder %s23379_s11, 0  ;;  %s15569_s21 = scalar_lea.sflag [#allocation4], %s15568_s24 }
0x1f19   : > { %p18174_p1 = pnand %p18213_p11, %p23380_p13 }
0x1f1b   : > { %21488 = dma.done.wait (!%p18174_p1), %s15569_s21, 1536  }
0x1f1c   : > { %21490 = vsyncadd (!%p18174_p1), %s15569_s21, 4294965760  ;;  %s23381_s24 = sld [smem:[#allocation48_spill]]  ;;  %s23382_s1 = sld [smem:[#allocation44_spill]] }
0x1f1d   : > { %s23383_s22 = sld [smem:[#allocation45_spill]]  ;;  %s23384_s23 = sld [smem:[#allocation49_spill]] }
0x1f22   : > { %p40_p0 = scmp.ge.s32.totalorder %s23381_s24, 4  }
0x1f24   :  { %42 = sbr.rel (!%p40_p0) target bundleno = 25 (0x19), region = 211 }
0x1f2b   :  { %15574 = vsyncpa [#allocation3], 1 }
0x1f2c   :  { %15576 = vsyncpa [#allocation3 + $0x1], 1 }
0x1f2d   :  { %15577 = vsyncpa [#allocation6], 1 }
0x1f2e   :  { %15578 = vsyncpa [#allocation9], 1 }
0x1f2f   :  { %15579 = vsyncpa [#allocation12], 1 }
0x1f30   :  { %15580 = vsyncpa [#allocation15], 1 }
0x1f31   :  { %15581 = vsyncpa [#allocation18], 1 }
0x1f32   :  { %15582 = vsyncpa [#allocation21], 1 }
0x1f33   :  { %15583 = vsyncpa [#allocation24], 1 }
0x1f34   :  { %15584 = vsyncpa [#allocation27], 1 }
0x1f35   :  { %15585 = vsyncpa [#allocation30], 1 }
0x1f36   :  { %15586 = vsyncpa [#allocation4], 1 }
0x1f37   :  { %15588 = vsyncpa [#allocation4 + $0x1], 1 }

</bundles_post_ra>
